<compile_context>
chip_gen: v7x
topology: tpu7x:2x2x1
jax: 0.10.0
libtpu: 0.0.40
codegen_flags: <defaults>
</compile_context>

<pallas_src>
import functools

import jax
import jax.numpy as jnp
from jax import lax
from jax.experimental import pallas as pl
from jax.experimental.pallas import tpu as pltpu


def _pick_batch_block(n):
    """Images per grid step: amortize per-step overhead but keep >=2 grid steps
    when possible so both v7x TensorCores get work under 'parallel' sharding."""
    for b in (8, 4, 2):
        if n % b == 0 and n // b >= 2:
            return b
    return 1


def _center_block_kernel(x_ref, mask_ref, w1_ref, b1_ref, w2_ref, b2_ref,
                         wu_ref, bu_ref, o_ref, col_ref, y_ref,
                         *, B, H, W, cin, cmid):
    """Fused CenterBlock forward for B images.

    x_ref   : [B, P2, Cin]        bf16  flat zero-padded NHWC input (halo=1 + tail)
    mask_ref: [B*M, 1]            f32   1.0 where the flat row is a valid (h,w)
    w1_ref  : [9*Cin, Cmid]       bf16  conv1 taps folded into K (BN folded)
    w2_ref  : [9*(Cin+Cmid),Cmid] bf16  conv2 taps folded into K (BN folded)
    wu_ref  : [9*Ct, 4*Cout]      bf16  convUp offset-major slab, parities on N
    o_ref   : [B*M, 4*Cout]       f32   lane-dense output (parity p=2a+b packed)
    col_ref : [B*M, 9*Ct]         bf16  shared im2col buffer (x | y1 | y2 groups)
    y_ref   : [B, P2, 2*Cmid]     bf16  flat zero-padded y1/y2 scratch
    """
    Wp = W + 2
    Lm = H * Wp                       # rows computed per image (incl. masked cols)
    P2 = y_ref.shape[1]
    shifts = tuple(kh * Wp + kw for kh in range(3) for kw in range(3))
    cx9 = 9 * cin
    cy9 = 9 * cmid

    maskv = mask_ref[...]             # [B*Lm, 1] f32

    # Only the halo rows of the padded y1/y2 scratch need zeroing each step;
    # the interior is fully overwritten below (grid steps stay independent).
    for b in range(B):
        y_ref[b, 0:Wp + 1, :] = jnp.zeros((Wp + 1, 2 * cmid), y_ref.dtype)
        y_ref[b, Wp + 1 + Lm:P2, :] = jnp.zeros((P2 - (Wp + 1 + Lm), 2 * cmid),
                                                y_ref.dtype)

    # ---- im2col (flat-shift) of x: contiguous row-slices, no strided reshape ----
    for b in range(B):
        for t, sh in enumerate(shifts):
            col_ref[b * Lm:(b + 1) * Lm, t * cin:(t + 1) * cin] = \
                x_ref[b, sh:sh + Lm, :]

    # ---- conv1: one wide-K matmul + folded BN + ReLU ----------------------------
    acc1 = jnp.dot(col_ref[:, 0:cx9], w1_ref[...],
                   preferred_element_type=jnp.float32)
    y1 = (jnp.maximum(acc1 + b1_ref[...], 0.0) * maskv).astype(y_ref.dtype)
    for b in range(B):
        y_ref[b, Wp + 1:Wp + 1 + Lm, 0:cmid] = y1[b * Lm:(b + 1) * Lm, :]

    # ---- im2col of y1 -----------------------------------------------------------
    for b in range(B):
        for t, sh in enumerate(shifts):
            col_ref[b * Lm:(b + 1) * Lm, cx9 + t * cmid:cx9 + (t + 1) * cmid] = \
                y_ref[b, sh:sh + Lm, 0:cmid]

    # ---- conv2 on cat([x, y1]): one wide-K matmul + folded BN + ReLU ------------
    acc2 = jnp.dot(col_ref[:, 0:cx9 + cy9], w2_ref[...],
                   preferred_element_type=jnp.float32)
    y2 = (jnp.maximum(acc2 + b2_ref[...], 0.0) * maskv).astype(y_ref.dtype)
    for b in range(B):
        y_ref[b, Wp + 1:Wp + 1 + Lm, cmid:2 * cmid] = y2[b * Lm:(b + 1) * Lm, :]

    # ---- im2col of y2 -----------------------------------------------------------
    for b in range(B):
        for t, sh in enumerate(shifts):
            col_ref[b * Lm:(b + 1) * Lm,
                    cx9 + cy9 + t * cmid:cx9 + cy9 + (t + 1) * cmid] = \
                y_ref[b, sh:sh + Lm, cmid:2 * cmid]

    # ---- convUp on cat([x,y1,y2]): one matmul, parities packed on lanes ---------
    accu = jnp.dot(col_ref[...], wu_ref[...], preferred_element_type=jnp.float32)
    o_ref[...] = jnp.maximum(accu + bu_ref[...], 0.0)


def _center_block_call(xp, maskf, w1s, b1, w2s, b2, wus, bu4, *, B, H, W):
    N, P2, cin = xp.shape
    cmid = b1.shape[1]
    cout4 = wus.shape[1]
    ct = cin + 2 * cmid
    Wp = W + 2
    Lm = H * Wp
    kernel = functools.partial(_center_block_kernel, B=B, H=H, W=W,
                               cin=cin, cmid=cmid)
    return pl.pallas_call(
        kernel,
        out_shape=jax.ShapeDtypeStruct((N * Lm, cout4), jnp.float32),
        grid_spec=pltpu.PrefetchScalarGridSpec(
            num_scalar_prefetch=0,
            grid=(N // B,),
            in_specs=[
                pl.BlockSpec((B, P2, cin), lambda i: (i, 0, 0)),
                pl.BlockSpec((B * Lm, 1), lambda i: (0, 0)),
                pl.BlockSpec(w1s.shape, lambda i: (0, 0)),
                pl.BlockSpec(b1.shape, lambda i: (0, 0)),
                pl.BlockSpec(w2s.shape, lambda i: (0, 0)),
                pl.BlockSpec(b2.shape, lambda i: (0, 0)),
                pl.BlockSpec(wus.shape, lambda i: (0, 0)),
                pl.BlockSpec(bu4.shape, lambda i: (0, 0)),
            ],
            out_specs=pl.BlockSpec((B * Lm, cout4), lambda i: (i, 0)),
            scratch_shapes=[
                pltpu.VMEM((B * Lm, 9 * ct), jnp.bfloat16),     # shared im2col
                pltpu.VMEM((B, P2, 2 * cmid), jnp.bfloat16),    # padded y1/y2
            ],
        ),
        compiler_params=pltpu.CompilerParams(
            dimension_semantics=("parallel",)),
    )(xp, maskf, w1s, b1, w2s, b2, wus, bu4)


def _build_up_slab(wut, cin, cmid, cout):
    """Build the [9*Ct, 4*Cout] ConvTranspose2d(k=4,s=2,p=1) slab.

    Rows are grouped (x taps | y1 taps | y2 taps), tap-major within a group, to
    match the in-kernel im2col layout; columns pack the 4 output parities p=2a+b.
    For window offset (oh,ow) and parity (a,b) that reads it, the contributing
    deconv tap is (kh,kw) = (3+a-2*oh, 3+b-2*ow); other (offset,parity) pairs are 0.
    """
    ct = cin + 2 * cmid
    grp_size = (cin, cmid, cmid)
    grp_row0 = (0, 9 * cin, 9 * (cin + cmid))
    grp_ch0 = (0, cin, cin + cmid)
    slab = jnp.zeros((9 * ct, 4 * cout), jnp.float32)
    for oh in range(3):
        for ow in range(3):
            t = oh * 3 + ow
            for a in range(2):
                if oh - a not in (0, 1):
                    continue
                for b in range(2):
                    if ow - b not in (0, 1):
                        continue
                    kh = 3 + a - 2 * oh
                    kw = 3 + b - 2 * ow
                    p = 2 * a + b
                    for g in range(3):
                        r0 = grp_row0[g] + t * grp_size[g]
                        c0 = grp_ch0[g]
                        slab = slab.at[r0:r0 + grp_size[g],
                                       p * cout:(p + 1) * cout].set(
                            wut[kh * 4 + kw, c0:c0 + grp_size[g], :])
    return slab


class PallasCenterBlock:
    """Pallas port of CenterBlock.forward (is_deconv=True), eval-mode BN."""

    def __init__(self, in_channels, middle_channels, out_channels, key,
                 is_deconv=True, eps=1e-5):
        if not is_deconv:
            raise NotImplementedError("is_deconv=False branch not implemented")
        self.cin, self.cmid, self.cout = in_channels, middle_channels, out_channels
        self.eps = eps
        cin, cmid, cout = in_channels, middle_channels, out_channels
        c2_in = cin + cmid
        cu_in = cin + 2 * cmid

        ks = jax.random.split(key, 14)
        s = 0.05
        p = {
            'w1':  jax.random.normal(ks[0], (cmid, cin, 3, 3), jnp.float32) * s,
            'cb1': jax.random.normal(ks[1], (cmid,), jnp.float32) * s,
            'g1':  1.0 + 0.1 * jax.random.normal(ks[2], (cmid,), jnp.float32),
            'be1': 0.1 * jax.random.normal(ks[3], (cmid,), jnp.float32),
            'm1':  0.1 * jax.random.normal(ks[4], (cmid,), jnp.float32),
            'v1':  1.0 + 0.1 * jnp.abs(jax.random.normal(ks[5], (cmid,), jnp.float32)),
            'w2':  jax.random.normal(ks[6], (cmid, c2_in, 3, 3), jnp.float32) * s,
            'cb2': jax.random.normal(ks[7], (cmid,), jnp.float32) * s,
            'g2':  1.0 + 0.1 * jax.random.normal(ks[8], (cmid,), jnp.float32),
            'be2': 0.1 * jax.random.normal(ks[9], (cmid,), jnp.float32),
            'm2':  0.1 * jax.random.normal(ks[10], (cmid,), jnp.float32),
            'v2':  1.0 + 0.1 * jnp.abs(jax.random.normal(ks[11], (cmid,), jnp.float32)),
            'wu':  jax.random.normal(ks[12], (cu_in, cout, 4, 4), jnp.float32) * s,
            'bu':  jax.random.normal(ks[13], (cout,), jnp.float32) * s,
        }
        self.p = p

        def fold(w, b, g, be, m, v):
            scale = g * lax.rsqrt(v + eps)
            return w * scale[:, None, None, None], (b - m) * scale + be

        w1f, b1f = fold(p['w1'], p['cb1'], p['g1'], p['be1'], p['m1'], p['v1'])
        w2f, b2f = fold(p['w2'], p['cb2'], p['g2'], p['be2'], p['m2'], p['v2'])

        # Kernel-ready weight slabs: taps folded into the matmul K dimension,
        # channel-grouped (x | y1 | y2) to match the shared im2col buffer.
        self.w1s = jnp.transpose(w1f, (2, 3, 1, 0)).reshape(
            9 * cin, cmid).astype(jnp.bfloat16)
        w2x = jnp.transpose(w2f[:, :cin], (2, 3, 1, 0)).reshape(9 * cin, cmid)
        w2y = jnp.transpose(w2f[:, cin:], (2, 3, 1, 0)).reshape(9 * cmid, cmid)
        self.w2s = jnp.concatenate([w2x, w2y], axis=0).astype(jnp.bfloat16)
        wut = jnp.transpose(p['wu'], (2, 3, 0, 1)).reshape(16, cu_in, cout)
        self.wus = _build_up_slab(wut, cin, cmid, cout).astype(jnp.bfloat16)
        self.b1 = b1f.reshape(1, cmid).astype(jnp.float32)
        self.b2 = b2f.reshape(1, cmid).astype(jnp.float32)
        self.bu4 = jnp.tile(p['bu'].reshape(1, cout), (1, 4)).astype(jnp.float32)

    def __call__(self, x):
        """x: NCHW [N, Cin, H, W] -> NCHW [N, Cout, 2H, 2W]."""
        N, _, H, W = x.shape
        Hp, Wp = H + 2, W + 2
        Lm = H * Wp
        P2 = ((2 * Wp + 2 + Lm + 7) // 8) * 8     # flat padded length (+ tail)
        B = _pick_batch_block(N)

        xn = jnp.transpose(x, (0, 2, 3, 1)).astype(jnp.bfloat16)
        xp = jnp.pad(xn, ((0, 0), (1, 1), (1, 1), (0, 0))).reshape(N, Hp * Wp, self.cin)
        xp = jnp.pad(xp, ((0, 0), (0, P2 - Hp * Wp), (0, 0)))
        mask = (jnp.arange(Lm, dtype=jnp.int32) % Wp < W).astype(jnp.float32)
        maskf = jnp.tile(mask.reshape(Lm, 1), (B, 1))

        out_k = _center_block_call(xp, maskf, self.w1s, self.b1, self.w2s,
                                   self.b2, self.wus, self.bu4, B=B, H=H, W=W)
        cout = self.cout
        out = out_k.reshape(N, H, Wp, 2, 2, cout)[:, :, :W]   # drop masked columns
        out = jnp.transpose(out, (0, 5, 1, 3, 2, 4))          # [n, c, h, a, w, b]
        return out.reshape(N, cout, 2 * H, 2 * W)

    def reference(self, x):
        """Pure-XLA reference mirroring the PyTorch module (eval-mode BN)."""
        p, eps = self.p, self.eps
        dn = ('NCHW', 'OIHW', 'NCHW')
        hp = lax.Precision.HIGHEST

        def conv_bn_relu(z, w, b, g, be, m, v):
            y = lax.conv_general_dilated(z, w, (1, 1), ((1, 1), (1, 1)),
                                         dimension_numbers=dn, precision=hp)
            y = y + b[None, :, None, None]
            y = (g[None, :, None, None] * (y - m[None, :, None, None]) *
                 lax.rsqrt(v + eps)[None, :, None, None] + be[None, :, None, None])
            return jax.nn.relu(y)

        y1 = conv_bn_relu(x, p['w1'], p['cb1'], p['g1'], p['be1'], p['m1'], p['v1'])
        y2 = conv_bn_relu(jnp.concatenate([x, y1], axis=1),
                          p['w2'], p['cb2'], p['g2'], p['be2'], p['m2'], p['v2'])
        zc = jnp.concatenate([x, y1, y2], axis=1)
        # ConvTranspose2d(k=4, s=2, p=1) == dilated correlation with flipped kernel.
        w_conv = jnp.transpose(p['wu'], (1, 0, 2, 3))[:, :, ::-1, ::-1]
        up = lax.conv_general_dilated(zc, w_conv, (1, 1), ((2, 2), (2, 2)),
                                      lhs_dilation=(2, 2), dimension_numbers=dn,
                                      precision=hp)
        return jax.nn.relu(up + p['bu'][None, :, None, None])


if __name__ == "__main__":
    key = jax.random.PRNGKey(0)
    k_x, k_p = jax.random.split(key)

    N, Cin, H, W = 2, 32, 16, 16
    Cmid, Cout = 32, 32

    x = jax.random.normal(k_x, (N, Cin, H, W), jnp.float32)
    block = PallasCenterBlock(Cin, Cmid, Cout, key=k_p, is_deconv=True)

    fwd = jax.jit(block.__call__)
    out = jax.block_until_ready(fwd(x))
    assert out.shape == (N, Cout, 2 * H, 2 * W), out.shape

    ref = jax.block_until_ready(block.reference(x))
    err = float(jnp.max(jnp.abs(out - ref)))
    # bf16 MXU inputs (f32 accumulation) vs f32 reference -> slightly looser tol.
    tol = 3e-2 * (1.0 + float(jnp.max(jnp.abs(ref))))
    assert err <= tol, f"max abs err {err} > tol {tol}"

    print("KERNEL_OK")
</pallas_src>

<mosaic_0001>
module attributes {stable_mosaic.version = 11 : i64} {
  func.func @_center_block_kernel(%arg0: i32, %arg1: memref<1x328x32xbf16, #tpu.memory_space<vmem>>, %arg2: memref<288x1xf32, #tpu.memory_space<vmem>>, %arg3: memref<288x32xbf16, #tpu.memory_space<vmem>>, %arg4: memref<1x32xf32, #tpu.memory_space<vmem>>, %arg5: memref<576x32xbf16, #tpu.memory_space<vmem>>, %arg6: memref<1x32xf32, #tpu.memory_space<vmem>>, %arg7: memref<864x128xbf16, #tpu.memory_space<vmem>>, %arg8: memref<1x128xf32, #tpu.memory_space<vmem>>, %arg9: memref<288x128xf32, #tpu.memory_space<vmem>>, %arg10: memref<288x864xbf16, #tpu.memory_space<vmem>>, %arg11: memref<1x328x64xbf16, #tpu.memory_space<vmem>>) attributes {dimension_semantics = [#tpu.dimension_semantics<parallel>], iteration_bounds = array<i64: 2>, scalar_prefetch = 0 : i64, scratch_operands = 2 : i64, tpu.core_type = #tpu.core_type<tc>, window_params = [{transform_indices = @transform_0, window_bounds = array<i64: 1, 328, 32>}, {pipeline_mode = #tpu.pipeline_mode<synchronous>, transform_indices = @transform_1, window_bounds = array<i64: 288, 1>}, {pipeline_mode = #tpu.pipeline_mode<synchronous>, transform_indices = @transform_2, window_bounds = array<i64: 288, 32>}, {pipeline_mode = #tpu.pipeline_mode<synchronous>, transform_indices = @transform_3, window_bounds = array<i64: 1, 32>}, {pipeline_mode = #tpu.pipeline_mode<synchronous>, transform_indices = @transform_4, window_bounds = array<i64: 576, 32>}, {pipeline_mode = #tpu.pipeline_mode<synchronous>, transform_indices = @transform_5, window_bounds = array<i64: 1, 32>}, {pipeline_mode = #tpu.pipeline_mode<synchronous>, transform_indices = @transform_6, window_bounds = array<i64: 864, 128>}, {pipeline_mode = #tpu.pipeline_mode<synchronous>, transform_indices = @transform_7, window_bounds = array<i64: 1, 128>}, {transform_indices = @transform_8, window_bounds = array<i64: 288, 128>}]} {
    %c0 = arith.constant 0 : index
    %c0_0 = arith.constant 0 : index
    %0 = vector.load %arg2[%c0, %c0_0] : memref<288x1xf32, #tpu.memory_space<vmem>>, vector<288x1xf32>
    %cst = arith.constant 0.000000e+00 : bf16
    %1 = vector.broadcast %cst : bf16 to vector<19x64xbf16>
    %c0_1 = arith.constant 0 : index
    %c0_2 = arith.constant 0 : index
    %c0_3 = arith.constant 0 : index
    %2 = vector.load %arg11[%c0_1, %c0_2, %c0_3] : memref<1x328x64xbf16, #tpu.memory_space<vmem>>, vector<1x19x64xbf16>
    %3 = vector.shape_cast %2 : vector<1x19x64xbf16> to vector<19x64xbf16>
    %4 = vector.shape_cast %1 : vector<19x64xbf16> to vector<1x19x64xbf16>
    tpu.vector_store %arg11[%c0_1, %c0_2, %c0_3], %4 {strides = array<i32>} : memref<1x328x64xbf16, #tpu.memory_space<vmem>>, vector<1x19x64xbf16>,
    %cst_4 = arith.constant 0.000000e+00 : bf16
    %5 = vector.broadcast %cst_4 : bf16 to vector<21x64xbf16>
    %c0_5 = arith.constant 0 : index
    %c307 = arith.constant 307 : index
    %c0_6 = arith.constant 0 : index
    %6 = vector.load %arg11[%c0_5, %c307, %c0_6] : memref<1x328x64xbf16, #tpu.memory_space<vmem>>, vector<1x21x64xbf16>
    %7 = vector.shape_cast %6 : vector<1x21x64xbf16> to vector<21x64xbf16>
    %8 = vector.shape_cast %5 : vector<21x64xbf16> to vector<1x21x64xbf16>
    tpu.vector_store %arg11[%c0_5, %c307, %c0_6], %8 {strides = array<i32>} : memref<1x328x64xbf16, #tpu.memory_space<vmem>>, vector<1x21x64xbf16>,
    %c0_7 = arith.constant 0 : index
    %c0_8 = arith.constant 0 : index
    %c0_9 = arith.constant 0 : index
    %9 = vector.load %arg1[%c0_7, %c0_8, %c0_9] : memref<1x328x32xbf16, #tpu.memory_space<vmem>>, vector<1x288x32xbf16>
    %10 = vector.shape_cast %9 : vector<1x288x32xbf16> to vector<288x32xbf16>
    %c0_10 = arith.constant 0 : index
    %c0_11 = arith.constant 0 : index
    %11 = vector.load %arg10[%c0_10, %c0_11] : memref<288x864xbf16, #tpu.memory_space<vmem>>, vector<288x32xbf16>
    tpu.vector_store %arg10[%c0_10, %c0_11], %10 {strides = array<i32>} : memref<288x864xbf16, #tpu.memory_space<vmem>>, vector<288x32xbf16>,
    %c0_12 = arith.constant 0 : index
    %c1 = arith.constant 1 : index
    %c0_13 = arith.constant 0 : index
    %12 = vector.load %arg1[%c0_12, %c1, %c0_13] : memref<1x328x32xbf16, #tpu.memory_space<vmem>>, vector<1x288x32xbf16>
    %13 = vector.shape_cast %12 : vector<1x288x32xbf16> to vector<288x32xbf16>
    %c0_14 = arith.constant 0 : index
    %c32 = arith.constant 32 : index
    %14 = vector.load %arg10[%c0_14, %c32] : memref<288x864xbf16, #tpu.memory_space<vmem>>, vector<288x32xbf16>
    tpu.vector_store %arg10[%c0_14, %c32], %13 {strides = array<i32>} : memref<288x864xbf16, #tpu.memory_space<vmem>>, vector<288x32xbf16>,
    %c0_15 = arith.constant 0 : index
    %c2 = arith.constant 2 : index
    %c0_16 = arith.constant 0 : index
    %15 = vector.load %arg1[%c0_15, %c2, %c0_16] : memref<1x328x32xbf16, #tpu.memory_space<vmem>>, vector<1x288x32xbf16>
    %16 = vector.shape_cast %15 : vector<1x288x32xbf16> to vector<288x32xbf16>
    %c0_17 = arith.constant 0 : index
    %c64 = arith.constant 64 : index
    %17 = vector.load %arg10[%c0_17, %c64] : memref<288x864xbf16, #tpu.memory_space<vmem>>, vector<288x32xbf16>
    tpu.vector_store %arg10[%c0_17, %c64], %16 {strides = array<i32>} : memref<288x864xbf16, #tpu.memory_space<vmem>>, vector<288x32xbf16>,
    %c0_18 = arith.constant 0 : index
    %c18 = arith.constant 18 : index
    %c0_19 = arith.constant 0 : index
    %18 = vector.load %arg1[%c0_18, %c18, %c0_19] : memref<1x328x32xbf16, #tpu.memory_space<vmem>>, vector<1x288x32xbf16>
    %19 = vector.shape_cast %18 : vector<1x288x32xbf16> to vector<288x32xbf16>
    %c0_20 = arith.constant 0 : index
    %c96 = arith.constant 96 : index
    %20 = vector.load %arg10[%c0_20, %c96] : memref<288x864xbf16, #tpu.memory_space<vmem>>, vector<288x32xbf16>
    tpu.vector_store %arg10[%c0_20, %c96], %19 {strides = array<i32>} : memref<288x864xbf16, #tpu.memory_space<vmem>>, vector<288x32xbf16>,
    %c0_21 = arith.constant 0 : index
    %c19 = arith.constant 19 : index
    %c0_22 = arith.constant 0 : index
    %21 = vector.load %arg1[%c0_21, %c19, %c0_22] : memref<1x328x32xbf16, #tpu.memory_space<vmem>>, vector<1x288x32xbf16>
    %22 = vector.shape_cast %21 : vector<1x288x32xbf16> to vector<288x32xbf16>
    %c0_23 = arith.constant 0 : index
    %c128 = arith.constant 128 : index
    %23 = vector.load %arg10[%c0_23, %c128] : memref<288x864xbf16, #tpu.memory_space<vmem>>, vector<288x32xbf16>
    tpu.vector_store %arg10[%c0_23, %c128], %22 {strides = array<i32>} : memref<288x864xbf16, #tpu.memory_space<vmem>>, vector<288x32xbf16>,
    %c0_24 = arith.constant 0 : index
    %c20 = arith.constant 20 : index
    %c0_25 = arith.constant 0 : index
    %24 = vector.load %arg1[%c0_24, %c20, %c0_25] : memref<1x328x32xbf16, #tpu.memory_space<vmem>>, vector<1x288x32xbf16>
    %25 = vector.shape_cast %24 : vector<1x288x32xbf16> to vector<288x32xbf16>
    %c0_26 = arith.constant 0 : index
    %c160 = arith.constant 160 : index
    %26 = vector.load %arg10[%c0_26, %c160] : memref<288x864xbf16, #tpu.memory_space<vmem>>, vector<288x32xbf16>
    tpu.vector_store %arg10[%c0_26, %c160], %25 {strides = array<i32>} : memref<288x864xbf16, #tpu.memory_space<vmem>>, vector<288x32xbf16>,
    %c0_27 = arith.constant 0 : index
    %c36 = arith.constant 36 : index
    %c0_28 = arith.constant 0 : index
    %27 = vector.load %arg1[%c0_27, %c36, %c0_28] : memref<1x328x32xbf16, #tpu.memory_space<vmem>>, vector<1x288x32xbf16>
    %28 = vector.shape_cast %27 : vector<1x288x32xbf16> to vector<288x32xbf16>
    %c0_29 = arith.constant 0 : index
    %c192 = arith.constant 192 : index
    %29 = vector.load %arg10[%c0_29, %c192] : memref<288x864xbf16, #tpu.memory_space<vmem>>, vector<288x32xbf16>
    tpu.vector_store %arg10[%c0_29, %c192], %28 {strides = array<i32>} : memref<288x864xbf16, #tpu.memory_space<vmem>>, vector<288x32xbf16>,
    %c0_30 = arith.constant 0 : index
    %c37 = arith.constant 37 : index
    %c0_31 = arith.constant 0 : index
    %30 = vector.load %arg1[%c0_30, %c37, %c0_31] : memref<1x328x32xbf16, #tpu.memory_space<vmem>>, vector<1x288x32xbf16>
    %31 = vector.shape_cast %30 : vector<1x288x32xbf16> to vector<288x32xbf16>
    %c0_32 = arith.constant 0 : index
    %c224 = arith.constant 224 : index
    %32 = vector.load %arg10[%c0_32, %c224] : memref<288x864xbf16, #tpu.memory_space<vmem>>, vector<288x32xbf16>
    tpu.vector_store %arg10[%c0_32, %c224], %31 {strides = array<i32>} : memref<288x864xbf16, #tpu.memory_space<vmem>>, vector<288x32xbf16>,
    %c0_33 = arith.constant 0 : index
    %c38 = arith.constant 38 : index
    %c0_34 = arith.constant 0 : index
    %33 = vector.load %arg1[%c0_33, %c38, %c0_34] : memref<1x328x32xbf16, #tpu.memory_space<vmem>>, vector<1x288x32xbf16>
    %34 = vector.shape_cast %33 : vector<1x288x32xbf16> to vector<288x32xbf16>
    %c0_35 = arith.constant 0 : index
    %c256 = arith.constant 256 : index
    %35 = vector.load %arg10[%c0_35, %c256] : memref<288x864xbf16, #tpu.memory_space<vmem>>, vector<288x32xbf16>
    tpu.vector_store %arg10[%c0_35, %c256], %34 {strides = array<i32>} : memref<288x864xbf16, #tpu.memory_space<vmem>>, vector<288x32xbf16>,
    %c0_36 = arith.constant 0 : index
    %c0_37 = arith.constant 0 : index
    %36 = vector.load %arg10[%c0_36, %c0_37] : memref<288x864xbf16, #tpu.memory_space<vmem>>, vector<288x288xbf16>
    %c0_38 = arith.constant 0 : index
    %c0_39 = arith.constant 0 : index
    %37 = vector.load %arg3[%c0_38, %c0_39] : memref<288x32xbf16, #tpu.memory_space<vmem>>, vector<288x32xbf16>
    %cst_40 = arith.constant dense<0.000000e+00> : vector<288x32xf32>
    %38 = tpu.matmul %36, %37, %cst_40 {dimension_numbers = #tpu.dot_dimension_numbers<[1], [0], [0], [1], [0, 0, 1, 1], [], []>} : vector<288x288xbf16>, vector<288x32xbf16>, vector<288x32xf32> -> vector<288x32xf32>
    %c0_41 = arith.constant 0 : index
    %c0_42 = arith.constant 0 : index
    %39 = vector.load %arg4[%c0_41, %c0_42] : memref<1x32xf32, #tpu.memory_space<vmem>>, vector<1x32xf32>
    %40 = vector.broadcast %39 : vector<1x32xf32> to vector<288x32xf32>
    %41 = arith.addf %38, %40 : vector<288x32xf32>
    %cst_43 = arith.constant 0.000000e+00 : f32
    %42 = vector.broadcast %cst_43 : f32 to vector<288x32xf32>
    %43 = arith.maximumf %41, %42 : vector<288x32xf32>
    %44 = vector.broadcast %0 : vector<288x1xf32> to vector<288x32xf32>
    %45 = arith.mulf %43, %44 : vector<288x32xf32>
    %46 = arith.truncf %45 : vector<288x32xf32> to vector<288x32xbf16>
    %c0_44 = arith.constant 0 : index
    %c19_45 = arith.constant 19 : index
    %c0_46 = arith.constant 0 : index
    %47 = vector.load %arg11[%c0_44, %c19_45, %c0_46] : memref<1x328x64xbf16, #tpu.memory_space<vmem>>, vector<1x288x32xbf16>
    %48 = vector.shape_cast %47 : vector<1x288x32xbf16> to vector<288x32xbf16>
    %49 = vector.shape_cast %46 : vector<288x32xbf16> to vector<1x288x32xbf16>
    tpu.vector_store %arg11[%c0_44, %c19_45, %c0_46], %49 {strides = array<i32>} : memref<1x328x64xbf16, #tpu.memory_space<vmem>>, vector<1x288x32xbf16>,
    %c0_47 = arith.constant 0 : index
    %c0_48 = arith.constant 0 : index
    %c0_49 = arith.constant 0 : index
    %50 = vector.load %arg11[%c0_47, %c0_48, %c0_49] : memref<1x328x64xbf16, #tpu.memory_space<vmem>>, vector<1x288x32xbf16>
    %51 = vector.shape_cast %50 : vector<1x288x32xbf16> to vector<288x32xbf16>
    %c0_50 = arith.constant 0 : index
    %c288 = arith.constant 288 : index
    %52 = vector.load %arg10[%c0_50, %c288] : memref<288x864xbf16, #tpu.memory_space<vmem>>, vector<288x32xbf16>
    tpu.vector_store %arg10[%c0_50, %c288], %51 {strides = array<i32>} : memref<288x864xbf16, #tpu.memory_space<vmem>>, vector<288x32xbf16>,
    %c0_51 = arith.constant 0 : index
    %c1_52 = arith.constant 1 : index
    %c0_53 = arith.constant 0 : index
    %53 = vector.load %arg11[%c0_51, %c1_52, %c0_53] : memref<1x328x64xbf16, #tpu.memory_space<vmem>>, vector<1x288x32xbf16>
    %54 = vector.shape_cast %53 : vector<1x288x32xbf16> to vector<288x32xbf16>
    %c0_54 = arith.constant 0 : index
    %c320 = arith.constant 320 : index
    %55 = vector.load %arg10[%c0_54, %c320] : memref<288x864xbf16, #tpu.memory_space<vmem>>, vector<288x32xbf16>
    tpu.vector_store %arg10[%c0_54, %c320], %54 {strides = array<i32>} : memref<288x864xbf16, #tpu.memory_space<vmem>>, vector<288x32xbf16>,
    %c0_55 = arith.constant 0 : index
    %c2_56 = arith.constant 2 : index
    %c0_57 = arith.constant 0 : index
    %56 = vector.load %arg11[%c0_55, %c2_56, %c0_57] : memref<1x328x64xbf16, #tpu.memory_space<vmem>>, vector<1x288x32xbf16>
    %57 = vector.shape_cast %56 : vector<1x288x32xbf16> to vector<288x32xbf16>
    %c0_58 = arith.constant 0 : index
    %c352 = arith.constant 352 : index
    %58 = vector.load %arg10[%c0_58, %c352] : memref<288x864xbf16, #tpu.memory_space<vmem>>, vector<288x32xbf16>
    tpu.vector_store %arg10[%c0_58, %c352], %57 {strides = array<i32>} : memref<288x864xbf16, #tpu.memory_space<vmem>>, vector<288x32xbf16>,
    %c0_59 = arith.constant 0 : index
    %c18_60 = arith.constant 18 : index
    %c0_61 = arith.constant 0 : index
    %59 = vector.load %arg11[%c0_59, %c18_60, %c0_61] : memref<1x328x64xbf16, #tpu.memory_space<vmem>>, vector<1x288x32xbf16>
    %60 = vector.shape_cast %59 : vector<1x288x32xbf16> to vector<288x32xbf16>
    %c0_62 = arith.constant 0 : index
    %c384 = arith.constant 384 : index
    %61 = vector.load %arg10[%c0_62, %c384] : memref<288x864xbf16, #tpu.memory_space<vmem>>, vector<288x32xbf16>
    tpu.vector_store %arg10[%c0_62, %c384], %60 {strides = array<i32>} : memref<288x864xbf16, #tpu.memory_space<vmem>>, vector<288x32xbf16>,
    %c0_63 = arith.constant 0 : index
    %c19_64 = arith.constant 19 : index
    %c0_65 = arith.constant 0 : index
    %62 = vector.load %arg11[%c0_63, %c19_64, %c0_65] : memref<1x328x64xbf16, #tpu.memory_space<vmem>>, vector<1x288x32xbf16>
    %63 = vector.shape_cast %62 : vector<1x288x32xbf16> to vector<288x32xbf16>
    %c0_66 = arith.constant 0 : index
    %c416 = arith.constant 416 : index
    %64 = vector.load %arg10[%c0_66, %c416] : memref<288x864xbf16, #tpu.memory_space<vmem>>, vector<288x32xbf16>
    tpu.vector_store %arg10[%c0_66, %c416], %63 {strides = array<i32>} : memref<288x864xbf16, #tpu.memory_space<vmem>>, vector<288x32xbf16>,
    %c0_67 = arith.constant 0 : index
    %c20_68 = arith.constant 20 : index
    %c0_69 = arith.constant 0 : index
    %65 = vector.load %arg11[%c0_67, %c20_68, %c0_69] : memref<1x328x64xbf16, #tpu.memory_space<vmem>>, vector<1x288x32xbf16>
    %66 = vector.shape_cast %65 : vector<1x288x32xbf16> to vector<288x32xbf16>
    %c0_70 = arith.constant 0 : index
    %c448 = arith.constant 448 : index
    %67 = vector.load %arg10[%c0_70, %c448] : memref<288x864xbf16, #tpu.memory_space<vmem>>, vector<288x32xbf16>
    tpu.vector_store %arg10[%c0_70, %c448], %66 {strides = array<i32>} : memref<288x864xbf16, #tpu.memory_space<vmem>>, vector<288x32xbf16>,
    %c0_71 = arith.constant 0 : index
    %c36_72 = arith.constant 36 : index
    %c0_73 = arith.constant 0 : index
    %68 = vector.load %arg11[%c0_71, %c36_72, %c0_73] : memref<1x328x64xbf16, #tpu.memory_space<vmem>>, vector<1x288x32xbf16>
    %69 = vector.shape_cast %68 : vector<1x288x32xbf16> to vector<288x32xbf16>
    %c0_74 = arith.constant 0 : index
    %c480 = arith.constant 480 : index
    %70 = vector.load %arg10[%c0_74, %c480] : memref<288x864xbf16, #tpu.memory_space<vmem>>, vector<288x32xbf16>
    tpu.vector_store %arg10[%c0_74, %c480], %69 {strides = array<i32>} : memref<288x864xbf16, #tpu.memory_space<vmem>>, vector<288x32xbf16>,
    %c0_75 = arith.constant 0 : index
    %c37_76 = arith.constant 37 : index
    %c0_77 = arith.constant 0 : index
    %71 = vector.load %arg11[%c0_75, %c37_76, %c0_77] : memref<1x328x64xbf16, #tpu.memory_space<vmem>>, vector<1x288x32xbf16>
    %72 = vector.shape_cast %71 : vector<1x288x32xbf16> to vector<288x32xbf16>
    %c0_78 = arith.constant 0 : index
    %c512 = arith.constant 512 : index
    %73 = vector.load %arg10[%c0_78, %c512] : memref<288x864xbf16, #tpu.memory_space<vmem>>, vector<288x32xbf16>
    tpu.vector_store %arg10[%c0_78, %c512], %72 {strides = array<i32>} : memref<288x864xbf16, #tpu.memory_space<vmem>>, vector<288x32xbf16>,
    %c0_79 = arith.constant 0 : index
    %c38_80 = arith.constant 38 : index
    %c0_81 = arith.constant 0 : index
    %74 = vector.load %arg11[%c0_79, %c38_80, %c0_81] : memref<1x328x64xbf16, #tpu.memory_space<vmem>>, vector<1x288x32xbf16>
    %75 = vector.shape_cast %74 : vector<1x288x32xbf16> to vector<288x32xbf16>
    %c0_82 = arith.constant 0 : index
    %c544 = arith.constant 544 : index
    %76 = vector.load %arg10[%c0_82, %c544] : memref<288x864xbf16, #tpu.memory_space<vmem>>, vector<288x32xbf16>
    tpu.vector_store %arg10[%c0_82, %c544], %75 {strides = array<i32>} : memref<288x864xbf16, #tpu.memory_space<vmem>>, vector<288x32xbf16>,
    %c0_83 = arith.constant 0 : index
    %c0_84 = arith.constant 0 : index
    %77 = vector.load %arg10[%c0_83, %c0_84] : memref<288x864xbf16, #tpu.memory_space<vmem>>, vector<288x576xbf16>
    %c0_85 = arith.constant 0 : index
    %c0_86 = arith.constant 0 : index
    %78 = vector.load %arg5[%c0_85, %c0_86] : memref<576x32xbf16, #tpu.memory_space<vmem>>, vector<576x32xbf16>
    %cst_87 = arith.constant dense<0.000000e+00> : vector<288x32xf32>
    %79 = tpu.matmul %77, %78, %cst_87 {dimension_numbers = #tpu.dot_dimension_numbers<[1], [0], [0], [1], [0, 0, 1, 1], [], []>} : vector<288x576xbf16>, vector<576x32xbf16>, vector<288x32xf32> -> vector<288x32xf32>
    %c0_88 = arith.constant 0 : index
    %c0_89 = arith.constant 0 : index
    %80 = vector.load %arg6[%c0_88, %c0_89] : memref<1x32xf32, #tpu.memory_space<vmem>>, vector<1x32xf32>
    %81 = vector.broadcast %80 : vector<1x32xf32> to vector<288x32xf32>
    %82 = arith.addf %79, %81 : vector<288x32xf32>
    %cst_90 = arith.constant 0.000000e+00 : f32
    %83 = vector.broadcast %cst_90 : f32 to vector<288x32xf32>
    %84 = arith.maximumf %82, %83 : vector<288x32xf32>
    %85 = vector.broadcast %0 : vector<288x1xf32> to vector<288x32xf32>
    %86 = arith.mulf %84, %85 : vector<288x32xf32>
    %87 = arith.truncf %86 : vector<288x32xf32> to vector<288x32xbf16>
    %c0_91 = arith.constant 0 : index
    %c19_92 = arith.constant 19 : index
    %c32_93 = arith.constant 32 : index
    %88 = vector.load %arg11[%c0_91, %c19_92, %c32_93] : memref<1x328x64xbf16, #tpu.memory_space<vmem>>, vector<1x288x32xbf16>
    %89 = vector.shape_cast %88 : vector<1x288x32xbf16> to vector<288x32xbf16>
    %90 = vector.shape_cast %87 : vector<288x32xbf16> to vector<1x288x32xbf16>
    tpu.vector_store %arg11[%c0_91, %c19_92, %c32_93], %90 {strides = array<i32>} : memref<1x328x64xbf16, #tpu.memory_space<vmem>>, vector<1x288x32xbf16>,
    %c0_94 = arith.constant 0 : index
    %c0_95 = arith.constant 0 : index
    %c32_96 = arith.constant 32 : index
    %91 = vector.load %arg11[%c0_94, %c0_95, %c32_96] : memref<1x328x64xbf16, #tpu.memory_space<vmem>>, vector<1x288x32xbf16>
    %92 = vector.shape_cast %91 : vector<1x288x32xbf16> to vector<288x32xbf16>
    %c0_97 = arith.constant 0 : index
    %c576 = arith.constant 576 : index
    %93 = vector.load %arg10[%c0_97, %c576] : memref<288x864xbf16, #tpu.memory_space<vmem>>, vector<288x32xbf16>
    tpu.vector_store %arg10[%c0_97, %c576], %92 {strides = array<i32>} : memref<288x864xbf16, #tpu.memory_space<vmem>>, vector<288x32xbf16>,
    %c0_98 = arith.constant 0 : index
    %c1_99 = arith.constant 1 : index
    %c32_100 = arith.constant 32 : index
    %94 = vector.load %arg11[%c0_98, %c1_99, %c32_100] : memref<1x328x64xbf16, #tpu.memory_space<vmem>>, vector<1x288x32xbf16>
    %95 = vector.shape_cast %94 : vector<1x288x32xbf16> to vector<288x32xbf16>
    %c0_101 = arith.constant 0 : index
    %c608 = arith.constant 608 : index
    %96 = vector.load %arg10[%c0_101, %c608] : memref<288x864xbf16, #tpu.memory_space<vmem>>, vector<288x32xbf16>
    tpu.vector_store %arg10[%c0_101, %c608], %95 {strides = array<i32>} : memref<288x864xbf16, #tpu.memory_space<vmem>>, vector<288x32xbf16>,
    %c0_102 = arith.constant 0 : index
    %c2_103 = arith.constant 2 : index
    %c32_104 = arith.constant 32 : index
    %97 = vector.load %arg11[%c0_102, %c2_103, %c32_104] : memref<1x328x64xbf16, #tpu.memory_space<vmem>>, vector<1x288x32xbf16>
    %98 = vector.shape_cast %97 : vector<1x288x32xbf16> to vector<288x32xbf16>
    %c0_105 = arith.constant 0 : index
    %c640 = arith.constant 640 : index
    %99 = vector.load %arg10[%c0_105, %c640] : memref<288x864xbf16, #tpu.memory_space<vmem>>, vector<288x32xbf16>
    tpu.vector_store %arg10[%c0_105, %c640], %98 {strides = array<i32>} : memref<288x864xbf16, #tpu.memory_space<vmem>>, vector<288x32xbf16>,
    %c0_106 = arith.constant 0 : index
    %c18_107 = arith.constant 18 : index
    %c32_108 = arith.constant 32 : index
    %100 = vector.load %arg11[%c0_106, %c18_107, %c32_108] : memref<1x328x64xbf16, #tpu.memory_space<vmem>>, vector<1x288x32xbf16>
    %101 = vector.shape_cast %100 : vector<1x288x32xbf16> to vector<288x32xbf16>
    %c0_109 = arith.constant 0 : index
    %c672 = arith.constant 672 : index
    %102 = vector.load %arg10[%c0_109, %c672] : memref<288x864xbf16, #tpu.memory_space<vmem>>, vector<288x32xbf16>
    tpu.vector_store %arg10[%c0_109, %c672], %101 {strides = array<i32>} : memref<288x864xbf16, #tpu.memory_space<vmem>>, vector<288x32xbf16>,
    %c0_110 = arith.constant 0 : index
    %c19_111 = arith.constant 19 : index
    %c32_112 = arith.constant 32 : index
    %103 = vector.load %arg11[%c0_110, %c19_111, %c32_112] : memref<1x328x64xbf16, #tpu.memory_space<vmem>>, vector<1x288x32xbf16>
    %104 = vector.shape_cast %103 : vector<1x288x32xbf16> to vector<288x32xbf16>
    %c0_113 = arith.constant 0 : index
    %c704 = arith.constant 704 : index
    %105 = vector.load %arg10[%c0_113, %c704] : memref<288x864xbf16, #tpu.memory_space<vmem>>, vector<288x32xbf16>
    tpu.vector_store %arg10[%c0_113, %c704], %104 {strides = array<i32>} : memref<288x864xbf16, #tpu.memory_space<vmem>>, vector<288x32xbf16>,
    %c0_114 = arith.constant 0 : index
    %c20_115 = arith.constant 20 : index
    %c32_116 = arith.constant 32 : index
    %106 = vector.load %arg11[%c0_114, %c20_115, %c32_116] : memref<1x328x64xbf16, #tpu.memory_space<vmem>>, vector<1x288x32xbf16>
    %107 = vector.shape_cast %106 : vector<1x288x32xbf16> to vector<288x32xbf16>
    %c0_117 = arith.constant 0 : index
    %c736 = arith.constant 736 : index
    %108 = vector.load %arg10[%c0_117, %c736] : memref<288x864xbf16, #tpu.memory_space<vmem>>, vector<288x32xbf16>
    tpu.vector_store %arg10[%c0_117, %c736], %107 {strides = array<i32>} : memref<288x864xbf16, #tpu.memory_space<vmem>>, vector<288x32xbf16>,
    %c0_118 = arith.constant 0 : index
    %c36_119 = arith.constant 36 : index
    %c32_120 = arith.constant 32 : index
    %109 = vector.load %arg11[%c0_118, %c36_119, %c32_120] : memref<1x328x64xbf16, #tpu.memory_space<vmem>>, vector<1x288x32xbf16>
    %110 = vector.shape_cast %109 : vector<1x288x32xbf16> to vector<288x32xbf16>
    %c0_121 = arith.constant 0 : index
    %c768 = arith.constant 768 : index
    %111 = vector.load %arg10[%c0_121, %c768] : memref<288x864xbf16, #tpu.memory_space<vmem>>, vector<288x32xbf16>
    tpu.vector_store %arg10[%c0_121, %c768], %110 {strides = array<i32>} : memref<288x864xbf16, #tpu.memory_space<vmem>>, vector<288x32xbf16>,
    %c0_122 = arith.constant 0 : index
    %c37_123 = arith.constant 37 : index
    %c32_124 = arith.constant 32 : index
    %112 = vector.load %arg11[%c0_122, %c37_123, %c32_124] : memref<1x328x64xbf16, #tpu.memory_space<vmem>>, vector<1x288x32xbf16>
    %113 = vector.shape_cast %112 : vector<1x288x32xbf16> to vector<288x32xbf16>
    %c0_125 = arith.constant 0 : index
    %c800 = arith.constant 800 : index
    %114 = vector.load %arg10[%c0_125, %c800] : memref<288x864xbf16, #tpu.memory_space<vmem>>, vector<288x32xbf16>
    tpu.vector_store %arg10[%c0_125, %c800], %113 {strides = array<i32>} : memref<288x864xbf16, #tpu.memory_space<vmem>>, vector<288x32xbf16>,
    %c0_126 = arith.constant 0 : index
    %c38_127 = arith.constant 38 : index
    %c32_128 = arith.constant 32 : index
    %115 = vector.load %arg11[%c0_126, %c38_127, %c32_128] : memref<1x328x64xbf16, #tpu.memory_space<vmem>>, vector<1x288x32xbf16>
    %116 = vector.shape_cast %115 : vector<1x288x32xbf16> to vector<288x32xbf16>
    %c0_129 = arith.constant 0 : index
    %c832 = arith.constant 832 : index
    %117 = vector.load %arg10[%c0_129, %c832] : memref<288x864xbf16, #tpu.memory_space<vmem>>, vector<288x32xbf16>
    tpu.vector_store %arg10[%c0_129, %c832], %116 {strides = array<i32>} : memref<288x864xbf16, #tpu.memory_space<vmem>>, vector<288x32xbf16>,
    %c0_130 = arith.constant 0 : index
    %c0_131 = arith.constant 0 : index
    %118 = vector.load %arg10[%c0_130, %c0_131] : memref<288x864xbf16, #tpu.memory_space<vmem>>, vector<288x864xbf16>
    %c0_132 = arith.constant 0 : index
    %c0_133 = arith.constant 0 : index
    %119 = vector.load %arg7[%c0_132, %c0_133] : memref<864x128xbf16, #tpu.memory_space<vmem>>, vector<864x128xbf16>
    %cst_134 = arith.constant dense<0.000000e+00> : vector<288x128xf32>
    %120 = tpu.matmul %118, %119, %cst_134 {dimension_numbers = #tpu.dot_dimension_numbers<[1], [0], [0], [1], [0, 0, 1, 1], [], []>} : vector<288x864xbf16>, vector<864x128xbf16>, vector<288x128xf32> -> vector<288x128xf32>
    %c0_135 = arith.constant 0 : index
    %c0_136 = arith.constant 0 : index
    %121 = vector.load %arg8[%c0_135, %c0_136] : memref<1x128xf32, #tpu.memory_space<vmem>>, vector<1x128xf32>
    %122 = vector.broadcast %121 : vector<1x128xf32> to vector<288x128xf32>
    %123 = arith.addf %120, %122 : vector<288x128xf32>
    %cst_137 = arith.constant 0.000000e+00 : f32
    %124 = vector.broadcast %cst_137 : f32 to vector<288x128xf32>
    %125 = arith.maximumf %123, %124 : vector<288x128xf32>
    %c0_138 = arith.constant 0 : index
    %c0_139 = arith.constant 0 : index
    %126 = vector.load %arg9[%c0_138, %c0_139] : memref<288x128xf32, #tpu.memory_space<vmem>>, vector<288x128xf32>
    tpu.vector_store %arg9[%c0_138, %c0_139], %125 {strides = array<i32>} : memref<288x128xf32, #tpu.memory_space<vmem>>, vector<288x128xf32>,
    return
  }
  func.func @transform_0(%arg0: i32) -> (i32, i32, i32) {
    %c0_i32 = arith.constant 0 : i32
    %c0_i32_0 = arith.constant 0 : i32
    %c0_i32_1 = arith.constant 0 : i32
    return %arg0, %c0_i32, %c0_i32_0 : i32, i32, i32
  }
  func.func @transform_1(%arg0: i32) -> (i32, i32) {
    %c0_i32 = arith.constant 0 : i32
    %c0_i32_0 = arith.constant 0 : i32
    %c0_i32_1 = arith.constant 0 : i32
    return %c0_i32, %c0_i32_0 : i32, i32
  }
  func.func @transform_2(%arg0: i32) -> (i32, i32) {
    %c0_i32 = arith.constant 0 : i32
    %c0_i32_0 = arith.constant 0 : i32
    %c0_i32_1 = arith.constant 0 : i32
    return %c0_i32, %c0_i32_0 : i32, i32
  }
  func.func @transform_3(%arg0: i32) -> (i32, i32) {
    %c0_i32 = arith.constant 0 : i32
    %c0_i32_0 = arith.constant 0 : i32
    %c0_i32_1 = arith.constant 0 : i32
    return %c0_i32, %c0_i32_0 : i32, i32
  }
  func.func @transform_4(%arg0: i32) -> (i32, i32) {
    %c0_i32 = arith.constant 0 : i32
    %c0_i32_0 = arith.constant 0 : i32
    %c0_i32_1 = arith.constant 0 : i32
    return %c0_i32, %c0_i32_0 : i32, i32
  }
  func.func @transform_5(%arg0: i32) -> (i32, i32) {
    %c0_i32 = arith.constant 0 : i32
    %c0_i32_0 = arith.constant 0 : i32
    %c0_i32_1 = arith.constant 0 : i32
    return %c0_i32, %c0_i32_0 : i32, i32
  }
  func.func @transform_6(%arg0: i32) -> (i32, i32) {
    %c0_i32 = arith.constant 0 : i32
    %c0_i32_0 = arith.constant 0 : i32
    %c0_i32_1 = arith.constant 0 : i32
    return %c0_i32, %c0_i32_0 : i32, i32
  }
  func.func @transform_7(%arg0: i32) -> (i32, i32) {
    %c0_i32 = arith.constant 0 : i32
    %c0_i32_0 = arith.constant 0 : i32
    %c0_i32_1 = arith.constant 0 : i32
    return %c0_i32, %c0_i32_0 : i32, i32
  }
  func.func @transform_8(%arg0: i32) -> (i32, i32) {
    %c0_i32 = arith.constant 0 : i32
    %c0_i32_0 = arith.constant 0 : i32
    return %arg0, %c0_i32 : i32, i32
  }
}

</mosaic_0001>

<bundles_post_ra>
// kernel: a_call__.1
= control target key start
LH: loop header
LB: loop body
LE: loop exit
PB: predicated region body
PF: predicated region fallthrough
CT: control target
= control target key end

     0   :  { %s14126_s27 = smov 0   ;;  %s19050_s0 = inlined_call_operand.vmem [shape: bf16[2,328,32], index: 0, kind: input, shape index: {}]   ;;  %s19051_s1 = inlined_call_operand.vmem [shape: f32[288,1], index: 1, kind: input, shape index: {}]   ;;  %s19052_s2 = inlined_call_operand.vmem [shape: bf16[288,32], index: 2, kind: input, shape index: {}]   ;;  %s19053_s3 = inlined_call_operand.vmem [shape: f32[1,32], index: 3, kind: input, shape index: {}]   ;;  %s19054_s4 = inlined_call_operand.vmem [shape: bf16[576,32], index: 4, kind: input, shape index: {}]   ;;  %s19055_s5 = inlined_call_operand.vmem [shape: f32[1,32], index: 5, kind: input, shape index: {}]   ;;  %s19056_s6 = inlined_call_operand.vmem [shape: bf16[864,128], index: 6, kind: input, shape index: {}]   ;;  %s19057_s7 = inlined_call_operand.vmem [shape: f32[1,128], index: 7, kind: input, shape index: {}]   ;;  %s19058_s8 = inlined_call_operand.vmem [shape: f32[576,128], index: 8, kind: output, shape index: {}]  }
   0x1 LB: > { %s14132_s28 = sadd.s32 4294967295, %s14075_s27   ;;  %p12124_p0 = scmp.ge.s32.totalorder %s14075_s27, 1  ;;  %s14075_s27 = sphi %s14126_s27, %s18_s27  }
   0x2   : > { %p262_p1 = scmp.lt.s32.totalorder %s14075_s27, 3 }
   0x4   : > { %p263_p2 = pnand %p12124_p0, %p262_p1 }
   0x6   : > { %266 = sbr.rel (%p263_p2) target bundleno = 1613 (0x64d), region = 52 }
   0xd   : > { %p296_p3 = scmp.lt.s32.totalorder %s14132_s28, 1  ;;  %v13483_v0 = vld [vmem:[%s19052_s2 + $0x80] sm:$0xff]   ;;  %v13486_v1 = vld [vmem:[%s19052_s2 + $0x88] sm:$0xff]   ;;  %v19059_v2 = vmov 0   ;;  %vm1824_vm0 = vcmask 1045504   ;;  %vm1006_vm1 = vcmask 1046528  }
   0xe   : > { %13014 = vmatprep.subr.bf16.mxu1 %v13483_v0  ;;  %3009 = vmatprep.subr.bf16.mxu0 %v19059_v2  ;;  %v13500_v3 = vld [vmem:[%s19052_s2] sm:$0xff]   ;;  %v13504_v4 = vld [vmem:[%s19052_s2 + $0x8] sm:$0xff]   ;;  %s14078_s20 = smov 64   ;;  %s14079_s21 = smov 32   ;;  %vm654_vm2 = vsmask.f32 7424 }
   0xf   : > { %s297_s29 = scalar_select %p296_p3, %s14132_s28, 1  ;;  %13015 = vmatpush3.bf16.msra.mxu1 %v13483_v0  ;;  %13446 = vset.pattern.permute.xlu1 %v19059_v2  ;;  %vm2303_vm3 = vsmask.f32 5376  ;;  %vm505_vm4 = vcmask 261120   ;;  %vm2676_vm5 = vcmask 1044480   ;;  %vm857_vm7 = vcmask 523520  }
  0x10   : > { %13016 = vmatprep.subr.bf16.mxu1 %v13486_v1  ;;  %3010 = vmatpush1.bf16.msra.mxu0 %v13500_v3  ;;  %s14080_s22 = smov 96   ;;  %vm1487_vm6 = vsmask.f32 6400  ;;  %vm1098_vm8 = vcmask 785920   ;;  %vm1338_vm9 = vcmask 1048320   ;;  %vm344_vm10 = vcmask 519168  }
  0x11   : > { %s13432_s12 = smul.u32 164, %s297_s29  ;;  %3011 = vmatprep.subr.bf16.mxu0 %v19059_v2  ;;  %13445 = vset.pattern.permute.xlu0 %v19059_v2  ;;  %345 = vst.msk [vmem:[#allocation3] sm:$0xf] %vm344_vm10, %v19059_v2  ;;  %346 = vst.msk [vmem:[#allocation3 + $0x4] sm:$0xf] %vm344_vm10, %v19059_v2  ;;  %vm347_vm11 = vcmask 517120  }
  0x12   : > { %359 = vst.msk [vmem:[#allocation3 + $0x9c] sm:$0xf] %vm344_vm10, %v19059_v2  ;;  %360 = vst.msk [vmem:[#allocation3 + $0xa0] sm:$0xf] %vm344_vm10, %v19059_v2  ;;  %vm348_vm12 = vsmask.f32 1280 }
  0x13   : > { %s14152_s17 = scalar_lea.vmem %s19050_s0, %s13432_s12  ;;  %13017 = vmatpush3.bf16.msra.mxu1 %v13486_v1  ;;  %vm349_vm13 = vmand %vm347_vm11, %vm348_vm12  ;;  %vm353_vm14 = vcmask 519169   ;;  %vm19108_vm15 = vsmask.f32 7942  ;;  %vm4121_vm11 = vcmask 257025  }
  0x14   : > { %v13447_v5 = vld [vmem:[%s14152_s17 + $0x10] sm:$0xfc]   ;;  %v13448_v6 = vld [vmem:[%s14152_s17 + $0x18] sm:$0xff]   ;;  %v13449_v9 = vld [vmem:[%s14152_s17 + $0x8] sm:$0xfc]   ;;  %7022 = vmatprep.subr.bf16.mxu1 %v19059_v2  ;;  %3012 = vmatpush1.bf16.msra.mxu0 %v13504_v4 }
  0x15   : > { %v2064_v7 = vrot.slane %v13447_v5, 2  ;;  %v2065_v8 = vrot.slane %v13448_v6, 2  ;;  %v13450_v10 = vld [vmem:[%s14152_s17 + $0x10] sm:$0xff]   ;;  %3013 = vmatprep.subr.bf16.mxu0 %v19059_v2  ;;  %v1825_v12 = vrot.slane %v13449_v9, 2  ;;  %v14167_v13 = vld [vmem:[%s14152_s17 + $0x18] sm:$0xff]   ;;  %v13453_v15 = vld [vmem:[%s14152_s17 + $0x8] sm:$0xff]  }
  0x16   : > { %v1826_v14 = vrot.slane %v13450_v10, 2  ;;  %v1828_v16 = vrot.slane %v14167_v13, 2  ;;  %v13452_v17 = vld [vmem:[%s14152_s17] sm:$0xfe]   ;;  %v1008_v20 = vrot.slane %v13453_v15, 1  ;;  %v14178_v21 = vld [vmem:[%s14152_s17 + $0x10] sm:$0xff]   ;;  %vm355_vm10 = vmand %vm353_vm14, %vm19108_vm15 }
  0x17   : > { %v2066_v11 = vsel %vm1824_vm0, %v2064_v7, %v2065_v8  ;;  %v14174_v18 = vld [vmem:[%s14152_s17 + $0x20] sm:$0xff]   ;;  %v1007_v22 = vrot.slane %v13452_v17, 1  ;;  %v13455_v25 = vld [vmem:[%s14152_s17 + $0x8] sm:$0xfe]   ;;  %v1248_v26 = vrot.slane %v14178_v21, 1  ;;  %v14188_v27 = vld [vmem:[%s14152_s17 + $0x10] sm:$0xff]  }
  0x18   : > { %2101 = vrot.lane.b32.xlu1 %v2066_v11, %s14078_s20  ;;  %v1827_v19 = vsel %vm1824_vm0, %v1825_v12, %v1826_v14  ;;  %v2067_v23 = vrot.slane %v14174_v18, 2  ;;  %v1829_v24 = vsel %vm1824_vm0, %v1826_v14, %v1828_v16  ;;  %v1247_v29 = vrot.slane %v13455_v25, 1  ;;  %v13458_v31 = vld [vmem:[%s14152_s17] sm:$0xff]   ;;  %v13459_v32 = vld [vmem:[%s14152_s17 + $0x8] sm:$0xff]   ;;  %v13460_v35 = vld [vmem:[%s14152_s17 + $0x10] sm:$0xff]  }
  0x19   : > { %1862 = vrot.lane.b32.xlu0 %v1827_v19, %s14079_s21  ;;  %v1009_v28 = vsel %vm1006_vm1, %v1007_v22, %v1008_v20  ;;  %v1010_v30 = vrot.slane %v14188_v27, 1  ;;  %v656_v36 = vshrl.u32 %v13458_v31, 16  ;;  %v658_v37 = vshll.u32 %v13458_v31, 16  ;;  %v13462_v41 = vld [vmem:[%s14152_s17 + $0x18] sm:$0xff]   ;;  %v13461_v45 = vld [vmem:[%s14152_s17 + $0x10] sm:$0xfc]   ;;  %vm15674_vm14 = vmand %vm4121_vm11, %vm19108_vm15 }
  0x1a   : > { %v2068_v33 = vsel %vm1824_vm0, %v2065_v8, %v2067_v23  ;;  %v1249_v34 = vsel %vm1006_vm1, %v1247_v29, %v1248_v26  ;;  %v663_v38 = vshll.u32 %v13459_v32, 16  ;;  %v667_v39 = vshrl.u32 %v13459_v32, 16  ;;  %v14209_v49 = vld [vmem:[%s14152_s17 + $0x18] sm:$0xff]   ;;  %v13464_v57 = vld [vmem:[%s14152_s17 + $0x20] sm:$0xff]   ;;  %v13468_v17 = vld [vmem:[%s14152_s17 + $0x28] sm:$0xff]  }
  0x1b   : > { %v671_v40 = vshll.u32 %v13460_v35, 16  ;;  %v1011_v42 = vsel %vm1006_vm1, %v1008_v20, %v1010_v30  ;;  %v660_v43 = vrot.slane %v658_v37, 1  ;;  %v2313_v47 = vshrl.u32 %v13462_v41, 16  ;;  %v13465_v1 = vld [vmem:[%s14152_s17 + $0x18] sm:$0xff]   ;;  %v13466_v5 = vld [vmem:[%s14152_s17 + $0x20] sm:$0xff]   ;;  %v13470_v20 = vld [vmem:[%s14152_s17 + $0x28] sm:$0xff]  }
  0x1c   : > { %1044 = vrot.lane.b32.xlu1 %v1009_v28, %s14078_s20  ;;  %v665_v44 = vrot.slane %v663_v38, 1  ;;  %v2316_v48 = vshll.u32 %v13462_v41, 16  ;;  %v2305_v52 = vshrl.u32 %v13461_v45, 16  ;;  %v2308_v53 = vshll.u32 %v13461_v45, 16  ;;  %v13467_v12 = vld [vmem:[%s14152_s17 + $0x18] sm:$0xff]   ;;  %v14229_v22 = vld [vmem:[%s14152_s17 + $0x20] sm:$0xff]  }
  0x1d   : > { %1864 = vrot.lane.b32.xlu0 %v1829_v24, %s14079_s21  ;;  %v673_v46 = vrot.slane %v671_v40, 1  ;;  %v661_v50 = vor.u32 %v660_v43, %v656_v36  ;;  %v2315_v54 = vrot.slane %v2313_v47, 2  ;;  %v1250_v56 = vrot.slane %v14209_v49, 1  ;;  %v13471_v29 = vld [vmem:[%s14152_s17 + $0x20] sm:$0xff]   ;;  %v14244_v13 = vld [vmem:[%s14152_s17 + $0x28] sm:$0xff]   ;;  %v13476_v40 = vld [vmem:[%s14152_s17 + $0x30] sm:$0xff]  }
  0x1e   : > { %v669_v51 = vor.u32 %v667_v39, %v665_v44  ;;  %v2318_v55 = vrot.slane %v2316_v48, 3  ;;  %v2307_v60 = vrot.slane %v2305_v52, 2  ;;  %v2310_v61 = vrot.slane %v2308_v53, 3  ;;  %v14252_v27 = vld [vmem:[%s14152_s17 + $0x20] sm:$0xff]   ;;  %v14261_v18 = vld [vmem:[%s14152_s17 + $0x28] sm:$0xff]  }
  0x1f   : > { %v666_v58 = vsel %vm654_vm2, %v661_v50, %v665_v44  ;;  %v2322_v63 = vshrl.u32 %v13464_v57, 16  ;;  %v2325_v0 = vshll.u32 %v13464_v57, 16  ;;  %v675_v4 = vshrl.u32 %v13460_v35, 16  ;;  %v14258_v44 = vld [vmem:[%s14152_s17 + $0x30] sm:$0xff]   ;;  %v14267_v48 = vld [vmem:[%s14152_s17 + $0x28] sm:$0xff]  }
  0x20   : > { %1284 = vrot.lane.b32.xlu1 %v1249_v34, %s14080_s22  ;;  %v674_v59 = vsel %vm654_vm2, %v669_v51, %v673_v46  ;;  %v2319_v62 = vor.u32 %v2318_v55, %v2315_v54  ;;  %v2311_v3 = vor.u32 %v2310_v61, %v2307_v60  ;;  %v679_v8 = vshll.u32 %v13465_v1, 16  ;;  %v14275_v55 = vld [vmem:[%s14152_s17 + $0x30] sm:$0xff]   ;;  %v13482_v60 = vld [vmem:[%s14152_s17 + $0x38] sm:$0xff]  }
  0x21   : > { %2103 = vrot.lane.b32.xlu0 %v2068_v33, %s14078_s20  ;;  %v2324_v6 = vrot.slane %v2322_v63, 2  ;;  %v2327_v7 = vrot.slane %v2325_v0, 3  ;;  %v1251_v10 = vsel %vm1006_vm1, %v1248_v26, %v1250_v56  ;;  %v677_v11 = vor.u32 %v675_v4, %v673_v46  ;;  %v14287_v0 = vld [vmem:[%s14152_s17 + $0x28] sm:$0xff]   ;;  %v14295_v4 = vld [vmem:[%s14152_s17 + $0x30] sm:$0xff]  }
  0x22   : > { %v2320_v9 = vsel %vm2303_vm3, %v2311_v3, %v2319_v62  ;;  %v681_v15 = vrot.slane %v679_v8, 1  ;;  %v1830_v19 = vrot.slane %v13466_v5, 2  ;;  %v1012_v25 = vrot.slane %v13467_v12, 1  ;;  %v13490_v3 = vld [vmem:[%s14152_s17 + $0x18] sm:$0xff]   ;;  %v13489_v5 = vld [vmem:[%s14152_s17 + $0x10] sm:$0xf8]  }
  0x23   : > { %v2328_v14 = vor.u32 %v2327_v7, %v2324_v6  ;;  %v2331_v26 = vshrl.u32 %v13470_v20, 16  ;;  %v2334_v28 = vshll.u32 %v13470_v20, 16  ;;  %v2069_v32 = vrot.slane %v13468_v17, 2  ;;  %v14307_v17 = vld [vmem:[%s14152_s17 + $0x30] sm:$0xff]  }
  0x24   : > { %1046 = vrot.lane.b32.xlu1 %v1011_v42, %s14078_s20  ;;  %v682_v24 = vsel %vm654_vm2, %v677_v11, %v681_v15  ;;  %v1831_v31 = vsel %vm1824_vm0, %v1828_v16, %v1830_v19  ;;  %v1252_v35 = vrot.slane %v14229_v22, 1  ;;  %v1013_v36 = vsel %vm1006_vm1, %v1010_v30, %v1012_v25 }
  0x25   : > { %803 = vrot.lane.b32.xlu0 %v666_v58, %s14079_s21  ;;  %v2329_v21 = vsel %vm2303_vm3, %v2319_v62, %v2328_v14  ;;  %v2333_v33 = vrot.slane %v2331_v26, 2  ;;  %v2336_v34 = vrot.slane %v2334_v28, 3  ;;  %v683_v37 = vshrl.u32 %v13465_v1, 16  ;;  %v14290_v1 = vld [vmem:[%s14152_s17 + $0x38] sm:$0xff]  }
  0x26   : > { %v687_v38 = vshll.u32 %v13471_v29, 16  ;;  %v2070_v16 = vsel %vm1824_vm0, %v2067_v23, %v2069_v32  ;;  %v1253_v30 = vsel %vm1006_vm1, %v1250_v56, %v1252_v35  ;;  %v1832_v43 = vrot.slane %v14244_v13, 2  ;;  %v13501_v13 = vld [vmem:[%s19054_s4] sm:$0xff]  }
  0x27   : > { %v2337_v39 = vor.u32 %v2336_v34, %v2333_v33  ;;  %v685_v41 = vor.u32 %v683_v37, %v681_v15  ;;  %v2340_v45 = vshrl.u32 %v13476_v40, 16  ;;  %v2343_v46 = vshll.u32 %v13476_v40, 16  ;;  %v13497_v33 = vld [vmem:[%s14152_s17 + $0x30] sm:$0xff]  }
  0x28   : > { %805 = vrot.lane.b32.xlu1 %v674_v59, %s14079_s21  ;;  %v689_v42 = vrot.slane %v687_v38, 1  ;;  %v1014_v47 = vrot.slane %v14252_v27, 1  ;;  %v695_v50 = vshll.u32 %v14261_v18, 16  ;;  %v1833_v51 = vsel %vm1824_vm0, %v1830_v19, %v1832_v43 }
  0x29   : > { %2474 = vrot.lane.b32.xlu0 %v2320_v9, %s14080_s22  ;;  %v2338_v23 = vsel %vm2303_vm3, %v2328_v14, %v2337_v39  ;;  %v2071_v52 = vrot.slane %v14258_v44, 2  ;;  %v2342_v53 = vrot.slane %v2340_v45, 2  ;;  %v2345_v54 = vrot.slane %v2343_v46, 3  ;;  %v13491_v9 = vld [vmem:[%s14152_s17 + $0x20] sm:$0xff]  }
  0x2a   : > { %v690_v49 = vsel %vm654_vm2, %v685_v41, %v689_v42  ;;  %v1015_v56 = vsel %vm1006_vm1, %v1012_v25, %v1014_v47  ;;  %v1254_v57 = vrot.slane %v14267_v48, 1  ;;  %v691_v58 = vshrl.u32 %v13471_v29, 16  ;;  %v13505_v48 = vld [vmem:[%s19054_s4 + $0x8] sm:$0xff]  }
  0x2b   : > { %v697_v59 = vrot.slane %v695_v50, 1  ;;  %v2072_v61 = vsel %vm1824_vm0, %v2069_v32, %v2071_v52  ;;  %v14283_v62 = vor.u32 %v2345_v54, %v2342_v53  ;;  %v1834_v63 = vrot.slane %v14275_v55, 2  ;;  %v13496_v32 = vld [vmem:[%s14152_s17 + $0x28] sm:$0xff]  }
  0x2c   : > { %1286 = vrot.lane.b32.xlu1 %v1251_v10, %s14080_s22  ;;  %v1255_v6 = vsel %vm1006_vm1, %v1252_v35, %v1254_v57  ;;  %v693_v7 = vor.u32 %v691_v58, %v689_v42  ;;  %v2678_v8 = vrot.slane %v13490_v3, 3  ;;  %v2349_v10 = vshrl.u32 %v13482_v60, 16  ;;  %v14327_v35 = vld [vmem:[%s14152_s17 + $0x38] sm:$0xff]  }
  0x2d   : > { %2476 = vrot.lane.b32.xlu0 %v2329_v21, %s14080_s22  ;;  %v2677_v11 = vrot.slane %v13489_v5, 3  ;;  %v2347_v12 = vsel %vm2303_vm3, %v2337_v39, %v14283_v62  ;;  %v2352_v14 = vshll.u32 %v13482_v60, 16  ;;  %v2680_v15 = vrot.slane %v13491_v9, 3  ;;  %v13493_v39 = vld [vmem:[%s14152_s17 + $0x40] sm:$0xff]   ;;  %v14382_v60 = vld [vmem:[%s14152_s17 + $0x38] sm:$0xff]  }
  0x2e   : > { %v698_v20 = vsel %vm654_vm2, %v693_v7, %v697_v59  ;;  %v1016_v21 = vrot.slane %v14287_v0, 1  ;;  %v2073_v22 = vrot.slane %v14290_v1, 2  ;;  %v1256_v25 = vrot.slane %v14295_v4, 1  ;;  %v13514_v1 = vld [vmem:[%s19052_s2 + $0x18] sm:$0xff]  }
  0x2f   : > { %v2679_v19 = vsel %vm2676_vm5, %v2677_v11, %v2678_v8  ;;  %v699_v26 = vshrl.u32 %v14261_v18, 16  ;;  %v1835_v28 = vsel %vm1824_vm0, %v1832_v43, %v1834_v63  ;;  %v2351_v29 = vrot.slane %v2349_v10, 2  ;;  %v14353_v18 = vld [vmem:[%s14152_s17 + $0x38] sm:$0xff]  }
  0x30   : > { %807 = vrot.lane.b32.xlu1 %v682_v24, %s14079_s21  ;;  %2732 = vst.msk [vmem:[#allocation2 + $0x10] sm:$0xff] %vm505_vm4, %v2679_v19  ;;  %v2681_v24 = vsel %vm2676_vm5, %v2678_v8, %v2680_v15  ;;  %v703_v34 = vshll.u32 %v14307_v17, 16  ;;  %v2682_v37 = vrot.slane %v13496_v32, 3  ;;  %v2684_v38 = vrot.slane %v13497_v33, 3  ;;  %v14400_v11 = vld [vmem:[%s14152_s17 + $0x38] sm:$0xff]   ;;  %v13516_v33 = vld [vmem:[%s14152_s17 + $0x48] sm:$0xff]  }
  0x31   : > { %1866 = vrot.lane.b32.xlu0 %v1831_v31, %s14079_s21  ;;  %2733 = vst.msk [vmem:[#allocation2 + $0x48] sm:$0xff] %vm505_vm4, %v2681_v24  ;;  %v2354_v31 = vrot.slane %v2352_v14, 3  ;;  %v2074_v40 = vsel %vm1824_vm0, %v2071_v52, %v2073_v22  ;;  %v1836_v43 = vrot.slane %v14327_v35, 2  ;;  %v701_v45 = vor.u32 %v699_v26, %v697_v59  ;;  %v13521_v35 = vld [vmem:[%s19054_s4 + $0x20] sm:$0xff]  }
  0x32   : > { %v2683_v41 = vsel %vm2676_vm5, %v2680_v15, %v2682_v37  ;;  %v2685_v42 = vsel %vm2676_vm5, %v2682_v37, %v2684_v38  ;;  %v705_v46 = vrot.slane %v703_v34, 1  ;;  %v2361_v50 = vshll.u32 %v13493_v39, 16  ;;  %v13511_v15 = vld [vmem:[%s19054_s4 + $0x10] sm:$0xff]   ;;  %v14458_v37 = vld [vmem:[%s14152_s17 + $0x40] sm:$0xff]  }
  0x33   : > { %v14343_v27 = vor.u32 %v2354_v31, %v2351_v29  ;;  %2734 = vst.msk [vmem:[#allocation2 + $0x80] sm:$0xff] %vm505_vm4, %v2683_v41  ;;  %2735 = vst.msk [vmem:[#allocation2 + $0xb8] sm:$0xff] %vm505_vm4, %v2685_v42  ;;  %v1258_v59 = vrot.slane %v14353_v18, 1  ;;  %v1837_v5 = vsel %vm1824_vm0, %v1834_v63, %v1836_v43  ;;  %v707_v10 = vshrl.u32 %v14307_v17, 16  ;;  %v13510_v63 = vld [vmem:[%s19052_s2 + $0x10] sm:$0xff]   ;;  %v13503_v17 = vld [vmem:[%s14152_s17 + $0x48] sm:$0xff]  }
  0x34   : > { %1048 = vrot.lane.b32.xlu1 %v1013_v36, %s14078_s20  ;;  %v1017_v36 = vsel %vm1006_vm1, %v1014_v47, %v1016_v21  ;;  %v706_v58 = vsel %vm654_vm2, %v701_v45, %v705_v46  ;;  %v2363_v7 = vrot.slane %v2361_v50, 3  ;;  %v711_v14 = vshll.u32 %v14382_v60, 16  ;;  %3014 = vmatpush1.bf16.msra.mxu0 %v13510_v63  ;;  %v14453_v34 = vld [vmem:[%s14152_s17 + $0x50] sm:$0xff]  }
  0x35   : > { %2105 = vrot.lane.b32.xlu0 %v2070_v16, %s14078_s20  ;;  %v14337_v16 = vld [vmem:[%s14152_s17 + $0x30] sm:$0xff]   ;;  %v2356_v52 = vsel %vm2303_vm3, %v14283_v62, %v14343_v27  ;;  %3015 = vmatprep.subr.bf16.mxu0 %v19059_v2  ;;  %v709_v24 = vor.u32 %v707_v10, %v705_v46  ;;  %v1020_v29 = vrot.slane %v14400_v11, 1  ;;  %v2367_v31 = vshrl.u32 %v13503_v17, 16  ;;  %v14479_v46 = vld [vmem:[%s14152_s17 + $0x48] sm:$0xff]  }
  0x36   : > { %v1018_v53 = vrot.slane %v14337_v16, 1  ;;  %v713_v26 = vrot.slane %v711_v14, 1  ;;  %v1260_v50 = vrot.slane %v14458_v37, 1  ;;  %v14538_v10 = vld [vmem:[%s14152_s17 + $0x48] sm:$0xff]   ;;  %vm4126_vm11 = vcmask 257024  }
  0x37   : > { %v2752_v44 = vld [vmem:[#allocation2 + $0x10] sm:$0xff]  ;;  %v2369_v41 = vrot.slane %v2367_v31, 2 }
  0x38   : > { %1288 = vrot.lane.b32.xlu1 %v1253_v30, %s14080_s22  ;;  %v14346_v30 = vld [vmem:[%s14152_s17 + $0x40] sm:$0xff]   ;;  %13018 = vmatprep.mubr.msk.bf16.mxu1 %vm505_vm4, %v2752_v44  ;;  %v2755_v47 = vld [vmem:[#allocation2 + $0x48] sm:$0xff]  ;;  %v14566_v31 = vld [vmem:[%s14152_s17 + $0x50] sm:$0xff]  }
  0x39   : > { %2478 = vrot.lane.b32.xlu0 %v2338_v23, %s14080_s22  ;;  %v1257_v23 = vsel %vm1006_vm1, %v1254_v57, %v1256_v25  ;;  %13019 = vmatmul.mubr.msk.bf16.vlgmr.msra.gmra.mrb[0].mxu1 %vm505_vm4, %v2755_v47  ;;  %v2075_v54 = vrot.slane %v14346_v30, 2  ;;  %v14377_v57 = vld [vmem:[%s14152_s17 + $0x40] sm:$0xff]   ;;  %v13525_v30 = vld [vmem:[%s19054_s4 + $0x28] sm:$0xff]  }
  0x3a   : > { %7023 = vmatpush1.bf16.msra.mxu1 %v13501_v13  ;;  %v2688_v3 = vrot.slane %v14377_v57, 3  ;;  %v2758_v8 = vld [vmem:[#allocation2 + $0x80] sm:$0xff]  ;;  %v2761_v9 = vld [vmem:[#allocation2 + $0xb8] sm:$0xff]  ;;  %3016 = vmatpush1.bf16.msra.mxu0 %v13514_v1  ;;  %v2690_v13 = vrot.slane %v13516_v33, 3  ;;  %v14511_v57 = vld [vmem:[%s14152_s17 + $0x50] sm:$0xff]  }
  0x3b   : > { %7024 = vmatprep.subr.bf16.mxu1 %v19059_v2  ;;  %13022 = vmatprep.mubr.msk.bf16.mxu1 %vm505_vm4, %v2758_v8  ;;  %v2076_v0 = vsel %vm1824_vm0, %v2073_v22, %v2075_v54  ;;  %v1259_v22 = vsel %vm1006_vm1, %v1256_v25, %v1258_v59  ;;  %v2370_v25 = vshll.u32 %v13503_v17, 16  ;;  %v13520_v44 = vld [vmem:[%s19052_s2 + $0x20] sm:$0xff]   ;;  %v2079_v17 = vrot.slane %v14511_v57, 2  ;;  %v13533_v33 = vld [vmem:[%s14152_s17 + $0x58] sm:$0xff]  }
  0x3c   : > { %809 = vrot.lane.b32.xlu1 %v690_v49, %s14079_s21  ;;  %v2358_v49 = vshrl.u32 %v13493_v39, 16  ;;  %v714_v39 = vsel %vm654_vm2, %v709_v24, %v713_v26  ;;  %3017 = vmatprep.subr.bf16.mxu0 %v19059_v2  ;;  %v2691_v42 = vsel %vm2676_vm5, %v2688_v3, %v2690_v13  ;;  %v13531_v24 = vld [vmem:[%s19054_s4 + $0x30] sm:$0xff]  }
  0x3d   : > { %1868 = vrot.lane.b32.xlu0 %v1833_v51, %s14079_s21  ;;  %v13506_v51 = vld [vmem:[%s14152_s17 + $0x38] sm:$0xff]   ;;  %v2372_v45 = vrot.slane %v2370_v25, 3  ;;  %2738 = vst.msk [vmem:[#allocation2 + $0x160] sm:$0xff] %vm505_vm4, %v2691_v42  ;;  %v14585_v25 = vld [vmem:[%s14152_s17 + $0x48] sm:$0xff]  }
  0x3e   : > { %7025 = vmatpush1.bf16.msra.mxu1 %v13505_v48  ;;  %3018 = vmatpush1.bf16.msra.mxu0 %v13520_v44  ;;  %v14617_v44 = vld [vmem:[%s14152_s17 + $0x50] sm:$0xff]  }
  0x3f   : > { %7026 = vmatprep.subr.bf16.mxu1 %v19059_v2  ;;  %3019 = vmatprep.subr.bf16.mxu0 %v19059_v2 }
  0x40   : > { %1050 = vrot.lane.b32.xlu1 %v1015_v56, %s14078_s20  ;;  %v2686_v56 = vrot.slane %v13506_v51, 3  ;;  %v14497_v51 = vld [vmem:[%s14152_s17 + $0x40] sm:$0xff]  }
  0x41   : > { %2107 = vrot.lane.b32.xlu0 %v2072_v61, %s14078_s20  ;;  %v14386_v61 = vld [vmem:[%s14152_s17 + $0x40] sm:$0xff]   ;;  %13023 = vmatmul.mubr.msk.bf16.gmra.mrb[4].mxu1 %vm505_vm4, %v2761_v9 }
  0x42   : > { %v2687_v62 = vsel %vm2676_vm5, %v2684_v38, %v2686_v56  ;;  %v2689_v55 = vsel %vm2676_vm5, %v2686_v56, %v2688_v3  ;;  %7027 = vmatpush1.bf16.msra.mxu1 %v13511_v15  ;;  %v1840_v56 = vrot.slane %v14479_v46, 2  ;;  %v14531_v9 = vld [vmem:[%s14152_s17 + $0x60] sm:$0xff]   ;;  %v13544_v46 = vld [vmem:[%s19052_s2 + $0x48] sm:$0xff]  }
  0x43   : > { %2736 = vst.msk [vmem:[#allocation2 + $0xf0] sm:$0xff] %vm505_vm4, %v2687_v62  ;;  %2737 = vst.msk [vmem:[#allocation2 + $0x128] sm:$0xff] %vm505_vm4, %v2689_v55  ;;  %7028 = vmatprep.subr.bf16.mxu1 %v19059_v2  ;;  %v2696_v14 = vrot.slane %v14531_v9, 3  ;;  %v13545_v9 = vld [vmem:[%s19054_s4 + $0x48] sm:$0xff]  }
  0x44   : > { %1290 = vrot.lane.b32.xlu1 %v1255_v6, %s14080_s22  ;;  %v2360_v6 = vrot.slane %v2358_v49, 2  ;;  %v715_v49 = vshrl.u32 %v14382_v60, 16  ;;  %v13524_v60 = vld [vmem:[%s19052_s2 + $0x28] sm:$0xff]  }
  0x45   : > { %2480 = vrot.lane.b32.xlu0 %v2347_v12, %s14080_s22  ;;  %v1019_v12 = vsel %vm1006_vm1, %v1016_v21, %v1018_v53  ;;  %v1838_v21 = vrot.slane %v14386_v61, 2  ;;  %3020 = vmatpush1.bf16.msra.mxu0 %v13524_v60  ;;  %v13541_v60 = vld [vmem:[%s19054_s4 + $0x40] sm:$0xff]  }
  0x46   : > { %v14425_v19 = vor.u32 %v2363_v7, %v2360_v6  ;;  %v717_v62 = vor.u32 %v715_v49, %v713_v26  ;;  %v1022_v6 = vrot.slane %v14497_v51, 1  ;;  %v2770_v7 = vld [vmem:[#allocation2 + $0x160] sm:$0xff]  ;;  %3021 = vmatprep.subr.bf16.mxu0 %v19059_v2 }
  0x47   : > { %v1841_v26 = vsel %vm1824_vm0, %v1838_v21, %v1840_v56  ;;  %v14686_v51 = vld [vmem:[%s14152_s17 + $0x60] sm:$0xff]  }
  0x48   : > { %811 = vrot.lane.b32.xlu1 %v698_v20, %s14079_s21  ;;  %v14428_v20 = vld [vmem:[%s14152_s17 + $0x48] sm:$0xff]   ;;  %v2365_v4 = vsel %vm2303_vm3, %v14343_v27, %v14425_v19  ;;  %v2692_v27 = vrot.slane %v14453_v34, 3  ;;  %v1023_v61 = vsel %vm1006_vm1, %v1020_v29, %v1022_v6  ;;  %v14595_v34 = vld [vmem:[%s14152_s17 + $0x58] sm:$0xff]  }
  0x49   : > { %1870 = vrot.lane.b32.xlu0 %v1835_v28, %s14079_s21  ;;  %v13515_v28 = vld [vmem:[%s19054_s4 + $0x18] sm:$0xff]  }
  0x4a   : > { %v2764_v32 = vld [vmem:[#allocation2 + $0xf0] sm:$0xff]  ;;  %v2767_v38 = vld [vmem:[#allocation2 + $0x128] sm:$0xff]  ;;  %7029 = vmatpush1.bf16.msra.mxu1 %v13515_v28  ;;  %v2693_v47 = vsel %vm2676_vm5, %v2690_v13, %v2692_v27 }
  0x4b   : > { %13026 = vmatprep.mubr.msk.bf16.mxu1 %vm505_vm4, %v2764_v32  ;;  %7030 = vmatprep.subr.bf16.mxu1 %v19059_v2  ;;  %2739 = vst.msk [vmem:[#allocation2 + $0x198] sm:$0xff] %vm505_vm4, %v2693_v47  ;;  %v2388_v47 = vshll.u32 %v13533_v33, 16 }
  0x4c   : > { %1052 = vrot.lane.b32.xlu1 %v1017_v36, %s14078_s20  ;;  %v2077_v36 = vrot.slane %v14428_v20, 2  ;;  %13027 = vmatmul.mubr.msk.bf16.gmra.mrb[8].mxu1 %vm505_vm4, %v2767_v38  ;;  %v13535_v38 = vld [vmem:[%s19054_s4 + $0x38] sm:$0xff]   ;;  %v14607_v20 = vld [vmem:[%s14152_s17 + $0x70] sm:$0xff]  }
  0x4d   : > { %2109 = vrot.lane.b32.xlu0 %v2074_v40, %s14078_s20  ;;  %v14462_v40 = vld [vmem:[%s14152_s17 + $0x40] sm:$0xff]   ;;  %13030 = vmatprep.mubr.msk.bf16.mxu1 %vm505_vm4, %v2770_v7  ;;  %v2700_v37 = vrot.slane %v14607_v20, 3 }
  0x4e   : > { %v719_v48 = vshll.u32 %v14462_v40, 16  ;;  %7031 = vmatpush1.bf16.msra.mxu1 %v13521_v35  ;;  %v2078_v16 = vsel %vm1824_vm0, %v2075_v54, %v2077_v36  ;;  %v1261_v54 = vsel %vm1006_vm1, %v1258_v59, %v1260_v50  ;;  %v2080_v11 = vsel %vm1824_vm0, %v2077_v36, %v2079_v17 }
  0x4f   : > { %7032 = vmatprep.subr.bf16.mxu1 %v19059_v2 }
  0x50   : > { %1292 = vrot.lane.b32.xlu1 %v1257_v23, %s14080_s22  ;;  %v1839_v23 = vsel %vm1824_vm0, %v1836_v43, %v1838_v21  ;;  %v1021_v43 = vsel %vm1006_vm1, %v1018_v53, %v1020_v29  ;;  %v14507_v53 = vor.u32 %v2372_v45, %v2369_v41  ;;  %v721_v3 = vrot.slane %v719_v48, 1 }
  0x51   : > { %2482 = vrot.lane.b32.xlu0 %v2356_v52, %s14080_s22  ;;  %v13519_v52 = vld [vmem:[%s14152_s17 + $0x50] sm:$0xff]   ;;  %v1262_v21 = vrot.slane %v14538_v10, 1 }
  0x52   : > { %v2376_v8 = vshrl.u32 %v13519_v52, 16  ;;  %7033 = vmatpush1.bf16.msra.mxu1 %v13525_v30  ;;  %v2374_v18 = vsel %vm2303_vm3, %v14425_v19, %v14507_v53  ;;  %v2773_v59 = vld [vmem:[#allocation2 + $0x198] sm:$0xff]  ;;  %v2379_v55 = vshll.u32 %v13519_v52, 16  ;;  %v722_v15 = vsel %vm654_vm2, %v717_v62, %v721_v3  ;;  %v13530_v19 = vld [vmem:[%s19052_s2 + $0x30] sm:$0xff]  }
  0x53   : > { %7034 = vmatprep.subr.bf16.mxu1 %v19059_v2  ;;  %3022 = vmatpush1.bf16.msra.mxu0 %v13530_v19  ;;  %v1263_v36 = vsel %vm1006_vm1, %v1260_v50, %v1262_v21  ;;  %v1024_v50 = vrot.slane %v14585_v25, 1 }
  0x54   : > { %813 = vrot.lane.b32.xlu1 %v706_v58, %s14079_s21  ;;  %v723_v58 = vshrl.u32 %v14462_v40, 16  ;;  %13031 = vmatmul.mubr.msk.bf16.gmra.mrb[12].mxu1 %vm505_vm4, %v2773_v59  ;;  %v2378_v1 = vrot.slane %v2376_v8, 2  ;;  %v2381_v28 = vrot.slane %v2379_v55, 3  ;;  %v14628_v40 = vld [vmem:[%s14152_s17 + $0x50] sm:$0xff]  }
  0x55   : > { %1872 = vrot.lane.b32.xlu0 %v1837_v5, %s14079_s21  ;;  %v13526_v5 = vld [vmem:[%s14152_s17 + $0x58] sm:$0xff]   ;;  %3023 = vmatprep.subr.bf16.mxu0 %v19059_v2  ;;  %v735_v7 = vshll.u32 %v14628_v40, 16  ;;  %v14663_v8 = vld [vmem:[%s14152_s17 + $0x50] sm:$0xff]  }
  0x56   : > { %v2694_v63 = vrot.slane %v13526_v5, 3  ;;  %7035 = vmatpush1.bf16.msra.mxu1 %v13531_v24  ;;  %v14592_v29 = vor.u32 %v2381_v28, %v2378_v1  ;;  %v725_v41 = vor.u32 %v723_v58, %v721_v3  ;;  %v2081_v58 = vrot.slane %v14595_v34, 2  ;;  %v14656_v5 = vld [vmem:[%s14152_s17 + $0x58] sm:$0xff]  }
  0x57   : > { %7036 = vmatprep.subr.bf16.mxu1 %v19059_v2  ;;  %v1264_v3 = vrot.slane %v14617_v44, 1  ;;  %v1844_v55 = vrot.slane %v14656_v5, 2  ;;  %v13548_v28 = vld [vmem:[%s14152_s17 + $0x78] sm:$0xff]   ;;  %v13559_v44 = vld [vmem:[%s14152_s17 + $0x88] sm:$0xff]  }
  0x58   : > { %1054 = vrot.lane.b32.xlu1 %v1019_v12, %s14078_s20  ;;  %v14544_v12 = vld [vmem:[%s14152_s17 + $0x48] sm:$0xff]   ;;  %v2383_v35 = vsel %vm2303_vm3, %v14507_v53, %v14592_v29  ;;  %v2082_v59 = vsel %vm1824_vm0, %v2079_v17, %v2081_v58  ;;  %v14698_v17 = vrot.slane %v735_v7, 1  ;;  %v13557_v34 = vld [vmem:[%s19052_s2 + $0x58] sm:$0xff]  }
  0x59   : > { %2111 = vrot.lane.b32.xlu0 %v2076_v0, %s14078_s20  ;;  %v2695_v0 = vsel %vm2676_vm5, %v2692_v27, %v2694_v63  ;;  %v727_v32 = vshll.u32 %v14544_v12, 16  ;;  %v13536_v27 = vld [vmem:[%s14152_s17 + $0x68] sm:$0xff]  }
  0x5a   : > { %2740 = vst.msk [vmem:[#allocation2 + $0x1d0] sm:$0xff] %vm505_vm4, %v2695_v0  ;;  %7037 = vmatpush1.bf16.msra.mxu1 %v13535_v38  ;;  %v2698_v49 = vrot.slane %v13536_v27, 3  ;;  %v739_v0 = vshrl.u32 %v14628_v40, 16  ;;  %v2083_v27 = vrot.slane %v14686_v51, 2  ;;  %v13568_v51 = vld [vmem:[%s19052_s2 + $0x68] sm:$0xff]  }
  0x5b   : > { %v14601_v13 = vrot.slane %v727_v32, 1  ;;  %7038 = vmatprep.subr.bf16.mxu1 %v19059_v2 }
  0x5c   : > { %1294 = vrot.lane.b32.xlu1 %v1259_v22, %s14080_s22  ;;  %v2697_v22 = vsel %vm2676_vm5, %v2694_v63, %v2696_v14  ;;  %v2699_v48 = vsel %vm2676_vm5, %v2696_v14, %v2698_v49  ;;  %v2701_v52 = vsel %vm2676_vm5, %v2698_v49, %v2700_v37  ;;  %v13547_v63 = vld [vmem:[%s14152_s17 + $0x10] sm:$0xff]  }
  0x5d   : > { %2484 = vrot.lane.b32.xlu0 %v2365_v4, %s14080_s22  ;;  %2741 = vst.msk [vmem:[#allocation2 + $0x208] sm:$0xff] %vm505_vm4, %v2697_v22  ;;  %v13534_v4 = vld [vmem:[%s19052_s2 + $0x38] sm:$0xff]   ;;  %v730_v53 = vsel %vm654_vm2, %v725_v41, %v14601_v13  ;;  %2742 = vst.msk [vmem:[#allocation2 + $0x240] sm:$0xff] %vm505_vm4, %v2699_v48  ;;  %v1497_v10 = vshrl.u32 %v13547_v63, 16  ;;  %v1500_v22 = vshll.u32 %v13547_v63, 16  ;;  %v13553_v48 = vld [vmem:[%s19054_s4 + $0x50] sm:$0xff]  }
  0x5e   : > { %3024 = vmatpush1.bf16.msra.mxu0 %v13534_v4  ;;  %2743 = vst.msk [vmem:[#allocation2 + $0x278] sm:$0xff] %vm505_vm4, %v2701_v52  ;;  %7039 = vmatpush1.bf16.msra.mxu1 %v13541_v60  ;;  %v14711_v4 = vld [vmem:[%s14152_s17 + $0x80] sm:$0xff]   ;;  %v13554_v52 = vld [vmem:[%s14152_s17 + $0x18] sm:$0xff]  }
  0x5f   : > { %3025 = vmatprep.subr.bf16.mxu0 %v19059_v2  ;;  %7040 = vmatprep.subr.bf16.mxu1 %v19059_v2  ;;  %v1509_v60 = vshll.u32 %v13554_v52, 16 }
  0x60   : > { %815 = vrot.lane.b32.xlu1 %v714_v39, %s14079_s21  ;;  %v1842_v39 = vrot.slane %v14566_v31, 2 }
  0x61   : > { %1874 = vrot.lane.b32.xlu0 %v1839_v23, %s14079_s21  ;;  %v2776_v42 = vld [vmem:[#allocation2 + $0x1d0] sm:$0xff]  ;;  %v2385_v23 = vshrl.u32 %v13533_v33, 16 }
  0x62   : > { %13034 = vmatprep.mubr.msk.bf16.mxu1 %vm505_vm4, %v2776_v42  ;;  %v1843_v62 = vsel %vm1824_vm0, %v1840_v56, %v1842_v39  ;;  %v1025_v56 = vsel %vm1006_vm1, %v1022_v6, %v1024_v50  ;;  %7041 = vmatpush1.bf16.msra.mxu1 %v13545_v9  ;;  %v13546_v6 = vld [vmem:[%s14152_s17 + $0x8] sm:$0xfe]   ;;  %v2704_v42 = vrot.slane %v14711_v4, 3  ;;  %v1845_v49 = vsel %vm1824_vm0, %v1842_v39, %v1844_v55 }
  0x63   : > { %v2387_v30 = vrot.slane %v2385_v23, 2  ;;  %7042 = vmatprep.subr.bf16.mxu1 %v19059_v2  ;;  %v1489_v19 = vshrl.u32 %v13546_v6, 16  ;;  %v1492_v1 = vshll.u32 %v13546_v6, 16  ;;  %v741_v9 = vor.u32 %v739_v0, %v14698_v17  ;;  %v14801_v0 = vld [vmem:[%s14152_s17 + $0x90] sm:$0xff]  }
  0x64   : > { %1056 = vrot.lane.b32.xlu1 %v1021_v43, %s14078_s20  ;;  %v2779_v45 = vld [vmem:[#allocation2 + $0x208] sm:$0xff]  ;;  %v731_v43 = vshrl.u32 %v14544_v12, 16  ;;  %v1265_v12 = vsel %vm1006_vm1, %v1262_v21, %v1264_v3  ;;  %v2782_v57 = vld [vmem:[#allocation2 + $0x240] sm:$0xff]  ;;  %v1502_v21 = vrot.slane %v1500_v22, 2  ;;  %v2708_v22 = vrot.slane %v14801_v0, 3  ;;  %v13580_v0 = vld [vmem:[%s19054_s4 + $0x78] sm:$0xff]  }
  0x65   : > { %2113 = vrot.lane.b32.xlu0 %v2078_v16, %s14078_s20  ;;  %13035 = vmatmul.mubr.msk.bf16.gmra.mrb[16].mxu1 %vm505_vm4, %v2779_v45  ;;  %v13540_v16 = vld [vmem:[%s19052_s2 + $0x40] sm:$0xff]   ;;  %v2785_v14 = vld [vmem:[#allocation2 + $0x278] sm:$0xff]  ;;  %v1491_v32 = vrot.slane %v1489_v19, 1  ;;  %v1494_v33 = vrot.slane %v1492_v1, 2 }
  0x66   : > { %3026 = vmatpush1.bf16.msra.mxu0 %v13540_v16  ;;  %13038 = vmatprep.mubr.msk.bf16.mxu1 %vm505_vm4, %v2782_v57  ;;  %v14810_v19 = vld [vmem:[%s14152_s17 + $0x58] sm:$0xff]  }
  0x67   : > { %3027 = vmatprep.subr.bf16.mxu0 %v19059_v2  ;;  %7043 = vmatpush1.bf16.msra.mxu1 %v13553_v48  ;;  %v14880_v48 = vld [vmem:[%s14152_s17 + $0x60] sm:$0xff]  }
  0x68   : > { %1296 = vrot.lane.b32.xlu1 %v1261_v54, %s14080_s22  ;;  %v2390_v54 = vrot.slane %v2388_v47, 3  ;;  %7044 = vmatprep.subr.bf16.mxu1 %v19059_v2 }
  0x69   : > { %2486 = vrot.lane.b32.xlu0 %v2374_v18, %s14080_s22 }
  0x6a   : > { %v14677_v18 = vor.u32 %v2390_v54, %v2387_v30  ;;  %3028 = vmatpush1.bf16.msra.mxu0 %v13544_v46  ;;  %v14754_v30 = vld [vmem:[%s14152_s17 + $0x58] sm:$0xff]   ;;  %v14757_v54 = vld [vmem:[%s14152_s17 + $0x60] sm:$0xff]   ;;  %v1511_v46 = vrot.slane %v1509_v60, 2 }
  0x6b   : > { %3029 = vmatprep.subr.bf16.mxu0 %v19059_v2 }
  0x6c   : > { %817 = vrot.lane.b32.xlu1 %v722_v15, %s14079_s21  ;;  %v733_v15 = vor.u32 %v731_v43, %v14601_v13  ;;  %v2392_v24 = vsel %vm2303_vm3, %v14592_v29, %v14677_v18  ;;  %v2702_v13 = vrot.slane %v13548_v28, 3  ;;  %v13551_v29 = vld [vmem:[%s14152_s17 + $0x60] sm:$0xff]  }
  0x6d   : > { %1876 = vrot.lane.b32.xlu0 %v1841_v26, %s14079_s21  ;;  %13039 = vmatmul.mubr.msk.bf16.gmra.mrb[20].mxu1 %vm505_vm4, %v2785_v14  ;;  %v1026_v26 = vrot.slane %v14663_v8, 1  ;;  %v2394_v45 = vshrl.u32 %v13551_v29, 16  ;;  %v2397_v47 = vshll.u32 %v13551_v29, 16  ;;  %v1846_v14 = vrot.slane %v14757_v54, 2  ;;  %v14848_v29 = vld [vmem:[%s14152_s17 + $0x60] sm:$0xff]   ;;  %v13567_v8 = vld [vmem:[%s14152_s17 + $0x68] sm:$0xff]  }
  0x6e   : > { %v738_v38 = vsel %vm654_vm2, %v733_v15, %v14698_v17  ;;  %v2703_v23 = vsel %vm2676_vm5, %v2700_v37, %v2702_v13  ;;  %v2705_v43 = vsel %vm2676_vm5, %v2702_v13, %v2704_v42  ;;  %v13552_v37 = vld [vmem:[%s19052_s2 + $0x50] sm:$0xff]   ;;  %v2706_v17 = vrot.slane %v13559_v44, 3  ;;  %v14922_v44 = vld [vmem:[%s14152_s17 + $0x60] sm:$0xff]   ;;  %v13579_v54 = vld [vmem:[%s19052_s2 + $0x78] sm:$0xff]  }
  0x6f   : > { %2744 = vst.msk [vmem:[#allocation2 + $0x2b0] sm:$0xff] %vm505_vm4, %v2703_v23  ;;  %2745 = vst.msk [vmem:[#allocation2 + $0x2e8] sm:$0xff] %vm505_vm4, %v2705_v43  ;;  %v2396_v31 = vrot.slane %v2394_v45, 2  ;;  %v2399_v39 = vrot.slane %v2397_v47, 3  ;;  %v1027_v16 = vsel %vm1006_vm1, %v1024_v50, %v1026_v26  ;;  %3030 = vmatpush1.bf16.msra.mxu0 %v13552_v37  ;;  %v2406_v23 = vshll.u32 %v13567_v8, 16  ;;  %v13569_v45 = vld [vmem:[%s19054_s4 + $0x68] sm:$0xff]  }
  0x70   : > { %1058 = vrot.lane.b32.xlu1 %v1023_v61, %s14078_s20  ;;  %v1499_v61 = vrot.slane %v1497_v10, 1  ;;  %3031 = vmatprep.subr.bf16.mxu0 %v19059_v2  ;;  %v2707_v10 = vsel %vm2676_vm5, %v2704_v42, %v2706_v17  ;;  %v1268_v42 = vrot.slane %v14848_v29, 1  ;;  %v13570_v47 = vld [vmem:[%s14152_s17 + $0x8] sm:$0xff]  }
  0x71   : > { %2115 = vrot.lane.b32.xlu0 %v2080_v11, %s14078_s20  ;;  %v14714_v11 = vld [vmem:[%s14152_s17 + $0x58] sm:$0xff]   ;;  %v14764_v7 = vor.u32 %v2399_v39, %v2396_v31  ;;  %2746 = vst.msk [vmem:[#allocation2 + $0x320] sm:$0xff] %vm505_vm4, %v2707_v10  ;;  %v2408_v31 = vrot.slane %v2406_v23, 3  ;;  %507 = vst.msk [vmem:[#allocation2 + $0x38] sm:$0xff] %vm505_vm4, %v13570_v47  ;;  %v14983_v47 = vld [vmem:[%s14152_s17 + $0x70] sm:$0xff]  }
  0x72   : > { %v1503_v41 = vor.u32 %v1502_v21, %v1499_v61  ;;  %v1266_v20 = vrot.slane %v14714_v11, 1  ;;  %v13563_v61 = vld [vmem:[%s19052_s2 + $0x60] sm:$0xff]   ;;  %v2709_v21 = vsel %vm2676_vm5, %v2706_v17, %v2708_v22  ;;  %v13571_v39 = vld [vmem:[%s14152_s17 + $0x98] sm:$0xff]  }
  0x73   : > { %3032 = vmatpush1.bf16.msra.mxu0 %v13557_v34  ;;  %v2401_v57 = vsel %vm2303_vm3, %v14677_v18, %v14764_v7  ;;  %2747 = vst.msk [vmem:[#allocation2 + $0x358] sm:$0xff] %vm505_vm4, %v2709_v21  ;;  %v13572_v11 = vld [vmem:[%s14152_s17 + $0xa0] ss:$0 sps:$4 sm:$0x77]  }
  0x74   : > { %1298 = vrot.lane.b32.xlu1 %v1263_v36, %s14080_s22  ;;  %v1495_v36 = vor.u32 %v1494_v33, %v1491_v32  ;;  %3033 = vmatprep.subr.bf16.mxu0 %v19059_v2  ;;  %v1847_v32 = vsel %vm1824_vm0, %v1844_v55, %v1846_v14  ;;  %v1028_v33 = vrot.slane %v14810_v19, 1  ;;  %v13564_v55 = vld [vmem:[%s19054_s4 + $0x60] sm:$0xff]   ;;  %v1269_v43 = vsel %vm1006_vm1, %v1266_v20, %v1268_v42  ;;  %v14960_v19 = vld [vmem:[%s14152_s17 + $0x68] sm:$0xff]  }
  0x75   : > { %2488 = vrot.lane.b32.xlu0 %v2383_v35, %s14080_s22 }
  0x76   : > { %v1504_v35 = vsel %vm1487_vm6, %v1495_v36, %v1503_v41  ;;  %v2788_v6 = vld [vmem:[#allocation2 + $0x2b0] sm:$0xff]  ;;  %v2791_v40 = vld [vmem:[#allocation2 + $0x2e8] sm:$0xff]  ;;  %v1029_v4 = vsel %vm1006_vm1, %v1026_v26, %v1028_v33  ;;  %v747_v26 = vshrl.u32 %v14754_v30, 16 }
  0x77   : > { %1676 = vst.msk [vmem:[#allocation2 + $0x8] sm:$0xff] %vm505_vm4, %v1504_v35  ;;  %13042 = vmatprep.mubr.msk.bf16.mxu1 %vm505_vm4, %v2788_v6  ;;  %3034 = vmatpush1.bf16.msra.mxu0 %v13563_v61  ;;  %v13576_v6 = vld [vmem:[%s19054_s4 + $0x70] sm:$0xff]  }
  0x78   : > { %819 = vrot.lane.b32.xlu1 %v730_v53, %s14079_s21  ;;  %v1506_v53 = vshrl.u32 %v13554_v52, 16  ;;  %13043 = vmatmul.mubr.msk.bf16.gmra.mrb[24].mxu1 %vm505_vm4, %v2791_v40 }
  0x79   : > { %1878 = vrot.lane.b32.xlu0 %v1843_v62, %s14079_s21  ;;  %v2084_v62 = vsel %vm1824_vm0, %v2081_v58, %v2083_v27  ;;  %v1267_v58 = vsel %vm1006_vm1, %v1264_v3, %v1266_v20  ;;  %3035 = vmatprep.subr.bf16.mxu0 %v19059_v2 }
  0x7a   : > { %v1508_v50 = vrot.slane %v1506_v53, 1  ;;  %v2797_v52 = vld [vmem:[#allocation2 + $0x358] sm:$0xff]  ;;  %v2710_v53 = vrot.slane %v13571_v39, 3  ;;  %v14992_v39 = vld [vmem:[%s14152_s17 + $0x68] sm:$0xff]  }
  0x7b   : > { %3036 = vmatpush1.bf16.msra.mxu0 %v13568_v51 }
  0x7c   : > { %1060 = vrot.lane.b32.xlu1 %v1025_v56, %s14078_s20  ;;  %v743_v56 = vshll.u32 %v14754_v30, 16  ;;  %v14785_v63 = vor.u32 %v1511_v46, %v1508_v50  ;;  %3037 = vmatprep.subr.bf16.mxu0 %v19059_v2  ;;  %v751_v30 = vshll.u32 %v14880_v48, 16  ;;  %v14894_v50 = vld [vmem:[%s14152_s17 + $0x68] sm:$0xff]  }
  0x7d   : > { %2117 = vrot.lane.b32.xlu0 %v2082_v59, %s14078_s20  ;;  %v13558_v59 = vld [vmem:[%s19054_s4 + $0x58] sm:$0xff]  }
  0x7e   : > { %7045 = vmatpush1.bf16.msra.mxu1 %v13558_v59  ;;  %v1513_v15 = vsel %vm1487_vm6, %v1503_v41, %v14785_v63  ;;  %v14904_v34 = vrot.slane %v751_v30, 1  ;;  %v1848_v59 = vrot.slane %v14894_v50, 2  ;;  %v15037_v50 = vld [vmem:[%s14152_s17 + $0x70] sm:$0xff]  }
  0x7f   : > { %1677 = vst.msk [vmem:[#allocation2 + $0x40] sm:$0xff] %vm505_vm4, %v1513_v15  ;;  %7046 = vmatprep.subr.bf16.mxu1 %v19059_v2  ;;  %v1030_v15 = vrot.slane %v14922_v44, 1 }
  0x80   : > { %1300 = vrot.lane.b32.xlu1 %v1265_v12, %s14080_s22  ;;  %v14787_v12 = vrot.slane %v743_v56, 1  ;;  %v2711_v56 = vsel %vm2676_vm5, %v2708_v22, %v2710_v53 }
  0x81   : > { %2490 = vrot.lane.b32.xlu0 %v2392_v24, %s14080_s22  ;;  %v14818_v24 = vld [vmem:[%s14152_s17 + $0x68] sm:$0xff]   ;;  %2748 = vst.msk [vmem:[#allocation2 + $0x390] sm:$0xff] %vm505_vm4, %v2711_v56 }
  0x82   : > { %v746_v18 = vsel %vm654_vm2, %v741_v9, %v14787_v12  ;;  %v2085_v5 = vrot.slane %v14818_v24, 2  ;;  %7047 = vmatpush1.bf16.msra.mxu1 %v13564_v55  ;;  %v749_v60 = vor.u32 %v747_v26, %v14787_v12 }
  0x83   : > { %7048 = vmatprep.subr.bf16.mxu1 %v19059_v2 }
  0x84   : > { %821 = vrot.lane.b32.xlu1 %v738_v38, %s14079_s21  ;;  %v13565_v38 = vld [vmem:[%s14152_s17] sm:$0xff]   ;;  %v2086_v41 = vsel %vm1824_vm0, %v2083_v27, %v2085_v5  ;;  %v2403_v27 = vshrl.u32 %v13567_v8, 16  ;;  %v754_v12 = vsel %vm654_vm2, %v749_v60, %v14904_v34  ;;  %v13589_v60 = vld [vmem:[%s14152_s17 + $0x28] sm:$0xff]  }
  0x85   : > { %1880 = vrot.lane.b32.xlu0 %v1845_v49, %s14079_s21  ;;  %506 = vst.msk [vmem:[#allocation2] sm:$0xff] %vm505_vm4, %v13565_v38  ;;  %v2794_v49 = vld [vmem:[#allocation2 + $0x320] sm:$0xff] }
  0x86   : > { %13046 = vmatprep.mubr.msk.bf16.mxu1 %vm505_vm4, %v2794_v49  ;;  %v2405_v37 = vrot.slane %v2403_v27, 2  ;;  %7049 = vmatpush1.bf16.msra.mxu1 %v13569_v45  ;;  %v14980_v45 = vld [vmem:[%s14152_s17 + $0x68] sm:$0xff]  }
  0x87   : > { %13047 = vmatmul.mubr.msk.bf16.gmra.mrb[28].mxu1 %vm505_vm4, %v2797_v52  ;;  %7050 = vmatprep.subr.bf16.mxu1 %v19059_v2 }
  0x88   : > { %1062 = vrot.lane.b32.xlu1 %v1027_v16, %s14078_s20  ;;  %v14887_v20 = vor.u32 %v2408_v31, %v2405_v37  ;;  %v759_v31 = vshll.u32 %v14980_v45, 16 }
  0x89   : > { %2119 = vrot.lane.b32.xlu0 %v2084_v62, %s14078_s20 }
  0x8a   : > { %v2102_v25 = vpop.permute.xlu1 %2101  ;;  %v2410_v46 = vsel %vm2303_vm3, %v14764_v7, %v14887_v20  ;;  %7051 = vmatpush1.bf16.msra.mxu1 %v13576_v6 }
  0x8b   : > { %v1863_v3 = vpop.permute.xlu0 %1862  ;;  %7052 = vmatprep.subr.bf16.mxu1 %v19059_v2 }
  0x8c   : > { %1916 = vst.msk [vmem:[#allocation2 + $0x8] sm:$0xff] %vm857_vm7, %v1863_v3  ;;  %1302 = vrot.lane.b32.xlu1 %v1267_v58, %s14080_s22  ;;  %v13575_v58 = vld [vmem:[%s19052_s2 + $0x70] sm:$0xff]   ;;  %v1849_v3 = vsel %vm1824_vm0, %v1846_v14, %v1848_v59 }
  0x8d   : > { %2155 = vst.msk [vmem:[#allocation2 + $0x8] sm:$0xff] %vm1098_vm8, %v2102_v25  ;;  %2492 = vrot.lane.b32.xlu0 %v2401_v57, %s14080_s22  ;;  %v2712_v25 = vrot.slane %v13572_v11, 3  ;;  %3038 = vmatpush1.bf16.msra.mxu0 %v13575_v58  ;;  %v14931_v57 = vld [vmem:[%s14152_s17 + $0x70] sm:$0xff]   ;;  %v1850_v11 = vrot.slane %v14983_v47, 2  ;;  %v1524_v58 = vshrl.u32 %v13589_v60, 16 }
  0x8e   : > { %v1045_v1 = vpop.permute.xlu1 %1044  ;;  %3039 = vmatprep.subr.bf16.mxu0 %v19059_v2  ;;  %v2087_v17 = vrot.slane %v14931_v57, 2  ;;  %7053 = vmatpush1.bf16.msra.mxu1 %v13580_v0 }
  0x8f   : > { %v1865_v28 = vpop.permute.xlu0 %1864  ;;  %v2713_v7 = vsel %vm2676_vm5, %v2710_v53, %v2712_v25  ;;  %7199 = vmatprep.subr.bf16.mxu1 %v19059_v2  ;;  %v1032_v53 = vrot.slane %v14992_v39, 1 }
  0x90   : > { %1917 = vst.msk [vmem:[#allocation2 + $0x40] sm:$0xff] %vm857_vm7, %v1865_v28  ;;  %823 = vrot.lane.b32.xlu1 %v746_v18, %s14079_s21  ;;  %v1031_v18 = vsel %vm1006_vm1, %v1028_v33, %v1030_v15  ;;  %v2088_v10 = vsel %vm1824_vm0, %v2085_v5, %v2087_v17  ;;  %v13582_v28 = vld [vmem:[%s14152_s17 + $0x10] sm:$0xff]   ;;  %v755_v5 = vshrl.u32 %v14880_v48, 16  ;;  %v15000_v48 = vld [vmem:[%s14152_s17 + $0x78] sm:$0xff]  }
  0x91   : > { %1882 = vrot.lane.b32.xlu0 %v1847_v32, %s14079_s21  ;;  %2749 = vst.msk [vmem:[#allocation2 + $0x3c8] sm:$0xff] %vm505_vm4, %v2713_v7  ;;  %3040 = vmatpush1.bf16.msra.mxu0 %v13579_v54  ;;  %v2800_v32 = vld [vmem:[#allocation2 + $0x390] sm:$0xff]  ;;  %508 = vst.msk [vmem:[#allocation2 + $0x70] sm:$0xff] %vm505_vm4, %v13582_v28  ;;  %v1527_v7 = vshll.u32 %v13589_v60, 16  ;;  %v1033_v54 = vsel %vm1006_vm1, %v1030_v15, %v1032_v53  ;;  %v767_v15 = vshll.u32 %v15037_v50, 16 }
  0x92   : > { %v1285_v13 = vpop.permute.xlu1 %1284  ;;  %13050 = vmatprep.mubr.msk.bf16.mxu1 %vm505_vm4, %v2800_v32 }
  0x93   : > { %v2104_v36 = vpop.permute.xlu0 %2103 }
  0x94   : > { %2156 = vst.msk [vmem:[#allocation2 + $0x40] sm:$0xff] %vm1098_vm8, %v2104_v36  ;;  %1064 = vrot.lane.b32.xlu1 %v1029_v4, %s14078_s20  ;;  %v13584_v36 = vld [vmem:[%s14152_s17 + $0x70] sm:$0xff]  }
  0x95   : > { %2121 = vrot.lane.b32.xlu0 %v2086_v41, %s14078_s20  ;;  %v2412_v27 = vshrl.u32 %v13584_v36, 16  ;;  %v2415_v23 = vshll.u32 %v13584_v36, 16 }
  0x96   : > { %v1047_v35 = vpop.permute.xlu1 %1046 }
  0x97   : > { %v804_v16 = vpop.permute.xlu0 %803  ;;  %v2417_v37 = vrot.slane %v2415_v23, 3 }
  0x98   : > { %1304 = vrot.lane.b32.xlu1 %v1269_v43, %s14080_s22  ;;  %858 = vst.msk [vmem:[#allocation2] sm:$0xff] %vm857_vm7, %v804_v16  ;;  %v2803_v33 = vld [vmem:[#allocation2 + $0x3c8] sm:$0xff]  ;;  %v757_v43 = vor.u32 %v755_v5, %v14904_v34  ;;  %v761_v16 = vrot.slane %v759_v31, 1 }
  0x99   : > { %1099 = vst.msk [vmem:[#allocation2] sm:$0xff] %vm1098_vm8, %v1045_v1  ;;  %2494 = vrot.lane.b32.xlu0 %v2410_v46, %s14080_s22  ;;  %v13581_v1 = vld [vmem:[%s14152_s17 + $0x20] sm:$0xff]   ;;  %13051 = vmatmul.mubr.msk.bf16.gmra.mrb[32].mxu1 %vm505_vm4, %v2803_v33  ;;  %v13590_v46 = vld [vmem:[%s14152_s17 + $0x18] sm:$0xff]  }
  0x9a   : > { %v806_v62 = vpop.permute.xlu1 %805  ;;  %1339 = vst.msk [vmem:[#allocation2] sm:$0xff] %vm1338_vm9, %v1285_v13  ;;  %v1515_v61 = vshrl.u32 %v13581_v1, 16  ;;  %v1518_v21 = vshll.u32 %v13581_v1, 16  ;;  %v1270_v13 = vrot.slane %v14960_v19, 1  ;;  %v762_v34 = vsel %vm654_vm2, %v757_v43, %v761_v16  ;;  %v15086_v43 = vld [vmem:[%s14152_s17 + $0x78] sm:$0xff]  }
  0x9b   : > { %859 = vst.msk [vmem:[#allocation2 + $0x38] sm:$0xff] %vm857_vm7, %v806_v62  ;;  %v2475_v9 = vpop.permute.xlu0 %2474  ;;  %v2089_v62 = vrot.slane %v15000_v48, 2 }
  0x9c   : > { %1100 = vst.msk [vmem:[#allocation2 + $0x38] sm:$0xff] %vm1098_vm8, %v1047_v35  ;;  %825 = vrot.lane.b32.xlu1 %v754_v12, %s14079_s21  ;;  %v1517_v4 = vrot.slane %v1515_v61, 1  ;;  %v1520_v38 = vrot.slane %v1518_v21, 2  ;;  %v1271_v51 = vsel %vm1006_vm1, %v1268_v42, %v1270_v13  ;;  %v2414_v42 = vrot.slane %v2412_v27, 2  ;;  %v13592_v12 = vld [vmem:[%s14152_s17 + $0x78] sm:$0xff]  }
  0x9d   : > { %2528 = vst.msk [vmem:[#allocation2 + $0x8] sm:$0xff] %vm1338_vm9, %v2475_v9  ;;  %1884 = vrot.lane.b32.xlu0 %v1849_v3, %s14079_s21  ;;  %v15018_v9 = vld [vmem:[%s14152_s17 + $0x70] sm:$0xff]   ;;  %v1526_v3 = vrot.slane %v1524_v58, 1  ;;  %v2424_v1 = vshll.u32 %v13592_v12, 16  ;;  %v2090_v21 = vsel %vm1824_vm0, %v2087_v17, %v2089_v62  ;;  %v771_v27 = vshrl.u32 %v15037_v50, 16 }
  0x9e   : > { %v1287_v40 = vpop.permute.xlu1 %1286  ;;  %v14971_v26 = vor.u32 %v1520_v38, %v1517_v4  ;;  %v15003_v52 = vor.u32 %v2417_v37, %v2414_v42  ;;  %509 = vst.msk [vmem:[#allocation2 + $0xa8] sm:$0xff] %vm505_vm4, %v13590_v46  ;;  %v769_v38 = vrot.slane %v767_v15, 1  ;;  %v15152_v15 = vld [vmem:[%s14152_s17 + $0x80] sm:$0xff]  }
  0x9f   : > { %1340 = vst.msk [vmem:[#allocation2 + $0x38] sm:$0xff] %vm1338_vm9, %v1287_v40  ;;  %v2477_v14 = vpop.permute.xlu0 %2476  ;;  %v1272_v40 = vrot.slane %v15018_v9, 1  ;;  %v2426_v32 = vrot.slane %v2424_v1, 3  ;;  %v13606_v1 = vld [vmem:[%s14152_s17 + $0x28] sm:$0xff]  }
  0xa0   : > { %2529 = vst.msk [vmem:[#allocation2 + $0x40] sm:$0xff] %vm1338_vm9, %v2477_v14  ;;  %1066 = vrot.lane.b32.xlu1 %v1031_v18, %s14078_s20  ;;  %v1522_v29 = vsel %vm1487_vm6, %v14785_v63, %v14971_v26  ;;  %v2419_v56 = vsel %vm2303_vm3, %v14887_v20, %v15003_v52  ;;  %v1851_v20 = vsel %vm1824_vm0, %v1848_v59, %v1850_v11  ;;  %v1529_v14 = vrot.slane %v1527_v7, 2  ;;  %v15111_v7 = vld [vmem:[%s14152_s17 + $0x80] sm:$0xff]  }
  0xa1   : > { %2123 = vrot.lane.b32.xlu0 %v2088_v10, %s14078_s20  ;;  %v2750_v41 = vld [vmem:[#allocation2] sm:$0xff]  ;;  %1678 = vst.msk [vmem:[#allocation2 + $0x78] sm:$0xff] %vm505_vm4, %v1522_v29  ;;  %v2421_v18 = vshrl.u32 %v13592_v12, 16  ;;  %v763_v59 = vshrl.u32 %v14980_v45, 16  ;;  %v15041_v10 = vld [vmem:[%s14152_s17 + $0x78] sm:$0xff]   ;;  %v1273_v33 = vsel %vm1006_vm1, %v1270_v13, %v1272_v40  ;;  %v1854_v9 = vrot.slane %v15111_v7, 2 }
  0xa2   : > { %v808_v22 = vpop.permute.xlu1 %807  ;;  %v1852_v19 = vrot.slane %v15041_v10, 2  ;;  %v15070_v13 = vld [vmem:[%s14152_s17 + $0x80] sm:$0xff]   ;;  %511 = vst.msk [vmem:[#allocation2 + $0x118] sm:$0xff] %vm505_vm4, %v13606_v1  ;;  %v15254_v7 = vld [vmem:[%s14152_s17 + $0x90] sm:$0xff]  }
  0xa3   : > { %v1867_v55 = vpop.permute.xlu0 %1866  ;;  %860 = vst.msk [vmem:[#allocation2 + $0x70] sm:$0xff] %vm857_vm7, %v808_v22  ;;  %v15044_v22 = vor.u32 %v1529_v14, %v1526_v3  ;;  %v2423_v28 = vrot.slane %v2421_v18, 2  ;;  %v765_v17 = vor.u32 %v763_v59, %v761_v16  ;;  %v13600_v29 = vld [vmem:[%s14152_s17 + $0x80] sm:$0xff]   ;;  %v2091_v42 = vrot.slane %v15070_v13, 2  ;;  %v15094_v16 = vld [vmem:[%s14152_s17 + $0x78] sm:$0xff]  }
  0xa4   : > { %v2751_v24 = vld [vmem:[#allocation2 + $0x8] sm:$0xff]  ;;  %1306 = vrot.lane.b32.xlu1 %v1271_v51, %s14080_s22  ;;  %1918 = vst.msk [vmem:[#allocation2 + $0x78] sm:$0xff] %vm857_vm7, %v1867_v55  ;;  %v15060_v55 = vld [vmem:[%s14152_s17 + $0x70] sm:$0xff]   ;;  %v13598_v51 = vld [vmem:[%s14152_s17 + $0x20] sm:$0xff]   ;;  %v1853_v60 = vsel %vm1824_vm0, %v1850_v11, %v1852_v19  ;;  %v775_v47 = vshll.u32 %v15094_v16, 16  ;;  %v773_v18 = vor.u32 %v771_v27, %v769_v38  ;;  %v1276_v27 = vrot.slane %v15152_v15, 1 }
  0xa5   : > { %3041 = vmatprep.mubr.bf16.mxu0 %v2751_v24  ;;  %7054 = vmatprep.mubr.bf16.mxu1 %v2751_v24  ;;  %v1531_v24 = vsel %vm1487_vm6, %v14971_v26, %v15044_v22  ;;  %v15065_v5 = vor.u32 %v2426_v32, %v2423_v28  ;;  %v770_v23 = vsel %vm654_vm2, %v765_v17, %v769_v38 }
  0xa6   : > { %v1049_v8 = vpop.permute.xlu1 %1048  ;;  %3042 = vmatmul.mubr.bf16.vlgmr.msra.gmra.mrb[0].mxu0 %v2750_v41  ;;  %v2753_v25 = vld [vmem:[#allocation2 + $0x38] sm:$0xff]  ;;  %7055 = vmatmul.mubr.bf16.vlgmr.msra.gmra.mrb[36].mxu1 %v2750_v41  ;;  %1679 = vst.msk [vmem:[#allocation2 + $0xb0] sm:$0xff] %vm505_vm4, %v1531_v24  ;;  %v1034_v41 = vrot.slane %v15060_v55, 1  ;;  %510 = vst.msk [vmem:[#allocation2 + $0xe0] sm:$0xff] %vm505_vm4, %v13598_v51  ;;  %v1855_v38 = vsel %vm1824_vm0, %v1852_v19, %v1854_v9  ;;  %v13614_v55 = vld [vmem:[%s14152_s17 + $0x30] sm:$0xff]  }
  0xa7   : > { %1101 = vst.msk [vmem:[#allocation2 + $0x70] sm:$0xff] %vm1098_vm8, %v1049_v8  ;;  %v2106_v49 = vpop.permute.xlu0 %2105  ;;  %v2754_v35 = vld [vmem:[#allocation2 + $0x40] sm:$0xff]  ;;  %2496 = vrot.lane.b32.xlu0 %v2419_v56, %s14080_s22  ;;  %v13597_v8 = vld [vmem:[%s14152_s17 + $0x30] sm:$0xff]   ;;  %v2428_v26 = vsel %vm2303_vm3, %v15003_v52, %v15065_v5  ;;  %v2430_v52 = vshrl.u32 %v13600_v29, 16 }
  0xa8   : > { %3049 = vmatprep.mubr.bf16.mxu0 %v2754_v35  ;;  %2157 = vst.msk [vmem:[#allocation2 + $0x78] sm:$0xff] %vm1098_vm8, %v2106_v49  ;;  %7062 = vmatprep.mubr.bf16.mxu1 %v2754_v35  ;;  %v1533_v49 = vshrl.u32 %v13597_v8, 16  ;;  %v1536_v35 = vshll.u32 %v13597_v8, 16  ;;  %v1035_v46 = vsel %vm1006_vm1, %v1032_v53, %v1034_v41  ;;  %v2092_v53 = vsel %vm1824_vm0, %v2089_v62, %v2091_v42 }
  0xa9   : > { %827 = vrot.lane.b32.xlu1 %v762_v34, %s14079_s21  ;;  %v2432_v58 = vrot.slane %v2430_v52, 2  ;;  %v15136_v62 = vrot.slane %v775_v47, 1  ;;  %512 = vst.msk [vmem:[#allocation2 + $0x150] sm:$0xff] %vm505_vm4, %v13614_v55 }
  0xaa   : > { %v1289_v63 = vpop.permute.xlu1 %1288  ;;  %v1535_v37 = vrot.slane %v1533_v49, 1  ;;  %v1538_v31 = vrot.slane %v1536_v35, 2 }
  0xab   : > { %1341 = vst.msk [vmem:[#allocation2 + $0x70] sm:$0xff] %vm1338_vm9, %v1289_v63  ;;  %v2479_v30 = vpop.permute.xlu0 %2478  ;;  %1886 = vrot.lane.b32.xlu0 %v1851_v20, %s14079_s21  ;;  %v15117_v20 = vld [vmem:[%s14152_s17 + $0x78] sm:$0xff]  }
  0xac   : > { %2530 = vst.msk [vmem:[#allocation2 + $0x78] sm:$0xff] %vm1338_vm9, %v2479_v30  ;;  %v1274_v30 = vrot.slane %v15086_v43, 1  ;;  %v1539_v56 = vor.u32 %v1538_v31, %v1535_v37  ;;  %v1036_v24 = vrot.slane %v15117_v20, 1  ;;  %v13624_v20 = vld [vmem:[%s14152_s17 + $0x98] sm:$0xff]  }
  0xad   : > { %1068 = vrot.lane.b32.xlu1 %v1033_v54, %s14078_s20  ;;  %v13605_v54 = vld [vmem:[%s14152_s17 + $0x38] sm:$0xff]  }
  0xae   : > { %v810_v6 = vpop.permute.xlu1 %809  ;;  %3050 = vmatmul.mubr.bf16.gmra.mrb[4].mxu0 %v2753_v25  ;;  %7063 = vmatmul.mubr.bf16.gmra.mrb[40].mxu1 %v2753_v25  ;;  %v2433_v25 = vshll.u32 %v13600_v29, 16  ;;  %v1275_v14 = vsel %vm1006_vm1, %v1272_v40, %v1274_v30  ;;  %v1542_v50 = vshrl.u32 %v13605_v54, 16  ;;  %v1545_v59 = vshll.u32 %v13605_v54, 16  ;;  %v15183_v29 = vld [vmem:[%s14152_s17 + $0x88] sm:$0xff]  }
  0xaf   : > { %861 = vst.msk [vmem:[#allocation2 + $0xa8] sm:$0xff] %vm857_vm7, %v810_v6  ;;  %v1869_v0 = vpop.permute.xlu0 %1868  ;;  %2125 = vrot.lane.b32.xlu0 %v2090_v21, %s14078_s20  ;;  %v1540_v6 = vsel %vm1487_vm6, %v15044_v22, %v1539_v56  ;;  %v15143_v22 = vld [vmem:[%s14152_s17 + $0x88] sm:$0xff]   ;;  %v778_v21 = vsel %vm654_vm2, %v773_v18, %v15136_v62  ;;  %v1037_v19 = vsel %vm1006_vm1, %v1034_v41, %v1036_v24  ;;  %v1856_v43 = vrot.slane %v15183_v29, 2 }
  0xb0   : > { %1919 = vst.msk [vmem:[#allocation2 + $0xb0] sm:$0xff] %vm857_vm7, %v1869_v0  ;;  %v2435_v11 = vrot.slane %v2433_v25, 3  ;;  %v1544_v32 = vrot.slane %v1542_v50, 1 }
  0xb1   : > { %1308 = vrot.lane.b32.xlu1 %v1273_v33, %s14080_s22  ;;  %1680 = vst.msk [vmem:[#allocation2 + $0xe8] sm:$0xff] %vm505_vm4, %v1540_v6  ;;  %v13616_v6 = vld [vmem:[%s14152_s17 + $0x90] sm:$0xff]  }
  0xb2   : > { %v1051_v44 = vpop.permute.xlu1 %1050  ;;  %v2756_v61 = vld [vmem:[#allocation2 + $0x70] sm:$0xff]  ;;  %v15126_v3 = vor.u32 %v2435_v11, %v2432_v58  ;;  %v2448_v54 = vshrl.u32 %v13616_v6, 16 }
  0xb3   : > { %1102 = vst.msk [vmem:[#allocation2 + $0xa8] sm:$0xff] %vm1098_vm8, %v1051_v44  ;;  %v2108_v57 = vpop.permute.xlu0 %2107  ;;  %v2757_v4 = vld [vmem:[#allocation2 + $0x78] sm:$0xff]  ;;  %2498 = vrot.lane.b32.xlu0 %v2428_v26, %s14080_s22  ;;  %v1547_v44 = vrot.slane %v1545_v59, 2  ;;  %v779_v26 = vshrl.u32 %v15094_v16, 16  ;;  %v15188_v16 = vld [vmem:[%s14152_s17 + $0x80] sm:$0xff]  }
  0xb4   : > { %3057 = vmatprep.mubr.bf16.mxu0 %v2757_v4  ;;  %7070 = vmatprep.mubr.bf16.mxu1 %v2757_v4  ;;  %2158 = vst.msk [vmem:[#allocation2 + $0xb0] sm:$0xff] %vm1098_vm8, %v2108_v57  ;;  %v2437_v28 = vsel %vm2303_vm3, %v15065_v5, %v15126_v3  ;;  %v15159_v57 = vld [vmem:[%s14152_s17 + $0x80] sm:$0xff]   ;;  %v1038_v18 = vrot.slane %v15188_v16, 1 }
  0xb5   : > { %829 = vrot.lane.b32.xlu1 %v770_v23, %s14079_s21  ;;  %v1548_v5 = vor.u32 %v1547_v44, %v1544_v32  ;;  %v783_v35 = vshll.u32 %v15159_v57, 16  ;;  %v781_v13 = vor.u32 %v779_v26, %v15136_v62  ;;  %v15230_v62 = vld [vmem:[%s14152_s17 + $0x88] sm:$0xff]   ;;  %v787_v1 = vshrl.u32 %v15159_v57, 16  ;;  %v13622_v57 = vld [vmem:[%s14152_s17 + $0x38] sm:$0xff]  }
  0xb6   : > { %v1291_v36 = vpop.permute.xlu1 %1290  ;;  %3058 = vmatmul.mubr.bf16.gmra.mrb[8].mxu0 %v2756_v61  ;;  %7071 = vmatmul.mubr.bf16.gmra.mrb[44].mxu1 %v2756_v61  ;;  %v13608_v61 = vld [vmem:[%s14152_s17 + $0x88] sm:$0xff]   ;;  %513 = vst.msk [vmem:[#allocation2 + $0x188] sm:$0xff] %vm505_vm4, %v13622_v57 }
  0xb7   : > { %1342 = vst.msk [vmem:[#allocation2 + $0xa8] sm:$0xff] %vm1338_vm9, %v1291_v36  ;;  %v2481_v45 = vpop.permute.xlu0 %2480  ;;  %1888 = vrot.lane.b32.xlu0 %v1853_v60, %s14079_s21  ;;  %v2439_v4 = vshrl.u32 %v13608_v61, 16  ;;  %v2442_v17 = vshll.u32 %v13608_v61, 16  ;;  %v2093_v36 = vrot.slane %v15143_v22, 2  ;;  %v1549_v51 = vsel %vm1487_vm6, %v1539_v56, %v1548_v5  ;;  %v13621_v44 = vld [vmem:[%s14152_s17 + $0x48] sm:$0xff]  }
  0xb8   : > { %2531 = vst.msk [vmem:[#allocation2 + $0xb0] sm:$0xff] %vm1338_vm9, %v2481_v45  ;;  %v13613_v45 = vld [vmem:[%s14152_s17 + $0x40] sm:$0xff]   ;;  %v1277_v56 = vsel %vm1006_vm1, %v1274_v30, %v1276_v27  ;;  %v785_v47 = vrot.slane %v783_v35, 1  ;;  %v1039_v61 = vsel %vm1006_vm1, %v1036_v24, %v1038_v18 }
  0xb9   : > { %1070 = vrot.lane.b32.xlu1 %v1035_v46, %s14078_s20  ;;  %v2441_v23 = vrot.slane %v2439_v4, 2  ;;  %v2444_v10 = vrot.slane %v2442_v17, 3  ;;  %1681 = vst.msk [vmem:[#allocation2 + $0x120] sm:$0xff] %vm505_vm4, %v1549_v51  ;;  %v1551_v37 = vshrl.u32 %v13613_v45, 16  ;;  %v1554_v31 = vshll.u32 %v13613_v45, 16 }
  0xba   : > { %v812_v63 = vpop.permute.xlu1 %811  ;;  %v2094_v41 = vsel %vm1824_vm0, %v2091_v42, %v2093_v36  ;;  %v15207_v42 = vld [vmem:[%s14152_s17 + $0x90] sm:$0xff]  }
  0xbb   : > { %862 = vst.msk [vmem:[#allocation2 + $0xe0] sm:$0xff] %vm857_vm7, %v812_v63  ;;  %v1871_v34 = vpop.permute.xlu0 %1870  ;;  %2127 = vrot.lane.b32.xlu0 %v2092_v53, %s14078_s20  ;;  %v15197_v60 = vor.u32 %v2444_v10, %v2441_v23  ;;  %v1553_v25 = vrot.slane %v1551_v37, 1  ;;  %v1556_v46 = vrot.slane %v1554_v31, 2  ;;  %v13629_v37 = vld [vmem:[%s14152_s17 + $0x50] sm:$0xff]   ;;  %v2457_v31 = vshrl.u32 %v13624_v20, 16 }
  0xbc   : > { %1920 = vst.msk [vmem:[#allocation2 + $0xe8] sm:$0xff] %vm857_vm7, %v1871_v34 }
  0xbd   : > { %1310 = vrot.lane.b32.xlu1 %v1275_v14, %s14080_s22  ;;  %v15211_v11 = vor.u32 %v1556_v46, %v1553_v25  ;;  %v2451_v14 = vshll.u32 %v13616_v6, 16 }
  0xbe   : > { %v1053_v12 = vpop.permute.xlu1 %1052  ;;  %v2759_v39 = vld [vmem:[#allocation2 + $0xa8] sm:$0xff] }
  0xbf   : > { %1103 = vst.msk [vmem:[#allocation2 + $0xe0] sm:$0xff] %vm1098_vm8, %v1053_v12  ;;  %v2110_v0 = vpop.permute.xlu0 %2109  ;;  %v2760_v48 = vld [vmem:[#allocation2 + $0xb0] sm:$0xff]  ;;  %2500 = vrot.lane.b32.xlu0 %v2437_v28, %s14080_s22  ;;  %v15217_v12 = vld [vmem:[%s14152_s17 + $0x88] sm:$0xff]   ;;  %v1558_v53 = vsel %vm1487_vm6, %v1548_v5, %v15211_v11  ;;  %v1857_v28 = vsel %vm1824_vm0, %v1854_v9, %v1856_v43  ;;  %v2453_v32 = vrot.slane %v2451_v14, 3  ;;  %v1560_v9 = vshrl.u32 %v13621_v44, 16 }
  0xc0   : > { %2159 = vst.msk [vmem:[#allocation2 + $0xe8] sm:$0xff] %vm1098_vm8, %v2110_v0  ;;  %3065 = vmatprep.mubr.bf16.mxu0 %v2760_v48  ;;  %7078 = vmatprep.mubr.bf16.mxu1 %v2760_v48  ;;  %v786_v0 = vsel %vm654_vm2, %v781_v13, %v785_v47  ;;  %v1278_v59 = vrot.slane %v15217_v12, 1  ;;  %v1563_v5 = vshll.u32 %v13621_v44, 16  ;;  %v1572_v13 = vshll.u32 %v13629_v37, 16 }
  0xc1   : > { %3066 = vmatmul.mubr.bf16.gmra.mrb[12].mxu0 %v2759_v39  ;;  %7079 = vmatmul.mubr.bf16.gmra.mrb[48].mxu1 %v2759_v39  ;;  %v2446_v39 = vsel %vm2303_vm3, %v15126_v3, %v15197_v60  ;;  %1682 = vst.msk [vmem:[#allocation2 + $0x158] sm:$0xff] %vm505_vm4, %v1558_v53  ;;  %v2095_v3 = vrot.slane %v15207_v42, 2  ;;  %v1562_v26 = vrot.slane %v1560_v9, 1  ;;  %v15314_v14 = vld [vmem:[%s14152_s17 + $0x90] ss:$0 sps:$4 sm:$0x11]  }
  0xc2   : > { %v1293_v40 = vpop.permute.xlu1 %1292  ;;  %831 = vrot.lane.b32.xlu1 %v778_v21, %s14079_s21  ;;  %v1565_v51 = vrot.slane %v1563_v5, 2  ;;  %v1279_v23 = vsel %vm1006_vm1, %v1276_v27, %v1278_v59  ;;  %v15284_v27 = vld [vmem:[%s14152_s17 + $0x90] sm:$0xff]  }
  0xc3   : > { %1343 = vst.msk [vmem:[#allocation2 + $0xe0] sm:$0xff] %vm1338_vm9, %v1293_v40  ;;  %v2483_v33 = vpop.permute.xlu0 %2482  ;;  %1890 = vrot.lane.b32.xlu0 %v1855_v38, %s14079_s21  ;;  %v2450_v40 = vrot.slane %v2448_v54, 2  ;;  %v2096_v24 = vsel %vm1824_vm0, %v2093_v36, %v2095_v3  ;;  %v789_v36 = vor.u32 %v787_v1, %v785_v47  ;;  %v13630_v47 = vld [vmem:[%s14152_s17 + $0x40] sm:$0xff]   ;;  %v1280_v6 = vrot.slane %v15284_v27, 1 }
  0xc4   : > { %2532 = vst.msk [vmem:[#allocation2 + $0xe8] sm:$0xff] %vm1338_vm9, %v2483_v33  ;;  %v791_v33 = vshll.u32 %v15230_v62, 16  ;;  %v1566_v35 = vor.u32 %v1565_v51, %v1562_v26  ;;  %v15311_v54 = vld [vmem:[%s14152_s17 + $0x98] ss:$0 sps:$4 sm:$0x33]  }
  0xc5   : > { %v15265_v17 = vor.u32 %v2453_v32, %v2450_v40  ;;  %514 = vst.msk [vmem:[#allocation2 + $0x1c0] sm:$0xff] %vm505_vm4, %v13630_v47  ;;  %v13632_v1 = vld [vmem:[%s14152_s17 + $0xa0] ss:$0 sps:$4 sm:$0x77]  }
  0xc6   : > { %v814_v8 = vpop.permute.xlu1 %813  ;;  %1072 = vrot.lane.b32.xlu1 %v1037_v19, %s14078_s20  ;;  %v793_v45 = vrot.slane %v791_v33, 1  ;;  %v15277_v19 = vld [vmem:[%s14152_s17 + $0x98] sm:$0xff]   ;;  %v1567_v55 = vsel %vm1487_vm6, %v15211_v11, %v1566_v35  ;;  %v1281_v33 = vsel %vm1006_vm1, %v1278_v59, %v1280_v6  ;;  %v2466_v12 = vshrl.u32 %v13632_v1, 16 }
  0xc7   : > { %863 = vst.msk [vmem:[#allocation2 + $0x118] sm:$0xff] %vm857_vm7, %v814_v8  ;;  %v1873_v49 = vpop.permute.xlu0 %1872  ;;  %2129 = vrot.lane.b32.xlu0 %v2094_v41, %s14078_s20  ;;  %v15269_v8 = vld [vmem:[%s14152_s17 + $0x88] sm:$0xff]   ;;  %v2460_v41 = vshll.u32 %v13624_v20, 16  ;;  %v1042_v20 = vrot.slane %v15314_v14, 1 }
  0xc8   : > { %1921 = vst.msk [vmem:[#allocation2 + $0x120] sm:$0xff] %vm857_vm7, %v1873_v49  ;;  %v1858_v49 = vrot.slane %v15254_v7, 2  ;;  %v794_v25 = vsel %vm654_vm2, %v789_v36, %v793_v45 }
  0xc9   : > { %1683 = vst.msk [vmem:[#allocation2 + $0x190] sm:$0xff] %vm505_vm4, %v1567_v55  ;;  %v2462_v53 = vrot.slane %v2460_v41, 3  ;;  %v2468_v55 = vrot.slane %v2466_v12, 2 }
  0xca   : > { %v1055_v63 = vpop.permute.xlu1 %1054  ;;  %v2762_v52 = vld [vmem:[#allocation2 + $0xe0] sm:$0xff]  ;;  %1312 = vrot.lane.b32.xlu1 %v1277_v56, %s14080_s22  ;;  %v2097_v56 = vrot.slane %v15277_v19, 2 }
  0xcb   : > { %1104 = vst.msk [vmem:[#allocation2 + $0x118] sm:$0xff] %vm1098_vm8, %v1055_v63  ;;  %v2112_v34 = vpop.permute.xlu0 %2111  ;;  %v2763_v58 = vld [vmem:[#allocation2 + $0xe8] sm:$0xff]  ;;  %2502 = vrot.lane.b32.xlu0 %v2446_v39, %s14080_s22  ;;  %v2455_v63 = vsel %vm2303_vm3, %v15197_v60, %v15265_v17  ;;  %v795_v60 = vshrl.u32 %v15230_v62, 16  ;;  %v1859_v39 = vsel %vm1824_vm0, %v1856_v43, %v1858_v49 }
  0xcc   : > { %2160 = vst.msk [vmem:[#allocation2 + $0x120] sm:$0xff] %vm1098_vm8, %v2112_v34  ;;  %3073 = vmatprep.mubr.bf16.mxu0 %v2763_v58  ;;  %7086 = vmatprep.mubr.bf16.mxu1 %v2763_v58  ;;  %v13625_v34 = vld [vmem:[%s14152_s17 + $0x90] ss:$0 sps:$4 sm:$0x11]   ;;  %v1569_v58 = vshrl.u32 %v13629_v37, 16  ;;  %v2098_v16 = vsel %vm1824_vm0, %v2095_v3, %v2097_v56 }
  0xcd   : > { %3074 = vmatmul.mubr.bf16.gmra.mrb[16].mxu0 %v2762_v52  ;;  %7087 = vmatmul.mubr.bf16.gmra.mrb[52].mxu1 %v2762_v52  ;;  %v1040_v52 = vrot.slane %v15269_v8, 1  ;;  %v799_v62 = vshll.u32 %v13625_v34, 16  ;;  %v797_v32 = vor.u32 %v795_v60, %v793_v45  ;;  %v13631_v45 = vld [vmem:[%s14152_s17 + $0x98] ss:$0 sps:$4 sm:$0x11]   ;;  %v13637_v60 = vld [vmem:[%s14152_s17 + $0x68] sm:$0xff]  }
  0xce   : > { %v1295_v30 = vpop.permute.xlu1 %1294  ;;  %833 = vrot.lane.b32.xlu1 %v786_v0, %s14079_s21  ;;  %v1571_v0 = vrot.slane %v1569_v58, 1 }
  0xcf   : > { %1344 = vst.msk [vmem:[#allocation2 + $0x118] sm:$0xff] %vm1338_vm9, %v1295_v30  ;;  %v2485_v48 = vpop.permute.xlu0 %2484  ;;  %1892 = vrot.lane.b32.xlu0 %v1857_v28, %s14079_s21  ;;  %v2459_v30 = vrot.slane %v2457_v31, 2  ;;  %v1041_v29 = vsel %vm1006_vm1, %v1038_v18, %v1040_v52  ;;  %v13633_v28 = vld [vmem:[%s14152_s17 + $0x58] sm:$0xff]   ;;  %v801_v9 = vrot.slane %v799_v62, 1  ;;  %v13636_v31 = vld [vmem:[%s14152_s17 + $0x50] sm:$0xff]  }
  0xd0   : > { %2533 = vst.msk [vmem:[#allocation2 + $0x120] sm:$0xff] %vm1338_vm9, %v2485_v48  ;;  %v1574_v48 = vrot.slane %v1572_v13, 2  ;;  %v1578_v3 = vshrl.u32 %v13633_v28, 16  ;;  %v1581_v5 = vshll.u32 %v13633_v28, 16  ;;  %v1043_v13 = vsel %vm1006_vm1, %v1040_v52, %v1042_v20  ;;  %v309_v28 = vld [vmem:[%s19051_s1 + $0x8] sm:$0xff] }
  0xd1   : > { %v15332_v18 = vor.u32 %v2462_v53, %v2459_v30  ;;  %516 = vst.msk [vmem:[#allocation2 + $0x230] sm:$0xff] %vm505_vm4, %v13636_v31  ;;  %v1599_v53 = vshll.u32 %v13637_v60, 16  ;;  %v13646_v31 = vld [vmem:[%s14152_s17 + $0x88] sm:$0xff]  }
  0xd2   : > { %v816_v50 = vpop.permute.xlu1 %815  ;;  %1074 = vrot.lane.b32.xlu1 %v1039_v61, %s14078_s20  ;;  %v1580_v26 = vrot.slane %v1578_v3, 1  ;;  %v1583_v51 = vrot.slane %v1581_v5, 2  ;;  %v310_v5 = vld [vmem:[%s19051_s1 + $0x10] sm:$0xff] }
  0xd3   : > { %864 = vst.msk [vmem:[#allocation2 + $0x150] sm:$0xff] %vm857_vm7, %v816_v50  ;;  %v1875_v21 = vpop.permute.xlu0 %1874  ;;  %2131 = vrot.lane.b32.xlu0 %v2096_v24, %s14078_s20  ;;  %v1575_v50 = vor.u32 %v1574_v48, %v1571_v0  ;;  %v13628_v24 = vld [vmem:[%s14152_s17 + $0xa0] ss:$0 sps:$4 sm:$0x33]   ;;  %v1601_v14 = vrot.slane %v1599_v53, 2 }
  0xd4   : > { %1922 = vst.msk [vmem:[#allocation2 + $0x158] sm:$0xff] %vm857_vm7, %v1875_v21  ;;  %v13634_v21 = vld [vmem:[%s14152_s17 + $0x48] sm:$0xff]  }
  0xd5   : > { %v1576_v61 = vsel %vm1487_vm6, %v1566_v35, %v1575_v50  ;;  %515 = vst.msk [vmem:[#allocation2 + $0x1f8] sm:$0xff] %vm505_vm4, %v13634_v21  ;;  %v1584_v35 = vor.u32 %v1583_v51, %v1580_v26  ;;  %v13641_v21 = vld [vmem:[%s14152_s17 + $0x78] sm:$0xff]  }
  0xd6   : > { %v1057_v4 = vpop.permute.xlu1 %1056  ;;  %v2765_v38 = vld [vmem:[#allocation2 + $0x118] sm:$0xff]  ;;  %1314 = vrot.lane.b32.xlu1 %v1279_v23, %s14080_s22  ;;  %1684 = vst.msk [vmem:[#allocation2 + $0x1c8] sm:$0xff] %vm505_vm4, %v1576_v61  ;;  %v13635_v23 = vld [vmem:[%s14152_s17 + $0x60] sm:$0xff]   ;;  %v1617_v3 = vshll.u32 %v13641_v21, 16 }
  0xd7   : > { %1105 = vst.msk [vmem:[#allocation2 + $0x150] sm:$0xff] %vm1098_vm8, %v1057_v4  ;;  %v2114_v22 = vpop.permute.xlu0 %2113  ;;  %v2766_v10 = vld [vmem:[#allocation2 + $0x120] sm:$0xff]  ;;  %2504 = vrot.lane.b32.xlu0 %v2455_v63, %s14080_s22  ;;  %v1860_v4 = vrot.slane %v15311_v54, 2  ;;  %v1587_v37 = vshrl.u32 %v13635_v23, 16  ;;  %v2099_v63 = vrot.slane %v13628_v24, 2  ;;  %v13638_v54 = vld [vmem:[%s14152_s17 + $0x58] sm:$0xff]  }
  0xd8   : > { %2161 = vst.msk [vmem:[#allocation2 + $0x158] sm:$0xff] %vm1098_vm8, %v2114_v22  ;;  %3081 = vmatprep.mubr.bf16.mxu0 %v2766_v10  ;;  %7094 = vmatprep.mubr.bf16.mxu1 %v2766_v10  ;;  %v2464_v22 = vsel %vm2303_vm3, %v15265_v17, %v15332_v18  ;;  %v802_v10 = vsel %vm654_vm2, %v797_v32, %v801_v9  ;;  %v1614_v9 = vshrl.u32 %v13641_v21, 16  ;;  %v1619_v12 = vrot.slane %v1617_v3, 2 }
  0xd9   : > { %3082 = vmatmul.mubr.bf16.gmra.mrb[20].mxu0 %v2765_v38  ;;  %7095 = vmatmul.mubr.bf16.gmra.mrb[56].mxu1 %v2765_v38  ;;  %v2469_v38 = vshll.u32 %v13632_v1, 16  ;;  %v1861_v58 = vsel %vm1824_vm0, %v1858_v49, %v1860_v4  ;;  %517 = vst.msk [vmem:[#allocation2 + $0x268] sm:$0xff] %vm505_vm4, %v13638_v54  ;;  %v2100_v0 = vsel %vm1824_vm0, %v2097_v56, %v2099_v63  ;;  %v313_v63 = vld [vmem:[%s19051_s1 + $0x28] sm:$0xff]  ;;  %v13649_v54 = vld [vmem:[%s14152_s17 + $0x80] sm:$0xff]  }
  0xda   : > { %v1297_v15 = vpop.permute.xlu1 %1296  ;;  %835 = vrot.lane.b32.xlu1 %v794_v25, %s14079_s21  ;;  %v1585_v25 = vsel %vm1487_vm6, %v1575_v50, %v1584_v35  ;;  %v1616_v24 = vrot.slane %v1614_v9, 1  ;;  %522 = vst.msk [vmem:[#allocation2 + $0x380] sm:$0xff] %vm505_vm4, %v13649_v54 }
  0xdb   : > { %1345 = vst.msk [vmem:[#allocation2 + $0x150] sm:$0xff] %vm1338_vm9, %v1297_v15  ;;  %v2487_v46 = vpop.permute.xlu0 %2486  ;;  %1894 = vrot.lane.b32.xlu0 %v1859_v39, %s14079_s21  ;;  %v1590_v15 = vshll.u32 %v13635_v23, 16  ;;  %v2471_v17 = vrot.slane %v2469_v38, 3  ;;  %v1596_v39 = vshrl.u32 %v13637_v60, 16  ;;  %v311_v38 = vld [vmem:[%s19051_s1 + $0x18] sm:$0xff]  ;;  %v13645_v23 = vld [vmem:[%s14152_s17 + $0x70] sm:$0xff]  }
  0xdc   : > { %2534 = vst.msk [vmem:[#allocation2 + $0x158] sm:$0xff] %vm1338_vm9, %v2487_v46  ;;  %v1589_v46 = vrot.slane %v1587_v37, 1  ;;  %v1620_v51 = vor.u32 %v1619_v12, %v1616_v24  ;;  %v13647_v60 = vld [vmem:[%s14152_s17 + $0x78] sm:$0xff]   ;;  %v321_v24 = vld [vmem:[%s19051_s1 + $0x68] sm:$0xff] }
  0xdd   : > { %v1592_v34 = vrot.slane %v1590_v15, 2  ;;  %1685 = vst.msk [vmem:[#allocation2 + $0x200] sm:$0xff] %vm505_vm4, %v1585_v25  ;;  %v1598_v52 = vrot.slane %v1596_v39, 1  ;;  %v2472_v48 = vor.u32 %v2471_v17, %v2468_v55  ;;  %520 = vst.msk [vmem:[#allocation2 + $0x310] sm:$0xff] %vm505_vm4, %v13645_v23  ;;  %v314_v17 = vld [vmem:[%s19051_s1 + $0x30] sm:$0xff]  ;;  %v324_v23 = vld [vmem:[%s19051_s1 + $0x80] sm:$0xff] }
  0xde   : > { %v818_v11 = vpop.permute.xlu1 %817  ;;  %1076 = vrot.lane.b32.xlu1 %v1041_v29, %s14078_s20  ;;  %v13639_v29 = vld [vmem:[%s14152_s17 + $0x70] sm:$0xff]   ;;  %521 = vst.msk [vmem:[#allocation2 + $0x348] sm:$0xff] %vm505_vm4, %v13647_v60  ;;  %v331_v60 = vld [vmem:[%s19051_s1 + $0xb8] sm:$0xff] }
  0xdf   : > { %865 = vst.msk [vmem:[#allocation2 + $0x188] sm:$0xff] %vm857_vm7, %v818_v11  ;;  %v1877_v43 = vpop.permute.xlu0 %1876  ;;  %2133 = vrot.lane.b32.xlu0 %v2098_v16, %s14078_s20  ;;  %v1282_v11 = vrot.slane %v13631_v45, 1  ;;  %v1593_v30 = vor.u32 %v1592_v34, %v1589_v46  ;;  %v1602_v50 = vor.u32 %v1601_v14, %v1598_v52  ;;  %v1605_v19 = vshrl.u32 %v13639_v29, 16  ;;  %v13650_v52 = vld [vmem:[%s14152_s17 + $0x98] ss:$0 sps:$4 sm:$0x33]  }
  0xe0   : > { %1923 = vst.msk [vmem:[#allocation2 + $0x190] sm:$0xff] %vm857_vm7, %v1877_v43  ;;  %v1608_v56 = vshll.u32 %v13639_v29, 16  ;;  %v2473_v16 = vsel %vm2303_vm3, %v15332_v18, %v2472_v48  ;;  %v308_v18 = vld [vmem:[%s19051_s1] sm:$0xff]  ;;  %v1632_v46 = vshrl.u32 %v13646_v31, 16  ;;  %v1635_v34 = vshll.u32 %v13646_v31, 16 }
  0xe1   : > { %v1594_v49 = vsel %vm1487_vm6, %v1584_v35, %v1593_v30  ;;  %v1283_v43 = vsel %vm1006_vm1, %v1280_v6, %v1282_v11  ;;  %v1603_v6 = vsel %vm1487_vm6, %v1593_v30, %v1602_v50  ;;  %v1607_v32 = vrot.slane %v1605_v19, 1 }
  0xe2   : > { %v1059_v40 = vpop.permute.xlu1 %1058  ;;  %v2768_v44 = vld [vmem:[#allocation2 + $0x150] sm:$0xff]  ;;  %1316 = vrot.lane.b32.xlu1 %v1281_v33, %s14080_s22  ;;  %1686 = vst.msk [vmem:[#allocation2 + $0x238] sm:$0xff] %vm505_vm4, %v1594_v49  ;;  %1687 = vst.msk [vmem:[#allocation2 + $0x270] sm:$0xff] %vm505_vm4, %v1603_v6  ;;  %v1634_v11 = vrot.slane %v1632_v46, 1  ;;  %v1637_v30 = vrot.slane %v1635_v34, 2 }
  0xe3   : > { %1106 = vst.msk [vmem:[#allocation2 + $0x188] sm:$0xff] %vm1098_vm8, %v1059_v40  ;;  %v2116_v57 = vpop.permute.xlu0 %2115  ;;  %v2769_v42 = vld [vmem:[#allocation2 + $0x158] sm:$0xff]  ;;  %2506 = vrot.lane.b32.xlu0 %v2464_v22, %s14080_s22  ;;  %v13640_v40 = vld [vmem:[%s14152_s17 + $0x60] sm:$0xff]  }
  0xe4   : > { %2162 = vst.msk [vmem:[#allocation2 + $0x190] sm:$0xff] %vm1098_vm8, %v2116_v57  ;;  %3089 = vmatprep.mubr.bf16.mxu0 %v2769_v42  ;;  %7102 = vmatprep.mubr.bf16.mxu1 %v2769_v42  ;;  %v13642_v57 = vld [vmem:[%s14152_s17 + $0x68] sm:$0xff]   ;;  %v312_v22 = vld [vmem:[%s19051_s1 + $0x20] sm:$0xff] }
  0xe5   : > { %3090 = vmatmul.mubr.bf16.gmra.mrb[24].mxu0 %v2768_v44  ;;  %7103 = vmatmul.mubr.bf16.gmra.mrb[60].mxu1 %v2768_v44  ;;  %518 = vst.msk [vmem:[#allocation2 + $0x2a0] sm:$0xff] %vm505_vm4, %v13640_v40  ;;  %v1610_v44 = vrot.slane %v1608_v56, 2  ;;  %519 = vst.msk [vmem:[#allocation2 + $0x2d8] sm:$0xff] %vm505_vm4, %v13642_v57 }
  0xe6   : > { %v1299_v59 = vpop.permute.xlu1 %1298  ;;  %837 = vrot.lane.b32.xlu1 %v802_v10, %s14079_s21 }
  0xe7   : > { %1346 = vst.msk [vmem:[#allocation2 + $0x188] sm:$0xff] %vm1338_vm9, %v1299_v59  ;;  %v2489_v36 = vpop.permute.xlu0 %2488  ;;  %1896 = vrot.lane.b32.xlu0 %v1861_v58, %s14079_s21  ;;  %v1611_v33 = vor.u32 %v1610_v44, %v1607_v32  ;;  %v13644_v59 = vld [vmem:[%s14152_s17 + $0x80] sm:$0xff]   ;;  %v13648_v58 = vld [vmem:[%s14152_s17 + $0x90] sm:$0xff]   ;;  %v317_v32 = vld [vmem:[%s19051_s1 + $0x48] sm:$0xff] }
  0xe8   : > { %2535 = vst.msk [vmem:[#allocation2 + $0x190] sm:$0xff] %vm1338_vm9, %v2489_v36  ;;  %v1623_v36 = vshrl.u32 %v13644_v59, 16  ;;  %v1626_v45 = vshll.u32 %v13644_v59, 16  ;;  %v1641_v39 = vshrl.u32 %v13648_v58, 16  ;;  %v1644_v53 = vshll.u32 %v13648_v58, 16  ;;  %v318_v44 = vld [vmem:[%s19051_s1 + $0x50] sm:$0xff] }
  0xe9   : > { %v1612_v4 = vsel %vm1487_vm6, %v1602_v50, %v1611_v33  ;;  %v1621_v15 = vsel %vm1487_vm6, %v1611_v33, %v1620_v51  ;;  %v316_v50 = vld [vmem:[%s19051_s1 + $0x40] sm:$0xff]  ;;  %v322_v59 = vld [vmem:[%s19051_s1 + $0x70] sm:$0xff] }
  0xea   : > { %v820_v41 = vpop.permute.xlu1 %819  ;;  %1078 = vrot.lane.b32.xlu1 %v1043_v13, %s14078_s20  ;;  %1688 = vst.msk [vmem:[#allocation2 + $0x2a8] sm:$0xff] %vm505_vm4, %v1612_v4  ;;  %1689 = vst.msk [vmem:[#allocation2 + $0x2e0] sm:$0xff] %vm505_vm4, %v1621_v15  ;;  %v1625_v55 = vrot.slane %v1623_v36, 1  ;;  %v1643_v48 = vrot.slane %v1641_v39, 1  ;;  %v1646_v29 = vrot.slane %v1644_v53, 2  ;;  %v319_v4 = vld [vmem:[%s19051_s1 + $0x58] sm:$0xff] }
  0xeb   : > { %866 = vst.msk [vmem:[#allocation2 + $0x1c0] sm:$0xff] %vm857_vm7, %v820_v41  ;;  %v1879_v47 = vpop.permute.xlu0 %1878  ;;  %2135 = vrot.lane.b32.xlu0 %v2100_v0, %s14078_s20  ;;  %v1628_v41 = vrot.slane %v1626_v45, 2  ;;  %v1638_v0 = vor.u32 %v1637_v30, %v1634_v11  ;;  %v325_v36 = vld [vmem:[%s19051_s1 + $0x88] sm:$0xff]  ;;  %v327_v15 = vld [vmem:[%s19051_s1 + $0x98] sm:$0xff] }
  0xec   : > { %1924 = vst.msk [vmem:[#allocation2 + $0x1c8] sm:$0xff] %vm857_vm7, %v1879_v47  ;;  %v1647_v56 = vor.u32 %v1646_v29, %v1643_v48  ;;  %v333_v39 = vld [vmem:[%s19051_s1 + $0xc8] sm:$0xff] }
  0xed   : > { %v1629_v13 = vor.u32 %v1628_v41, %v1625_v55  ;;  %v329_v55 = vld [vmem:[%s19051_s1 + $0xa8] sm:$0xff]  ;;  %v330_v41 = vld [vmem:[%s19051_s1 + $0xb0] sm:$0xff] }
  0xee   : > { %v1061_v7 = vpop.permute.xlu1 %1060  ;;  %v2771_v8 = vld [vmem:[#allocation2 + $0x188] sm:$0xff]  ;;  %1318 = vrot.lane.b32.xlu1 %v1283_v43, %s14080_s22  ;;  %v1650_v43 = vshrl.u32 %v13650_v52, 16  ;;  %v1648_v21 = vsel %vm1487_vm6, %v1638_v0, %v1647_v56 }
  0xef   : > { %1107 = vst.msk [vmem:[#allocation2 + $0x1c0] sm:$0xff] %vm1098_vm8, %v1061_v7  ;;  %v2118_v62 = vpop.permute.xlu0 %2117  ;;  %v2772_v1 = vld [vmem:[#allocation2 + $0x190] sm:$0xff]  ;;  %2508 = vrot.lane.b32.xlu0 %v2473_v16, %s14080_s22  ;;  %v13651_v7 = vld [vmem:[%s14152_s17 + $0x88] sm:$0xff]   ;;  %v1630_v49 = vsel %vm1487_vm6, %v1620_v51, %v1629_v13  ;;  %v1639_v19 = vsel %vm1487_vm6, %v1629_v13, %v1638_v0  ;;  %v335_v0 = vld [vmem:[%s19051_s1 + $0xd8] sm:$0xff] }
  0xf0   : > { %2163 = vst.msk [vmem:[#allocation2 + $0x1c8] sm:$0xff] %vm1098_vm8, %v2118_v62  ;;  %3097 = vmatprep.mubr.bf16.mxu0 %v2772_v1  ;;  %7110 = vmatprep.mubr.bf16.mxu1 %v2772_v1  ;;  %v1653_v62 = vshll.u32 %v13650_v52, 16  ;;  %v350_v1 = vld [vmem:[#allocation3 + $0x8] sm:$0x3] }
  0xf1   : > { %3098 = vmatmul.mubr.bf16.gmra.mrb[28].mxu0 %v2771_v8  ;;  %7111 = vmatmul.mubr.bf16.gmra.mrb[64].mxu1 %v2771_v8  ;;  %v315_v8 = vld [vmem:[%s19051_s1 + $0x38] sm:$0xff]  ;;  %1690 = vst.msk [vmem:[#allocation2 + $0x318] sm:$0xff] %vm505_vm4, %v1630_v49  ;;  %523 = vst.msk [vmem:[#allocation2 + $0x3b8] sm:$0xff] %vm505_vm4, %v13651_v7  ;;  %v351_v16 = vsel %vm349_vm13, 0, %v350_v1  ;;  %vm3723_vm13 = vsmask.f32 5392 }
  0xf2   : > { %v1301_v27 = vpop.permute.xlu1 %1300  ;;  %3406 = vperm.xlu1 %13446, %v309_v28   ;;  %v356_v28 = vld [vmem:[#allocation3 + $0x98] sm:$0xe]  ;;  %1691 = vst.msk [vmem:[#allocation2 + $0x350] sm:$0xff] %vm505_vm4, %v1639_v19  ;;  %v1655_v6 = vrot.slane %v1653_v62, 2  ;;  %352 = vst [vmem:[#allocation3 + $0x8] sm:$0x3] %v351_v16 }
  0xf3   : > { %1347 = vst.msk [vmem:[#allocation2 + $0x1c0] sm:$0xff] %vm1338_vm9, %v1301_v27  ;;  %v2491_v61 = vpop.permute.xlu0 %2490  ;;  %3401 = vperm.xlu0 %13445, %v308_v18   ;;  %v1652_v27 = vrot.slane %v1650_v43, 1  ;;  %v357_v33 = vsel %vm355_vm10, 0, %v356_v28  ;;  %v336_v43 = vld [vmem:[%s19051_s1 + $0xe0] sm:$0xff]  ;;  %v13643_v62 = vld [vmem:[#allocation3] sm:$0xff]   ;;  %vm15688_vm10 = vmor %vm348_vm12, %vm3723_vm13  ;;  %vm6967_vm13 = vcmask 523264  }
  0xf4   : > { %2536 = vst.msk [vmem:[#allocation2 + $0x1c8] sm:$0xff] %vm1338_vm9, %v2491_v61  ;;  %358 = vst [vmem:[#allocation3 + $0x98] sm:$0xe] %v357_v33 }
  0xf5   : > { %1692 = vst.msk [vmem:[#allocation2 + $0x388] sm:$0xff] %vm505_vm4, %v1648_v21  ;;  %v339_v21 = vld [vmem:[%s19051_s1 + $0xf8] sm:$0xff] }
  0xf6   : > { %v822_v42 = vpop.permute.xlu1 %821  ;;  %3411 = vperm.xlu1 %13446, %v310_v5  }
  0xf7   : > { %867 = vst.msk [vmem:[#allocation2 + $0x1f8] sm:$0xff] %vm857_vm7, %v822_v42  ;;  %v1881_v20 = vpop.permute.xlu0 %1880  ;;  %3416 = vperm.xlu0 %13445, %v311_v38   ;;  %v1656_v42 = vor.u32 %v1655_v6, %v1652_v27  ;;  %v338_v27 = vld [vmem:[%s19051_s1 + $0xf0] sm:$0xff] }
  0xf8   : > { %1925 = vst.msk [vmem:[#allocation2 + $0x200] sm:$0xff] %vm857_vm7, %v1881_v20  ;;  %v320_v20 = vld [vmem:[%s19051_s1 + $0x60] sm:$0xff] }
  0xf9   : > { %v1657_v18 = vsel %vm1487_vm6, %v1647_v56, %v1656_v42  ;;  %v342_v42 = vld [vmem:[%s19051_s1 + $0x110] sm:$0xff] }
  0xfa   : > { %v1063_v26 = vpop.permute.xlu1 %1062  ;;  %v2774_v10 = vld [vmem:[#allocation2 + $0x1c0] sm:$0xff]  ;;  %3421 = vperm.xlu1 %13446, %v312_v22   ;;  %1693 = vst.msk [vmem:[#allocation2 + $0x3c0] sm:$0xff] %vm505_vm4, %v1657_v18 }
  0xfb   : > { %1108 = vst.msk [vmem:[#allocation2 + $0x1f8] sm:$0xff] %vm1098_vm8, %v1063_v26  ;;  %v2120_v35 = vpop.permute.xlu0 %2119  ;;  %v2775_v37 = vld [vmem:[#allocation2 + $0x1c8] sm:$0xff]  ;;  %3426 = vperm.xlu0 %13445, %v313_v63   ;;  %v323_v26 = vld [vmem:[%s19051_s1 + $0x78] sm:$0xff]  ;;  %v328_v63 = vld [vmem:[%s19051_s1 + $0xa0] sm:$0xff] }
  0xfc   : > { %2164 = vst.msk [vmem:[#allocation2 + $0x200] sm:$0xff] %vm1098_vm8, %v2120_v35  ;;  %3105 = vmatprep.mubr.bf16.mxu0 %v2775_v37  ;;  %7118 = vmatprep.mubr.bf16.mxu1 %v2775_v37  ;;  %v326_v37 = vld [vmem:[%s19051_s1 + $0x90] sm:$0xff] }
  0xfd   : > { %3106 = vmatmul.mubr.bf16.gmra.mrb[32].mxu0 %v2774_v10  ;;  %7119 = vmatmul.mubr.bf16.gmra.mrb[68].mxu1 %v2774_v10 }
  0xfe   : > { %v1303_v25 = vpop.permute.xlu1 %1302  ;;  %3431 = vperm.xlu1 %13446, %v314_v17  }
  0xff   : > { %1348 = vst.msk [vmem:[#allocation2 + $0x1f8] sm:$0xff] %vm1338_vm9, %v1303_v25  ;;  %v2493_v47 = vpop.permute.xlu0 %2492  ;;  %3436 = vperm.xlu0 %13445, %v315_v8   ;;  %v334_v8 = vld [vmem:[%s19051_s1 + $0xd0] sm:$0xff] }
 0x100   : > { %2537 = vst.msk [vmem:[#allocation2 + $0x200] sm:$0xff] %vm1338_vm9, %v2493_v47  ;;  %v332_v47 = vld [vmem:[%s19051_s1 + $0xc0] sm:$0xff] }
 0x102   : > { %v824_v14 = vpop.permute.xlu1 %823  ;;  %3441 = vperm.xlu1 %13446, %v316_v50  }
 0x103   : > { %868 = vst.msk [vmem:[#allocation2 + $0x230] sm:$0xff] %vm857_vm7, %v824_v14  ;;  %v1883_v40 = vpop.permute.xlu0 %1882  ;;  %3446 = vperm.xlu0 %13445, %v317_v32  }
 0x104   : > { %1926 = vst.msk [vmem:[#allocation2 + $0x238] sm:$0xff] %vm857_vm7, %v1883_v40  ;;  %v337_v40 = vld [vmem:[%s19051_s1 + $0xe8] sm:$0xff] }
 0x106   : > { %v1065_v61 = vpop.permute.xlu1 %1064  ;;  %v2777_v57 = vld [vmem:[#allocation2 + $0x1f8] sm:$0xff]  ;;  %3451 = vperm.xlu1 %13446, %v318_v44  }
 0x107   : > { %1109 = vst.msk [vmem:[#allocation2 + $0x230] sm:$0xff] %vm1098_vm8, %v1065_v61  ;;  %v2122_v9 = vpop.permute.xlu0 %2121  ;;  %v2778_v3 = vld [vmem:[#allocation2 + $0x200] sm:$0xff]  ;;  %3456 = vperm.xlu0 %13445, %v319_v4  }
 0x108   : > { %2165 = vst.msk [vmem:[#allocation2 + $0x238] sm:$0xff] %vm1098_vm8, %v2122_v9  ;;  %3113 = vmatprep.mubr.bf16.mxu0 %v2778_v3  ;;  %7126 = vmatprep.mubr.bf16.mxu1 %v2778_v3  ;;  %v340_v9 = vld [vmem:[%s19051_s1 + $0x100] sm:$0xff] }
 0x109   : > { %3114 = vmatmul.mubr.bf16.gmra.mrb[36].mxu0 %v2777_v57  ;;  %7127 = vmatmul.mubr.bf16.gmra.mrb[72].mxu1 %v2777_v57 }
 0x10a   : > { %v1305_v5 = vpop.permute.xlu1 %1304  ;;  %3461 = vperm.xlu1 %13446, %v320_v20  }
 0x10b   : > { %1349 = vst.msk [vmem:[#allocation2 + $0x230] sm:$0xff] %vm1338_vm9, %v1305_v5  ;;  %v2495_v12 = vpop.permute.xlu0 %2494  ;;  %3466 = vperm.xlu0 %13445, %v321_v24   ;;  %v341_v5 = vld [vmem:[%s19051_s1 + $0x108] sm:$0xff] }
 0x10c   : > { %2538 = vst.msk [vmem:[#allocation2 + $0x238] sm:$0xff] %vm1338_vm9, %v2495_v12  ;;  %v15516_v46 = vpop.f32.mrb[0].mxu1 }
 0x10d   : > { %v15519_v34 = vpop.f32.mrb[1].mxu1 }
 0x10e   : > { %v826_v38 = vpop.permute.xlu1 %825  ;;  %3471 = vperm.xlu1 %13446, %v322_v59   ;;  %v15524_v58 = vpop.f32.mrb[2].mxu1 }
 0x10f   : > { %869 = vst.msk [vmem:[#allocation2 + $0x268] sm:$0xff] %vm857_vm7, %v826_v38  ;;  %v1885_v51 = vpop.permute.xlu0 %1884  ;;  %3476 = vperm.xlu0 %13445, %v323_v26   ;;  %v15529_v11 = vpop.f32.mrb[3].mxu1  ;;  %v343_v38 = vld [vmem:[%s19051_s1 + $0x118] sm:$0xff] }
 0x110   : > { %1927 = vst.msk [vmem:[#allocation2 + $0x270] sm:$0xff] %vm857_vm7, %v1885_v51 }
 0x112   : > { %v2780_v22 = vld [vmem:[#allocation2 + $0x230] sm:$0xff]  ;;  %v1067_v10 = vpop.permute.xlu1 %1066  ;;  %3481 = vperm.xlu1 %13446, %v324_v23  }
 0x113   : > { %1110 = vst.msk [vmem:[#allocation2 + $0x268] sm:$0xff] %vm1098_vm8, %v1067_v10  ;;  %v2124_v45 = vpop.permute.xlu0 %2123  ;;  %v2781_v35 = vld [vmem:[#allocation2 + $0x238] sm:$0xff]  ;;  %3486 = vperm.xlu0 %13445, %v325_v36  }
 0x114   : > { %2166 = vst.msk [vmem:[#allocation2 + $0x270] sm:$0xff] %vm1098_vm8, %v2124_v45  ;;  %3121 = vmatprep.mubr.bf16.mxu0 %v2781_v35  ;;  %7134 = vmatprep.mubr.bf16.mxu1 %v2781_v35  ;;  %v15540_v52 = vpop.f32.mrb[4].mxu1 }
 0x115   : > { %3122 = vmatmul.mubr.bf16.gmra.mrb[40].mxu0 %v2780_v22  ;;  %7135 = vmatmul.mubr.bf16.gmra.mrb[76].mxu1 %v2780_v22  ;;  %v15543_v14 = vpop.f32.mrb[5].mxu1 }
 0x116   : > { %v1307_v31 = vpop.permute.xlu1 %1306  ;;  %3491 = vperm.xlu1 %13446, %v326_v37   ;;  %v15548_v48 = vpop.f32.mrb[6].mxu1 }
 0x117   : > { %1350 = vst.msk [vmem:[#allocation2 + $0x268] sm:$0xff] %vm1338_vm9, %v1307_v31  ;;  %3496 = vperm.xlu0 %13445, %v327_v15   ;;  %v15553_v1 = vpop.f32.mrb[7].mxu1 }
 0x119   : > { %v2497_v17 = vpop.permute.xlu0 %2496 }
 0x11a   : > { %3501 = vperm.xlu1 %13446, %v328_v63   ;;  %2539 = vst.msk [vmem:[#allocation2 + $0x270] sm:$0xff] %vm1338_vm9, %v2497_v17 }
 0x11b   : > { %v828_v25 = vpop.permute.xlu1 %827  ;;  %3506 = vperm.xlu0 %13445, %v329_v55  }
 0x11c   : > { %870 = vst.msk [vmem:[#allocation2 + $0x2a0] sm:$0xff] %vm857_vm7, %v828_v25 }
 0x11d   : > { %v1887_v13 = vpop.permute.xlu0 %1886 }
 0x11e   : > { %3511 = vperm.xlu1 %13446, %v330_v41   ;;  %1928 = vst.msk [vmem:[#allocation2 + $0x2a8] sm:$0xff] %vm857_vm7, %v1887_v13  ;;  %v2783_v53 = vld [vmem:[#allocation2 + $0x268] sm:$0xff] }
 0x11f   : > { %v1069_v30 = vpop.permute.xlu1 %1068  ;;  %3516 = vperm.xlu0 %13445, %v331_v60   ;;  %v15561_v28 = vpop.f32.mrb[8].mxu1 }
 0x120   : > { %1111 = vst.msk [vmem:[#allocation2 + $0x2a0] sm:$0xff] %vm1098_vm8, %v1069_v30  ;;  %v15568_v6 = vpop.f32.mrb[9].mxu1 }
 0x121   : > { %v2126_v54 = vpop.permute.xlu0 %2125  ;;  %v2784_v7 = vld [vmem:[#allocation2 + $0x270] sm:$0xff]  ;;  %v15570_v32 = vpop.f32.mrb[10].mxu1 }
 0x122   : > { %3521 = vperm.xlu1 %13446, %v332_v47   ;;  %2167 = vst.msk [vmem:[#allocation2 + $0x2a8] sm:$0xff] %vm1098_vm8, %v2126_v54  ;;  %3129 = vmatprep.mubr.bf16.mxu0 %v2784_v7  ;;  %v15575_v33 = vpop.f32.mrb[11].mxu1 }
 0x123   : > { %v1309_v49 = vpop.permute.xlu1 %1308  ;;  %7142 = vmatprep.mubr.bf16.mxu1 %v2784_v7  ;;  %3526 = vperm.xlu0 %13445, %v333_v39  }
 0x124   : > { %3130 = vmatmul.mubr.bf16.gmra.mrb[44].mxu0 %v2783_v53  ;;  %1351 = vst.msk [vmem:[#allocation2 + $0x2a0] sm:$0xff] %vm1338_vm9, %v1309_v49  ;;  %7143 = vmatmul.mubr.bf16.gmra.mrb[80].mxu1 %v2783_v53 }
 0x125   : > { %v2499_v29 = vpop.permute.xlu0 %2498 }
 0x126   : > { %3531 = vperm.xlu1 %13446, %v334_v8   ;;  %2540 = vst.msk [vmem:[#allocation2 + $0x2a8] sm:$0xff] %vm1338_vm9, %v2499_v29 }
 0x127   : > { %v830_v50 = vpop.permute.xlu1 %829  ;;  %3536 = vperm.xlu0 %13445, %v335_v0   ;;  %v15596_v51 = vpop.f32.mrb[12].mxu1 }
 0x128   : > { %871 = vst.msk [vmem:[#allocation2 + $0x2d8] sm:$0xff] %vm857_vm7, %v830_v50  ;;  %v15599_v23 = vpop.f32.mrb[13].mxu1 }
 0x129   : > { %v1889_v19 = vpop.permute.xlu0 %1888  ;;  %v15605_v31 = vpop.f32.mrb[14].mxu1 }
 0x12a   : > { %3541 = vperm.xlu1 %13446, %v336_v43   ;;  %1929 = vst.msk [vmem:[#allocation2 + $0x2e0] sm:$0xff] %vm857_vm7, %v1889_v19  ;;  %v15608_v55 = vpop.f32.mrb[15].mxu1 }
 0x12b   : > { %v1071_v56 = vpop.permute.xlu1 %1070  ;;  %4293 = vrot.lane.b32.xlu0 %v13643_v62, %s14079_s21  ;;  %v2786_v16 = vld [vmem:[#allocation2 + $0x2a0] sm:$0xff] }
 0x12c   : > { %1112 = vst.msk [vmem:[#allocation2 + $0x2d8] sm:$0xff] %vm1098_vm8, %v1071_v56 }
 0x12d   : > { %v2128_v44 = vpop.permute.xlu0 %2127  ;;  %v2787_v61 = vld [vmem:[#allocation2 + $0x2a8] sm:$0xff] }
 0x12e   : > { %3546 = vperm.xlu1 %13446, %v337_v40   ;;  %2168 = vst.msk [vmem:[#allocation2 + $0x2e0] sm:$0xff] %vm1098_vm8, %v2128_v44  ;;  %3137 = vmatprep.mubr.bf16.mxu0 %v2787_v61 }
 0x12f   : > { %v1311_v57 = vpop.permute.xlu1 %1310  ;;  %7150 = vmatprep.mubr.bf16.mxu1 %v2787_v61  ;;  %3551 = vperm.xlu0 %13445, %v338_v27  }
 0x130   : > { %3138 = vmatmul.mubr.bf16.gmra.mrb[48].mxu0 %v2786_v16  ;;  %1352 = vst.msk [vmem:[#allocation2 + $0x2d8] sm:$0xff] %vm1338_vm9, %v1311_v57  ;;  %7151 = vmatmul.mubr.bf16.gmra.mrb[84].mxu1 %v2786_v16 }
 0x131   : > { %v2501_v3 = vpop.permute.xlu0 %2500 }
 0x132   : > { %3556 = vperm.xlu1 %13446, %v339_v21   ;;  %2541 = vst.msk [vmem:[#allocation2 + $0x2e0] sm:$0xff] %vm1338_vm9, %v2501_v3  ;;  %v15639_v21 = vld [vmem:[%s19053_s3] ss:$0 sm:$0xff] }
 0x133   : > { %3571 = vperm.xlu0 %13445, %v342_v42  }
 0x134   : > { %v832_v18 = vpop.permute.xlu1 %831 }
 0x135   : > { %872 = vst.msk [vmem:[#allocation2 + $0x310] sm:$0xff] %vm857_vm7, %v832_v18  ;;  %v1891_v4 = vpop.permute.xlu0 %1890 }
 0x136   : > { %3561 = vperm.xlu1 %13446, %v340_v9   ;;  %1930 = vst.msk [vmem:[#allocation2 + $0x318] sm:$0xff] %vm857_vm7, %v1891_v4 }
 0x137   : > { %v2789_v24 = vld [vmem:[#allocation2 + $0x2d8] sm:$0xff] }
 0x138   : > { %v1073_v20 = vpop.permute.xlu1 %1072  ;;  %v15616_v53 = vpop.f32.mrb[16].mxu1 }
 0x139   : > { %1113 = vst.msk [vmem:[#allocation2 + $0x310] sm:$0xff] %vm1098_vm8, %v1073_v20  ;;  %v2130_v12 = vpop.permute.xlu0 %2129  ;;  %v2790_v59 = vld [vmem:[#allocation2 + $0x2e0] sm:$0xff]  ;;  %v15619_v54 = vpop.f32.mrb[17].mxu1 }
 0x13a   : > { %3566 = vperm.xlu1 %13446, %v341_v5   ;;  %2169 = vst.msk [vmem:[#allocation2 + $0x318] sm:$0xff] %vm1098_vm8, %v2130_v12  ;;  %3145 = vmatprep.mubr.bf16.mxu0 %v2790_v59  ;;  %v15625_v50 = vpop.f32.mrb[18].mxu1 }
 0x13b   : > { %7158 = vmatprep.mubr.bf16.mxu1 %v2790_v59  ;;  %3146 = vmatmul.mubr.bf16.gmra.mrb[52].mxu0 %v2789_v24  ;;  %v15628_v19 = vpop.f32.mrb[19].mxu1 }
 0x13c   : > { %v1313_v26 = vpop.permute.xlu1 %1312  ;;  %7159 = vmatmul.mubr.bf16.gmra.mrb[88].mxu1 %v2789_v24 }
 0x13d   : > { %1353 = vst.msk [vmem:[#allocation2 + $0x310] sm:$0xff] %vm1338_vm9, %v1313_v26  ;;  %v2503_v22 = vpop.permute.xlu0 %2502 }
 0x13e   : > { %3576 = vperm.xlu1 %13446, %v343_v38   ;;  %2542 = vst.msk [vmem:[#allocation2 + $0x318] sm:$0xff] %vm1338_vm9, %v2503_v22  ;;  %v13700_v22 = vld [vmem:[%s19054_s4 + $0x80] sm:$0xff]  }
 0x13f   : > { %7200 = vmatpush1.bf16.msra.mxu1 %v13700_v22 }
 0x140   : > { %v834_v10 = vpop.permute.xlu1 %833  ;;  %v15632_v44 = vpop.f32.mrb[20].mxu1  ;;  %7201 = vmatprep.subr.bf16.mxu1 %v19059_v2 }
 0x141   : > { %873 = vst.msk [vmem:[#allocation2 + $0x348] sm:$0xff] %vm857_vm7, %v834_v10  ;;  %v1893_v36 = vpop.permute.xlu0 %1892  ;;  %v15634_v61 = vpop.f32.mrb[21].mxu1 }
 0x142   : > { %1931 = vst.msk [vmem:[#allocation2 + $0x350] sm:$0xff] %vm857_vm7, %v1893_v36  ;;  %v15648_v12 = vpop.f32.mrb[22].mxu1 }
 0x143   : > { %v15651_v26 = vpop.f32.mrb[23].mxu1 }
 0x144   : > { %v1075_v45 = vpop.permute.xlu1 %1074  ;;  %v2792_v35 = vld [vmem:[#allocation2 + $0x310] sm:$0xff] }
 0x145   : > { %1114 = vst.msk [vmem:[#allocation2 + $0x348] sm:$0xff] %vm1098_vm8, %v1075_v45  ;;  %v2132_v37 = vpop.permute.xlu0 %2131  ;;  %v2793_v15 = vld [vmem:[#allocation2 + $0x318] sm:$0xff] }
 0x146   : > { %2170 = vst.msk [vmem:[#allocation2 + $0x350] sm:$0xff] %vm1098_vm8, %v2132_v37  ;;  %3153 = vmatprep.mubr.bf16.mxu0 %v2793_v15  ;;  %7166 = vmatprep.mubr.bf16.mxu1 %v2793_v15  ;;  %v13703_v37 = vld [vmem:[%s19054_s4 + $0x88] sm:$0xff]  }
 0x147   : > { %3154 = vmatmul.mubr.bf16.gmra.mrb[56].mxu0 %v2792_v35  ;;  %7167 = vmatmul.mubr.bf16.gmra.mrb[92].mxu1 %v2792_v35 }
 0x148   : > { %v1315_v63 = vpop.permute.xlu1 %1314  ;;  %7202 = vmatpush1.bf16.msra.mxu1 %v13703_v37 }
 0x149   : > { %1354 = vst.msk [vmem:[#allocation2 + $0x348] sm:$0xff] %vm1338_vm9, %v1315_v63  ;;  %v2505_v41 = vpop.permute.xlu0 %2504  ;;  %7203 = vmatprep.subr.bf16.mxu1 %v19059_v2 }
 0x14a   : > { %2543 = vst.msk [vmem:[#allocation2 + $0x350] sm:$0xff] %vm1338_vm9, %v2505_v41 }
 0x14c   : > { %v836_v17 = vpop.permute.xlu1 %835 }
 0x14d   : > { %874 = vst.msk [vmem:[#allocation2 + $0x380] sm:$0xff] %vm857_vm7, %v836_v17  ;;  %v1895_v25 = vpop.permute.xlu0 %1894 }
 0x14e   : > { %1932 = vst.msk [vmem:[#allocation2 + $0x388] sm:$0xff] %vm857_vm7, %v1895_v25 }
 0x150   : > { %v1077_v60 = vpop.permute.xlu1 %1076  ;;  %v2795_v13 = vld [vmem:[#allocation2 + $0x348] sm:$0xff] }
 0x151   : > { %1115 = vst.msk [vmem:[#allocation2 + $0x380] sm:$0xff] %vm1098_vm8, %v1077_v60  ;;  %v2134_v47 = vpop.permute.xlu0 %2133  ;;  %v2796_v30 = vld [vmem:[#allocation2 + $0x350] sm:$0xff] }
 0x152   : > { %2171 = vst.msk [vmem:[#allocation2 + $0x388] sm:$0xff] %vm1098_vm8, %v2134_v47  ;;  %3161 = vmatprep.mubr.bf16.mxu0 %v2796_v30  ;;  %7174 = vmatprep.mubr.bf16.mxu1 %v2796_v30 }
 0x153   : > { %3162 = vmatmul.mubr.bf16.gmra.mrb[60].mxu0 %v2795_v13  ;;  %7175 = vmatmul.mubr.bf16.gmra.mrb[96].mxu1 %v2795_v13 }
 0x154   : > { %v1317_v39 = vpop.permute.xlu1 %1316 }
 0x155   : > { %1355 = vst.msk [vmem:[#allocation2 + $0x380] sm:$0xff] %vm1338_vm9, %v1317_v39  ;;  %v2507_v7 = vpop.permute.xlu0 %2506 }
 0x156   : > { %2544 = vst.msk [vmem:[#allocation2 + $0x388] sm:$0xff] %vm1338_vm9, %v2507_v7 }
 0x158   : > { %v838_v8 = vpop.permute.xlu1 %837 }
 0x159   : > { %875 = vst.msk [vmem:[#allocation2 + $0x3b8] sm:$0xff] %vm857_vm7, %v838_v8  ;;  %v1897_v49 = vpop.permute.xlu0 %1896 }
 0x15a   : > { %1933 = vst.msk [vmem:[#allocation2 + $0x3c0] sm:$0xff] %vm857_vm7, %v1897_v49 }
 0x15c   : > { %v1079_v0 = vpop.permute.xlu1 %1078  ;;  %v2798_v29 = vld [vmem:[#allocation2 + $0x380] sm:$0xff] }
 0x15d   : > { %1116 = vst.msk [vmem:[#allocation2 + $0x3b8] sm:$0xff] %vm1098_vm8, %v1079_v0  ;;  %v2136_v43 = vpop.permute.xlu0 %2135  ;;  %v2799_v62 = vld [vmem:[#allocation2 + $0x388] sm:$0xff] }
 0x15e   : > { %2172 = vst.msk [vmem:[#allocation2 + $0x3c0] sm:$0xff] %vm1098_vm8, %v2136_v43  ;;  %3169 = vmatprep.mubr.bf16.mxu0 %v2799_v62  ;;  %7182 = vmatprep.mubr.bf16.mxu1 %v2799_v62  ;;  %v4123_v62 = vld [vmem:[#allocation3 + $0x8] sm:$0xe] }
 0x15f   : > { %3170 = vmatmul.mubr.bf16.gmra.mrb[64].mxu0 %v2798_v29  ;;  %7183 = vmatmul.mubr.bf16.gmra.mrb[100].mxu1 %v2798_v29 }
 0x160   : > { %v1319_v40 = vpop.permute.xlu1 %1318 }
 0x161   : > { %1356 = vst.msk [vmem:[#allocation2 + $0x3b8] sm:$0xff] %vm1338_vm9, %v1319_v40  ;;  %v2509_v56 = vpop.permute.xlu0 %2508 }
 0x162   : > { %2545 = vst.msk [vmem:[#allocation2 + $0x3c0] sm:$0xff] %vm1338_vm9, %v2509_v56 }
 0x168   : > { %v2801_v27 = vld [vmem:[#allocation2 + $0x3b8] sm:$0xff] }
 0x169   : > { %v2802_v16 = vld [vmem:[#allocation2 + $0x3c0] sm:$0xff] }
 0x16a   : > { %3177 = vmatprep.mubr.bf16.mxu0 %v2802_v16  ;;  %7190 = vmatprep.mubr.bf16.mxu1 %v2802_v16 }
 0x16b   : > { %3178 = vmatmul.mubr.bf16.gmra.mrb[68].mxu0 %v2801_v27  ;;  %7191 = vmatmul.mubr.bf16.gmra.mrb[104].mxu1 %v2801_v27 }
 0x172   : > { %v15641_v57 = vpop.permute.xlu0 %3401 }
 0x173   : > { %19111 = vst [vmem:[#allocation4_spill] sm:$0xff] %v15641_v57 }
 0x176   : > { %v15644_v5 = vpop.permute.xlu0 %3416 }
 0x177   : > { %19112 = vst [vmem:[#allocation5_spill] sm:$0xff] %v15644_v5 }
 0x179   : > { %v3043_v42 = vpop.f32.mrb[0].mxu0 }
 0x17a   : > { %v3044_v9 = vadd.f32 %v15639_v21, %v3043_v42  ;;  %v3045_v3 = vpop.f32.mrb[1].mxu0  ;;  %v15656_v10 = vpop.permute.xlu0 %3426 }
 0x17b   : > { %v3046_v18 = vpop.f32.mrb[2].mxu0  ;;  %19113 = vst [vmem:[#allocation6_spill] sm:$0xff] %v15656_v10  ;;  %v13706_v3 = vld [vmem:[%s19054_s4 + $0x90] sm:$0xff]  }
 0x17c   : > { %v3221_v4 = vadd.f32 %v15519_v34, %v3044_v9  ;;  %v3047_v20 = vadd.f32 %v15639_v21, %v3046_v18  ;;  %v3048_v24 = vpop.f32.mrb[3].mxu0  ;;  %v15659_v34 = vpop.permute.xlu1 %3406  ;;  %7204 = vmatpush1.bf16.msra.mxu1 %v13706_v3  ;;  %v13711_v3 = vld [vmem:[%s19054_s4 + $0x100] sm:$0xff]  }
 0x17d   : > { %19114 = vst [vmem:[#allocation7_spill] sm:$0xff] %v15659_v34  ;;  %7205 = vmatprep.subr.bf16.mxu1 %v19059_v2  ;;  %13054 = vmatprep.subr.bf16.mxu0 %v13711_v3 }
 0x17e   : > { %v3363_v59 = vmax.f32 %v3221_v4, 0.0  ;;  %v3224_v38 = vadd.f32 %v15529_v11, %v3047_v20  ;;  %v15667_v47 = vpop.permute.xlu0 %3436  ;;  %13055 = vmatpush3.bf16.msra.mxu0 %v13711_v3  ;;  %v13716_v3 = vld [vmem:[%s19054_s4 + $0xa8] sm:$0xff]  }
 0x17f   : > { %19115 = vst [vmem:[#allocation8_spill] sm:$0xff] %v15667_v47 }
 0x180   : > { %v3579_v36 = vmul.f32 %v15641_v57, %v3363_v59  ;;  %v3364_v45 = vmax.f32 %v3224_v38, 0.0  ;;  %v15679_v56 = vpop.permute.xlu1 %3411 }
 0x181   : > { %v3051_v35 = vpop.f32.mrb[4].mxu0  ;;  %19118 = vst [vmem:[#allocation9_spill] sm:$0xff] %v15679_v56 }
 0x182   : > { %v12876_v11 = vpack.c.bf16 %v3579_v36, %v3579_v36  ;;  %v3580_v15 = vmul.f32 %v15659_v34, %v3364_v45  ;;  %v3052_v63 = vadd.f32 %v15639_v21, %v3051_v35  ;;  %v3053_v41 = vpop.f32.mrb[5].mxu0  ;;  %v15681_v9 = vpop.permute.xlu0 %3446  ;;  %v15696_v45 = vld [vmem:[#allocation3] sm:$0xff]  }
 0x183   : > { %v3054_v17 = vpop.f32.mrb[6].mxu0  ;;  %19119 = vst [vmem:[#allocation10_spill] sm:$0xff] %v15681_v9 }
 0x184   : > { %v3726_v25 = vshrl.u32 %v12876_v11, 16  ;;  %v3729_v60 = vshll.u32 %v12876_v11, 16  ;;  %v12877_v13 = vpack.c.bf16 %v3580_v15, %v3580_v15  ;;  %v3229_v30 = vadd.f32 %v15516_v46, %v3052_v63  ;;  %v3056_v39 = vpop.f32.mrb[7].mxu0 }
 0x185   : > { %v3055_v7 = vadd.f32 %v15639_v21, %v3054_v17 }
 0x186   : > { %v3728_v8 = vrot.slane %v3726_v25, 6  ;;  %v3731_v49 = vrot.slane %v3729_v60, 7  ;;  %v3735_v0 = vshrl.u32 %v12877_v13, 16  ;;  %v3738_v29 = vshll.u32 %v12877_v13, 16  ;;  %v15702_v63 = vpop.permute.xlu0 %3456  ;;  %v15706_v60 = vld [vmem:[#allocation3] sm:$0xfe]  }
 0x187   : > { %v3365_v40 = vmax.f32 %v3229_v30, 0.0  ;;  %v3232_v46 = vadd.f32 %v15524_v58, %v3055_v7  ;;  %19122 = vst [vmem:[#allocation11_spill] sm:$0xff] %v15702_v63  ;;  %v13710_v13 = vld [vmem:[%s19054_s4 + $0x98] sm:$0xff]  }
 0x188   : > { %v3732_v27 = vor.u32 %v3731_v49, %v3728_v8  ;;  %v3737_v16 = vrot.slane %v3735_v0, 6  ;;  %v3740_v42 = vrot.slane %v3738_v29, 7  ;;  %v4498_v0 = vshll.u32 %v15696_v45, 16  ;;  %7206 = vmatpush1.bf16.msra.mxu1 %v13710_v13 }
 0x189   : > { %v3581_v58 = vmul.f32 %v15679_v56, %v3365_v40  ;;  %v3366_v4 = vmax.f32 %v3232_v46, 0.0  ;;  %v3059_v20 = vpop.f32.mrb[8].mxu0  ;;  %7207 = vmatprep.subr.bf16.mxu1 %v19059_v2 }
 0x18a   : > { %v3733_v24 = vrot.slane %v3732_v27, 4  ;;  %v4124_v59 = vsel %vm15674_vm14, %v3732_v27, %v4123_v62  ;;  %v3741_v38 = vor.u32 %v3740_v42, %v3737_v16  ;;  %v3060_v22 = vadd.f32 %v15639_v21, %v3059_v20  ;;  %v3061_v36 = vpop.f32.mrb[9].mxu0  ;;  %v15717_v46 = vpop.permute.xlu0 %3466 }
 0x18b   : > { %4125 = vst [vmem:[#allocation3 + $0x8] sm:$0xe] %v4124_v59  ;;  %v12878_v35 = vpack.c.bf16 %v3581_v58, %v3581_v58  ;;  %v3582_v37 = vmul.f32 %v15644_v5, %v3366_v4  ;;  %v3062_v11 = vpop.f32.mrb[10].mxu0  ;;  %19124 = vst [vmem:[#allocation13_spill] sm:$0xff] %v15717_v46  ;;  %v4845_v42 = vrot.slane %v15706_v60, 1  ;;  %v13714_v58 = vld [vmem:[%s19054_s4 + $0xa0] sm:$0xff]  }
 0x18c   : > { %v3742_v15 = vsel %vm15688_vm10, %v3733_v24, %v3741_v38  ;;  %v3237_v41 = vadd.f32 %v15543_v14, %v3060_v22  ;;  %v3063_v17 = vadd.f32 %v15639_v21, %v3062_v11  ;;  %v3064_v25 = vpop.f32.mrb[11].mxu0  ;;  %v15714_v14 = vpop.permute.xlu1 %3421  ;;  %v3743_v20 = vrot.slane %v3741_v38, 4  ;;  %7208 = vmatpush1.bf16.msra.mxu1 %v13714_v58 }
 0x18d   : > { %4127 = vst.msk [vmem:[#allocation3 + $0xc] sm:$0xf] %vm4126_vm11, %v3742_v15  ;;  %v3745_v30 = vshrl.u32 %v12878_v35, 16  ;;  %v3748_v39 = vshll.u32 %v12878_v35, 16  ;;  %v12879_v7 = vpack.c.bf16 %v3582_v37, %v3582_v37  ;;  %19123 = vst [vmem:[#allocation12_spill] sm:$0xff] %v15714_v14  ;;  %v15728_v4 = vpop.f32.mrb[24].mxu1  ;;  %7209 = vmatprep.subr.bf16.mxu1 %v19059_v2 }
 0x18e   : > { %v3367_v8 = vmax.f32 %v3237_v41, 0.0  ;;  %v3240_v49 = vadd.f32 %v15553_v1, %v3063_v17  ;;  %v4496_v1 = vshrl.u32 %v15696_v45, 16  ;;  %v15730_v36 = vpop.f32.mrb[25].mxu1  ;;  %v4500_v41 = vrot.slane %v4498_v0, 1  ;;  %v15737_v60 = vpop.permute.xlu0 %3476 }
 0x18f   : > { %v3747_v29 = vrot.slane %v3745_v30, 6  ;;  %v3750_v43 = vrot.slane %v3748_v39, 7  ;;  %v3755_v62 = vshrl.u32 %v12879_v7, 16  ;;  %v3758_v40 = vshll.u32 %v12879_v7, 16  ;;  %19125 = vst [vmem:[#allocation14_spill] sm:$0xff] %v15737_v60 }
 0x190   : > { %v3583_v27 = vmul.f32 %v15714_v14, %v3367_v8  ;;  %v3368_v16 = vmax.f32 %v3240_v49, 0.0  ;;  %7210 = vmatpush1.bf16.msra.mxu1 %v13716_v3  ;;  %vm4162_vm14 = vcmask 254976  }
 0x191   : > { %v3751_v24 = vor.u32 %v3750_v43, %v3747_v29  ;;  %v3757_v59 = vrot.slane %v3755_v62, 6  ;;  %v3760_v22 = vrot.slane %v3758_v40, 7  ;;  %7211 = vmatprep.subr.bf16.mxu1 %v19059_v2  ;;  %vm16966_vm15 = vmand %vm4162_vm14, %vm348_vm12  ;;  %vm8208_vm14 = vcmask 519424  }
 0x192   : > { %v12880_v35 = vpack.c.bf16 %v3583_v27, %v3583_v27  ;;  %v3584_v37 = vmul.f32 %v15656_v10, %v3368_v16 }
 0x193   : > { %v3752_v45 = vsel %vm15688_vm10, %v3743_v20, %v3751_v24  ;;  %v3753_v11 = vrot.slane %v3751_v24, 4  ;;  %v3761_v15 = vor.u32 %v3760_v22, %v3757_v59 }
 0x194   : > { %4128 = vst.msk [vmem:[#allocation3 + $0x10] sm:$0xf] %vm4126_vm11, %v3752_v45  ;;  %v3765_v38 = vshrl.u32 %v12880_v35, 16  ;;  %v3768_v17 = vshll.u32 %v12880_v35, 16  ;;  %v12881_v25 = vpack.c.bf16 %v3584_v37, %v3584_v37  ;;  %v3067_v13 = vpop.f32.mrb[12].mxu0  ;;  %v13652_v30 = vld [vmem:[#allocation3 + $0x8] sm:$0xff]  }
 0x195   : > { %v3762_v39 = vsel %vm15688_vm10, %v3753_v11, %v3761_v15  ;;  %v3763_v7 = vrot.slane %v3761_v15, 4  ;;  %v3068_v8 = vadd.f32 %v15639_v21, %v3067_v13  ;;  %v3069_v49 = vpop.f32.mrb[13].mxu0  ;;  %v15742_v0 = vld [vmem:[#allocation3 + $0x8] sm:$0xff]   ;;  %4295 = vrot.lane.b32.xlu1 %v13652_v30, %s14079_s21  ;;  %v15755_v11 = vpop.permute.xlu0 %3486  ;;  %v4501_v15 = vor.u32 %v4500_v41, %v4496_v1 }
 0x196   : > { %v15744_v29 = vld [vmem:[#allocation3 + $0x8] sm:$0xff]   ;;  %4129 = vst.msk [vmem:[#allocation3 + $0x14] sm:$0xf] %vm4126_vm11, %v3762_v39  ;;  %v3767_v43 = vrot.slane %v3765_v38, 6  ;;  %v3770_v62 = vrot.slane %v3768_v17, 7  ;;  %v3775_v40 = vshrl.u32 %v12881_v25, 16  ;;  %v15764_v39 = vpop.permute.xlu1 %3431 }
 0x197   : > { %v3778_v27 = vshll.u32 %v12881_v25, 16  ;;  %v3070_v16 = vpop.f32.mrb[14].mxu0  ;;  %v3245_v58 = vadd.f32 %v15540_v52, %v3068_v8  ;;  %v19061_v59 = vrot.slane %v15742_v0, 1  ;;  %v4503_v22 = vshll.u32 %v15744_v29, 16  ;;  %19126 = vst [vmem:[#allocation15_spill] sm:$0xff] %v15755_v11  ;;  %19127 = vst [vmem:[#allocation16_spill] sm:$0xff] %v15764_v39 }
 0x198   : > { %v3071_v20 = vadd.f32 %v15639_v21, %v3070_v16  ;;  %v3072_v24 = vpop.f32.mrb[15].mxu0  ;;  %v3771_v35 = vor.u32 %v3770_v62, %v3767_v43  ;;  %v3777_v37 = vrot.slane %v3775_v40, 6  ;;  %v13658_v38 = vld [vmem:[#allocation3 + $0x8] sm:$0xfc]  }
 0x199   : > { %v3780_v45 = vrot.slane %v3778_v27, 7  ;;  %v3369_v17 = vmax.f32 %v3245_v58, 0.0  ;;  %v4847_v52 = vsel %vm1006_vm1, %v4845_v42, %v19061_v59  ;;  %v4505_v13 = vrot.slane %v4503_v22, 1  ;;  %v15761_v30 = vld [vmem:[#allocation3 + $0x8] sm:$0xfe]   ;;  %v13719_v42 = vld [vmem:[%s19054_s4 + $0xb0] sm:$0xff]   ;;  %v15781_v62 = vpop.permute.xlu0 %3496 }
 0x19a   : > { %v3248_v25 = vadd.f32 %v15548_v48, %v3071_v20  ;;  %v3772_v8 = vsel %vm15688_vm10, %v3763_v7, %v3771_v35  ;;  %v3773_v1 = vrot.slane %v3771_v35, 4  ;;  %4882 = vrot.lane.b32.xlu0 %v4847_v52, %s14080_s22  ;;  %v15771_v48 = vpop.f32.mrb[26].mxu1  ;;  %19128 = vst [vmem:[#allocation17_spill] sm:$0xff] %v15781_v62  ;;  %v5659_v27 = vrot.slane %v13658_v38, 2  ;;  %7212 = vmatpush1.bf16.msra.mxu1 %v13719_v42  ;;  %v15842_v10 = vpop.permute.xlu1 %3441 }
 0x19b   : > { %v15768_v41 = vor.u32 %v3780_v45, %v3777_v37  ;;  %4130 = vst.msk [vmem:[#allocation3 + $0x18] sm:$0xf] %vm4126_vm11, %v3772_v8  ;;  %v3585_v49 = vmul.f32 %v15764_v39, %v3369_v17  ;;  %v4506_v40 = vsel %vm654_vm2, %v4501_v15, %v4505_v13  ;;  %v5288_v16 = vshrl.u32 %v15761_v30, 16  ;;  %7213 = vmatprep.subr.bf16.mxu1 %v19059_v2  ;;  %v15796_v15 = vpop.f32.mrb[27].mxu1 }
 0x19c   : > { %v3370_v43 = vmax.f32 %v3248_v25, 0.0  ;;  %v4507_v24 = vshrl.u32 %v15744_v29, 16  ;;  %v5291_v45 = vshll.u32 %v15761_v30, 16  ;;  %19134 = vst [vmem:[#allocation20_spill] sm:$0xff] %v15842_v10  ;;  %v15887_v34 = vpop.f32.mrb[28].mxu1 }
 0x19d   : > { %v3782_v7 = vsel %vm15688_vm10, %v3773_v1, %v15768_v41  ;;  %v3783_v3 = vrot.slane %v15768_v41, 4  ;;  %v12882_v58 = vpack.c.bf16 %v3585_v49, %v3585_v49  ;;  %v13657_v22 = vld [vmem:[#allocation3 + $0x10] sm:$0xff]   ;;  %v15800_v8 = vrot.slane %v5288_v16, 1  ;;  %v15802_v29 = vpop.permute.xlu0 %3506 }
 0x19e   : > { %4131 = vst.msk [vmem:[#allocation3 + $0x1c] sm:$0xf] %vm4126_vm11, %v3782_v7  ;;  %v3586_v20 = vmul.f32 %v15667_v47, %v3370_v43  ;;  %4643 = vrot.lane.b32.xlu0 %v4506_v40, %s14078_s20  ;;  %v15791_v35 = vld [vmem:[#allocation3 + $0x10] sm:$0xff]   ;;  %19129 = vst [vmem:[#allocation18_spill] sm:$0xff] %v15802_v29 }
 0x19f   : > { %v15793_v37 = vld [vmem:[#allocation3 + $0x10] sm:$0xff]   ;;  %v3785_v38 = vshrl.u32 %v12882_v58, 16  ;;  %v3788_v17 = vshll.u32 %v12882_v58, 16  ;;  %v5660_v41 = vrot.slane %v15791_v35, 2  ;;  %v13722_v58 = vld [vmem:[%s19054_s4 + $0xb8] sm:$0xff]   ;;  %v4509_v35 = vor.u32 %v4507_v24, %v4505_v13 }
 0x1a0   : > { %v12883_v25 = vpack.c.bf16 %v3586_v20, %v3586_v20  ;;  %v15798_v52 = vld [vmem:[#allocation3 + $0x10] sm:$0xff]   ;;  %v3075_v1 = vpop.f32.mrb[16].mxu0  ;;  %7214 = vmatpush1.bf16.msra.mxu1 %v13722_v58  ;;  %v19131_v13 = vrot.slane %v15793_v37, 1  ;;  %v19132_v24 = vrot.slane %v15742_v0, 1  ;;  %v19133_v58 = vmov 0  }
 0x1a1   : > { %v13664_v49 = vld [vmem:[#allocation3 + $0x10] sm:$0xff]   ;;  %v3787_v43 = vrot.slane %v3785_v38, 6  ;;  %v3790_v7 = vrot.slane %v3788_v17, 7  ;;  %v3077_v2 = vpop.f32.mrb[17].mxu0  ;;  %v3076_v16 = vadd.f32 %v15639_v21, %v3075_v1  ;;  %v5661_v20 = vsel %vm1824_vm0, %v5659_v27, %v5660_v41  ;;  %7215 = vmatprep.subr.bf16.mxu1 %v19133_v58 }
 0x1a2   : > { %v3795_v30 = vshrl.u32 %v12883_v25, 16  ;;  %v3798_v40 = vshll.u32 %v12883_v25, 16  ;;  %4297 = vrot.lane.b32.xlu0 %v13657_v22, %s14079_s21  ;;  %v3078_v59 = vpop.f32.mrb[18].mxu0  ;;  %v4511_v42 = vshll.u32 %v15798_v52, 16  ;;  %5696 = vrot.lane.b32.xlu1 %v5661_v20, %s14078_s20  ;;  %v13725_v1 = vld [vmem:[%s19054_s4 + $0xc0] sm:$0xff]   ;;  %v15818_v22 = vpop.permute.xlu0 %3516 }
 0x1a3   : > { %v3791_v47 = vor.u32 %v3790_v7, %v3787_v43  ;;  %v3079_v2 = vadd.f32 %v15639_v21, %v3078_v59  ;;  %v3080_v25 = vpop.f32.mrb[19].mxu0  ;;  %19130 = vst [vmem:[#allocation19_spill] sm:$0xff] %v15818_v22  ;;  %v3253_v27 = vadd.f32 %v15568_v6, %v3076_v16  ;;  %v4849_v43 = vsel %vm1006_vm1, %v19132_v24, %v19131_v13  ;;  %v13671_v57 = vld [vmem:[#allocation3 + $0x10] sm:$0xf8]  }
 0x1a4   : > { %v3797_v38 = vrot.slane %v3795_v30, 6  ;;  %v3800_v17 = vrot.slane %v3798_v40, 7  ;;  %v4513_v7 = vrot.slane %v4511_v42, 1  ;;  %v5296_v59 = vshrl.u32 %v13664_v49, 16  ;;  %7216 = vmatpush1.bf16.msra.mxu1 %v13725_v1 }
 0x1a5   : > { %v15826_v30 = vld [vmem:[#allocation3 + $0x18] sm:$0xff]   ;;  %v3792_v20 = vsel %vm15688_vm10, %v3783_v3, %v3791_v47  ;;  %v3793_v25 = vrot.slane %v3791_v47, 4  ;;  %v3256_v6 = vadd.f32 %v15575_v33, %v3079_v2  ;;  %v3371_v0 = vmax.f32 %v3253_v27, 0.0  ;;  %7217 = vmatprep.subr.bf16.mxu1 %v19133_v58 }
 0x1a6   : > { %v15828_v40 = vld [vmem:[#allocation3 + $0x18] sm:$0xff]   ;;  %v15833_v39 = vor.u32 %v3800_v17, %v3797_v38  ;;  %4132 = vst.msk [vmem:[#allocation3 + $0x20] sm:$0xf] %vm4126_vm11, %v3792_v20  ;;  %4884 = vrot.lane.b32.xlu0 %v4849_v43, %s14080_s22  ;;  %v4514_v42 = vsel %vm654_vm2, %v4509_v35, %v4513_v7  ;;  %v19065_v16 = vrot.slane %v15826_v30, 2  ;;  %v5293_v13 = vrot.slane %v5291_v45, 2  ;;  %v15851_v35 = vpop.permute.xlu0 %3526 }
 0x1a7   : > { %v15840_v24 = vld [vmem:[#allocation3 + $0x18] sm:$0xff]   ;;  %v3372_v3 = vmax.f32 %v3256_v6, 0.0  ;;  %4645 = vrot.lane.b32.xlu1 %v4514_v42, %s14078_s20  ;;  %v5298_v33 = vrot.slane %v5296_v59, 1  ;;  %v5299_v38 = vshll.u32 %v13664_v49, 16  ;;  %19135 = vst [vmem:[#allocation21_spill] sm:$0xff] %v15851_v35  ;;  %v3587_v45 = vmul.f32 %v15842_v10, %v3371_v0 }
 0x1a8   : > { %v3802_v47 = vsel %vm15688_vm10, %v3793_v25, %v15833_v39  ;;  %v15848_v17 = vld [vmem:[#allocation3 + $0x18] sm:$0xff]   ;;  %v5663_v2 = vsel %vm1824_vm0, %v5660_v41, %v19065_v16  ;;  %v19066_v27 = vrot.slane %v15828_v40, 1  ;;  %v4519_v59 = vshll.u32 %v15840_v24, 16 }
 0x1a9   : > { %4133 = vst.msk [vmem:[#allocation3 + $0x24] sm:$0xf] %vm4126_vm11, %v3802_v47  ;;  %v3588_v43 = vmul.f32 %v15681_v9, %v3372_v3  ;;  %v5301_v49 = vrot.slane %v5299_v38, 2  ;;  %v3803_v1 = vrot.slane %v15833_v39, 4  ;;  %v12884_v20 = vpack.c.bf16 %v3587_v45, %v3587_v45  ;;  %v13670_v0 = vld [vmem:[#allocation3 + $0x18] sm:$0xff]  }
 0x1aa   : > { %5698 = vrot.lane.b32.xlu0 %v5663_v2, %s14078_s20  ;;  %v5294_v25 = vor.u32 %v5293_v13, %v15800_v8  ;;  %v4515_v6 = vshrl.u32 %v15798_v52, 16  ;;  %v19136_v47 = vrot.slane %v15793_v37, 1  ;;  %v15873_v16 = vpop.permute.xlu0 %3536  ;;  %v15875_v8 = vrot.slane %v4519_v59, 1  ;;  %v13728_v13 = vld [vmem:[%s19054_s4 + $0xc8] sm:$0xff]  }
 0x1ab   : > { %v12885_v41 = vpack.c.bf16 %v3588_v43, %v3588_v43  ;;  %v15865_v42 = vor.u32 %v5301_v49, %v5298_v33  ;;  %v3805_v39 = vshrl.u32 %v12884_v20, 16  ;;  %v3808_v45 = vshll.u32 %v12884_v20, 16  ;;  %v13666_v59 = vld [vmem:[#allocation3 + $0x18] sm:$0xff]   ;;  %7218 = vmatpush1.bf16.msra.mxu1 %v13728_v13 }
 0x1ac   : > { %v4851_v3 = vsel %vm1006_vm1, %v19136_v47, %v19066_v27  ;;  %v3083_v2 = vpop.f32.mrb[20].mxu0  ;;  %v5305_v52 = vshrl.u32 %v13670_v0, 16  ;;  %v13668_v27 = vld [vmem:[#allocation3 + $0x10] sm:$0xfc]   ;;  %v4517_v10 = vor.u32 %v4515_v6, %v4513_v7  ;;  %v15885_v14 = vld [vmem:[#allocation3 + $0x18] sm:$0xff]   ;;  %7219 = vmatprep.subr.bf16.mxu1 %v19133_v58 }
 0x1ad   : > { %v3815_v33 = vshrl.u32 %v12885_v41, 16  ;;  %v3818_v43 = vshll.u32 %v12885_v41, 16  ;;  %v5303_v37 = vsel %vm1487_vm6, %v5294_v25, %v15865_v42  ;;  %v3084_v49 = vadd.f32 %v15639_v21, %v3083_v2  ;;  %v3085_v47 = vpop.f32.mrb[21].mxu0 }
 0x1ae   : > { %v3807_v20 = vrot.slane %v3805_v39, 6  ;;  %v3810_v38 = vrot.slane %v3808_v45, 7  ;;  %5457 = vrot.lane.b32.xlu1 %v5303_v37, %s14079_s21  ;;  %4886 = vrot.lane.b32.xlu0 %v4851_v3, %s14080_s22  ;;  %v3086_v9 = vpop.f32.mrb[22].mxu0  ;;  %v13732_v39 = vld [vmem:[%s19054_s4 + $0xd0] sm:$0xff]   ;;  %v15894_v3 = vpop.permute.xlu1 %3451  ;;  %v5307_v6 = vrot.slane %v5305_v52, 1  ;;  %v5308_v37 = vshll.u32 %v13670_v0, 16 }
 0x1af   : > { %v3817_v41 = vrot.slane %v3815_v33, 6  ;;  %v3820_v5 = vrot.slane %v3818_v43, 7  ;;  %v3261_v25 = vadd.f32 %v15561_v28, %v3084_v49  ;;  %v3087_v2 = vadd.f32 %v15639_v21, %v3086_v9  ;;  %v3088_v47 = vpop.f32.mrb[23].mxu0  ;;  %19137 = vst [vmem:[#allocation22_spill] sm:$0xff] %v15894_v3  ;;  %v4294_v7 = vpop.permute.xlu0 %4293  ;;  %7220 = vmatpush1.bf16.msra.mxu1 %v13732_v39 }
 0x1b0   : > { %v3811_v45 = vor.u32 %v3810_v38, %v3807_v20  ;;  %4347 = vst.msk [vmem:[#allocation2 + $0x10] sm:$0xff] %vm857_vm7, %v4294_v7  ;;  %v4522_v13 = vsel %vm654_vm2, %v4517_v10, %v15875_v8  ;;  %v5310_v0 = vrot.slane %v5308_v37, 2  ;;  %v15907_v52 = vld [vmem:[#allocation3 + $0x20] sm:$0xff]   ;;  %v19073_v20 = vrot.slane %v15885_v14, 3  ;;  %7221 = vmatprep.subr.bf16.mxu1 %v19133_v58 }
 0x1b1   : > { %v15897_v33 = vor.u32 %v3820_v5, %v3817_v41  ;;  %v3373_v28 = vmax.f32 %v3261_v25, 0.0  ;;  %v3264_v9 = vadd.f32 %v15570_v32, %v3087_v2  ;;  %v5898_v32 = vrot.slane %v13668_v27, 2  ;;  %v15925_v47 = vld [vmem:[#allocation3 + $0x20] sm:$0xff]  }
 0x1b2   : > { %v3812_v43 = vsel %vm15688_vm10, %v3803_v1, %v3811_v45  ;;  %v3813_v38 = vrot.slane %v3811_v45, 4  ;;  %4299 = vrot.lane.b32.xlu1 %v13666_v59, %s14079_s21  ;;  %4647 = vrot.lane.b32.xlu0 %v4522_v13, %s14078_s20  ;;  %v15914_v1 = vor.u32 %v5310_v0, %v5307_v6  ;;  %v15917_v59 = vld [vmem:[#allocation3 + $0x20] sm:$0xff]   ;;  %v19138_v27 = vrot.slane %v15848_v17, 2  ;;  %v15927_v39 = vpop.permute.xlu1 %3461 }
 0x1b3   : > { %4134 = vst.msk [vmem:[#allocation3 + $0x28] sm:$0xf] %vm4126_vm11, %v3812_v43  ;;  %v3589_v5 = vmul.f32 %v15894_v3, %v3373_v28  ;;  %v3374_v49 = vmax.f32 %v3264_v9, 0.0  ;;  %19139 = vst [vmem:[#allocation23_spill] sm:$0xff] %v15927_v39  ;;  %v6473_v7 = vrot.slane %v13671_v57, 3  ;;  %v19075_v6 = vrot.slane %v15907_v52, 2 }
 0x1b4   : > { %v3822_v10 = vsel %vm15688_vm10, %v3813_v38, %v15897_v33  ;;  %v5900_v2 = vsel %vm1824_vm0, %v5898_v32, %v19138_v27  ;;  %v5312_v45 = vsel %vm1487_vm6, %v15865_v42, %v15914_v1  ;;  %v3823_v37 = vrot.slane %v15897_v33, 4  ;;  %v13673_v43 = vld [vmem:[#allocation3 + $0x20] sm:$0xff]   ;;  %v13735_v27 = vld [vmem:[%s19054_s4 + $0xd8] sm:$0xff]  }
 0x1b5   : > { %4135 = vst.msk [vmem:[#allocation3 + $0x2c] sm:$0xf] %vm4126_vm11, %v3822_v10  ;;  %v12886_v41 = vpack.c.bf16 %v3589_v5, %v3589_v5  ;;  %v3590_v25 = vmul.f32 %v15702_v63, %v3374_v49  ;;  %v13678_v38 = vld [vmem:[#allocation3 + $0x20] sm:$0xff]   ;;  %v6475_v0 = vsel %vm2676_vm5, %v6473_v7, %v19073_v20  ;;  %v4523_v57 = vshrl.u32 %v15840_v24, 16  ;;  %7222 = vmatpush1.bf16.msra.mxu1 %v13735_v27 }
 0x1b6   : > { %5935 = vrot.lane.b32.xlu1 %v5900_v2, %s14080_s22  ;;  %5459 = vrot.lane.b32.xlu0 %v5312_v45, %s14079_s21  ;;  %v4527_v42 = vshll.u32 %v15925_v47, 16  ;;  %v19140_v45 = vrot.slane %v15826_v30, 2  ;;  %v15960_v30 = vpop.permute.xlu1 %3471  ;;  %v5317_v56 = vshll.u32 %v13678_v38, 16 }
 0x1b7   : > { %v3825_v28 = vshrl.u32 %v12886_v41, 16  ;;  %v3828_v9 = vshll.u32 %v12886_v41, 16  ;;  %v12887_v13 = vpack.c.bf16 %v3590_v25, %v3590_v25  ;;  %19141 = vst [vmem:[#allocation24_spill] sm:$0xff] %v15960_v30  ;;  %7223 = vmatprep.subr.bf16.mxu1 %v19133_v58 }
 0x1b8   : > { %v3091_v5 = vpop.f32.mrb[24].mxu0  ;;  %v5665_v24 = vsel %vm1824_vm0, %v19140_v45, %v19075_v6  ;;  %v15963_v6 = vrot.slane %v4527_v42, 1  ;;  %v19142_v42 = vrot.slane %v15917_v59, 2 }
 0x1b9   : > { %v3827_v32 = vrot.slane %v3825_v28, 6  ;;  %v3830_v33 = vrot.slane %v3828_v9, 7  ;;  %v3835_v10 = vshrl.u32 %v12887_v13, 16  ;;  %v3838_v41 = vshll.u32 %v12887_v13, 16  ;;  %v3093_v25 = vpop.f32.mrb[25].mxu0  ;;  %v15952_v28 = vld [vmem:[#allocation3 + $0x20] sm:$0xff]  }
 0x1ba   : > { %6510 = vrot.lane.b32.xlu1 %v6475_v0, %s14079_s21  ;;  %v3092_v2 = vadd.f32 %v15639_v21, %v3091_v5  ;;  %v3094_v7 = vpop.f32.mrb[26].mxu0  ;;  %v5314_v9 = vshrl.u32 %v13678_v38, 16  ;;  %v15954_v13 = vpop.f32.mrb[29].mxu1  ;;  %4301 = vrot.lane.b32.xlu0 %v13673_v43, %s14079_s21  ;;  %v19143_v38 = vrot.slane %v15848_v17, 2 }
 0x1bb   : > { %v3831_v25 = vor.u32 %v3830_v33, %v3827_v32  ;;  %v3837_v20 = vrot.slane %v3835_v10, 6  ;;  %v3840_v49 = vrot.slane %v3838_v41, 7  ;;  %v3095_v0 = vadd.f32 %v15639_v21, %v3094_v7  ;;  %v3096_v5 = vpop.f32.mrb[27].mxu0  ;;  %v15958_v63 = vpop.f32.mrb[30].mxu1  ;;  %v15971_v41 = vld [vmem:[#allocation3 + $0x20] sm:$0xff]  }
 0x1bc   : > { %v3269_v45 = vadd.f32 %v15599_v23, %v3092_v2  ;;  %v5316_v3 = vrot.slane %v5314_v9, 1  ;;  %v5902_v27 = vsel %vm1824_vm0, %v19143_v38, %v19142_v42  ;;  %v5319_v2 = vrot.slane %v5317_v56, 2  ;;  %v15988_v7 = vld [vmem:[#allocation3 + $0x28] sm:$0xff]   ;;  %v15998_v5 = vpop.permute.xlu1 %3481 }
 0x1bd   : > { %v3832_v32 = vsel %vm15688_vm10, %v3823_v37, %v3831_v25  ;;  %v3833_v43 = vrot.slane %v3831_v25, 4  ;;  %v15968_v33 = vor.u32 %v3840_v49, %v3837_v20  ;;  %v3272_v10 = vadd.f32 %v15608_v55, %v3095_v0  ;;  %19144 = vst [vmem:[#allocation25_spill] sm:$0xff] %v15998_v5 }
 0x1be   : > { %4136 = vst.msk [vmem:[#allocation3 + $0x30] sm:$0xf] %vm4126_vm11, %v3832_v32  ;;  %5700 = vrot.lane.b32.xlu1 %v5665_v24, %s14078_s20  ;;  %v3375_v23 = vmax.f32 %v3269_v45, 0.0  ;;  %v19078_v37 = vrot.slane %v15952_v28, 3  ;;  %5937 = vrot.lane.b32.xlu0 %v5902_v27, %s14080_s22  ;;  %v4525_v49 = vor.u32 %v4523_v57, %v15875_v8  ;;  %v15986_v24 = vld [vmem:[#allocation3 + $0x28] sm:$0xff]   ;;  %v15995_v25 = vor.u32 %v5319_v2, %v5316_v3 }
 0x1bf   : > { %v3842_v55 = vsel %vm15688_vm10, %v3833_v43, %v15968_v33  ;;  %v3376_v20 = vmax.f32 %v3272_v10, 0.0  ;;  %v19079_v0 = vrot.slane %v15971_v41, 1  ;;  %v19145_v57 = vrot.slane %v15885_v14, 3  ;;  %v13686_v32 = vld [vmem:[#allocation3 + $0x28] sm:$0xff]   ;;  %v16006_v43 = vpop.f32.mrb[31].mxu1 }
 0x1c0   : > { %4137 = vst.msk [vmem:[#allocation3 + $0x34] sm:$0xf] %vm4126_vm11, %v3842_v55  ;;  %v3591_v17 = vmul.f32 %v15927_v39, %v3375_v23  ;;  %v4530_v56 = vsel %vm654_vm2, %v4525_v49, %v15963_v6  ;;  %v3843_v23 = vrot.slane %v15968_v33, 4  ;;  %v16012_v55 = vld [vmem:[#allocation3 + $0x28] sm:$0xff]   ;;  %v5321_v49 = vsel %vm1487_vm6, %v15914_v1, %v15995_v25  ;;  %v13739_v33 = vld [vmem:[%s19054_s4 + $0xe0] sm:$0xff]  }
 0x1c1   : > { %v3592_v9 = vmul.f32 %v15717_v46, %v3376_v20  ;;  %v6477_v45 = vsel %vm2676_vm5, %v19145_v57, %v19078_v37  ;;  %v19146_v57 = vrot.slane %v15828_v40, 1  ;;  %v5323_v37 = vshrl.u32 %v13686_v32, 16  ;;  %7224 = vmatpush1.bf16.msra.mxu1 %v13739_v33 }
 0x1c2   : > { %v12888_v8 = vpack.c.bf16 %v3591_v17, %v3591_v17  ;;  %4649 = vrot.lane.b32.xlu1 %v4530_v56, %s14078_s20  ;;  %6512 = vrot.lane.b32.xlu0 %v6477_v45, %s14079_s21 }
 0x1c3   : > { %v12889_v10 = vpack.c.bf16 %v3592_v9, %v3592_v9  ;;  %v4853_v45 = vsel %vm1006_vm1, %v19146_v57, %v19079_v0  ;;  %v5666_v57 = vrot.slane %v16012_v55, 2  ;;  %v16035_v0 = vld [vmem:[#allocation3 + $0x28] sm:$0xff]   ;;  %7225 = vmatprep.subr.bf16.mxu1 %v19133_v58 }
 0x1c4   : > { %v3845_v42 = vshrl.u32 %v12888_v8, 16  ;;  %v3848_v38 = vshll.u32 %v12888_v8, 16  ;;  %v3099_v27 = vpop.f32.mrb[28].mxu0 }
 0x1c5   : > { %v3855_v14 = vshrl.u32 %v12889_v10, 16  ;;  %v3858_v20 = vshll.u32 %v12889_v10, 16  ;;  %v3100_v17 = vadd.f32 %v15639_v21, %v3099_v27  ;;  %v3101_v9 = vpop.f32.mrb[29].mxu0 }
 0x1c6   : > { %v3847_v56 = vrot.slane %v3845_v42, 6  ;;  %v3850_v8 = vrot.slane %v3848_v38, 7  ;;  %5461 = vrot.lane.b32.xlu1 %v5321_v49, %s14079_s21  ;;  %v3102_v10 = vpop.f32.mrb[30].mxu0  ;;  %4888 = vrot.lane.b32.xlu0 %v4853_v45, %s14080_s22  ;;  %v13681_v42 = vld [vmem:[#allocation3 + $0x28] sm:$0xff]   ;;  %v16032_v49 = vpop.permute.xlu1 %3491  ;;  %v19149_v45 = vrot.slane %v15917_v59, 2 }
 0x1c7   : > { %v3857_v1 = vrot.slane %v3855_v14, 6  ;;  %v3860_v2 = vrot.slane %v3858_v20, 7  ;;  %v3277_v27 = vadd.f32 %v15596_v51, %v3100_v17  ;;  %v3103_v9 = vadd.f32 %v15639_v21, %v3102_v10  ;;  %v3104_v38 = vpop.f32.mrb[31].mxu0  ;;  %v16030_v3 = vld [vmem:[#allocation3 + $0x30] sm:$0xff]   ;;  %19147 = vst [vmem:[#allocation26_spill] sm:$0xff] %v16032_v49 }
 0x1c8   : > { %v3851_v40 = vor.u32 %v3850_v8, %v3847_v56  ;;  %v13687_v14 = vld [vmem:[#allocation3 + $0x30] sm:$0xff]   ;;  %v5326_v20 = vshll.u32 %v13686_v32, 16  ;;  %v19148_v21 = vrot.slane %v15986_v24, 2  ;;  %v16046_v56 = vld [vmem:[#allocation3 + $0x28] sm:$0xff]   ;;  %v19080_v59 = vrot.slane %v16030_v3, 2 }
 0x1c9   : > { %v16038_v51 = vor.u32 %v3860_v2, %v3857_v1  ;;  %v3377_v17 = vmax.f32 %v3277_v27, 0.0  ;;  %v3280_v10 = vadd.f32 %v15605_v31, %v3103_v9  ;;  %v5332_v32 = vshrl.u32 %v13687_v14, 16 }
 0x1ca   : > { %v5904_v33 = vsel %vm1824_vm0, %v19149_v45, %v19148_v21  ;;  %v3852_v55 = vsel %vm15688_vm10, %v3843_v23, %v3851_v40  ;;  %v3853_v8 = vrot.slane %v3851_v40, 4  ;;  %4303 = vrot.lane.b32.xlu0 %v13681_v42, %s14079_s21  ;;  %v5325_v27 = vrot.slane %v5323_v37, 1 }
 0x1cb   : > { %5939 = vrot.lane.b32.xlu1 %v5904_v33, %s14080_s22  ;;  %4138 = vst.msk [vmem:[#allocation3 + $0x38] sm:$0xf] %vm4126_vm11, %v3852_v55  ;;  %v3593_v2 = vmul.f32 %v15960_v30, %v3377_v17  ;;  %v3378_v1 = vmax.f32 %v3280_v10, 0.0  ;;  %v5328_v9 = vrot.slane %v5326_v20, 2  ;;  %v5334_v23 = vrot.slane %v5332_v32, 1  ;;  %v16065_v33 = vpop.permute.xlu1 %3501 }
 0x1cc   : > { %v3862_v31 = vsel %vm15688_vm10, %v3853_v8, %v16038_v51  ;;  %v5335_v38 = vshll.u32 %v13687_v14, 16  ;;  %v19150_v17 = vrot.slane %v15988_v7, 3  ;;  %v19151_v45 = vrot.slane %v15952_v28, 3  ;;  %19152 = vst [vmem:[#allocation27_spill] sm:$0xff] %v16065_v33  ;;  %v13740_v8 = vld [vmem:[%s19054_s4 + $0x108] sm:$0xff]  }
 0x1cd   : > { %4139 = vst.msk [vmem:[#allocation3 + $0x3c] sm:$0xf] %vm4126_vm11, %v3862_v31  ;;  %v12890_v40 = vpack.c.bf16 %v3593_v2, %v3593_v2  ;;  %v3594_v21 = vmul.f32 %v15737_v60, %v3378_v1  ;;  %v19153_v37 = vrot.slane %v15907_v52, 2  ;;  %v4535_v55 = vshll.u32 %v16046_v56, 16  ;;  %13056 = vmatprep.subr.bf16.mxu0 %v13740_v8 }
 0x1ce   : > { %v6479_v42 = vsel %vm2676_vm5, %v19151_v45, %v19150_v17  ;;  %v5337_v10 = vrot.slane %v5335_v38, 2  ;;  %v5669_v52 = vsel %vm1824_vm0, %v5666_v57, %v19080_v59  ;;  %v3863_v1 = vrot.slane %v16038_v51, 4  ;;  %13057 = vmatpush3.bf16.msra.mxu0 %v13740_v8  ;;  %v16095_v51 = vld [vmem:[%s19053_s3] ss:$0 sm:$0xff] }
 0x1cf   : > { %6514 = vrot.lane.b32.xlu1 %v6479_v42, %s14079_s21  ;;  %v5667_v20 = vsel %vm1824_vm0, %v19153_v37, %v5666_v57  ;;  %v3865_v28 = vshrl.u32 %v12890_v40, 16  ;;  %v3868_v32 = vshll.u32 %v12890_v40, 16  ;;  %v12891_v2 = vpack.c.bf16 %v3594_v21, %v3594_v21  ;;  %v16086_v42 = vld [vmem:[#allocation3 + $0x30] sm:$0xff]   ;;  %v13743_v57 = vld [vmem:[%s19054_s4 + $0xe8] sm:$0xff]  }
 0x1d0   : > { %5702 = vrot.lane.b32.xlu0 %v5667_v20, %s14078_s20  ;;  %v3107_v31 = vpop.f32.mrb[32].mxu0  ;;  %v16081_v17 = vor.u32 %v5328_v9, %v5325_v27  ;;  %v16083_v38 = vor.u32 %v5337_v10, %v5334_v23  ;;  %v4531_v45 = vshrl.u32 %v15925_v47, 16  ;;  %v19154_v27 = vrot.slane %v16035_v0, 1  ;;  %7226 = vmatpush1.bf16.msra.mxu1 %v13743_v57 }
 0x1d1   : > { %v3867_v40 = vrot.slane %v3865_v28, 6  ;;  %v3870_v21 = vrot.slane %v3868_v32, 7  ;;  %v3875_v37 = vshrl.u32 %v12891_v2, 16  ;;  %v3878_v20 = vshll.u32 %v12891_v2, 16  ;;  %v3109_v14 = vpop.f32.mrb[33].mxu0  ;;  %7227 = vmatprep.subr.bf16.mxu1 %v19133_v58 }
 0x1d2   : > { %v3108_v47 = vadd.f32 %v16095_v51, %v3107_v31  ;;  %v19155_v9 = vrot.slane %v15971_v41, 1  ;;  %v5339_v14 = vsel %vm1487_vm6, %v16081_v17, %v16083_v38  ;;  %v3110_v10 = vpop.f32.mrb[34].mxu0  ;;  %v16106_v8 = vrot.slane %v4535_v55, 1  ;;  %v13746_v41 = vld [vmem:[%s19054_s4 + $0xf0] sm:$0xff]  }
 0x1d3   : > { %5704 = vrot.lane.b32.xlu1 %v5669_v52, %s14078_s20  ;;  %v3871_v28 = vor.u32 %v3870_v21, %v3867_v40  ;;  %v3877_v32 = vrot.slane %v3875_v37, 6  ;;  %v3880_v2 = vrot.slane %v3878_v20, 7  ;;  %v3111_v52 = vadd.f32 %v16095_v51, %v3110_v10  ;;  %v3112_v31 = vpop.f32.mrb[35].mxu0  ;;  %v16120_v21 = vld [vmem:[#allocation3 + $0x30] sm:$0xff]  }
 0x1d4   : > { %v4855_v23 = vsel %vm1006_vm1, %v19155_v9, %v19154_v27  ;;  %v16113_v27 = vpop.permute.xlu1 %3511  ;;  %v3285_v9 = vadd.f32 %v15619_v54, %v3108_v47  ;;  %v4533_v55 = vor.u32 %v4531_v45, %v15963_v6  ;;  %v16117_v59 = vld [vmem:[#allocation3 + $0x38] sm:$0xff]   ;;  %v19082_v40 = vrot.slane %v16086_v42, 2  ;;  %v16130_v54 = vld [vmem:[#allocation3 + $0x30] sm:$0xff]   ;;  %v16132_v6 = vpop.f32.mrb[32].mxu1  ;;  %7228 = vmatpush1.bf16.msra.mxu1 %v13746_v41 }
 0x1d5   : > { %4890 = vrot.lane.b32.xlu0 %v4855_v23, %s14080_s22  ;;  %19156 = vst [vmem:[#allocation28_spill] sm:$0xff] %v16113_v27  ;;  %v3872_v37 = vsel %vm15688_vm10, %v3863_v1, %v3871_v28  ;;  %v3873_v20 = vrot.slane %v3871_v28, 4  ;;  %v16125_v57 = vor.u32 %v3880_v2, %v3877_v32  ;;  %v3288_v23 = vadd.f32 %v15628_v19, %v3111_v52  ;;  %v16128_v10 = vld [vmem:[#allocation3 + $0x38] sm:$0xff]  }
 0x1d6   : > { %4140 = vst.msk [vmem:[#allocation3 + $0x40] sm:$0xf] %vm4126_vm11, %v3872_v37  ;;  %v3379_v45 = vmax.f32 %v3285_v9, 0.0  ;;  %v4538_v47 = vsel %vm654_vm2, %v4533_v55, %v16106_v8  ;;  %v19081_v1 = vrot.slane %v16117_v59, 2  ;;  %v16143_v32 = vld [vmem:[#allocation3 + $0x38] sm:$0xff]   ;;  %7229 = vmatprep.subr.bf16.mxu1 %v19133_v58 }
 0x1d7   : > { %5465 = vrot.lane.b32.xlu1 %v5339_v14, %s14079_s21  ;;  %v3882_v19 = vsel %vm15688_vm10, %v3873_v20, %v16125_v57  ;;  %v3380_v28 = vmax.f32 %v3288_v23, 0.0  ;;  %v13695_v2 = vld [vmem:[#allocation3 + $0x38] sm:$0xff]   ;;  %v5330_v23 = vsel %vm1487_vm6, %v15995_v25, %v16081_v17 }
 0x1d8   : > { %4141 = vst.msk [vmem:[#allocation3 + $0x44] sm:$0xf] %vm4126_vm11, %v3882_v19  ;;  %v3595_v14 = vmul.f32 %v15998_v5, %v3379_v45  ;;  %v5908_v52 = vsel %vm1824_vm0, %v19082_v40, %v19081_v1  ;;  %v5341_v55 = vshrl.u32 %v13695_v2, 16  ;;  %v5344_v37 = vshll.u32 %v13695_v2, 16  ;;  %v16155_v20 = vpop.permute.xlu1 %3521  ;;  %v13691_v1 = vld [vmem:[#allocation3 + $0x30] sm:$0xff]  }
 0x1d9   : > { %4651 = vrot.lane.b32.xlu0 %v4538_v47, %s14078_s20  ;;  %v3596_v9 = vmul.f32 %v15755_v11, %v3380_v28  ;;  %v6480_v45 = vrot.slane %v16120_v21, 3  ;;  %v16162_v47 = vld [vmem:[#allocation3 + $0x30] sm:$0xff]   ;;  %v19157_v11 = vrot.slane %v16128_v10, 3 }
 0x1da   : > { %v12892_v41 = vpack.c.bf16 %v3595_v14, %v3595_v14  ;;  %v5343_v17 = vrot.slane %v5341_v55, 1  ;;  %v5346_v46 = vrot.slane %v5344_v37, 2  ;;  %v4543_v2 = vshll.u32 %v16162_v47, 16 }
 0x1db   : > { %5943 = vrot.lane.b32.xlu1 %v5908_v52, %s14080_s22  ;;  %v12893_v19 = vpack.c.bf16 %v3596_v9, %v3596_v9  ;;  %v6483_v25 = vsel %vm2676_vm5, %v6480_v45, %v19157_v11  ;;  %v19158_v37 = vrot.slane %v16143_v32, 2 }
 0x1dc   : > { %v3885_v40 = vshrl.u32 %v12892_v41, 16  ;;  %v3888_v14 = vshll.u32 %v12892_v41, 16  ;;  %v3115_v31 = vpop.f32.mrb[36].mxu0 }
 0x1dd   : > { %5463 = vrot.lane.b32.xlu0 %v5330_v23, %s14079_s21  ;;  %v3895_v52 = vshrl.u32 %v12893_v19, 16  ;;  %v3898_v21 = vshll.u32 %v12893_v19, 16  ;;  %v3116_v5 = vadd.f32 %v16095_v51, %v3115_v31  ;;  %v3117_v9 = vpop.f32.mrb[37].mxu0  ;;  %v16176_v19 = vpop.permute.xlu1 %3531  ;;  %v3883_v31 = vrot.slane %v16125_v57, 4  ;;  %v13736_v57 = vld [vmem:[#allocation3 + $0x8] sm:$0xfe]  }
 0x1de   : > { %v3887_v23 = vrot.slane %v3885_v40, 6  ;;  %v3890_v60 = vrot.slane %v3888_v14, 7  ;;  %v3118_v28 = vpop.f32.mrb[38].mxu0  ;;  %v19159_v14 = vrot.slane %v16030_v3, 2  ;;  %v19160_v3 = vrot.slane %v15988_v7, 3 }
 0x1df   : > { %6518 = vrot.lane.b32.xlu1 %v6483_v25, %s14079_s21  ;;  %v3897_v41 = vrot.slane %v3895_v52, 6  ;;  %v3900_v39 = vrot.slane %v3898_v21, 7  ;;  %v3293_v30 = vadd.f32 %v15616_v53, %v3116_v5  ;;  %v3119_v11 = vadd.f32 %v16095_v51, %v3118_v28  ;;  %v3120_v55 = vpop.f32.mrb[39].mxu0  ;;  %v16184_v52 = vld [vmem:[#allocation3 + $0x40] sm:$0xff]   ;;  %v16186_v21 = vld [vmem:[#allocation3 + $0x10] sm:$0xff]  }
 0x1e0   : > { %v3891_v40 = vor.u32 %v3890_v60, %v3887_v23  ;;  %v5671_v25 = vsel %vm1824_vm0, %v19159_v14, %v19158_v37  ;;  %v16191_v28 = vor.u32 %v5346_v46, %v5343_v17  ;;  %v13702_v9 = vld [vmem:[#allocation3 + $0x40] sm:$0xff]   ;;  %v6481_v55 = vsel %vm2676_vm5, %v19160_v3, %v6480_v45 }
 0x1e1   : > { %4305 = vrot.lane.b32.xlu0 %v13691_v1, %s14079_s21  ;;  %v16188_v53 = vor.u32 %v3900_v39, %v3897_v41  ;;  %v3381_v5 = vmax.f32 %v3293_v30, 0.0  ;;  %v3296_v1 = vadd.f32 %v15625_v50, %v3119_v11  ;;  %v16199_v37 = vld [vmem:[#allocation3 + $0x40] sm:$0xff]   ;;  %v4539_v39 = vshrl.u32 %v16046_v56, 16  ;;  %v16216_v56 = vpop.permute.xlu1 %3541 }
 0x1e2   : > { %v3892_v60 = vsel %vm15688_vm10, %v3883_v31, %v3891_v40  ;;  %v3893_v23 = vrot.slane %v3891_v40, 4  ;;  %v5909_v7 = vrot.slane %v16184_v52, 2  ;;  %v5350_v45 = vshrl.u32 %v13702_v9, 16 }
 0x1e3   : > { %5706 = vrot.lane.b32.xlu1 %v5671_v25, %s14078_s20  ;;  %4142 = vst.msk [vmem:[#allocation3 + $0x48] sm:$0xf] %vm4126_vm11, %v3892_v60  ;;  %v3597_v50 = vmul.f32 %v16032_v49, %v3381_v5  ;;  %v3382_v46 = vmax.f32 %v3296_v1, 0.0  ;;  %v5353_v17 = vshll.u32 %v13702_v9, 16  ;;  %v5348_v31 = vsel %vm1487_vm6, %v16083_v38, %v16191_v28  ;;  %v16225_v9 = vld [vmem:[#allocation3 + $0x38] sm:$0xff]  }
 0x1e4   : > { %v3902_v30 = vsel %vm15688_vm10, %v3893_v23, %v16188_v53  ;;  %v16214_v40 = vrot.slane %v4543_v2, 1  ;;  %v19161_v14 = vrot.slane %v16086_v42, 2  ;;  %v19162_v25 = vrot.slane %v15986_v24, 2 }
 0x1e5   : > { %6516 = vrot.lane.b32.xlu0 %v6481_v55, %s14079_s21  ;;  %4143 = vst.msk [vmem:[#allocation3 + $0x4c] sm:$0xf] %vm4126_vm11, %v3902_v30  ;;  %v12894_v41 = vpack.c.bf16 %v3597_v50, %v3597_v50  ;;  %v3598_v11 = vmul.f32 %v15781_v62, %v3382_v46  ;;  %v19089_v1 = vrot.slane %v16199_v37, 2  ;;  %v5084_v60 = vrot.slane %v13736_v57, 1 }
 0x1e6   : > { %v5906_v5 = vsel %vm1824_vm0, %v19162_v25, %v19161_v14  ;;  %v5085_v23 = vrot.slane %v16186_v21, 1  ;;  %v19163_v24 = vrot.slane %v16117_v59, 2  ;;  %v5352_v55 = vrot.slane %v5350_v45, 1  ;;  %v16241_v59 = vld [vmem:[#allocation3 + $0x38] sm:$0xff]  }
 0x1e7   : > { %5467 = vrot.lane.b32.xlu1 %v5348_v31, %s14079_s21  ;;  %v3905_v38 = vshrl.u32 %v12894_v41, 16  ;;  %v3908_v2 = vshll.u32 %v12894_v41, 16  ;;  %v12895_v3 = vpack.c.bf16 %v3598_v11, %v3598_v11  ;;  %v5355_v50 = vrot.slane %v5353_v17, 2 }
 0x1e8   : > { %v5910_v42 = vsel %vm1824_vm0, %v19163_v24, %v5909_v7  ;;  %v3903_v57 = vrot.slane %v16188_v53, 4  ;;  %v3123_v25 = vpop.f32.mrb[40].mxu0  ;;  %v19164_v41 = vrot.slane %v16130_v54, 1  ;;  %v19165_v11 = vrot.slane %v16035_v0, 1  ;;  %v13752_v0 = vld [vmem:[%s19054_s4 + $0xf8] sm:$0xff]   ;;  %v16252_v24 = vpop.permute.xlu1 %3546 }
 0x1e9   : > { %5941 = vrot.lane.b32.xlu0 %v5906_v5, %s14080_s22  ;;  %v3907_v46 = vrot.slane %v3905_v38, 6  ;;  %v3910_v30 = vrot.slane %v3908_v2, 7  ;;  %v3915_v31 = vshrl.u32 %v12895_v3, 16  ;;  %v3918_v14 = vshll.u32 %v12895_v3, 16  ;;  %v3125_v3 = vpop.f32.mrb[41].mxu0  ;;  %7230 = vmatpush1.bf16.msra.mxu1 %v13752_v0 }
 0x1ea   : > { %v4857_v5 = vsel %vm1006_vm1, %v19165_v11, %v19164_v41  ;;  %v5086_v45 = vsel %vm1006_vm1, %v5084_v60, %v5085_v23  ;;  %v3124_v53 = vadd.f32 %v16095_v51, %v3123_v25  ;;  %v4541_v41 = vor.u32 %v4539_v39, %v16106_v8  ;;  %v16270_v39 = vld [vmem:[#allocation3 + $0x18] sm:$0xff]   ;;  %13146 = vmatprep.subr.bf16.mxu1 %v19133_v58 }
 0x1eb   : > { %5945 = vrot.lane.b32.xlu1 %v5910_v42, %s14080_s22  ;;  %v3911_v17 = vor.u32 %v3910_v30, %v3907_v46  ;;  %v3917_v38 = vrot.slane %v3915_v31, 6  ;;  %v3920_v2 = vrot.slane %v3918_v14, 7  ;;  %5139 = vst.msk [vmem:[#allocation2 + $0x18] sm:$0xff] %vm505_vm4, %v5086_v45  ;;  %v3126_v42 = vpop.f32.mrb[42].mxu0  ;;  %v19166_v60 = vrot.slane %v16143_v32, 2 }
 0x1ec   : > { %v16260_v30 = vor.u32 %v5355_v50, %v5352_v55  ;;  %v4551_v31 = vshll.u32 %v16225_v9, 16  ;;  %v3128_v45 = vpop.f32.mrb[43].mxu0  ;;  %v16268_v8 = vld [vmem:[#allocation3 + $0x48] sm:$0xff]   ;;  %v3301_v32 = vadd.f32 %v15634_v61, %v3124_v53  ;;  %v4546_v55 = vsel %vm654_vm2, %v4541_v41, %v16214_v40  ;;  %v16277_v50 = vld [vmem:[#allocation3 + $0x40] sm:$0xff]  }
 0x1ed   : > { %4892 = vrot.lane.b32.xlu0 %v4857_v5, %s14080_s22  ;;  %v5673_v46 = vsel %vm1824_vm0, %v19166_v60, %v19089_v1  ;;  %v3912_v14 = vsel %vm15688_vm10, %v3903_v57, %v3911_v17  ;;  %v3913_v25 = vrot.slane %v3911_v17, 4  ;;  %v16265_v11 = vor.u32 %v3920_v2, %v3917_v38  ;;  %v13715_v38 = vld [vmem:[#allocation3 + $0x48] sm:$0xff]  }
 0x1ee   : > { %v3127_v5 = vadd.f32 %v16095_v51, %v3126_v42  ;;  %4144 = vst.msk [vmem:[#allocation3 + $0x50] sm:$0xf] %vm4126_vm11, %v3912_v14  ;;  %v3383_v61 = vmax.f32 %v3301_v32, 0.0  ;;  %v19091_v2 = vrot.slane %v16241_v59, 1  ;;  %v4547_v53 = vshrl.u32 %v16162_v47, 16  ;;  %v16288_v3 = vld [vmem:[#allocation3 + $0x48] sm:$0xff]  }
 0x1ef   : > { %5708 = vrot.lane.b32.xlu1 %v5673_v46, %s14078_s20  ;;  %v3922_v57 = vsel %vm15688_vm10, %v3913_v25, %v16265_v11  ;;  %v13701_v42 = vld [vmem:[#allocation3 + $0x38] sm:$0xff]   ;;  %v5357_v41 = vsel %vm1487_vm6, %v16191_v28, %v16260_v30  ;;  %v16294_v60 = vrot.slane %v4551_v31, 1  ;;  %v16296_v46 = vpop.permute.xlu1 %3556  ;;  %v16300_v25 = vld [vmem:[#allocation3 + $0x40] sm:$0xff]   ;;  %v19090_v47 = vrot.slane %v16270_v39, 1  ;;  %v16306_v45 = vld [vmem:[#allocation3 + $0x48] sm:$0xff]  }
 0x1f0   : > { %v3304_v17 = vadd.f32 %v15651_v26, %v3127_v5  ;;  %4145 = vst.msk [vmem:[#allocation3 + $0x54] sm:$0xf] %vm4126_vm11, %v3922_v57  ;;  %v19092_v26 = vrot.slane %v16268_v8, 2  ;;  %v3599_v14 = vmul.f32 %v16065_v33, %v3383_v61  ;;  %v5359_v31 = vshrl.u32 %v13715_v38, 16  ;;  %v16308_v32 = vld [vmem:[#allocation3 + $0x10] sm:$0xfc]  }
 0x1f1   : > { %4653 = vrot.lane.b32.xlu0 %v4546_v55, %s14078_s20  ;;  %v16310_v55 = vpop.f32.mrb[33].mxu1  ;;  %v5362_v61 = vshll.u32 %v13715_v38, 16  ;;  %v19168_v1 = vrot.slane %v16130_v54, 1  ;;  %v3923_v21 = vrot.slane %v16265_v11, 4  ;;  %v4559_v54 = vshll.u32 %v16300_v25, 16 }
 0x1f2   : > { %v3384_v0 = vmax.f32 %v3304_v17, 0.0  ;;  %v12896_v57 = vpack.c.bf16 %v3599_v14, %v3599_v14  ;;  %v5912_v38 = vsel %vm1824_vm0, %v5909_v7, %v19092_v26  ;;  %v16330_v14 = vld [vmem:[#allocation3 + $0x40] sm:$0xff]   ;;  %v19169_v11 = vrot.slane %v16288_v3, 3 }
 0x1f3   : > { %5469 = vrot.lane.b32.xlu1 %v5357_v41, %s14079_s21  ;;  %v4859_v28 = vsel %vm1006_vm1, %v19168_v1, %v19091_v2  ;;  %v5361_v2 = vrot.slane %v5359_v31, 1  ;;  %v16338_v7 = vpop.permute.xlu1 %3561  ;;  %v6138_v31 = vshrl.u32 %v16308_v32, 16 }
 0x1f4   : > { %v3600_v5 = vmul.f32 %v15802_v29, %v3384_v0  ;;  %v5088_v0 = vsel %vm1006_vm1, %v5085_v23, %v19090_v47  ;;  %v3925_v23 = vshrl.u32 %v12896_v57, 16 }
 0x1f5   : > { %4307 = vrot.lane.b32.xlu0 %v13701_v42, %s14079_s21  ;;  %v16318_v42 = vpop.f32.mrb[34].mxu1  ;;  %5140 = vst.msk [vmem:[#allocation2 + $0x50] sm:$0xff] %vm505_vm4, %v5088_v0  ;;  %v4549_v0 = vor.u32 %v4547_v53, %v16214_v40 }
 0x1f6   : > { %19167 = vst [vmem:[#allocation29_spill] sm:$0xff] %v16318_v42  ;;  %v12897_v41 = vpack.c.bf16 %v3600_v5, %v3600_v5  ;;  %v3928_v5 = vshll.u32 %v12896_v57, 16  ;;  %v3927_v26 = vrot.slane %v3925_v23, 6  ;;  %v19170_v57 = vrot.slane %v16277_v50, 3 }
 0x1f7   : > { %5947 = vrot.lane.b32.xlu1 %v5912_v38, %s14080_s22  ;;  %v13724_v62 = vld [vmem:[#allocation3 + $0x50] sm:$0xff]   ;;  %v4554_v23 = vsel %vm654_vm2, %v4549_v0, %v16294_v60  ;;  %v16374_v53 = vpop.permute.xlu1 %3566 }
 0x1f8   : > { %v3935_v47 = vshrl.u32 %v12897_v41, 16  ;;  %v3938_v1 = vshll.u32 %v12897_v41, 16  ;;  %v3930_v17 = vrot.slane %v3928_v5, 7  ;;  %v6487_v38 = vsel %vm2676_vm5, %v19170_v57, %v19169_v11  ;;  %v13712_v11 = vld [vmem:[#allocation3 + $0x40] sm:$0xff]  }
 0x1f9   : > { %4894 = vrot.lane.b32.xlu0 %v4859_v28, %s14080_s22  ;;  %v5364_v41 = vrot.slane %v5362_v61, 2  ;;  %v16346_v28 = vld [vmem:[#allocation3 + $0x48] sm:$0xff]  }
 0x1fa   : > { %v3937_v29 = vrot.slane %v3935_v47, 6  ;;  %v3940_v33 = vrot.slane %v3938_v1, 7  ;;  %v3931_v52 = vor.u32 %v3930_v17, %v3927_v26  ;;  %v4555_v47 = vshrl.u32 %v16225_v9, 16  ;;  %v3131_v1 = vpop.f32.mrb[44].mxu0 }
 0x1fb   : > { %6522 = vrot.lane.b32.xlu1 %v6487_v38, %s14079_s21  ;;  %v19171_v26 = vrot.slane %v16306_v45, 2  ;;  %v19172_v17 = vrot.slane %v16199_v37, 2  ;;  %v3132_v57 = vadd.f32 %v16095_v51, %v3131_v1  ;;  %v3133_v9 = vpop.f32.mrb[45].mxu0  ;;  %v16368_v38 = vor.u32 %v5364_v41, %v5361_v2 }
 0x1fc   : > { %v16352_v40 = vor.u32 %v3940_v33, %v3937_v29  ;;  %v3932_v61 = vsel %vm15688_vm10, %v3923_v21, %v3931_v52  ;;  %v3933_v5 = vrot.slane %v3931_v52, 4  ;;  %v16364_v29 = vrot.slane %v4559_v54, 1  ;;  %v13749_v33 = vld [vmem:[#allocation3 + $0x18] sm:$0xff]   ;;  %v16370_v21 = vld [vmem:[#allocation3 + $0x50] sm:$0xff]   ;;  %v3134_v54 = vpop.f32.mrb[46].mxu0  ;;  %v16386_v52 = vpop.f32.mrb[35].mxu1 }
 0x1fd   : > { %4655 = vrot.lane.b32.xlu0 %v4554_v23, %s14078_s20  ;;  %v5675_v0 = vsel %vm1824_vm0, %v19172_v17, %v19171_v26  ;;  %4146 = vst.msk [vmem:[#allocation3 + $0x58] sm:$0xf] %vm4126_vm11, %v3932_v61  ;;  %v6141_v23 = vshll.u32 %v16308_v32, 16  ;;  %v16380_v61 = vld [vmem:[#allocation3 + $0x50] sm:$0xff]   ;;  %v5368_v1 = vshrl.u32 %v13724_v62, 16  ;;  %v6140_v2 = vrot.slane %v6138_v31, 2 }
 0x1fe   : > { %v3942_v37 = vsel %vm15688_vm10, %v3933_v5, %v16352_v40  ;;  %v3309_v41 = vadd.f32 %v15632_v44, %v3132_v57  ;;  %v3135_v26 = vadd.f32 %v16095_v51, %v3134_v54  ;;  %v3136_v32 = vpop.f32.mrb[47].mxu0  ;;  %v5371_v17 = vshll.u32 %v13724_v62, 16  ;;  %v13760_v44 = vld [vmem:[%s19054_s4 + $0x110] sm:$0xff]   ;;  %v16399_v62 = vpop.permute.xlu0 %3551  ;;  %v16408_v54 = vld [vmem:[#allocation3 + $0x48] sm:$0xff]  }
 0x1ff   : > { %5710 = vrot.lane.b32.xlu1 %v5675_v0, %s14078_s20  ;;  %4147 = vst.msk [vmem:[#allocation3 + $0x5c] sm:$0xf] %vm4126_vm11, %v3942_v37  ;;  %v6143_v9 = vrot.slane %v6141_v23, 3  ;;  %v19173_v5 = vrot.slane %v16277_v50, 3  ;;  %v19174_v0 = vrot.slane %v16128_v10, 3  ;;  %v6146_v31 = vshrl.u32 %v13749_v33, 16  ;;  %13058 = vmatprep.subr.bf16.mxu0 %v13760_v44 }
 0x200   : > { %v6149_v42 = vshll.u32 %v13749_v33, 16  ;;  %v3385_v57 = vmax.f32 %v3309_v41, 0.0  ;;  %v3312_v23 = vadd.f32 %v15648_v12, %v3135_v26  ;;  %v5366_v10 = vsel %vm1487_vm6, %v16260_v30, %v16368_v38  ;;  %13059 = vmatpush3.bf16.msra.mxu0 %v13760_v44  ;;  %v16412_v30 = vpop.permute.xlu1 %3576 }
 0x201   : > { %4309 = vrot.lane.b32.xlu0 %v13712_v11, %s14079_s21  ;;  %v6485_v49 = vsel %vm2676_vm5, %v19174_v0, %v19173_v5  ;;  %v13763_v11 = vld [vmem:[%s19054_s4 + $0x118] sm:$0xff]   ;;  %v19097_v33 = vrot.slane %v16380_v61, 2  ;;  %v5370_v37 = vrot.slane %v5368_v1, 1  ;;  %v6148_v32 = vrot.slane %v6146_v31, 2 }
 0x202   : > { %v6151_v5 = vrot.slane %v6149_v42, 3  ;;  %v3601_v41 = vmul.f32 %v16113_v27, %v3385_v57  ;;  %v3386_v0 = vmax.f32 %v3312_v23, 0.0  ;;  %v5373_v12 = vrot.slane %v5371_v17, 2  ;;  %13060 = vmatprep.subr.bf16.mxu0 %v13763_v11 }
 0x203   : > { %5471 = vrot.lane.b32.xlu1 %v5366_v10, %s14079_s21  ;;  %v6144_v26 = vor.u32 %v6143_v9, %v6140_v2  ;;  %v19175_v31 = vrot.slane %v16370_v21, 2  ;;  %v19176_v42 = vrot.slane %v16268_v8, 2  ;;  %v19177_v23 = vrot.slane %v16330_v14, 1  ;;  %v16434_v8 = vpop.permute.xlu0 %3571 }
 0x204   : > { %v16414_v50 = vor.u32 %v6151_v5, %v6148_v32  ;;  %v12898_v10 = vpack.c.bf16 %v3601_v41, %v3601_v41  ;;  %v3602_v1 = vmul.f32 %v15818_v22, %v3386_v0  ;;  %v4557_v2 = vor.u32 %v4555_v47, %v16294_v60  ;;  %v16432_v32 = vld [vmem:[#allocation3 + $0x20] sm:$0xff]   ;;  %13061 = vmatpush3.bf16.msra.mxu0 %v13763_v11  ;;  %v3139_v60 = vpop.f32.mrb[48].mxu0  ;;  %v16454_v11 = vld [vmem:[#allocation3 + $0x50] sm:$0xff]  }
 0x205   : > { %6520 = vrot.lane.b32.xlu0 %v6485_v49, %s14079_s21  ;;  %v5914_v57 = vsel %vm1824_vm0, %v19176_v42, %v19175_v31  ;;  %v19178_v49 = vrot.slane %v16241_v59, 1  ;;  %v4563_v9 = vshrl.u32 %v16300_v25, 16  ;;  %v19180_v42 = vshll.u32 %v16346_v28, 16  ;;  %11284 = vmatprep.subr.bf16.mxu0 %v19133_v58 }
 0x206   : > { %v6153_v44 = vsel %vm2303_vm3, %v6144_v26, %v16414_v50  ;;  %v3945_v5 = vshrl.u32 %v12898_v10, 16  ;;  %v3948_v41 = vshll.u32 %v12898_v10, 16  ;;  %v12899_v0 = vpack.c.bf16 %v3602_v1, %v3602_v1  ;;  %v16448_v1 = vld [vmem:[#allocation3 + $0x58] sm:$0xff]  }
 0x207   : > { %v4861_v17 = vsel %vm1006_vm1, %v19178_v49, %v19177_v23  ;;  %5949 = vrot.lane.b32.xlu1 %v5914_v57, %s14080_s22  ;;  %6325 = vst.msk [vmem:[#allocation2 + $0x20] sm:$0xff] %vm505_vm4, %v6153_v44  ;;  %v4296_v47 = vpop.permute.xlu1 %4295  ;;  %v4562_v25 = vsel %vm654_vm2, %v4557_v2, %v16364_v29  ;;  %v19179_v26 = vrot.slane %v16306_v45, 2  ;;  %v16446_v10 = vor.u32 %v5373_v12, %v5370_v37  ;;  %v16456_v23 = vld [vmem:[#allocation3 + $0x58] sm:$0xff]   ;;  %v3141_v44 = vpop.f32.mrb[49].mxu0  ;;  %v16460_v37 = vld [vmem:[#allocation3 + $0x50] sm:$0xff]  }
 0x208   : > { %v16452_v57 = vrot.slane %v19180_v42, 1  ;;  %v3947_v49 = vrot.slane %v3945_v5, 6  ;;  %v3955_v2 = vshrl.u32 %v12899_v0, 16  ;;  %v3958_v45 = vshll.u32 %v12899_v0, 16  ;;  %4348 = vst.msk [vmem:[#allocation2 + $0x48] sm:$0xff] %vm857_vm7, %v4296_v47  ;;  %v3142_v42 = vpop.f32.mrb[50].mxu0 }
 0x209   : > { %4896 = vrot.lane.b32.xlu0 %v4861_v17, %s14080_s22  ;;  %v5677_v31 = vsel %vm1824_vm0, %v19179_v26, %v19097_v33  ;;  %v3950_v17 = vrot.slane %v3948_v41, 7  ;;  %v3943_v12 = vrot.slane %v16352_v40, 4  ;;  %v3140_v26 = vadd.f32 %v16095_v51, %v3139_v60  ;;  %v16466_v59 = vld [vmem:[#allocation3 + $0x58] sm:$0xff]   ;;  %v3144_v22 = vpop.f32.mrb[51].mxu0  ;;  %v13723_v40 = vld [vmem:[#allocation3 + $0x48] sm:$0xff]  }
 0x20a   : > { %v4565_v33 = vor.u32 %v4563_v9, %v16364_v29  ;;  %v6155_v5 = vshrl.u32 %v16432_v32, 16  ;;  %v3957_v0 = vrot.slane %v3955_v2, 6  ;;  %v3960_v44 = vrot.slane %v3958_v45, 7  ;;  %v16471_v27 = vld [vmem:[#allocation3 + $0x58] sm:$0xff]   ;;  %v16484_v45 = vld [vmem:[#allocation3 + $0x20] sm:$0xff]  }
 0x20b   : > { %5712 = vrot.lane.b32.xlu1 %v5677_v31, %s14078_s20  ;;  %v3951_v41 = vor.u32 %v3950_v17, %v3947_v49  ;;  %v3143_v47 = vadd.f32 %v16095_v51, %v3142_v42  ;;  %v3317_v60 = vadd.f32 %v15730_v36, %v3140_v26  ;;  %v5375_v29 = vsel %vm1487_vm6, %v16368_v38, %v16446_v10 }
 0x20c   : > { %v4883_v31 = vpop.permute.xlu0 %4882  ;;  %v19100_v9 = vrot.slane %v16448_v1, 2  ;;  %v5377_v49 = vshrl.u32 %v16456_v23, 16  ;;  %v19181_v38 = vrot.slane %v16408_v54, 1  ;;  %v19182_v26 = vrot.slane %v16330_v14, 1 }
 0x20d   : > { %4657 = vrot.lane.b32.xlu0 %v4562_v25, %s14078_s20  ;;  %v3952_v17 = vsel %vm15688_vm10, %v3943_v12, %v3951_v41  ;;  %v3953_v2 = vrot.slane %v3951_v41, 4  ;;  %v16481_v25 = vor.u32 %v3960_v44, %v3957_v0  ;;  %v3320_v22 = vadd.f32 %v15796_v15, %v3143_v47  ;;  %v13765_v0 = vld [vmem:[#allocation3 + $0x28] sm:$0xff]  }
 0x20e   : > { %4148 = vst.msk [vmem:[#allocation3 + $0x60] sm:$0xf] %vm4126_vm11, %v3952_v17  ;;  %v3387_v36 = vmax.f32 %v3317_v60, 0.0  ;;  %v4863_v42 = vsel %vm1006_vm1, %v19182_v26, %v19181_v38  ;;  %v19103_v12 = vrot.slane %v16454_v11, 3  ;;  %v19102_v47 = vrot.slane %v16466_v59, 3  ;;  %v3147_v41 = vpop.f32.mrb[52].mxu0 }
 0x20f   : > { %5473 = vrot.lane.b32.xlu1 %v5375_v29, %s14079_s21  ;;  %v3962_v15 = vsel %vm15688_vm10, %v3953_v2, %v16481_v25  ;;  %v3388_v44 = vmax.f32 %v3320_v22, 0.0  ;;  %v5380_v60 = vshll.u32 %v16456_v23, 16  ;;  %v19183_v17 = vrot.slane %v16370_v21, 2 }
 0x210   : > { %4149 = vst.msk [vmem:[#allocation3 + $0x64] sm:$0xf] %vm4126_vm11, %v3962_v15  ;;  %v3603_v14 = vmul.f32 %v16155_v20, %v3387_v36  ;;  %v4644_v29 = vpop.permute.xlu0 %4643  ;;  %v5379_v22 = vrot.slane %v5377_v49, 1  ;;  %v6157_v26 = vrot.slane %v6155_v5, 2  ;;  %v6158_v23 = vshll.u32 %v16432_v32, 16 }
 0x211   : > { %4311 = vrot.lane.b32.xlu0 %v13723_v40, %s14079_s21  ;;  %v5916_v38 = vsel %vm1824_vm0, %v19183_v17, %v19100_v9  ;;  %v3604_v40 = vmul.f32 %v15851_v35, %v3388_v44  ;;  %4697 = vst.msk [vmem:[#allocation2 + $0x10] sm:$0xff] %vm1098_vm8, %v4644_v29  ;;  %v19101_v15 = vrot.slane %v16484_v45, 1  ;;  %v4570_v21 = vsel %vm654_vm2, %v4565_v33, %v16452_v57  ;;  %v13733_v35 = vld [vmem:[#allocation3 + $0x50] sm:$0xff]  }
 0x212   : > { %v12900_v36 = vpack.c.bf16 %v3603_v14, %v3603_v14  ;;  %4936 = vst.msk [vmem:[#allocation2 + $0x10] sm:$0xff] %vm1338_vm9, %v4883_v31  ;;  %v6164_v17 = vshrl.u32 %v13765_v0, 16  ;;  %v6167_v9 = vshll.u32 %v13765_v0, 16  ;;  %v5382_v44 = vrot.slane %v5380_v60, 2 }
 0x213   : > { %5951 = vrot.lane.b32.xlu1 %v5916_v38, %s14080_s22  ;;  %v12901_v49 = vpack.c.bf16 %v3604_v40, %v3604_v40  ;;  %v6160_v29 = vrot.slane %v6158_v23, 3  ;;  %v19184_v32 = vrot.slane %v16270_v39, 1  ;;  %v6491_v33 = vsel %vm2676_vm5, %v19103_v12, %v19102_v47  ;;  %v3149_v39 = vpop.f32.mrb[53].mxu0 }
 0x214   : > { %v3965_v14 = vshrl.u32 %v12900_v36, 16  ;;  %v3968_v31 = vshll.u32 %v12900_v36, 16  ;;  %v4298_v38 = vpop.permute.xlu0 %4297  ;;  %v3148_v40 = vadd.f32 %v16095_v51, %v3147_v41  ;;  %v16531_v23 = vpop.permute.xlu1 %5696  ;;  %v19185_v47 = vrot.slane %v16471_v27, 2 }
 0x215   : > { %4898 = vrot.lane.b32.xlu0 %v4863_v42, %s14080_s22  ;;  %v5090_v5 = vsel %vm1006_vm1, %v19184_v32, %v19101_v15  ;;  %v6166_v42 = vrot.slane %v6164_v17, 2  ;;  %v3975_v0 = vshrl.u32 %v12901_v49, 16  ;;  %v3978_v60 = vshll.u32 %v12901_v49, 16  ;;  %4349 = vst.msk [vmem:[#allocation2 + $0x80] sm:$0xff] %vm857_vm7, %v4298_v38  ;;  %v3150_v2 = vpop.f32.mrb[54].mxu0 }
 0x216   : > { %5141 = vst.msk [vmem:[#allocation2 + $0x88] sm:$0xff] %vm505_vm4, %v5090_v5  ;;  %v6161_v36 = vor.u32 %v6160_v29, %v6157_v26  ;;  %v3967_v32 = vrot.slane %v3965_v14, 6  ;;  %v3970_v15 = vrot.slane %v3968_v31, 7  ;;  %v19186_v5 = vrot.slane %v16380_v61, 2  ;;  %v3152_v26 = vpop.f32.mrb[55].mxu0 }
 0x217   : > { %6526 = vrot.lane.b32.xlu1 %v6491_v33, %s14079_s21  ;;  %v6169_v49 = vrot.slane %v6167_v9, 3  ;;  %v3977_v12 = vrot.slane %v3975_v0, 6  ;;  %v3980_v41 = vrot.slane %v3978_v60, 7  ;;  %v3325_v39 = vadd.f32 %v15728_v4, %v3148_v40  ;;  %v16542_v29 = vld [vmem:[#allocation3 + $0x60] sm:$0xff]   ;;  %v16554_v0 = vld [vmem:[#allocation3 + $0x50] sm:$0xff]  }
 0x218   : > { %v5679_v17 = vsel %vm1824_vm0, %v19186_v5, %v19185_v47  ;;  %v3151_v38 = vadd.f32 %v16095_v51, %v3150_v2  ;;  %v3963_v14 = vrot.slane %v16481_v25, 4  ;;  %v3971_v31 = vor.u32 %v3970_v15, %v3967_v32  ;;  %v4885_v33 = vpop.permute.xlu0 %4884  ;;  %v13751_v60 = vld [vmem:[#allocation3 + $0x60] sm:$0xff]  }
 0x219   : > { %4659 = vrot.lane.b32.xlu0 %v4570_v21, %s14078_s20  ;;  %v6162_v61 = vsel %vm2303_vm3, %v16414_v50, %v6161_v36  ;;  %v16547_v9 = vor.u32 %v6169_v49, %v6166_v42  ;;  %v16549_v47 = vor.u32 %v3980_v41, %v3977_v12  ;;  %v3389_v4 = vmax.f32 %v3325_v39, 0.0  ;;  %v4646_v2 = vpop.permute.xlu1 %4645  ;;  %v16561_v50 = vld [vmem:[#allocation3 + $0x58] sm:$0xff]   ;;  %v16570_v42 = vld [vmem:[#allocation3 + $0x60] sm:$0xff]  }
 0x21a   : > { %v3328_v51 = vadd.f32 %v15771_v48, %v3151_v38  ;;  %v16552_v21 = vor.u32 %v5382_v44, %v5379_v22  ;;  %6326 = vst.msk [vmem:[#allocation2 + $0x58] sm:$0xff] %vm505_vm4, %v6162_v61  ;;  %v3972_v25 = vsel %vm15688_vm10, %v3963_v14, %v3971_v31  ;;  %v3973_v15 = vrot.slane %v3971_v31, 4 }
 0x21b   : > { %4698 = vst.msk [vmem:[#allocation2 + $0x48] sm:$0xff] %vm1098_vm8, %v4646_v2  ;;  %5714 = vrot.lane.b32.xlu1 %v5679_v17, %s14078_s20  ;;  %v6171_v48 = vsel %vm2303_vm3, %v6161_v36, %v16547_v9  ;;  %v3605_v12 = vmul.f32 %v16176_v19, %v3389_v4  ;;  %v5917_v44 = vrot.slane %v16542_v29, 2  ;;  %v5386_v32 = vshrl.u32 %v13751_v60, 16 }
 0x21c   : > { %4150 = vst.msk [vmem:[#allocation3 + $0x68] sm:$0xf] %vm4126_vm11, %v3972_v25  ;;  %v3390_v22 = vmax.f32 %v3328_v51, 0.0  ;;  %v3982_v40 = vsel %vm15688_vm10, %v3973_v15, %v16549_v47  ;;  %v16576_v36 = vpop.permute.xlu0 %5698  ;;  %v5389_v5 = vshll.u32 %v13751_v60, 16  ;;  %v4571_v41 = vshrl.u32 %v16346_v28, 16  ;;  %v3155_v28 = vpop.f32.mrb[56].mxu0 }
 0x21d   : > { %4937 = vst.msk [vmem:[#allocation2 + $0x48] sm:$0xff] %vm1338_vm9, %v4885_v33  ;;  %4313 = vrot.lane.b32.xlu0 %v13733_v35, %s14079_s21  ;;  %v12902_v17 = vpack.c.bf16 %v3605_v12, %v3605_v12  ;;  %v5384_v35 = vsel %vm1487_vm6, %v16446_v10, %v16552_v21  ;;  %v19187_v39 = vrot.slane %v16454_v11, 3  ;;  %v19188_v38 = vrot.slane %v16288_v3, 3 }
 0x21e   : > { %6327 = vst.msk [vmem:[#allocation2 + $0x90] sm:$0xff] %vm505_vm4, %v6171_v48  ;;  %v3606_v49 = vmul.f32 %v15873_v16, %v3390_v22  ;;  %v4864_v14 = vrot.slane %v16554_v0, 1  ;;  %v19189_v31 = vshll.u32 %v16460_v37, 16  ;;  %v4583_v61 = vshll.u32 %v16561_v50, 16 }
 0x21f   : > { %4151 = vst.msk [vmem:[#allocation3 + $0x6c] sm:$0xf] %vm4126_vm11, %v3982_v40  ;;  %v6489_v26 = vsel %vm2676_vm5, %v19188_v38, %v19187_v39  ;;  %5475 = vrot.lane.b32.xlu1 %v5384_v35, %s14079_s21  ;;  %v3985_v4 = vshrl.u32 %v12902_v17, 16  ;;  %v3988_v10 = vshll.u32 %v12902_v17, 16  ;;  %v19190_v3 = vrot.slane %v16448_v1, 2  ;;  %v3157_v17 = vpop.f32.mrb[57].mxu0 }
 0x220   : > { %v16593_v33 = vrot.slane %v19189_v31, 1  ;;  %v12903_v51 = vpack.c.bf16 %v3606_v49, %v3606_v49  ;;  %v5458_v11 = vpop.permute.xlu1 %5457  ;;  %v5680_v60 = vrot.slane %v16570_v42, 2  ;;  %v5388_v25 = vrot.slane %v5386_v32, 1  ;;  %v4887_v49 = vpop.permute.xlu0 %4886  ;;  %v16604_v35 = vld [vmem:[#allocation3 + $0x58] sm:$0xff]   ;;  %v16610_v1 = vld [vmem:[%s19053_s3] ss:$0 sm:$0xff] }
 0x221   : > { %6524 = vrot.lane.b32.xlu0 %v6489_v26, %s14079_s21  ;;  %v5918_v2 = vsel %vm1824_vm0, %v19190_v3, %v5917_v44  ;;  %v5391_v15 = vrot.slane %v5389_v5, 2  ;;  %v3987_v48 = vrot.slane %v3985_v4, 6  ;;  %v3990_v12 = vrot.slane %v3988_v10, 7  ;;  %5511 = vst.msk [vmem:[#allocation2 + $0x18] sm:$0xff] %vm857_vm7, %v5458_v11  ;;  %v3158_v5 = vpop.f32.mrb[58].mxu0  ;;  %v16622_v31 = vld [vmem:[#allocation3 + $0x28] sm:$0xff]  }
 0x222   : > { %v3995_v22 = vshrl.u32 %v12903_v51, 16  ;;  %v3998_v40 = vshll.u32 %v12903_v51, 16  ;;  %v3983_v39 = vrot.slane %v16549_v47, 4  ;;  %v3156_v32 = vadd.f32 %v16610_v1, %v3155_v28  ;;  %5750 = vst.msk [vmem:[#allocation2 + $0x18] sm:$0xff] %vm1098_vm8, %v16531_v23  ;;  %v3160_v23 = vpop.f32.mrb[59].mxu0  ;;  %v16626_v11 = vld [vmem:[#allocation3 + $0x60] sm:$0xff]  }
 0x223   : > { %v19191_v38 = vrot.slane %v16408_v54, 1  ;;  %5953 = vrot.lane.b32.xlu1 %v5918_v2, %s14080_s22  ;;  %v4573_v47 = vor.u32 %v4571_v41, %v16452_v57  ;;  %v3991_v4 = vor.u32 %v3990_v12, %v3987_v48  ;;  %v3159_v28 = vadd.f32 %v16610_v1, %v3158_v5  ;;  %v16637_v12 = vld [vmem:[#allocation3 + $0x60] sm:$0xff]   ;;  %v16647_v5 = vld [vmem:[#allocation3 + $0x30] sm:$0xff]  }
 0x224   : > { %v3997_v10 = vrot.slane %v3995_v22, 6  ;;  %v4000_v51 = vrot.slane %v3998_v40, 7  ;;  %v3333_v54 = vadd.f32 %v15954_v13, %v3156_v32  ;;  %v4300_v3 = vpop.permute.xlu1 %4299  ;;  %v19192_v2 = vrot.slane %v16471_v27, 2  ;;  %v4648_v32 = vpop.permute.xlu0 %4647 }
 0x225   : > { %v4865_v26 = vsel %vm1006_vm1, %v19191_v38, %v4864_v14  ;;  %v16634_v41 = vor.u32 %v5391_v15, %v5388_v25  ;;  %v4579_v48 = vshrl.u32 %v16460_v37, 16  ;;  %v3992_v22 = vsel %vm15688_vm10, %v3983_v39, %v3991_v4  ;;  %4350 = vst.msk [vmem:[#allocation2 + $0xb8] sm:$0xff] %vm857_vm7, %v4300_v3 }
 0x226   : > { %4900 = vrot.lane.b32.xlu0 %v4865_v26, %s14080_s22  ;;  %v5681_v57 = vsel %vm1824_vm0, %v19192_v2, %v5680_v60  ;;  %v3993_v40 = vrot.slane %v3991_v4, 4  ;;  %v16641_v17 = vor.u32 %v4000_v51, %v3997_v10  ;;  %v3336_v13 = vadd.f32 %v16006_v43, %v3159_v28  ;;  %v16645_v27 = vld [vmem:[#allocation3 + $0x68] sm:$0xff]   ;;  %4152 = vst.msk [vmem:[#allocation3 + $0x70] sm:$0xf] %vm4126_vm11, %v3992_v22  ;;  %v13750_v51 = vld [vmem:[#allocation3 + $0x58] sm:$0xff]  }
 0x227   : > { %v3391_v37 = vmax.f32 %v3333_v54, 0.0  ;;  %4699 = vst.msk [vmem:[#allocation2 + $0x80] sm:$0xff] %vm1098_vm8, %v4648_v32  ;;  %v4578_v25 = vsel %vm654_vm2, %v4573_v47, %v16593_v33  ;;  %5716 = vrot.lane.b32.xlu1 %v5681_v57, %s14078_s20  ;;  %v4866_v15 = vrot.slane %v16604_v35, 1  ;;  %v16660_v38 = vrot.slane %v4583_v61, 1  ;;  %v16662_v26 = vld [vmem:[#allocation3 + $0x68] sm:$0xff]  }
 0x228   : > { %v4002_v43 = vsel %vm15688_vm10, %v3993_v40, %v16641_v17  ;;  %v3392_v39 = vmax.f32 %v3336_v13, 0.0  ;;  %4938 = vst.msk [vmem:[#allocation2 + $0x80] sm:$0xff] %vm1338_vm9, %v4887_v49  ;;  %v13764_v4 = vld [vmem:[#allocation3 + $0x68] sm:$0xff]   ;;  %v5936_v10 = vpop.permute.xlu1 %5935  ;;  %v6492_v28 = vrot.slane %v16626_v11, 3  ;;  %v4591_v23 = vshll.u32 %v16637_v12, 16  ;;  %v5460_v61 = vpop.permute.xlu0 %5459 }
 0x229   : > { %4153 = vst.msk [vmem:[#allocation3 + $0x74] sm:$0xf] %vm4126_vm11, %v4002_v43  ;;  %v3607_v47 = vmul.f32 %v16216_v56, %v3391_v37  ;;  %v5091_v54 = vrot.slane %v16622_v31, 1  ;;  %v5393_v3 = vsel %vm1487_vm6, %v16552_v21, %v16634_v41  ;;  %v5919_v2 = vrot.slane %v16645_v27, 2  ;;  %v16675_v57 = vld [vmem:[#allocation3 + $0x68] sm:$0xff]  }
 0x22a   : > { %4661 = vrot.lane.b32.xlu0 %v4578_v25, %s14078_s20  ;;  %v3608_v49 = vmul.f32 %v16252_v24, %v3392_v39  ;;  %5989 = vst.msk [vmem:[#allocation2 + $0x18] sm:$0xff] %vm1338_vm9, %v5936_v10  ;;  %v4003_v22 = vrot.slane %v16641_v17, 4  ;;  %v4581_v31 = vor.u32 %v4579_v48, %v16593_v33  ;;  %v19105_v13 = vrot.slane %v16647_v5, 1 }
 0x22b   : > { %v12904_v40 = vpack.c.bf16 %v3607_v47, %v3607_v47  ;;  %5512 = vst.msk [vmem:[#allocation2 + $0x50] sm:$0xff] %vm857_vm7, %v5460_v61  ;;  %5477 = vrot.lane.b32.xlu1 %v5393_v3, %s14079_s21  ;;  %v19106_v21 = vrot.slane %v16662_v26, 3  ;;  %v5395_v37 = vshrl.u32 %v13764_v4, 16  ;;  %v19193_v17 = vrot.slane %v16484_v45, 1  ;;  %v3163_v47 = vpop.f32.mrb[60].mxu0  ;;  %v16700_v3 = vld [vmem:[#allocation3 + $0x60] sm:$0xff]  }
 0x22c   : > { %v12905_v32 = vpack.c.bf16 %v3608_v49, %v3608_v49  ;;  %5751 = vst.msk [vmem:[#allocation2 + $0x50] sm:$0xff] %vm1098_vm8, %v16576_v36  ;;  %v6511_v10 = vpop.permute.xlu1 %6510  ;;  %v5398_v33 = vshll.u32 %v13764_v4, 16  ;;  %v5094_v48 = vsel %vm1006_vm1, %v5091_v54, %v19105_v13  ;;  %v3164_v49 = vadd.f32 %v16610_v1, %v3163_v47  ;;  %v3165_v61 = vpop.f32.mrb[61].mxu0 }
 0x22d   : > { %v5092_v25 = vsel %vm1006_vm1, %v19193_v17, %v5091_v54  ;;  %v4005_v43 = vshrl.u32 %v12904_v40, 16  ;;  %v4008_v39 = vshll.u32 %v12904_v40, 16  ;;  %6564 = vst.msk [vmem:[#allocation2 + $0x20] sm:$0xff] %vm857_vm7, %v6511_v10  ;;  %v4302_v45 = vpop.permute.xlu0 %4301  ;;  %v5920_v4 = vsel %vm1824_vm0, %v5917_v44, %v5919_v2  ;;  %v3166_v17 = vpop.f32.mrb[62].mxu0 }
 0x22e   : > { %4315 = vrot.lane.b32.xlu0 %v13750_v51, %s14079_s21  ;;  %5142 = vst.msk [vmem:[#allocation2 + $0xc0] sm:$0xff] %vm505_vm4, %v5092_v25  ;;  %v4015_v36 = vshrl.u32 %v12905_v32, 16  ;;  %v4018_v51 = vshll.u32 %v12905_v32, 16  ;;  %5143 = vst.msk [vmem:[#allocation2 + $0xf8] sm:$0xff] %vm505_vm4, %v5094_v48  ;;  %v4867_v32 = vsel %vm1006_vm1, %v4864_v14, %v4866_v15  ;;  %v19107_v29 = vrot.slane %v16675_v57, 2  ;;  %v3168_v10 = vpop.f32.mrb[63].mxu0 }
 0x22f   : > { %v4007_v54 = vrot.slane %v4005_v43, 6  ;;  %v4010_v40 = vrot.slane %v4008_v39, 7  ;;  %4351 = vst.msk [vmem:[#allocation2 + $0xf0] sm:$0xff] %vm857_vm7, %v4302_v45  ;;  %5955 = vrot.lane.b32.xlu1 %v5920_v4, %s14080_s22  ;;  %v3341_v47 = vadd.f32 %v15887_v34, %v3164_v49  ;;  %v3167_v43 = vadd.f32 %v16610_v1, %v3166_v17  ;;  %v6584_v39 = vld [vmem:[#allocation2 + $0x10] sm:$0xff] }
 0x230   : > { %v4017_v44 = vrot.slane %v4015_v36, 6  ;;  %v4020_v25 = vrot.slane %v4018_v51, 7  ;;  %v16714_v61 = vpop.permute.xlu1 %5700  ;;  %v4586_v14 = vsel %vm654_vm2, %v4581_v31, %v16660_v38  ;;  %v5397_v45 = vrot.slane %v5395_v37, 1  ;;  %v16718_v13 = vld [vmem:[#allocation3 + $0x70] sm:$0xff]  }
 0x231   : > { %v4011_v48 = vor.u32 %v4010_v40, %v4007_v54  ;;  %v6585_v0 = vld [vmem:[#allocation2 + $0x18] sm:$0xff]  ;;  %v5400_v4 = vrot.slane %v5398_v33, 2  ;;  %v13779_v36 = vld [vmem:[#allocation3 + $0x30] sm:$0xff]   ;;  %v3393_v34 = vmax.f32 %v3341_v47, 0.0  ;;  %v3344_v49 = vadd.f32 %v15958_v63, %v3167_v43  ;;  %v5938_v17 = vpop.permute.xlu0 %5937 }
 0x232   : > { %4902 = vrot.lane.b32.xlu0 %v4867_v32, %s14080_s22  ;;  %v16720_v51 = vor.u32 %v4020_v25, %v4017_v44  ;;  %7231 = vmatprep.mubr.bf16.mxu1 %v6585_v0  ;;  %v6495_v54 = vsel %vm2676_vm5, %v6492_v28, %v19106_v21  ;;  %v16728_v40 = vld [vmem:[#allocation3 + $0x70] sm:$0xff]   ;;  %5990 = vst.msk [vmem:[#allocation2 + $0x50] sm:$0xff] %vm1338_vm9, %v5938_v17  ;;  %v4868_v63 = vrot.slane %v16700_v3, 1  ;;  %v4587_v33 = vshrl.u32 %v16561_v50, 16  ;;  %v16736_v44 = vld [vmem:[#allocation3 + $0x38] sm:$0xff]   ;;  %v13761_v0 = vld [vmem:[#allocation3 + $0x60] sm:$0xff]  }
 0x233   : > { %v4012_v31 = vsel %vm15688_vm10, %v4003_v22, %v4011_v48  ;;  %v4013_v37 = vrot.slane %v4011_v48, 4  ;;  %7232 = vmatmul.mubr.bf16.vlgmr.msra.gmra.mrb[36].mxu1 %v6584_v39  ;;  %6530 = vrot.lane.b32.xlu1 %v6495_v54, %s14079_s21  ;;  %v13773_v32 = vld [vmem:[#allocation3 + $0x70] sm:$0xff]   ;;  %v3609_v25 = vmul.f32 %v16399_v62, %v3393_v34  ;;  %v3394_v47 = vmax.f32 %v3344_v49, 0.0 }
 0x234   : > { %4154 = vst.msk [vmem:[#allocation3 + $0x78] sm:$0xf] %vm4126_vm11, %v4012_v31  ;;  %v5683_v22 = vsel %vm1824_vm0, %v5680_v60, %v19107_v29  ;;  %v16748_v43 = vrot.slane %v4591_v23, 1  ;;  %v4650_v10 = vpop.permute.xlu1 %4649  ;;  %v6586_v48 = vld [vmem:[#allocation2 + $0x20] sm:$0xff]  ;;  %v16753_v34 = vor.u32 %v5400_v4, %v5397_v45  ;;  %v5404_v49 = vshrl.u32 %v13773_v32, 16 }
 0x235   : > { %v4022_v39 = vsel %vm15688_vm10, %v4013_v37, %v16720_v51  ;;  %v4023_v42 = vrot.slane %v16720_v51, 4  ;;  %v12906_v60 = vpack.c.bf16 %v3609_v25, %v3609_v25  ;;  %v3610_v23 = vmul.f32 %v16296_v46, %v3394_v47  ;;  %4700 = vst.msk [vmem:[#allocation2 + $0xb8] sm:$0xff] %vm1098_vm8, %v4650_v10  ;;  %13062 = vmatprep.mubr.msk.bf16.mxu0 %vm6967_vm13, %v6586_v48  ;;  %v6513_v17 = vpop.permute.xlu0 %6512  ;;  %v3171_v48 = vpop.f32.mrb[64].mxu0 }
 0x236   : > { %4663 = vrot.lane.b32.xlu0 %v4586_v14, %s14078_s20  ;;  %v5921_v14 = vrot.slane %v16718_v13, 2  ;;  %4155 = vst.msk [vmem:[#allocation3 + $0x7c] sm:$0xf] %vm4126_vm11, %v4022_v39  ;;  %v16764_v45 = vrot.slane %v5404_v49, 1  ;;  %v5407_v4 = vshll.u32 %v13773_v32, 16  ;;  %v6173_v51 = vshrl.u32 %v13779_v36, 16 }
 0x237   : > { %6565 = vst.msk [vmem:[#allocation2 + $0x58] sm:$0xff] %vm857_vm7, %v6513_v17  ;;  %5718 = vrot.lane.b32.xlu1 %v5683_v22, %s14078_s20  ;;  %v6176_v31 = vshll.u32 %v13779_v36, 16  ;;  %v4025_v37 = vshrl.u32 %v12906_v60, 16  ;;  %v4028_v25 = vshll.u32 %v12906_v60, 16  ;;  %v12907_v39 = vpack.c.bf16 %v3610_v23, %v3610_v23  ;;  %v6589_v32 = vld [vmem:[#allocation2 + $0x48] sm:$0xff]  ;;  %v3173_v11 = vpop.f32.mrb[65].mxu0 }
 0x238   : > { %v19194_v47 = vrot.slane %v16466_v59, 3  ;;  %v5462_v17 = vpop.permute.xlu1 %5461  ;;  %v5402_v22 = vsel %vm1487_vm6, %v16634_v41, %v16753_v34  ;;  %v6175_v49 = vrot.slane %v6173_v51, 2  ;;  %v6182_v60 = vshrl.u32 %v16736_v44, 16  ;;  %v3174_v54 = vpop.f32.mrb[66].mxu0 }
 0x239   : > { %v6178_v36 = vrot.slane %v6176_v31, 3  ;;  %v4027_v23 = vrot.slane %v4025_v37, 6  ;;  %v4030_v21 = vrot.slane %v4028_v25, 7  ;;  %v4038_v29 = vshll.u32 %v12907_v39, 16  ;;  %5513 = vst.msk [vmem:[#allocation2 + $0x88] sm:$0xff] %vm857_vm7, %v5462_v17  ;;  %v4889_v59 = vpop.permute.xlu0 %4888  ;;  %v16789_v17 = vld [vmem:[#allocation3 + $0x68] sm:$0xff]  }
 0x23a   : > { %4317 = vrot.lane.b32.xlu0 %v13761_v0, %s14079_s21  ;;  %v6493_v10 = vsel %vm2676_vm5, %v19194_v47, %v6492_v28  ;;  %v4035_v0 = vshrl.u32 %v12907_v39, 16  ;;  %v6590_v28 = vld [vmem:[#allocation2 + $0x50] sm:$0xff]  ;;  %v3172_v47 = vadd.f32 %v16610_v1, %v3171_v48  ;;  %5752 = vst.msk [vmem:[#allocation2 + $0x88] sm:$0xff] %vm1098_vm8, %v16714_v61  ;;  %v5922_v41 = vsel %vm1824_vm0, %v5919_v2, %v5921_v14  ;;  %v3176_v61 = vpop.f32.mrb[67].mxu0 }
 0x23b   : > { %4939 = vst.msk [vmem:[#allocation2 + $0xb8] sm:$0xff] %vm1338_vm9, %v4889_v59  ;;  %7239 = vmatprep.mubr.bf16.mxu1 %v6590_v28  ;;  %5479 = vrot.lane.b32.xlu1 %v5402_v22, %s14079_s21  ;;  %v5409_v51 = vrot.slane %v5407_v4, 2  ;;  %v6179_v31 = vor.u32 %v6178_v36, %v6175_v49  ;;  %v4031_v37 = vor.u32 %v4030_v21, %v4027_v23  ;;  %v4040_v39 = vrot.slane %v4038_v29, 7  ;;  %v16816_v49 = vld [vmem:[#allocation3 + $0x38] sm:$0xff]  }
 0x23c   : > { %v4037_v25 = vrot.slane %v4035_v0, 6  ;;  %v3175_v48 = vadd.f32 %v16610_v1, %v3174_v54  ;;  %7240 = vmatmul.mubr.bf16.gmra.mrb[40].mxu1 %v6589_v32  ;;  %v3349_v22 = vadd.f32 %v16310_v55, %v3172_v47  ;;  %v6184_v59 = vrot.slane %v6182_v60, 2 }
 0x23d   : > { %v5940_v11 = vpop.permute.xlu1 %5939  ;;  %v6185_v27 = vshll.u32 %v16736_v44, 16  ;;  %v6180_v2 = vsel %vm2303_vm3, %v16547_v9, %v6179_v31  ;;  %v4032_v21 = vsel %vm15688_vm10, %v4023_v42, %v4031_v37  ;;  %v4033_v29 = vrot.slane %v4031_v37, 4  ;;  %v16814_v44 = vld [vmem:[#allocation3 + $0x68] sm:$0xff]   ;;  %v16843_v37 = vld [vmem:[#allocation3 + $0x78] sm:$0xff]  }
 0x23e   : > { %6528 = vrot.lane.b32.xlu0 %v6493_v10, %s14079_s21  ;;  %v16797_v54 = vor.u32 %v4040_v39, %v4037_v25  ;;  %v3352_v4 = vadd.f32 %v16386_v52, %v3175_v48  ;;  %5991 = vst.msk [vmem:[#allocation2 + $0x88] sm:$0xff] %vm1338_vm9, %v5940_v11  ;;  %v4304_v10 = vpop.permute.xlu0 %4303  ;;  %v6591_v32 = vld [vmem:[#allocation2 + $0x58] sm:$0xff]  ;;  %v3395_v55 = vmax.f32 %v3349_v22, 0.0  ;;  %v4869_v9 = vsel %vm1006_vm1, %v4866_v15, %v4868_v63  ;;  %v6594_v11 = vld [vmem:[#allocation2 + $0x80] sm:$0xff] }
 0x23f   : > { %6328 = vst.msk [vmem:[#allocation2 + $0xc8] sm:$0xff] %vm505_vm4, %v6180_v2  ;;  %13063 = vmatmul.mubr.msk.bf16.vlgmr.msra.gmra.mrb[72].mxu0 %vm6967_vm13, %v6591_v32  ;;  %5957 = vrot.lane.b32.xlu1 %v5922_v41, %s14080_s22  ;;  %v4589_v52 = vor.u32 %v4587_v33, %v16660_v38  ;;  %v6187_v42 = vrot.slane %v6185_v27, 3  ;;  %v16823_v35 = vor.u32 %v5409_v51, %v16764_v45  ;;  %v4599_v15 = vshll.u32 %v16789_v17, 16  ;;  %v16828_v33 = vld [vmem:[#allocation3 + $0x78] sm:$0xff]  }
 0x240   : > { %4156 = vst.msk [vmem:[#allocation3 + $0x80] sm:$0xf] %vm4126_vm11, %v4032_v21  ;;  %v4042_v36 = vsel %vm15688_vm10, %v4033_v29, %v16797_v54  ;;  %v3396_v60 = vmax.f32 %v3352_v4, 0.0  ;;  %v3611_v50 = vmul.f32 %v16338_v7, %v3395_v55  ;;  %v19195_v47 = vrot.slane %v16728_v40, 2  ;;  %v16858_v21 = vld [vmem:[#allocation3 + $0x40] sm:$0xff]   ;;  %v3179_v4 = vpop.f32.mrb[68].mxu0 }
 0x241   : > { %4352 = vst.msk [vmem:[#allocation2 + $0x128] sm:$0xff] %vm857_vm7, %v4304_v10  ;;  %v6515_v38 = vpop.permute.xlu1 %6514  ;;  %v16830_v23 = vor.u32 %v6187_v42, %v6184_v59  ;;  %v4594_v45 = vsel %vm654_vm2, %v4589_v52, %v16748_v43  ;;  %v19196_v41 = vrot.slane %v16675_v57, 2  ;;  %v4870_v39 = vrot.slane %v16814_v44, 1  ;;  %v13772_v59 = vld [vmem:[#allocation3 + $0x68] sm:$0xff]  }
 0x242   : > { %4904 = vrot.lane.b32.xlu0 %v4869_v9, %s14080_s22  ;;  %4157 = vst.msk [vmem:[#allocation3 + $0x84] sm:$0xf] %vm4126_vm11, %v4042_v36  ;;  %v3612_v0 = vmul.f32 %v16374_v53, %v3396_v60  ;;  %v16834_v28 = vpop.permute.xlu0 %5702  ;;  %v12908_v25 = vpack.c.bf16 %v3611_v50, %v3611_v50  ;;  %v5095_v61 = vrot.slane %v16816_v49, 1  ;;  %v5411_v57 = vsel %vm1487_vm6, %v16753_v34, %v16823_v35  ;;  %v16861_v9 = vld [vmem:[#allocation3 + $0x78] sm:$0xff]   ;;  %v13781_v49 = vld [vmem:[#allocation3 + $0x70] sm:$0xff]  }
 0x243   : > { %6566 = vst.msk [vmem:[#allocation2 + $0x90] sm:$0xff] %vm857_vm7, %v6515_v38  ;;  %v5685_v51 = vsel %vm1824_vm0, %v19196_v41, %v19195_v47  ;;  %v6189_v48 = vsel %vm2303_vm3, %v6179_v31, %v16830_v23  ;;  %v4595_v27 = vshrl.u32 %v16637_v12, 16  ;;  %v16855_v2 = vrot.slane %v4599_v15, 1  ;;  %v3181_v15 = vpop.f32.mrb[69].mxu0 }
 0x244   : > { %5720 = vrot.lane.b32.xlu1 %v5685_v51, %s14078_s20  ;;  %v12909_v22 = vpack.c.bf16 %v3612_v0, %v3612_v0  ;;  %6329 = vst.msk [vmem:[#allocation2 + $0x100] sm:$0xff] %vm505_vm4, %v6189_v48  ;;  %v4045_v31 = vshrl.u32 %v12908_v25, 16  ;;  %v4048_v29 = vshll.u32 %v12908_v25, 16  ;;  %v5923_v55 = vrot.slane %v16828_v33, 2  ;;  %v3182_v47 = vpop.f32.mrb[70].mxu0 }
 0x245   : > { %v5705_v10 = vpop.permute.xlu1 %5704  ;;  %v6595_v32 = vld [vmem:[#allocation2 + $0x88] sm:$0xff]  ;;  %v19197_v34 = vrot.slane %v16647_v5, 1  ;;  %v3180_v60 = vadd.f32 %v16610_v1, %v3179_v4  ;;  %v5413_v38 = vshrl.u32 %v16843_v37, 16  ;;  %v4871_v5 = vsel %vm1006_vm1, %v4868_v63, %v4870_v39 }
 0x246   : > { %4665 = vrot.lane.b32.xlu0 %v4594_v45, %s14078_s20  ;;  %v4055_v42 = vshrl.u32 %v12909_v22, 16  ;;  %v4058_v36 = vshll.u32 %v12909_v22, 16  ;;  %7247 = vmatprep.mubr.bf16.mxu1 %v6595_v32  ;;  %v4047_v0 = vrot.slane %v4045_v31, 6  ;;  %v4050_v45 = vrot.slane %v4048_v29, 7  ;;  %v3184_v31 = vpop.f32.mrb[71].mxu0  ;;  %v19198_v32 = vld [vmem:[#allocation29_spill] sm:$0xff] }
 0x247   : > { %v5096_v52 = vsel %vm1006_vm1, %v19197_v34, %v5095_v61  ;;  %v4891_v50 = vpop.permute.xlu0 %4890  ;;  %7248 = vmatmul.mubr.bf16.gmra.mrb[44].mxu1 %v6594_v11  ;;  %v5416_v41 = vshll.u32 %v16843_v37, 16  ;;  %v3357_v48 = vadd.f32 %v16132_v6, %v3180_v60  ;;  %v3183_v22 = vadd.f32 %v16610_v1, %v3182_v47  ;;  %v16881_v11 = vld [vmem:[#allocation3 + $0x70] sm:$0xff]   ;;  %v16890_v37 = vld [vmem:[#allocation3 + $0x78] sm:$0xff]  }
 0x248   : > { %5144 = vst.msk [vmem:[#allocation2 + $0x130] sm:$0xff] %vm505_vm4, %v5096_v52  ;;  %5481 = vrot.lane.b32.xlu1 %v5411_v57, %s14079_s21  ;;  %v4057_v51 = vrot.slane %v4055_v42, 6  ;;  %v4060_v25 = vrot.slane %v4058_v36, 7  ;;  %v4043_v57 = vrot.slane %v16797_v54, 4  ;;  %v4051_v29 = vor.u32 %v4050_v45, %v4047_v0 }
 0x249   : > { %v5466_v4 = vpop.permute.xlu1 %5465  ;;  %v5924_v63 = vsel %vm1824_vm0, %v5921_v14, %v5923_v55  ;;  %v6498_v6 = vrot.slane %v16861_v9, 3  ;;  %v3360_v34 = vadd.f32 %v19198_v32, %v3183_v22  ;;  %v5097_v52 = vrot.slane %v16858_v21, 1  ;;  %v13790_v32 = vld [vmem:[#allocation3 + $0x80] sm:$0xff]  }
 0x24a   : > { %4319 = vrot.lane.b32.xlu0 %v13772_v59, %s14079_s21  ;;  %v6596_v3 = vld [vmem:[#allocation2 + $0x90] sm:$0xff]  ;;  %v16892_v1 = vor.u32 %v4060_v25, %v4057_v51  ;;  %v3397_v59 = vmax.f32 %v3357_v48, 0.0  ;;  %5515 = vst.msk [vmem:[#allocation2 + $0xf8] sm:$0xff] %vm857_vm7, %v5466_v4  ;;  %v4052_v13 = vsel %vm15688_vm10, %v4043_v57, %v4051_v29  ;;  %v4053_v14 = vrot.slane %v4051_v29, 4 }
 0x24b   : > { %13066 = vmatprep.mubr.msk.bf16.mxu0 %vm6967_vm13, %v6596_v3  ;;  %v4652_v54 = vpop.permute.xlu0 %4651  ;;  %5754 = vst.msk [vmem:[#allocation2 + $0xf8] sm:$0xff] %vm1098_vm8, %v5705_v10  ;;  %v5415_v42 = vrot.slane %v5413_v38, 1  ;;  %v5418_v36 = vrot.slane %v5416_v41, 2  ;;  %v3398_v15 = vmax.f32 %v3360_v34, 0.0  ;;  %v6496_v0 = vrot.slane %v16881_v11, 3  ;;  %v16915_v41 = vld [vmem:[#allocation3 + $0x80] sm:$0xff]  }
 0x24c   : > { %4701 = vst.msk [vmem:[#allocation2 + $0xf0] sm:$0xff] %vm1098_vm8, %v4652_v54  ;;  %5959 = vrot.lane.b32.xlu1 %v5924_v63, %s14080_s22  ;;  %v3613_v60 = vmul.f32 %v16434_v8, %v3397_v59  ;;  %v4062_v10 = vsel %vm15688_vm10, %v4053_v14, %v16892_v1  ;;  %v4597_v38 = vor.u32 %v4595_v27, %v16748_v43  ;;  %v5686_v47 = vrot.slane %v16890_v37, 2  ;;  %v13797_v48 = vld [vmem:[#allocation3 + $0x40] sm:$0xff]   ;;  %v16943_v3 = vld [vmem:[#allocation3 + $0x70] sm:$0xff]  }
 0x24d   : > { %4158 = vst.msk [vmem:[#allocation3 + $0x88] sm:$0xf] %vm4126_vm11, %v4052_v13  ;;  %v5944_v45 = vpop.permute.xlu1 %5943  ;;  %4159 = vst.msk [vmem:[#allocation3 + $0x8c] sm:$0xf] %vm4126_vm11, %v4062_v10  ;;  %v6499_v25 = vsel %vm2676_vm5, %v6496_v0, %v6498_v6  ;;  %v5098_v12 = vsel %vm1006_vm1, %v5095_v61, %v5097_v52  ;;  %v16932_v27 = vor.u32 %v5418_v36, %v5415_v42  ;;  %v13798_v61 = vld [vmem:[#allocation3 + $0x48] sm:$0xff]   ;;  %v19199_v29 = vrot.slane %v16728_v40, 2 }
 0x24e   : > { %4940 = vst.msk [vmem:[#allocation2 + $0xf0] sm:$0xff] %vm1338_vm9, %v4891_v50  ;;  %4906 = vrot.lane.b32.xlu0 %v4871_v5, %s14080_s22  ;;  %v12910_v50 = vpack.c.bf16 %v3613_v60, %v3613_v60  ;;  %v3614_v5 = vmul.f32 %v16412_v30, %v3398_v15  ;;  %5993 = vst.msk [vmem:[#allocation2 + $0xf8] sm:$0xff] %vm1338_vm9, %v5944_v45  ;;  %v4602_v43 = vsel %vm654_vm2, %v4597_v38, %v16855_v2  ;;  %v16946_v59 = vld [vmem:[#allocation3 + $0x70] sm:$0xff]   ;;  %v17038_v37 = vld [vmem:[#allocation3 + $0x80] sm:$0xff]  }
 0x24f   : > { %v5464_v51 = vpop.permute.xlu0 %5463  ;;  %5145 = vst.msk [vmem:[#allocation2 + $0x168] sm:$0xff] %vm505_vm4, %v5098_v12  ;;  %v5687_v4 = vsel %vm1824_vm0, %v19199_v29, %v5686_v47  ;;  %v5925_v63 = vrot.slane %v16915_v41, 2  ;;  %v4063_v42 = vrot.slane %v16892_v1, 4  ;;  %v19200_v40 = vrot.slane %v16662_v26, 3 }
 0x250   : > { %5514 = vst.msk [vmem:[#allocation2 + $0xc0] sm:$0xff] %vm857_vm7, %v5464_v51  ;;  %6534 = vrot.lane.b32.xlu1 %v6499_v25, %s14079_s21  ;;  %v4065_v22 = vshrl.u32 %v12910_v50, 16  ;;  %v4068_v31 = vshll.u32 %v12910_v50, 16  ;;  %v12911_v11 = vpack.c.bf16 %v3614_v5, %v3614_v5  ;;  %v5420_v60 = vsel %vm1487_vm6, %v16823_v35, %v16932_v27  ;;  %v16959_v50 = vld [vmem:[#allocation3 + $0x80] sm:$0xff]   ;;  %v4164_v5 = vld [vmem:[#allocation3 + $0x98] sm:$0x3] }
 0x251   : > { %5753 = vst.msk [vmem:[#allocation2 + $0xc0] sm:$0xff] %vm1098_vm8, %v16834_v28  ;;  %v6519_v57 = vpop.permute.xlu1 %6518  ;;  %v6497_v36 = vsel %vm2676_vm5, %v19200_v40, %v6496_v0  ;;  %v6191_v15 = vshrl.u32 %v13797_v48, 16  ;;  %v6194_v1 = vshll.u32 %v13797_v48, 16  ;;  %v5422_v25 = vshrl.u32 %v13790_v32, 16  ;;  %v17043_v48 = vld [vmem:[#allocation3 + $0x80] sm:$0xff]  }
 0x252   : > { %4667 = vrot.lane.b32.xlu0 %v4602_v43, %s14078_s20  ;;  %v4067_v34 = vrot.slane %v4065_v22, 6  ;;  %v4070_v28 = vrot.slane %v4068_v31, 7  ;;  %v4075_v54 = vshrl.u32 %v12911_v11, 16  ;;  %v4078_v13 = vshll.u32 %v12911_v11, 16  ;;  %6568 = vst.msk [vmem:[#allocation2 + $0x100] sm:$0xff] %vm857_vm7, %v6519_v57  ;;  %v13802_v57 = vld [vmem:[#allocation3 + $0x48] sm:$0xff]  }
 0x253   : > { %v4306_v14 = vpop.permute.xlu0 %4305  ;;  %v5425_v12 = vshll.u32 %v13790_v32, 16  ;;  %v6193_v26 = vrot.slane %v6191_v15, 2  ;;  %v6200_v43 = vshrl.u32 %v13798_v61, 16  ;;  %v6196_v11 = vrot.slane %v6194_v1, 3 }
 0x254   : > { %4353 = vst.msk [vmem:[#allocation2 + $0x160] sm:$0xff] %vm857_vm7, %v4306_v14  ;;  %5722 = vrot.lane.b32.xlu1 %v5687_v4, %s14078_s20  ;;  %v4071_v10 = vor.u32 %v4070_v28, %v4067_v34  ;;  %v4077_v45 = vrot.slane %v4075_v54, 6  ;;  %v4080_v38 = vrot.slane %v4078_v13, 7  ;;  %v4607_v29 = vshll.u32 %v16946_v59, 16  ;;  %v16977_v13 = vld [vmem:[#allocation3 + $0x50] sm:$0xff]  }
 0x255   : > { %v5707_v51 = vpop.permute.xlu1 %5706  ;;  %v6202_v4 = vrot.slane %v6200_v43, 2  ;;  %v6203_v32 = vshll.u32 %v13798_v61, 16  ;;  %v6197_v54 = vor.u32 %v6196_v11, %v6193_v26  ;;  %v5688_v61 = vrot.slane %v16959_v50, 2  ;;  %v17013_v26 = vld [vmem:[#allocation3 + $0x88] sm:$0xff]   ;;  %v17015_v43 = vld [vmem:[#allocation3 + $0x78] sm:$0xff]  }
 0x256   : > { %4321 = vrot.lane.b32.xlu0 %v13781_v49, %s14079_s21  ;;  %v4072_v0 = vsel %vm15688_vm10, %v4063_v42, %v4071_v10  ;;  %v4073_v22 = vrot.slane %v4071_v10, 4  ;;  %v4081_v35 = vor.u32 %v4080_v38, %v4077_v45  ;;  %v4872_v49 = vrot.slane %v16943_v3, 1 }
 0x257   : > { %v6517_v31 = vpop.permute.xlu0 %6516  ;;  %4160 = vst.msk [vmem:[#allocation3 + $0x90] sm:$0xf] %vm4126_vm11, %v4072_v0  ;;  %v5926_v42 = vsel %vm1824_vm0, %v5923_v55, %v5925_v63  ;;  %v5424_v40 = vrot.slane %v5422_v25, 1  ;;  %v5427_v10 = vrot.slane %v5425_v12, 2  ;;  %v6198_v45 = vsel %vm2303_vm3, %v16830_v23, %v6197_v54 }
 0x258   : > { %6567 = vst.msk [vmem:[#allocation2 + $0xc8] sm:$0xff] %vm857_vm7, %v6517_v31  ;;  %5483 = vrot.lane.b32.xlu1 %v5420_v60, %s14079_s21  ;;  %v4082_v34 = vsel %vm15688_vm10, %v4073_v22, %v4081_v35  ;;  %v4083_v28 = vrot.slane %v4081_v35, 4  ;;  %v6205_v60 = vrot.slane %v6203_v32, 3  ;;  %v5099_v38 = vrot.slane %v13802_v57, 1  ;;  %v17032_v31 = vld [vmem:[#allocation3 + $0x58] sm:$0xff]   ;;  %v6599_v32 = vld [vmem:[#allocation2 + $0xb8] sm:$0xff] }
 0x259   : > { %4161 = vst.msk [vmem:[#allocation3 + $0x94] sm:$0xf] %vm4126_vm11, %v4082_v34  ;;  %v5468_v14 = vpop.permute.xlu1 %5467  ;;  %v4873_v33 = vsel %vm1006_vm1, %v4870_v39, %v4872_v49  ;;  %v4603_v55 = vshrl.u32 %v16789_v17, 16  ;;  %v17000_v1 = vrot.slane %v4607_v29, 1  ;;  %v5101_v44 = vrot.slane %v16977_v13, 1  ;;  %v6606_v12 = vld [vmem:[#allocation2 + $0x100] sm:$0xff] }
 0x25a   : > { %6532 = vrot.lane.b32.xlu0 %v6497_v36, %s14079_s21  ;;  %v4165_v15 = vsel %vm16966_vm15, %v4083_v28, %v4164_v5  ;;  %5516 = vst.msk [vmem:[#allocation2 + $0x130] sm:$0xff] %vm857_vm7, %v5468_v14  ;;  %v17002_v5 = vor.u32 %v6205_v60, %v6202_v4  ;;  %v5100_v23 = vsel %vm1006_vm1, %v5097_v52, %v5099_v38  ;;  %v17011_v17 = vld [vmem:[#allocation3 + $0x78] sm:$0xff]   ;;  %v4615_v34 = vshll.u32 %v17015_v43, 16  ;;  %v17046_v28 = vld [vmem:[#allocation3 + $0x88] sm:$0xff]   ;;  %v17167_v13 = vld [vmem:[#allocation3 + $0x70] sm:$0xff]  }
 0x25b   : > { %v5942_v36 = vpop.permute.xlu0 %5941  ;;  %4166 = vst [vmem:[#allocation3 + $0x98] sm:$0x3] %v4165_v15  ;;  %5755 = vst.msk [vmem:[#allocation2 + $0x130] sm:$0xff] %vm1098_vm8, %v5707_v51  ;;  %v13814_v51 = vld [vmem:[#allocation3 + $0x50] sm:$0xff]   ;;  %v4605_v25 = vor.u32 %v4603_v55, %v16855_v2  ;;  %v5689_v2 = vsel %vm1824_vm0, %v5686_v47, %v5688_v61  ;;  %v17026_v22 = vor.u32 %v5427_v10, %v5424_v40  ;;  %v13801_v47 = vld [vmem:[#allocation3 + $0x88] sm:$0xff]   ;;  %v19110_v15 = vrot.slane %v17013_v26, 2 }
 0x25c   : > { %5992 = vst.msk [vmem:[#allocation2 + $0xc0] sm:$0xff] %vm1338_vm9, %v5942_v36  ;;  %5961 = vrot.lane.b32.xlu1 %v5926_v42, %s14080_s22  ;;  %v6207_v0 = vsel %vm2303_vm3, %v6197_v54, %v17002_v5  ;;  %v5102_v35 = vsel %vm1006_vm1, %v5099_v38, %v5101_v44  ;;  %v13789_v57 = vld [vmem:[#allocation3 + $0x78] sm:$0xff]   ;;  %v6209_v29 = vshrl.u32 %v13814_v51, 16  ;;  %v17048_v54 = vld [vmem:[#allocation3 + $0x80] sm:$0xff]   ;;  %v6212_v14 = vshll.u32 %v13814_v51, 16  ;;  %v17054_v36 = vld [vmem:[#allocation3 + $0x88] sm:$0xff]  }
 0x25d   : > { %6330 = vst.msk [vmem:[#allocation2 + $0x138] sm:$0xff] %vm505_vm4, %v6198_v45  ;;  %v5946_v39 = vpop.permute.xlu1 %5945  ;;  %5146 = vst.msk [vmem:[#allocation2 + $0x1a0] sm:$0xff] %vm505_vm4, %v5100_v23  ;;  %v4610_v11 = vsel %vm654_vm2, %v4605_v25, %v17000_v1  ;;  %v5429_v60 = vsel %vm1487_vm6, %v16932_v27, %v17026_v22  ;;  %v6605_v45 = vld [vmem:[#allocation2 + $0xf8] sm:$0xff]  ;;  %v4874_v38 = vrot.slane %v17011_v17, 1  ;;  %v5431_v55 = vshrl.u32 %v13801_v47, 16 }
 0x25e   : > { %4908 = vrot.lane.b32.xlu0 %v4873_v33, %s14080_s22  ;;  %5994 = vst.msk [vmem:[#allocation2 + $0x130] sm:$0xff] %vm1338_vm9, %v5946_v39  ;;  %v6211_v10 = vrot.slane %v6209_v29, 2  ;;  %v4611_v33 = vshrl.u32 %v16946_v59, 16  ;;  %v5434_v27 = vshll.u32 %v13801_v47, 16  ;;  %v6214_v23 = vrot.slane %v6212_v14, 3  ;;  %v13832_v39 = vld [vmem:[%s19056_s6] sm:$0xff]  }
 0x25f   : > { %v4893_v21 = vpop.permute.xlu0 %4892  ;;  %v6601_v52 = vld [vmem:[#allocation2 + $0xc8] sm:$0xff]  ;;  %6331 = vst.msk [vmem:[#allocation2 + $0x170] sm:$0xff] %vm505_vm4, %v6207_v0  ;;  %5147 = vst.msk [vmem:[#allocation2 + $0x1d8] sm:$0xff] %vm505_vm4, %v5102_v35  ;;  %v6218_v51 = vshrl.u32 %v17032_v31, 16  ;;  %v6500_v59 = vrot.slane %v17038_v37, 3  ;;  %v19109_v0 = vrot.slane %v17046_v28, 3  ;;  %v5928_v35 = vsel %vm1824_vm0, %v5925_v63, %v19110_v15  ;;  %11285 = vmatpush1.bf16.msra.mxu0 %v13832_v39 }
 0x260   : > { %13067 = vmatmul.mubr.msk.bf16.gmra.mrb[76].mxu0 %vm6967_vm13, %v6601_v52  ;;  %5724 = vrot.lane.b32.xlu1 %v5689_v2, %s14078_s20  ;;  %v17071_v52 = vld [vmem:[#allocation3 + $0x58] sm:$0xff]   ;;  %v4623_v47 = vshll.u32 %v17048_v54, 16  ;;  %v17083_v29 = vld [vmem:[#allocation3 + $0x88] sm:$0xff]   ;;  %v4875_v41 = vsel %vm1006_vm1, %v4872_v49, %v4874_v38  ;;  %v4619_v63 = vshrl.u32 %v17015_v43, 16  ;;  %v17097_v14 = vld [vmem:[#allocation3 + $0x90] sm:$0xff]   ;;  %vm8203_vm15 = vcmask 519425  }
 0x261   : > { %13070 = vmatprep.mubr.msk.bf16.mxu0 %vm6967_vm13, %v6606_v12  ;;  %v5709_v4 = vpop.permute.xlu1 %5708  ;;  %v17066_v12 = vrot.slane %v4615_v34, 1  ;;  %v13833_v34 = vld [vmem:[%s19056_s6 + $0x8] sm:$0xff]   ;;  %11286 = vmatprep.subr.bf16.mxu0 %v19133_v58  ;;  %v17103_v3 = vld [vmem:[#allocation3 + $0x90] sm:$0xff]   ;;  %v6501_v50 = vsel %vm2676_vm5, %v6498_v6, %v6500_v59  ;;  %vm19231_vm11 = vsmask.f32 7942 }
 0x262   : > { %4669 = vrot.lane.b32.xlu0 %v4610_v11, %s14078_s20  ;;  %v5690_v11 = vrot.slane %v17054_v36, 2  ;;  %v17105_v49 = vld [vmem:[#allocation3 + $0x90] sm:$0xff]   ;;  %v17190_v37 = vld [vmem:[#allocation3 + $0x78] sm:$0xff]  }
 0x263   : > { %v4654_v42 = vpop.permute.xlu0 %4653  ;;  %v6600_v40 = vld [vmem:[#allocation2 + $0xc0] sm:$0xff]  ;;  %11287 = vmatpush1.bf16.msra.mxu0 %v13833_v34 }
 0x264   : > { %4702 = vst.msk [vmem:[#allocation2 + $0x128] sm:$0xff] %vm1098_vm8, %v4654_v42  ;;  %7255 = vmatprep.mubr.bf16.mxu1 %v6600_v40  ;;  %5485 = vrot.lane.b32.xlu1 %v5429_v60, %s14079_s21  ;;  %v6220_v42 = vrot.slane %v6218_v51, 2  ;;  %v6221_v40 = vshll.u32 %v17032_v31, 16  ;;  %v5433_v60 = vrot.slane %v5431_v55, 1  ;;  %v17109_v39 = vld [vmem:[#allocation3 + $0x90] sm:$0xff]   ;;  %v17111_v51 = vld [vmem:[#allocation3 + $0x98] sm:$0xff]  }
 0x265   : > { %4941 = vst.msk [vmem:[#allocation2 + $0x128] sm:$0xff] %vm1338_vm9, %v4893_v21  ;;  %7256 = vmatmul.mubr.bf16.gmra.mrb[48].mxu1 %v6599_v32  ;;  %v5470_v25 = vpop.permute.xlu1 %5469  ;;  %v4876_v21 = vrot.slane %v17043_v48, 1  ;;  %v6215_v32 = vor.u32 %v6214_v23, %v6211_v10  ;;  %v5436_v10 = vrot.slane %v5434_v27, 2  ;;  %v17125_v27 = vrot.slane %v4623_v47, 1  ;;  %v17138_v47 = vld [vmem:[#allocation3 + $0x68] sm:$0xff]   ;;  %11288 = vmatprep.subr.bf16.mxu0 %v19133_v58  ;;  %v6610_v34 = vld [vmem:[#allocation2 + $0x130] sm:$0xff] }
 0x266   : > { %4323 = vrot.lane.b32.xlu0 %v13789_v57, %s14079_s21  ;;  %7263 = vmatprep.mubr.bf16.mxu1 %v6605_v45  ;;  %5517 = vst.msk [vmem:[#allocation2 + $0x168] sm:$0xff] %vm857_vm7, %v5470_v25  ;;  %v17081_v57 = vld [vmem:[#allocation3 + $0x88] sm:$0xff]   ;;  %v6223_v25 = vrot.slane %v6221_v40, 3  ;;  %v5443_v40 = vshll.u32 %v17097_v14, 16  ;;  %v5931_v31 = vrot.slane %v17111_v51, 2 }
 0x267   : > { %v4308_v2 = vpop.permute.xlu0 %4307  ;;  %5756 = vst.msk [vmem:[#allocation2 + $0x168] sm:$0xff] %vm1098_vm8, %v5709_v4  ;;  %v4613_v4 = vor.u32 %v4611_v33, %v17000_v1  ;;  %v6216_v45 = vsel %vm2303_vm3, %v17002_v5, %v6215_v32  ;;  %v17115_v1 = vld [vmem:[#allocation3 + $0x60] sm:$0xff]   ;;  %v6503_v5 = vsel %vm2676_vm5, %v6500_v59, %v19109_v0  ;;  %v5929_v0 = vrot.slane %v17103_v3, 2 }
 0x268   : > { %4354 = vst.msk [vmem:[#allocation2 + $0x198] sm:$0xff] %vm857_vm7, %v4308_v2  ;;  %5963 = vrot.lane.b32.xlu1 %v5928_v35, %s14080_s22  ;;  %v17127_v2 = vld [vmem:[#allocation3 + $0x60] sm:$0xff]  }
 0x269   : > { %v5948_v23 = vpop.permute.xlu1 %5947  ;;  %6332 = vst.msk [vmem:[#allocation2 + $0x1a8] sm:$0xff] %vm505_vm4, %v6216_v45  ;;  %v4618_v55 = vsel %vm654_vm2, %v4613_v4, %v17066_v12  ;;  %v13835_v35 = vld [vmem:[%s19056_s6 + $0x10] sm:$0xff]   ;;  %v5440_v4 = vshrl.u32 %v17097_v14, 16  ;;  %v17135_v45 = vor.u32 %v6223_v25, %v6220_v42  ;;  %v17146_v42 = vld [vmem:[#allocation3 + $0x68] sm:$0xff]   ;;  %v6504_v25 = vrot.slane %v17109_v39, 3 }
 0x26a   : > { %4910 = vrot.lane.b32.xlu0 %v4875_v41, %s14080_s22  ;;  %5995 = vst.msk [vmem:[#allocation2 + $0x168] sm:$0xff] %vm1338_vm9, %v5948_v23  ;;  %v6604_v41 = vld [vmem:[#allocation2 + $0xf0] sm:$0xff]  ;;  %v5103_v23 = vrot.slane %v17071_v52, 1  ;;  %v5691_v14 = vsel %vm1824_vm0, %v5688_v61, %v5690_v11  ;;  %11289 = vmatpush1.bf16.msra.mxu0 %v13835_v35  ;;  %v6227_v9 = vshrl.u32 %v17127_v2, 16  ;;  %v6230_v35 = vshll.u32 %v17127_v2, 16  ;;  %v13839_v2 = vld [vmem:[%s19056_s6 + $0x20] sm:$0xff]  }
 0x26b   : > { %v4895_v33 = vpop.permute.xlu0 %4894  ;;  %v6225_v15 = vsel %vm2303_vm3, %v6215_v32, %v17135_v45  ;;  %v17179_v61 = vrot.slane %v5440_v4, 1  ;;  %v17182_v32 = vld [vmem:[#allocation3 + $0x70] sm:$0xff]   ;;  %11290 = vmatprep.subr.bf16.mxu0 %v19133_v58  ;;  %v6236_v4 = vshrl.u32 %v17138_v47, 16 }
 0x26c   : > { %6538 = vrot.lane.b32.xlu1 %v6503_v5, %s14079_s21  ;;  %6333 = vst.msk [vmem:[#allocation2 + $0x1e0] sm:$0xff] %vm505_vm4, %v6225_v15  ;;  %v5105_v15 = vrot.slane %v17115_v1, 1  ;;  %v6609_v59 = vld [vmem:[#allocation2 + $0x128] sm:$0xff] }
 0x26d   : > { %7264 = vmatmul.mubr.bf16.gmra.mrb[52].mxu1 %v6604_v41  ;;  %v6523_v52 = vpop.permute.xlu1 %6522  ;;  %v5104_v41 = vsel %vm1006_vm1, %v5101_v44, %v5103_v23  ;;  %v13836_v44 = vld [vmem:[%s19056_s6 + $0x18] sm:$0xff]  }
 0x26e   : > { %4671 = vrot.lane.b32.xlu0 %v4618_v55, %s14078_s20  ;;  %7271 = vmatprep.mubr.bf16.mxu1 %v6610_v34  ;;  %v17151_v55 = vld [vmem:[#allocation3 + $0x98] ss:$0 sps:$4 sm:$0x33]   ;;  %6570 = vst.msk [vmem:[#allocation2 + $0x170] sm:$0xff] %vm857_vm7, %v6523_v52  ;;  %v17162_v34 = vor.u32 %v5436_v10, %v5433_v60  ;;  %v17187_v60 = vrot.slane %v5443_v40, 2  ;;  %v5106_v1 = vsel %vm1006_vm1, %v5103_v23, %v5105_v15  ;;  %v17204_v23 = vld [vmem:[#allocation3 + $0x80] sm:$0xff]  }
 0x26f   : > { %v4656_v5 = vpop.permute.xlu0 %4655  ;;  %5148 = vst.msk [vmem:[#allocation2 + $0x210] sm:$0xff] %vm505_vm4, %v5104_v41  ;;  %v5449_v10 = vshrl.u32 %v17151_v55, 16  ;;  %5149 = vst.msk [vmem:[#allocation2 + $0x248] sm:$0xff] %vm505_vm4, %v5106_v1  ;;  %v6229_v41 = vrot.slane %v6227_v9, 2  ;;  %11291 = vmatpush1.bf16.msra.mxu0 %v13836_v44  ;;  %v6238_v44 = vrot.slane %v6236_v4, 2  ;;  %v17219_v9 = vld [vmem:[#allocation3 + $0x80] sm:$0xff]  }
 0x270   : > { %4703 = vst.msk [vmem:[#allocation2 + $0x160] sm:$0xff] %vm1098_vm8, %v4656_v5  ;;  %5726 = vrot.lane.b32.xlu1 %v5691_v14, %s14078_s20  ;;  %v17196_v5 = vld [vmem:[#allocation3 + $0x78] sm:$0xff]   ;;  %v5438_v40 = vsel %vm1487_vm6, %v17026_v22, %v17162_v34  ;;  %v6239_v14 = vshll.u32 %v17138_v47, 16  ;;  %v4877_v22 = vsel %vm1006_vm1, %v4874_v38, %v4876_v21  ;;  %v4621_v47 = vor.u32 %v4619_v63, %v17066_v12  ;;  %v13838_v4 = vld [vmem:[#allocation3 + $0x88] sm:$0xff]  }
 0x271   : > { %4942 = vst.msk [vmem:[#allocation2 + $0x160] sm:$0xff] %vm1338_vm9, %v4895_v33  ;;  %v5711_v6 = vpop.permute.xlu1 %5710  ;;  %v6615_v52 = vld [vmem:[#allocation2 + $0x168] sm:$0xff]  ;;  %11292 = vmatprep.subr.bf16.mxu0 %v19133_v58  ;;  %v5109_v38 = vrot.slane %v17167_v13, 1  ;;  %v19203_v12 = vrot.slane %v17013_v26, 2  ;;  %v6266_v36 = vshll.u32 %v17219_v9, 16 }
 0x272   : > { %6536 = vrot.lane.b32.xlu0 %v6501_v50, %s14079_s21  ;;  %v5107_v50 = vrot.slane %v17146_v42, 1  ;;  %v6232_v42 = vrot.slane %v6230_v35, 3  ;;  %v6241_v1 = vrot.slane %v6239_v14, 3  ;;  %v4626_v43 = vsel %vm654_vm2, %v4621_v47, %v17125_v27 }
 0x273   : > { %v4310_v33 = vpop.permute.xlu0 %4309  ;;  %v5930_v63 = vsel %vm1824_vm0, %v19203_v12, %v5929_v0  ;;  %v6254_v14 = vshrl.u32 %v17190_v37, 16  ;;  %11293 = vmatpush1.bf16.msra.mxu0 %v13839_v2  ;;  %v17248_v2 = vld [vmem:[#allocation3 + $0x98] sm:$0xff]   ;;  %v6263_v12 = vshrl.u32 %v17219_v9, 16 }
 0x274   : > { %4355 = vst.msk [vmem:[#allocation2 + $0x1d0] sm:$0xff] %vm857_vm7, %v4310_v33  ;;  %5487 = vrot.lane.b32.xlu1 %v5438_v40, %s14079_s21  ;;  %v5108_v17 = vsel %vm1006_vm1, %v5105_v15, %v5107_v50  ;;  %v6233_v35 = vor.u32 %v6232_v42, %v6229_v41  ;;  %v6242_v13 = vor.u32 %v6241_v1, %v6238_v44  ;;  %v5113_v42 = vrot.slane %v17204_v23, 1 }
 0x275   : > { %7272 = vmatmul.mubr.bf16.gmra.mrb[56].mxu1 %v6609_v59  ;;  %v5472_v33 = vpop.permute.xlu1 %5471  ;;  %5150 = vst.msk [vmem:[#allocation2 + $0x280] sm:$0xff] %vm505_vm4, %v5108_v17  ;;  %v6245_v59 = vshrl.u32 %v17182_v32, 16  ;;  %v5110_v40 = vsel %vm1006_vm1, %v5107_v50, %v5109_v38  ;;  %v5111_v50 = vrot.slane %v17196_v5, 1  ;;  %11294 = vmatprep.subr.bf16.mxu0 %v19133_v58  ;;  %v19204_v44 = vrot.slane %v17105_v49, 2 }
 0x276   : > { %4912 = vrot.lane.b32.xlu0 %v4877_v22, %s14080_s22  ;;  %7279 = vmatprep.mubr.bf16.mxu1 %v6615_v52  ;;  %5518 = vst.msk [vmem:[#allocation2 + $0x1a0] sm:$0xff] %vm857_vm7, %v5472_v33  ;;  %v6248_v52 = vshll.u32 %v17182_v32, 16  ;;  %v6234_v26 = vsel %vm2303_vm3, %v17135_v45, %v6233_v35  ;;  %v6257_v22 = vshll.u32 %v17190_v37, 16  ;;  %v13805_v32 = vld [vmem:[#allocation3 + $0x80] sm:$0xff]   ;;  %v6256_v45 = vrot.slane %v6254_v14, 2  ;;  %v13840_v37 = vld [vmem:[%s19056_s6 + $0x28] sm:$0xff]  }
 0x277   : > { %v6521_v15 = vpop.permute.xlu0 %6520  ;;  %5757 = vst.msk [vmem:[#allocation2 + $0x1a0] sm:$0xff] %vm1098_vm8, %v5711_v6  ;;  %v6247_v41 = vrot.slane %v6245_v59, 2  ;;  %v6243_v6 = vsel %vm2303_vm3, %v6233_v35, %v6242_v13  ;;  %v5693_v1 = vsel %vm1824_vm0, %v5690_v11, %v19204_v44  ;;  %v5114_v35 = vsel %vm1006_vm1, %v5111_v50, %v5113_v42  ;;  %11295 = vmatpush1.bf16.msra.mxu0 %v13840_v37 }
 0x278   : > { %6569 = vst.msk [vmem:[#allocation2 + $0x138] sm:$0xff] %vm857_vm7, %v6521_v15  ;;  %5965 = vrot.lane.b32.xlu1 %v5930_v63, %s14080_s22  ;;  %v6250_v47 = vrot.slane %v6248_v52, 3  ;;  %v6614_v17 = vld [vmem:[#allocation2 + $0x160] sm:$0xff]  ;;  %v6259_v33 = vrot.slane %v6257_v22, 3  ;;  %v6272_v59 = vshrl.u32 %v13838_v4, 16  ;;  %v6275_v15 = vshll.u32 %v13838_v4, 16  ;;  %11296 = vmatprep.subr.bf16.mxu0 %v19133_v58 }
 0x279   : > { %5151 = vst.msk [vmem:[#allocation2 + $0x2b8] sm:$0xff] %vm505_vm4, %v5110_v40  ;;  %6334 = vst.msk [vmem:[#allocation2 + $0x218] sm:$0xff] %vm505_vm4, %v6234_v26  ;;  %v5950_v5 = vpop.permute.xlu1 %5949  ;;  %v19205_v40 = vshll.u32 %v17081_v57, 16  ;;  %v6268_v14 = vrot.slane %v6266_v36, 3  ;;  %v13842_v22 = vld [vmem:[%s19056_s6 + $0x30] sm:$0xff]   ;;  %v6506_v44 = vrot.slane %v17248_v2, 3 }
 0x27a   : > { %4673 = vrot.lane.b32.xlu0 %v4626_v43, %s14078_s20  ;;  %6335 = vst.msk [vmem:[#allocation2 + $0x250] sm:$0xff] %vm505_vm4, %v6243_v6  ;;  %v5112_v43 = vsel %vm1006_vm1, %v5109_v38, %v5111_v50  ;;  %v6251_v63 = vor.u32 %v6250_v47, %v6247_v41  ;;  %v6260_v11 = vor.u32 %v6259_v33, %v6256_v45  ;;  %5153 = vst.msk [vmem:[#allocation2 + $0x328] sm:$0xff] %vm505_vm4, %v5114_v35  ;;  %v17277_v41 = vld [vmem:[#allocation3 + $0x88] sm:$0xff]   ;;  %v6616_v33 = vld [vmem:[#allocation2 + $0x170] sm:$0xff] }
 0x27b   : > { %v4897_v23 = vpop.permute.xlu0 %4896  ;;  %5996 = vst.msk [vmem:[#allocation2 + $0x1a0] sm:$0xff] %vm1338_vm9, %v5950_v5  ;;  %v6265_v38 = vrot.slane %v6263_v12, 2  ;;  %v17274_v52 = vrot.slane %v19205_v40, 1  ;;  %v6274_v26 = vrot.slane %v6272_v59, 2  ;;  %v19206_v50 = vshrl.u32 %v17048_v54, 16  ;;  %11297 = vmatpush1.bf16.msra.mxu0 %v13842_v22  ;;  %v13847_v35 = vld [vmem:[#allocation3 + $0x98] sm:$0xff]  }
 0x27c   : > { %5152 = vst.msk [vmem:[#allocation2 + $0x2f0] sm:$0xff] %vm505_vm4, %v5112_v43  ;;  %5728 = vrot.lane.b32.xlu1 %v5693_v1, %s14078_s20  ;;  %v6252_v9 = vsel %vm2303_vm3, %v6242_v13, %v6251_v63  ;;  %v5452_v6 = vshll.u32 %v17151_v55, 16  ;;  %v6261_v47 = vsel %vm2303_vm3, %v6251_v63, %v6260_v11  ;;  %v6277_v13 = vrot.slane %v6275_v15, 3  ;;  %v13843_v1 = vld [vmem:[%s19056_s6 + $0x38] sm:$0xff]   ;;  %11298 = vmatprep.subr.bf16.mxu0 %v19133_v58  ;;  %v13849_v40 = vld [vmem:[#allocation3 + $0x90] sm:$0xff]  }
 0x27d   : > { %7280 = vmatmul.mubr.bf16.gmra.mrb[60].mxu1 %v6614_v17  ;;  %v5713_v4 = vpop.permute.xlu1 %5712  ;;  %6336 = vst.msk [vmem:[#allocation2 + $0x288] sm:$0xff] %vm505_vm4, %v6252_v9  ;;  %v5932_v5 = vsel %vm1824_vm0, %v5929_v0, %v5931_v31  ;;  %6337 = vst.msk [vmem:[#allocation2 + $0x2c0] sm:$0xff] %vm505_vm4, %v6261_v47  ;;  %v6269_v54 = vor.u32 %v6268_v14, %v6265_v38  ;;  %v13845_v17 = vld [vmem:[#allocation3 + $0x90] sm:$0xff]   ;;  %v19207_v0 = vrot.slane %v17046_v28, 3  ;;  %v17313_v12 = vrot.slane %v5449_v10, 1 }
 0x27e   : > { %4325 = vrot.lane.b32.xlu0 %v13805_v32, %s14079_s21  ;;  %v4629_v32 = vor.u32 %v19206_v50, %v17125_v27  ;;  %v5115_v27 = vrot.slane %v17277_v41, 1  ;;  %v17309_v43 = vor.u32 %v17187_v60, %v17179_v61  ;;  %v6278_v63 = vor.u32 %v6277_v13, %v6274_v26  ;;  %v17320_v15 = vld [vmem:[#allocation3 + $0xa0] ss:$0 sps:$4 sm:$0x77]   ;;  %v13844_v14 = vld [vmem:[%s19056_s6 + $0x40] sm:$0xff]  }
 0x27f   : > { %v4658_v45 = vpop.permute.xlu0 %4657  ;;  %v6611_v37 = vld [vmem:[#allocation2 + $0x138] sm:$0xff]  ;;  %v6505_v3 = vsel %vm2676_vm5, %v19207_v0, %v6504_v25  ;;  %v6270_v28 = vsel %vm2303_vm3, %v6260_v11, %v6269_v54  ;;  %v6281_v59 = vshrl.u32 %v13845_v17, 16  ;;  %v6284_v38 = vshll.u32 %v13845_v17, 16  ;;  %11299 = vmatpush1.bf16.msra.mxu0 %v13843_v1  ;;  %v13851_v22 = vld [vmem:[#allocation3 + $0xa0] ss:$0 sps:$4 sm:$0x77]  }
 0x280   : > { %4704 = vst.msk [vmem:[#allocation2 + $0x198] sm:$0xff] %vm1098_vm8, %v4658_v45  ;;  %13071 = vmatmul.mubr.msk.bf16.gmra.mrb[80].mxu0 %vm6967_vm13, %v6611_v37  ;;  %5967 = vrot.lane.b32.xlu1 %v5932_v5, %s14080_s22  ;;  %v5116_v36 = vsel %vm1006_vm1, %v5113_v42, %v5115_v27  ;;  %v17322_v55 = vrot.slane %v5452_v6, 2  ;;  %v6279_v10 = vsel %vm2303_vm3, %v6269_v54, %v6278_v63  ;;  %v6293_v11 = vshll.u32 %v13847_v35, 16  ;;  %v13852_v37 = vld [vmem:[#allocation3 + $0x98] ss:$0 sps:$4 sm:$0x11]  }
 0x281   : > { %4943 = vst.msk [vmem:[#allocation2 + $0x198] sm:$0xff] %vm1338_vm9, %v4897_v23  ;;  %13074 = vmatprep.mubr.msk.bf16.mxu0 %vm6967_vm13, %v6616_v33  ;;  %v5474_v61 = vpop.permute.xlu1 %5473  ;;  %v6290_v23 = vshrl.u32 %v13847_v35, 16  ;;  %v6507_v9 = vsel %vm2676_vm5, %v6504_v25, %v6506_v44  ;;  %v6283_v26 = vrot.slane %v6281_v59, 2  ;;  %v6286_v41 = vrot.slane %v6284_v38, 3  ;;  %11300 = vmatprep.subr.bf16.mxu0 %v19133_v58  ;;  %v13846_v33 = vld [vmem:[%s19056_s6 + $0x48] sm:$0xff]  }
 0x282   : > { %6540 = vrot.lane.b32.xlu0 %v6505_v3, %s14079_s21  ;;  %v6620_v60 = vld [vmem:[#allocation2 + $0x1a0] sm:$0xff]  ;;  %6338 = vst.msk [vmem:[#allocation2 + $0x2f8] sm:$0xff] %vm505_vm4, %v6270_v28  ;;  %5154 = vst.msk [vmem:[#allocation2 + $0x360] sm:$0xff] %vm505_vm4, %v5116_v36  ;;  %v4634_v50 = vsel %vm654_vm2, %v4629_v32, %v17274_v52  ;;  %v6295_v25 = vrot.slane %v6293_v11, 3  ;;  %v5117_v6 = vrot.slane %v13849_v40, 1  ;;  %v6299_v13 = vshrl.u32 %v13851_v22, 16 }
 0x283   : > { %v4312_v42 = vpop.permute.xlu0 %4311  ;;  %5519 = vst.msk [vmem:[#allocation2 + $0x1d8] sm:$0xff] %vm857_vm7, %v5474_v61  ;;  %7287 = vmatprep.mubr.bf16.mxu1 %v6620_v60  ;;  %v6292_v39 = vrot.slane %v6290_v23, 2  ;;  %v6287_v47 = vor.u32 %v6286_v41, %v6283_v26  ;;  %v6302_v45 = vshll.u32 %v13851_v22, 16  ;;  %v5455_v32 = vor.u32 %v17322_v55, %v17313_v12  ;;  %v13819_v54 = vld [vmem:[#allocation3 + $0x98] ss:$0 sps:$4 sm:$0x33]   ;;  %11301 = vmatpush1.bf16.msra.mxu0 %v13844_v14 }
 0x284   : > { %6339 = vst.msk [vmem:[#allocation2 + $0x330] sm:$0xff] %vm505_vm4, %v6279_v10  ;;  %6542 = vrot.lane.b32.xlu1 %v6507_v9, %s14079_s21  ;;  %v5118_v17 = vsel %vm1006_vm1, %v5115_v27, %v5117_v6  ;;  %v5119_v28 = vrot.slane %v13852_v37, 1  ;;  %v19208_v12 = vrot.slane %v17083_v29, 1  ;;  %v13821_v59 = vld [vmem:[#allocation3 + $0x90] ss:$0 sps:$4 sm:$0x11]   ;;  %11302 = vmatprep.subr.bf16.mxu0 %v19133_v58 }
 0x285   : > { %4356 = vst.msk [vmem:[#allocation2 + $0x208] sm:$0xff] %vm857_vm7, %v4312_v42  ;;  %v5952_v5 = vpop.permute.xlu1 %5951  ;;  %v6296_v1 = vor.u32 %v6295_v25, %v6292_v39  ;;  %v6288_v3 = vsel %vm2303_vm3, %v6278_v63, %v6287_v47  ;;  %v6304_v35 = vrot.slane %v6302_v45, 3  ;;  %v6508_v63 = vrot.slane %v17320_v15, 3  ;;  %v13822_v10 = vld [vmem:[#allocation3 + $0xa0] ss:$0 sps:$4 sm:$0x33]  }
 0x286   : > { %5758 = vst.msk [vmem:[#allocation2 + $0x1d8] sm:$0xff] %vm1098_vm8, %v5713_v4  ;;  %4675 = vrot.lane.b32.xlu0 %v4634_v50, %s14078_s20  ;;  %v5447_v4 = vsel %vm1487_vm6, %v17162_v34, %v17309_v43  ;;  %v6301_v34 = vrot.slane %v6299_v13, 2  ;;  %v4879_v27 = vsel %vm1006_vm1, %v4876_v21, %v19208_v12  ;;  %v5120_v21 = vsel %vm1006_vm1, %v5117_v6, %v5119_v28  ;;  %v13848_v23 = vld [vmem:[%s19056_s6 + $0x50] sm:$0xff]   ;;  %v13818_v26 = vld [vmem:[#allocation3 + $0x88] sm:$0xff]  }
 0x287   : > { %v4899_v0 = vpop.permute.xlu0 %4898  ;;  %5997 = vst.msk [vmem:[#allocation2 + $0x1d8] sm:$0xff] %vm1338_vm9, %v5952_v5  ;;  %v6297_v38 = vsel %vm2303_vm3, %v6287_v47, %v6296_v1  ;;  %v5456_v15 = vsel %vm1487_vm6, %v17309_v43, %v5455_v32  ;;  %v5694_v55 = vrot.slane %v13819_v54, 2  ;;  %11303 = vmatpush1.bf16.msra.mxu0 %v13846_v33  ;;  %v6509_v40 = vsel %vm2676_vm5, %v6506_v44, %v6508_v63  ;;  %v13850_v22 = vld [vmem:[%s19056_s6 + $0x58] sm:$0xff]   ;;  %v13823_v25 = vld [vmem:[#allocation3 + $0x90] ss:$0 sps:$4 sm:$0x11]  }
 0x288   : > { %5155 = vst.msk [vmem:[#allocation2 + $0x398] sm:$0xff] %vm505_vm4, %v5118_v17  ;;  %5489 = vrot.lane.b32.xlu1 %v5447_v4, %s14079_s21  ;;  %v6619_v36 = vld [vmem:[#allocation2 + $0x198] sm:$0xff]  ;;  %6340 = vst.msk [vmem:[#allocation2 + $0x368] sm:$0xff] %vm505_vm4, %v6288_v3  ;;  %v6305_v48 = vor.u32 %v6304_v35, %v6301_v34  ;;  %v4639_v42 = vshll.u32 %v13821_v59, 16  ;;  %11304 = vmatprep.subr.bf16.mxu0 %v19133_v58  ;;  %v19209_v2 = vrot.slane %v17105_v49, 2  ;;  %v5933_v41 = vrot.slane %v13822_v10, 2 }
 0x289   : > { %7288 = vmatmul.mubr.bf16.gmra.mrb[64].mxu1 %v6619_v36  ;;  %6341 = vst.msk [vmem:[#allocation2 + $0x3a0] sm:$0xff] %vm505_vm4, %v6297_v38  ;;  %v6527_v61 = vpop.permute.xlu1 %6526  ;;  %5156 = vst.msk [vmem:[#allocation2 + $0x3d0] sm:$0xff] %vm505_vm4, %v5120_v21  ;;  %v4635_v50 = vshrl.u32 %v17081_v57, 16  ;;  %v13853_v57 = vld [vmem:[%s19056_s6 + $0x60] sm:$0xff]   ;;  %v4880_v37 = vrot.slane %v13823_v25, 1  ;;  %v13854_v5 = vld [vmem:[%s19056_s6 + $0x68] sm:$0xff]   ;;  %v19210_v4 = vmov %v19208_v12 }
 0x28a   : > { %4914 = vrot.lane.b32.xlu0 %v4879_v27, %s14080_s22  ;;  %6572 = vst.msk [vmem:[#allocation2 + $0x1e0] sm:$0xff] %vm857_vm7, %v6527_v61  ;;  %v6306_v11 = vsel %vm2303_vm3, %v6296_v1, %v6305_v48  ;;  %v5695_v44 = vsel %vm1824_vm0, %v19209_v2, %v5694_v55  ;;  %v4641_v39 = vrot.slane %v4639_v42, 1  ;;  %v5934_v13 = vsel %vm1824_vm0, %v5931_v31, %v5933_v41  ;;  %v13856_v35 = vld [vmem:[%s19056_s6 + $0x78] sm:$0xff]  }
 0x28b   : > { %v4660_v60 = vpop.permute.xlu0 %4659  ;;  %6342 = vst.msk [vmem:[#allocation2 + $0x3d8] sm:$0xff] %vm505_vm4, %v6306_v11  ;;  %11305 = vmatpush1.bf16.msra.mxu0 %v13848_v23  ;;  %v4637_v6 = vor.u32 %v4635_v50, %v17274_v52  ;;  %v4881_v32 = vsel %vm1006_vm1, %v19210_v4, %v4880_v37 }
 0x28c   : > { %4705 = vst.msk [vmem:[#allocation2 + $0x1d0] sm:$0xff] %vm1098_vm8, %v4660_v60  ;;  %5491 = vrot.lane.b32.xlu1 %v5456_v15, %s14079_s21  ;;  %11306 = vmatprep.subr.bf16.mxu0 %v19133_v58 }
 0x28d   : > { %4944 = vst.msk [vmem:[#allocation2 + $0x1d0] sm:$0xff] %vm1338_vm9, %v4899_v0  ;;  %v5715_v43 = vpop.permute.xlu1 %5714  ;;  %v4642_v45 = vsel %vm654_vm2, %v4637_v6, %v4641_v39  ;;  %v13855_v0 = vld [vmem:[%s19056_s6 + $0x70] sm:$0xff]  }
 0x28e   : > { %6544 = vrot.lane.b32.xlu0 %v6509_v40, %s14079_s21  ;;  %v6625_v9 = vld [vmem:[#allocation2 + $0x1d8] sm:$0xff] }
 0x28f   : > { %v4314_v14 = vpop.permute.xlu0 %4313  ;;  %7295 = vmatprep.mubr.bf16.mxu1 %v6625_v9  ;;  %11307 = vmatpush1.bf16.msra.mxu0 %v13850_v22 }
 0x290   : > { %4357 = vst.msk [vmem:[#allocation2 + $0x240] sm:$0xff] %vm857_vm7, %v4314_v14  ;;  %5730 = vrot.lane.b32.xlu1 %v5695_v44, %s14078_s20  ;;  %11308 = vmatprep.subr.bf16.mxu0 %v19133_v58 }
 0x291   : > { %v5476_v49 = vpop.permute.xlu1 %5475  ;;  %v6626_v3 = vld [vmem:[#allocation2 + $0x1e0] sm:$0xff] }
 0x292   : > { %4327 = vrot.lane.b32.xlu0 %v13818_v26, %s14079_s21  ;;  %5520 = vst.msk [vmem:[#allocation2 + $0x210] sm:$0xff] %vm857_vm7, %v5476_v49 }
 0x293   : > { %v6525_v47 = vpop.permute.xlu0 %6524  ;;  %5759 = vst.msk [vmem:[#allocation2 + $0x210] sm:$0xff] %vm1098_vm8, %v5715_v43  ;;  %11309 = vmatpush1.bf16.msra.mxu0 %v13853_v57 }
 0x294   : > { %6571 = vst.msk [vmem:[#allocation2 + $0x1a8] sm:$0xff] %vm857_vm7, %v6525_v47  ;;  %5969 = vrot.lane.b32.xlu1 %v5934_v13, %s14080_s22  ;;  %v6624_v52 = vld [vmem:[#allocation2 + $0x1d0] sm:$0xff]  ;;  %11310 = vmatprep.subr.bf16.mxu0 %v19133_v58 }
 0x295   : > { %7296 = vmatmul.mubr.bf16.gmra.mrb[68].mxu1 %v6624_v52  ;;  %v5954_v51 = vpop.permute.xlu1 %5953 }
 0x296   : > { %4677 = vrot.lane.b32.xlu0 %v4642_v45, %s14078_s20  ;;  %5998 = vst.msk [vmem:[#allocation2 + $0x210] sm:$0xff] %vm1338_vm9, %v5954_v51 }
 0x297   : > { %11311 = vmatpush1.bf16.msra.mxu0 %v13854_v5 }
 0x298   : > { %v4901_v31 = vpop.permute.xlu0 %4900  ;;  %11312 = vmatprep.subr.bf16.mxu0 %v19133_v58 }
 0x299   : > { %v5717_v54 = vpop.permute.xlu1 %5716 }
 0x29a   : > { %4916 = vrot.lane.b32.xlu0 %v4881_v32, %s14080_s22 }
 0x29b   : > { %v6621_v17 = vld [vmem:[#allocation2 + $0x1a8] sm:$0xff]  ;;  %11313 = vmatpush1.bf16.msra.mxu0 %v13855_v0 }
 0x29c   : > { %v4662_v1 = vpop.permute.xlu0 %4661  ;;  %13075 = vmatmul.mubr.msk.bf16.gmra.mrb[84].mxu0 %vm6967_vm13, %v6621_v17  ;;  %11314 = vmatprep.subr.bf16.mxu0 %v19133_v58 }
 0x29d   : > { %4706 = vst.msk [vmem:[#allocation2 + $0x208] sm:$0xff] %vm1098_vm8, %v4662_v1  ;;  %13078 = vmatprep.mubr.msk.bf16.mxu0 %vm6967_vm13, %v6626_v3  ;;  %v5478_v29 = vpop.permute.xlu1 %5477  ;;  %v6630_v33 = vld [vmem:[#allocation2 + $0x210] sm:$0xff] }
 0x29e   : > { %4945 = vst.msk [vmem:[#allocation2 + $0x208] sm:$0xff] %vm1338_vm9, %v4901_v31  ;;  %7303 = vmatprep.mubr.bf16.mxu1 %v6630_v33 }
 0x29f   : > { %5521 = vst.msk [vmem:[#allocation2 + $0x248] sm:$0xff] %vm857_vm7, %v5478_v29  ;;  %11315 = vmatpush1.bf16.msra.mxu0 %v13856_v35 }
 0x2a0   : > { %v4316_v34 = vpop.permute.xlu0 %4315  ;;  %5760 = vst.msk [vmem:[#allocation2 + $0x248] sm:$0xff] %vm1098_vm8, %v5717_v54  ;;  %11461 = vmatprep.subr.bf16.mxu0 %v19133_v58 }
 0x2a1   : > { %4358 = vst.msk [vmem:[#allocation2 + $0x278] sm:$0xff] %vm857_vm7, %v4316_v34  ;;  %v5956_v28 = vpop.permute.xlu1 %5955 }
 0x2a2   : > { %5999 = vst.msk [vmem:[#allocation2 + $0x248] sm:$0xff] %vm1338_vm9, %v5956_v28 }
 0x2a4   : > { %v4903_v12 = vpop.permute.xlu0 %4902 }
 0x2a5   : > { %v6629_v27 = vld [vmem:[#allocation2 + $0x208] sm:$0xff]  ;;  %v6531_v36 = vpop.permute.xlu1 %6530 }
 0x2a6   : > { %7304 = vmatmul.mubr.bf16.gmra.mrb[72].mxu1 %v6629_v27  ;;  %6574 = vst.msk [vmem:[#allocation2 + $0x250] sm:$0xff] %vm857_vm7, %v6531_v36 }
 0x2a8   : > { %v4664_v63 = vpop.permute.xlu0 %4663 }
 0x2a9   : > { %4707 = vst.msk [vmem:[#allocation2 + $0x240] sm:$0xff] %vm1098_vm8, %v4664_v63  ;;  %v5719_v59 = vpop.permute.xlu1 %5718  ;;  %v6635_v38 = vld [vmem:[#allocation2 + $0x248] sm:$0xff] }
 0x2aa   : > { %4946 = vst.msk [vmem:[#allocation2 + $0x240] sm:$0xff] %vm1338_vm9, %v4903_v12  ;;  %7311 = vmatprep.mubr.bf16.mxu1 %v6635_v38 }
 0x2ac   : > { %v4318_v48 = vpop.permute.xlu0 %4317 }
 0x2ad   : > { %4359 = vst.msk [vmem:[#allocation2 + $0x2b0] sm:$0xff] %vm857_vm7, %v4318_v48  ;;  %v5480_v21 = vpop.permute.xlu1 %5479  ;;  %v6636_v40 = vld [vmem:[#allocation2 + $0x250] sm:$0xff] }
 0x2ae   : > { %5522 = vst.msk [vmem:[#allocation2 + $0x280] sm:$0xff] %vm857_vm7, %v5480_v21 }
 0x2af   : > { %5761 = vst.msk [vmem:[#allocation2 + $0x280] sm:$0xff] %vm1098_vm8, %v5719_v59 }
 0x2b0   : > { %v6529_v61 = vpop.permute.xlu0 %6528 }
 0x2b1   : > { %6573 = vst.msk [vmem:[#allocation2 + $0x218] sm:$0xff] %vm857_vm7, %v6529_v61  ;;  %v6634_v60 = vld [vmem:[#allocation2 + $0x240] sm:$0xff]  ;;  %v5958_v15 = vpop.permute.xlu1 %5957 }
 0x2b2   : > { %7312 = vmatmul.mubr.bf16.gmra.mrb[76].mxu1 %v6634_v60  ;;  %6000 = vst.msk [vmem:[#allocation2 + $0x280] sm:$0xff] %vm1338_vm9, %v5958_v15 }
 0x2b4   : > { %v4905_v55 = vpop.permute.xlu0 %4904 }
 0x2b6   : > { %v5721_v10 = vpop.permute.xlu1 %5720 }
 0x2b8   : > { %v4666_v23 = vpop.permute.xlu0 %4665  ;;  %v6631_v11 = vld [vmem:[#allocation2 + $0x218] sm:$0xff] }
 0x2b9   : > { %4708 = vst.msk [vmem:[#allocation2 + $0x278] sm:$0xff] %vm1098_vm8, %v4666_v23  ;;  %13079 = vmatmul.mubr.msk.bf16.gmra.mrb[88].mxu0 %vm6967_vm13, %v6631_v11  ;;  %v6640_v43 = vld [vmem:[#allocation2 + $0x280] sm:$0xff] }
 0x2ba   : > { %4947 = vst.msk [vmem:[#allocation2 + $0x278] sm:$0xff] %vm1338_vm9, %v4905_v55  ;;  %13082 = vmatprep.mubr.msk.bf16.mxu0 %vm6967_vm13, %v6636_v40  ;;  %v5482_v42 = vpop.permute.xlu1 %5481  ;;  %7319 = vmatprep.mubr.bf16.mxu1 %v6640_v43 }
 0x2bb   : > { %5523 = vst.msk [vmem:[#allocation2 + $0x2b8] sm:$0xff] %vm857_vm7, %v5482_v42 }
 0x2bc   : > { %v4320_v9 = vpop.permute.xlu0 %4319  ;;  %5762 = vst.msk [vmem:[#allocation2 + $0x2b8] sm:$0xff] %vm1098_vm8, %v5721_v10 }
 0x2bd   : > { %4360 = vst.msk [vmem:[#allocation2 + $0x2e8] sm:$0xff] %vm857_vm7, %v4320_v9 }
 0x2be   : > { %v5960_v14 = vpop.permute.xlu1 %5959 }
 0x2bf   : > { %6001 = vst.msk [vmem:[#allocation2 + $0x2b8] sm:$0xff] %vm1338_vm9, %v5960_v14 }
 0x2c0   : > { %v4907_v26 = vpop.permute.xlu0 %4906 }
 0x2c1   : > { %v6639_v2 = vld [vmem:[#allocation2 + $0x278] sm:$0xff] }
 0x2c2   : > { %7320 = vmatmul.mubr.bf16.gmra.mrb[80].mxu1 %v6639_v2  ;;  %v6535_v44 = vpop.permute.xlu1 %6534 }
 0x2c3   : > { %6576 = vst.msk [vmem:[#allocation2 + $0x2c0] sm:$0xff] %vm857_vm7, %v6535_v44 }
 0x2c4   : > { %v4668_v41 = vpop.permute.xlu0 %4667 }
 0x2c5   : > { %4709 = vst.msk [vmem:[#allocation2 + $0x2b0] sm:$0xff] %vm1098_vm8, %v4668_v41 }
 0x2c6   : > { %4948 = vst.msk [vmem:[#allocation2 + $0x2b0] sm:$0xff] %vm1338_vm9, %v4907_v26  ;;  %v5723_v22 = vpop.permute.xlu1 %5722  ;;  %v6645_v50 = vld [vmem:[#allocation2 + $0x2b8] sm:$0xff] }
 0x2c7   : > { %7327 = vmatprep.mubr.bf16.mxu1 %v6645_v50 }
 0x2c8   : > { %v4322_v39 = vpop.permute.xlu0 %4321 }
 0x2c9   : > { %4361 = vst.msk [vmem:[#allocation2 + $0x320] sm:$0xff] %vm857_vm7, %v4322_v39  ;;  %v10665_v39 = vld [vmem:[#allocation2 + $0x8] sm:$0xff] }
 0x2ca   : > { %v5484_v25 = vpop.permute.xlu1 %5483  ;;  %v6646_v37 = vld [vmem:[#allocation2 + $0x2c0] sm:$0xff] }
 0x2cb   : > { %5524 = vst.msk [vmem:[#allocation2 + $0x2f0] sm:$0xff] %vm857_vm7, %v5484_v25 }
 0x2cc   : > { %v6533_v49 = vpop.permute.xlu0 %6532  ;;  %5763 = vst.msk [vmem:[#allocation2 + $0x2f0] sm:$0xff] %vm1098_vm8, %v5723_v22 }
 0x2cd   : > { %6575 = vst.msk [vmem:[#allocation2 + $0x288] sm:$0xff] %vm857_vm7, %v6533_v49  ;;  %v6644_v6 = vld [vmem:[#allocation2 + $0x2b0] sm:$0xff] }
 0x2ce   : > { %7328 = vmatmul.mubr.bf16.gmra.mrb[84].mxu1 %v6644_v6  ;;  %v5962_v47 = vpop.permute.xlu1 %5961  ;;  %v10750_v18 = vld [vmem:[#allocation2 + $0x2b0] sm:$0xff] }
 0x2cf   : > { %6002 = vst.msk [vmem:[#allocation2 + $0x2f0] sm:$0xff] %vm1338_vm9, %v5962_v47  ;;  %v13857_v47 = vld [vmem:[%s19056_s6 + $0x80] sm:$0xff]  }
 0x2d0   : > { %v4909_v13 = vpop.permute.xlu0 %4908 }
 0x2d2   : > { %v5725_v57 = vpop.permute.xlu1 %5724 }
 0x2d4   : > { %v4670_v45 = vpop.permute.xlu0 %4669  ;;  %v6641_v52 = vld [vmem:[#allocation2 + $0x288] sm:$0xff] }
 0x2d5   : > { %4710 = vst.msk [vmem:[#allocation2 + $0x2e8] sm:$0xff] %vm1098_vm8, %v4670_v45  ;;  %13083 = vmatmul.mubr.msk.bf16.gmra.mrb[92].mxu0 %vm6967_vm13, %v6641_v52  ;;  %v17505_v45 = vld [vmem:[%s19055_s5] ss:$0 sm:$0xff] }
 0x2d6   : > { %4949 = vst.msk [vmem:[#allocation2 + $0x2e8] sm:$0xff] %vm1338_vm9, %v4909_v13  ;;  %13086 = vmatprep.mubr.msk.bf16.mxu0 %vm6967_vm13, %v6646_v37  ;;  %v5486_v51 = vpop.permute.xlu1 %5485  ;;  %v6650_v31 = vld [vmem:[#allocation2 + $0x2f0] sm:$0xff]  ;;  %v10672_v37 = vld [vmem:[#allocation2 + $0x40] sm:$0xff] }
 0x2d7   : > { %5525 = vst.msk [vmem:[#allocation2 + $0x328] sm:$0xff] %vm857_vm7, %v5486_v51  ;;  %7335 = vmatprep.mubr.bf16.mxu1 %v6650_v31 }
 0x2d8   : > { %v4324_v5 = vpop.permute.xlu0 %4323  ;;  %5764 = vst.msk [vmem:[#allocation2 + $0x328] sm:$0xff] %vm1098_vm8, %v5725_v57  ;;  %v10664_v57 = vld [vmem:[#allocation2] sm:$0xff] }
 0x2d9   : > { %4362 = vst.msk [vmem:[#allocation2 + $0x358] sm:$0xff] %vm857_vm7, %v4324_v5  ;;  %v13858_v5 = vld [vmem:[%s19056_s6 + $0x88] sm:$0xff]  }
 0x2da   : > { %v5964_v4 = vpop.permute.xlu1 %5963 }
 0x2db   : > { %6003 = vst.msk [vmem:[#allocation2 + $0x328] sm:$0xff] %vm1338_vm9, %v5964_v4 }
 0x2dc   : > { %v4911_v32 = vpop.permute.xlu0 %4910 }
 0x2dd   : > { %v6649_v54 = vld [vmem:[#allocation2 + $0x2e8] sm:$0xff] }
 0x2de   : > { %7336 = vmatmul.mubr.bf16.gmra.mrb[88].mxu1 %v6649_v54  ;;  %v6539_v1 = vpop.permute.xlu1 %6538 }
 0x2df   : > { %6578 = vst.msk [vmem:[#allocation2 + $0x330] sm:$0xff] %vm857_vm7, %v6539_v1 }
 0x2e0   : > { %v4672_v17 = vpop.permute.xlu0 %4671 }
 0x2e1   : > { %4711 = vst.msk [vmem:[#allocation2 + $0x320] sm:$0xff] %vm1098_vm8, %v4672_v17 }
 0x2e2   : > { %4950 = vst.msk [vmem:[#allocation2 + $0x320] sm:$0xff] %vm1338_vm9, %v4911_v32  ;;  %v5727_v0 = vpop.permute.xlu1 %5726  ;;  %v6655_v3 = vld [vmem:[#allocation2 + $0x328] sm:$0xff] }
 0x2e3   : > { %7343 = vmatprep.mubr.bf16.mxu1 %v6655_v3 }
 0x2e4   : > { %v6537_v29 = vpop.permute.xlu0 %6536 }
 0x2e5   : > { %6577 = vst.msk [vmem:[#allocation2 + $0x2f8] sm:$0xff] %vm857_vm7, %v6537_v29 }
 0x2e6   : > { %v5488_v33 = vpop.permute.xlu1 %5487  ;;  %v6656_v36 = vld [vmem:[#allocation2 + $0x330] sm:$0xff] }
 0x2e7   : > { %5526 = vst.msk [vmem:[#allocation2 + $0x360] sm:$0xff] %vm857_vm7, %v5488_v33 }
 0x2e8   : > { %v4913_v34 = vpop.permute.xlu0 %4912  ;;  %5765 = vst.msk [vmem:[#allocation2 + $0x360] sm:$0xff] %vm1098_vm8, %v5727_v0 }
 0x2e9   : > { %v6654_v35 = vld [vmem:[#allocation2 + $0x320] sm:$0xff] }
 0x2ea   : > { %7344 = vmatmul.mubr.bf16.gmra.mrb[92].mxu1 %v6654_v35  ;;  %v5966_v28 = vpop.permute.xlu1 %5965 }
 0x2eb   : > { %6004 = vst.msk [vmem:[#allocation2 + $0x360] sm:$0xff] %vm1338_vm9, %v5966_v28  ;;  %v13859_v28 = vld [vmem:[%s19056_s6 + $0x90] sm:$0xff]  }
 0x2ec   : > { %v4674_v12 = vpop.permute.xlu0 %4673  ;;  %v6651_v27 = vld [vmem:[#allocation2 + $0x2f8] sm:$0xff] }
 0x2ed   : > { %4712 = vst.msk [vmem:[#allocation2 + $0x358] sm:$0xff] %vm1098_vm8, %v4674_v12  ;;  %13087 = vmatmul.mubr.msk.bf16.gmra.mrb[96].mxu0 %vm6967_vm13, %v6651_v27 }
 0x2ee   : > { %4951 = vst.msk [vmem:[#allocation2 + $0x358] sm:$0xff] %vm1338_vm9, %v4913_v34  ;;  %13090 = vmatprep.mubr.msk.bf16.mxu0 %vm6967_vm13, %v6656_v36  ;;  %v5729_v63 = vpop.permute.xlu1 %5728 }
 0x2f0   : > { %v4326_v59 = vpop.permute.xlu0 %4325 }
 0x2f1   : > { %4363 = vst.msk [vmem:[#allocation2 + $0x390] sm:$0xff] %vm857_vm7, %v4326_v59 }
 0x2f2   : > { %v5968_v38 = vpop.permute.xlu1 %5967  ;;  %v6660_v48 = vld [vmem:[#allocation2 + $0x360] sm:$0xff] }
 0x2f3   : > { %7351 = vmatprep.mubr.bf16.mxu1 %v6660_v48  ;;  %v19211_v48 = vld [vmem:[#allocation9_spill] sm:$0xff] }
 0x2f4   : > { %v6541_v21 = vpop.permute.xlu0 %6540 }
 0x2f5   : > { %6579 = vst.msk [vmem:[#allocation2 + $0x368] sm:$0xff] %vm857_vm7, %v6541_v21  ;;  %v6659_v61 = vld [vmem:[#allocation2 + $0x358] sm:$0xff] }
 0x2f6   : > { %7352 = vmatmul.mubr.bf16.gmra.mrb[96].mxu1 %v6659_v61  ;;  %v6543_v60 = vpop.permute.xlu1 %6542 }
 0x2f7   : > { %6580 = vst.msk [vmem:[#allocation2 + $0x3a0] sm:$0xff] %vm857_vm7, %v6543_v60  ;;  %v10679_v60 = vld [vmem:[#allocation2 + $0x78] sm:$0xff] }
 0x2f8   : > { %v4676_v15 = vpop.permute.xlu0 %4675 }
 0x2f9   : > { %4713 = vst.msk [vmem:[#allocation2 + $0x390] sm:$0xff] %vm1098_vm8, %v4676_v15  ;;  %v19212_v15 = vld [vmem:[#allocation4_spill] sm:$0xff] }
 0x2fa   : > { %v5490_v55 = vpop.permute.xlu1 %5489 }
 0x2fb   : > { %5527 = vst.msk [vmem:[#allocation2 + $0x398] sm:$0xff] %vm857_vm7, %v5490_v55 }
 0x2fc   : > { %v4915_v10 = vpop.permute.xlu0 %4914  ;;  %v6661_v23 = vld [vmem:[#allocation2 + $0x368] sm:$0xff]  ;;  %5766 = vst.msk [vmem:[#allocation2 + $0x398] sm:$0xff] %vm1098_vm8, %v5729_v63 }
 0x2fd   : > { %4952 = vst.msk [vmem:[#allocation2 + $0x390] sm:$0xff] %vm1338_vm9, %v4915_v10  ;;  %13091 = vmatmul.mubr.msk.bf16.gmra.mrb[100].mxu0 %vm6967_vm13, %v6661_v23  ;;  %6005 = vst.msk [vmem:[#allocation2 + $0x398] sm:$0xff] %vm1338_vm9, %v5968_v38  ;;  %v10671_v38 = vld [vmem:[#allocation2 + $0x38] sm:$0xff] }
 0x2fe   : > { %v5492_v11 = vpop.permute.xlu1 %5491  ;;  %v6666_v40 = vld [vmem:[#allocation2 + $0x3a0] sm:$0xff]  ;;  %v13860_v23 = vld [vmem:[%s19056_s6 + $0x98] sm:$0xff]  }
 0x2ff   : > { %5528 = vst.msk [vmem:[#allocation2 + $0x3d0] sm:$0xff] %vm857_vm7, %v5492_v11  ;;  %13094 = vmatprep.mubr.msk.bf16.mxu0 %vm6967_vm13, %v6666_v40  ;;  %v19213_v40 = vld [vmem:[#allocation5_spill] sm:$0xff] }
 0x300   : > { %v6545_v42 = vpop.permute.xlu0 %6544 }
 0x301   : > { %6581 = vst.msk [vmem:[#allocation2 + $0x3d8] sm:$0xff] %vm857_vm7, %v6545_v42 }
 0x302   : > { %v5731_v43 = vpop.permute.xlu1 %5730 }
 0x303   : > { %5767 = vst.msk [vmem:[#allocation2 + $0x3d0] sm:$0xff] %vm1098_vm8, %v5731_v43 }
 0x304   : > { %v4328_v9 = vpop.permute.xlu0 %4327  ;;  %v6665_v14 = vld [vmem:[#allocation2 + $0x398] sm:$0xff]  ;;  %v6664_v26 = vld [vmem:[#allocation2 + $0x390] sm:$0xff] }
 0x305   : > { %4364 = vst.msk [vmem:[#allocation2 + $0x3c8] sm:$0xff] %vm857_vm7, %v4328_v9  ;;  %7359 = vmatprep.mubr.bf16.mxu1 %v6665_v14  ;;  %v19214_v9 = vld [vmem:[#allocation7_spill] sm:$0xff] }
 0x306   : > { %7360 = vmatmul.mubr.bf16.gmra.mrb[100].mxu1 %v6664_v26  ;;  %v5970_v2 = vpop.permute.xlu1 %5969  ;;  %v7233_v44 = vpop.f32.mrb[36].mxu1 }
 0x307   : > { %6006 = vst.msk [vmem:[#allocation2 + $0x3d0] sm:$0xff] %vm1338_vm9, %v5970_v2  ;;  %v7235_v50 = vpop.f32.mrb[37].mxu1  ;;  %v13178_v32 = vadd.f32 %v17505_v45, %v7233_v44 }
 0x308   : > { %v4678_v41 = vpop.permute.xlu0 %4677  ;;  %v6671_v22 = vld [vmem:[#allocation2 + $0x3d8] sm:$0xff]  ;;  %v7236_v25 = vpop.f32.mrb[38].mxu1 }
 0x309   : > { %4714 = vst.msk [vmem:[#allocation2 + $0x3c8] sm:$0xff] %vm1098_vm8, %v4678_v41  ;;  %13095 = vmatmul.mubr.msk.bf16.gmra.mrb[104].mxu0 %vm6967_vm13, %v6671_v22  ;;  %v7238_v49 = vpop.f32.mrb[39].mxu1  ;;  %v13179_v33 = vadd.f32 %v17505_v45, %v7236_v25  ;;  %vm17694_vm13 = vmand %vm8203_vm15, %vm19231_vm11 }
 0x30a   : > { %11316 = vmatprep.mubr.bf16.mxu0 %v10665_v39 }
 0x30c   : > { %v4917_v6 = vpop.permute.xlu0 %4916 }
 0x30d   : > { %4953 = vst.msk [vmem:[#allocation2 + $0x3c8] sm:$0xff] %vm1338_vm9, %v4917_v6  ;;  %v13861_v6 = vld [vmem:[%s19056_s6 + $0xa0] sm:$0xff]  }
 0x30e   : > { %v6670_v13 = vld [vmem:[#allocation2 + $0x3d0] sm:$0xff] }
 0x30f   : > { %7367 = vmatprep.mubr.bf16.mxu1 %v6670_v13  ;;  %v7241_v52 = vpop.f32.mrb[40].mxu1 }
 0x310   : > { %v13180_v51 = vadd.f32 %v17505_v45, %v7241_v52  ;;  %v7243_v31 = vpop.f32.mrb[41].mxu1 }
 0x311   : > { %11317 = vmatmul.mubr.bf16.vlgmr.msra.gmra.mrb[108].mxu0 %v10664_v57  ;;  %v7244_v4 = vpop.f32.mrb[42].mxu1 }
 0x312   : > { %11324 = vmatprep.mubr.bf16.mxu0 %v10672_v37  ;;  %11462 = vmatpush1.bf16.msra.mxu0 %v13857_v47  ;;  %v13181_v54 = vadd.f32 %v17505_v45, %v7244_v4  ;;  %v7246_v1 = vpop.f32.mrb[43].mxu1  ;;  %v13064_v17 = vpop.f32.mrb[72].mxu0 }
 0x313   : > { %11463 = vmatprep.subr.bf16.mxu0 %v19133_v58  ;;  %v7419_v3 = vadd.f32 %v13180_v51, %v13064_v17  ;;  %v7410_v29 = vpop.f32.mrb[73].mxu0  ;;  %v10686_v17 = vld [vmem:[#allocation2 + $0xb0] sm:$0xff] }
 0x314   : > { %v6669_v0 = vld [vmem:[#allocation2 + $0x3c8] sm:$0xff]  ;;  %v7411_v34 = vadd.f32 %v13178_v32, %v7410_v29  ;;  %v13065_v35 = vpop.f32.mrb[74].mxu0  ;;  %v10678_v32 = vld [vmem:[#allocation2 + $0x70] sm:$0xff] }
 0x315   : > { %7368 = vmatmul.mubr.bf16.gmra.mrb[104].mxu1 %v6669_v0  ;;  %v7555_v12 = vmax.f32 %v7419_v3, 0.0  ;;  %v7422_v27 = vadd.f32 %v13181_v54, %v13065_v35  ;;  %v7413_v36 = vpop.f32.mrb[75].mxu0 }
 0x316   : > { %11464 = vmatpush1.bf16.msra.mxu0 %v13858_v5  ;;  %v7553_v63 = vmax.f32 %v7411_v34, 0.0  ;;  %v7414_v59 = vadd.f32 %v13179_v33, %v7413_v36  ;;  %v13862_v34 = vld [vmem:[%s19056_s6 + $0xa8] sm:$0xff]  }
 0x317   : > { %11465 = vmatprep.subr.bf16.mxu0 %v19133_v58  ;;  %v7591_v21 = vmul.f32 %v7555_v12, %v19211_v48  ;;  %v7556_v61 = vmax.f32 %v7422_v27, 0.0 }
 0x318   : > { %v7589_v55 = vmul.f32 %v7553_v63, %v19212_v15  ;;  %v7554_v10 = vmax.f32 %v7414_v59, 0.0  ;;  %v13865_v15 = vld [vmem:[%s19056_s6 + $0xc0] sm:$0xff]  }
 0x319   : > { %11325 = vmatmul.mubr.bf16.gmra.mrb[112].mxu0 %v10671_v38  ;;  %v12914_v11 = vpack.c.bf16 %v7591_v21, %v7591_v21  ;;  %v7592_v42 = vmul.f32 %v7556_v61, %v19213_v40  ;;  %v13863_v38 = vld [vmem:[%s19056_s6 + $0xb0] sm:$0xff]   ;;  %v10685_v21 = vld [vmem:[#allocation2 + $0xa8] sm:$0xff] }
 0x31a   : > { %11332 = vmatprep.mubr.bf16.mxu0 %v10679_v60  ;;  %11466 = vmatpush1.bf16.msra.mxu0 %v13859_v28  ;;  %v12912_v43 = vpack.c.bf16 %v7589_v55, %v7589_v55  ;;  %v7590_v14 = vmul.f32 %v7554_v10, %v19214_v9  ;;  %v17527_v26 = vpop.f32.mrb[44].mxu1  ;;  %v10693_v61 = vld [vmem:[#allocation2 + $0xe8] sm:$0xff]  ;;  %v13864_v60 = vld [vmem:[%s19056_s6 + $0xb8] sm:$0xff]   ;;  %v10692_v55 = vld [vmem:[#allocation2 + $0xe0] sm:$0xff] }
 0x31b   : > { %11467 = vmatprep.subr.bf16.mxu0 %v19133_v58  ;;  %v7753_v2 = vshrl.u32 %v12914_v11, 16  ;;  %v7756_v44 = vshll.u32 %v12914_v11, 16  ;;  %v12915_v41 = vpack.c.bf16 %v7592_v42, %v7592_v42  ;;  %v7251_v22 = vpop.f32.mrb[45].mxu1  ;;  %v10700_v10 = vld [vmem:[#allocation2 + $0x120] sm:$0xff]  ;;  %v13182_v11 = vadd.f32 %v17505_v45, %v17527_v26  ;;  %v10707_v26 = vld [vmem:[#allocation2 + $0x158] sm:$0xff] }
 0x31c   : > { %v7734_v50 = vshrl.u32 %v12912_v43, 16  ;;  %v7737_v39 = vshll.u32 %v12912_v43, 16  ;;  %v12913_v25 = vpack.c.bf16 %v7590_v14, %v7590_v14  ;;  %v7252_v49 = vpop.f32.mrb[46].mxu1 }
 0x31d   : > { %v7755_v47 = vrot.slane %v7753_v2, 6  ;;  %v7758_v13 = vrot.slane %v7756_v44, 7  ;;  %v7763_v57 = vshrl.u32 %v12915_v41, 16  ;;  %v7766_v52 = vshll.u32 %v12915_v41, 16  ;;  %v7254_v37 = vpop.f32.mrb[47].mxu1  ;;  %v13867_v2 = vld [vmem:[%s19056_s6 + $0xd0] sm:$0xff]  }
 0x31e   : > { %11468 = vmatpush1.bf16.msra.mxu0 %v13860_v23  ;;  %v7736_v51 = vrot.slane %v7734_v50, 6  ;;  %v7739_v31 = vrot.slane %v7737_v39, 7  ;;  %v7743_v5 = vshrl.u32 %v12913_v25, 16  ;;  %v7746_v4 = vshll.u32 %v12913_v25, 16  ;;  %v13866_v23 = vld [vmem:[%s19056_s6 + $0xc8] sm:$0xff]   ;;  %v10699_v50 = vld [vmem:[#allocation2 + $0x118] sm:$0xff] }
 0x31f   : > { %11469 = vmatprep.subr.bf16.mxu0 %v19133_v58  ;;  %v7765_v54 = vrot.slane %v7763_v57, 6  ;;  %v7768_v1 = vrot.slane %v7766_v52, 7  ;;  %v7759_v0 = vor.u32 %v7758_v13, %v7755_v47  ;;  %v13183_v43 = vadd.f32 %v17505_v45, %v7252_v49  ;;  %v19215_v25 = vld [vmem:[#allocation12_spill] sm:$0xff] }
 0x320   : > { %v7745_v3 = vrot.slane %v7743_v5, 6  ;;  %v7748_v29 = vrot.slane %v7746_v4, 7  ;;  %v7740_v33 = vor.u32 %v7739_v31, %v7736_v51  ;;  %v13868_v57 = vld [vmem:[%s19056_s6 + $0xd8] sm:$0xff]   ;;  %v19216_v51 = vld [vmem:[#allocation6_spill] sm:$0xff] }
 0x321   : > { %11333 = vmatmul.mubr.bf16.gmra.mrb[116].mxu0 %v10678_v32  ;;  %v7761_v35 = vrot.slane %v7759_v0, 4  ;;  %v17536_v28 = vor.u32 %v7768_v1, %v7765_v54 }
 0x322   : > { %11340 = vmatprep.mubr.bf16.mxu0 %v10686_v17  ;;  %11470 = vmatpush1.bf16.msra.mxu0 %v13861_v6  ;;  %v7741_v12 = vrot.slane %v7740_v33, 4  ;;  %v7749_v27 = vor.u32 %v7748_v29, %v7745_v3  ;;  %v13869_v3 = vld [vmem:[%s19056_s6 + $0xe0] sm:$0xff]  }
 0x323   : > { %11471 = vmatprep.subr.bf16.mxu0 %v19133_v58  ;;  %8092 = vrot.lane.b32.xlu1 %v7740_v33, %s14079_s21  ;;  %v7770_v36 = vsel %vm15688_vm10, %v7761_v35, %v17536_v28 }
 0x324   : > { %v7750_v63 = vsel %vm15688_vm10, %v7741_v12, %v7749_v27  ;;  %v7751_v59 = vrot.slane %v7749_v27, 4  ;;  %v10706_v27 = vld [vmem:[#allocation2 + $0x150] sm:$0xff] }
 0x325   : > { %8094 = vrot.lane.b32.xlu0 %v7750_v63, %s14079_s21 }
 0x326   : > { %11472 = vmatpush1.bf16.msra.mxu0 %v13862_v34  ;;  %v7760_v48 = vsel %vm15688_vm10, %v7751_v59, %v7759_v0 }
 0x327   : > { %11473 = vmatprep.subr.bf16.mxu0 %v19133_v58  ;;  %8096 = vrot.lane.b32.xlu1 %v7760_v48, %s14079_s21  ;;  %v10714_v48 = vld [vmem:[#allocation2 + $0x190] sm:$0xff] }
 0x329   : > { %11341 = vmatmul.mubr.bf16.gmra.mrb[120].mxu0 %v10685_v21  ;;  %8098 = vrot.lane.b32.xlu0 %v7770_v36, %s14079_s21  ;;  %v19217_v36 = vld [vmem:[#allocation16_spill] sm:$0xff] }
 0x32a   : > { %11348 = vmatprep.mubr.bf16.mxu0 %v10693_v61  ;;  %11474 = vmatpush1.bf16.msra.mxu0 %v13863_v38 }
 0x32b   : > { %11475 = vmatprep.subr.bf16.mxu0 %v19133_v58 }
 0x32e   : > { %11476 = vmatpush1.bf16.msra.mxu0 %v13864_v60 }
 0x32f   : > { %11477 = vmatprep.subr.bf16.mxu0 %v19133_v58 }
 0x331   : > { %11349 = vmatmul.mubr.bf16.gmra.mrb[124].mxu0 %v10692_v55 }
 0x332   : > { %11356 = vmatprep.mubr.bf16.mxu0 %v10700_v10  ;;  %11478 = vmatpush1.bf16.msra.mxu0 %v13865_v15  ;;  %v7771_v15 = vrot.slane %v17536_v28, 4  ;;  %v13870_v10 = vld [vmem:[%s19056_s6 + $0xe8] sm:$0xff]  }
 0x333   : > { %11479 = vmatprep.subr.bf16.mxu0 %v19133_v58  ;;  %v13068_v40 = vpop.f32.mrb[76].mxu0 }
 0x334   : > { %v7426_v42 = vpop.f32.mrb[77].mxu0 }
 0x335   : > { %v7427_v9 = vadd.f32 %v13182_v11, %v7426_v42  ;;  %v13069_v14 = vpop.f32.mrb[78].mxu0  ;;  %v19218_v11 = vld [vmem:[#allocation8_spill] sm:$0xff] }
 0x336   : > { %11480 = vmatpush1.bf16.msra.mxu0 %v13866_v23  ;;  %v7429_v44 = vpop.f32.mrb[79].mxu0 }
 0x337   : > { %11481 = vmatprep.subr.bf16.mxu0 %v19133_v58  ;;  %v7557_v41 = vmax.f32 %v7427_v9, 0.0  ;;  %v7430_v22 = vadd.f32 %v13183_v43, %v7429_v44 }
 0x338   : > { %v7257_v39 = vpop.f32.mrb[48].mxu1 }
 0x339   : > { %11357 = vmatmul.mubr.bf16.gmra.mrb[128].mxu0 %v10699_v50  ;;  %v7593_v6 = vmul.f32 %v7557_v41, %v19215_v25  ;;  %v7558_v47 = vmax.f32 %v7430_v22, 0.0  ;;  %v13184_v49 = vadd.f32 %v17505_v45, %v7257_v39  ;;  %v7259_v13 = vpop.f32.mrb[49].mxu1  ;;  %v13871_v50 = vld [vmem:[%s19056_s6 + $0xf0] sm:$0xff]  }
 0x33a   : > { %11364 = vmatprep.mubr.bf16.mxu0 %v10707_v26  ;;  %11482 = vmatpush1.bf16.msra.mxu0 %v13867_v2  ;;  %v7260_v52 = vpop.f32.mrb[50].mxu1 }
 0x33b   : > { %11483 = vmatprep.subr.bf16.mxu0 %v19133_v58  ;;  %v12916_v37 = vpack.c.bf16 %v7593_v6, %v7593_v6  ;;  %v7594_v31 = vmul.f32 %v7558_v47, %v19216_v51  ;;  %v7435_v5 = vadd.f32 %v13184_v49, %v13068_v40  ;;  %v13185_v4 = vadd.f32 %v17505_v45, %v7260_v52  ;;  %v7262_v32 = vpop.f32.mrb[51].mxu1  ;;  %v10713_v47 = vld [vmem:[#allocation2 + $0x188] sm:$0xff] }
 0x33c   : > { %v10721_v52 = vld [vmem:[#allocation2 + $0x1c8] sm:$0xff] }
 0x33d   : > { %v7773_v54 = vshrl.u32 %v12916_v37, 16  ;;  %v7776_v1 = vshll.u32 %v12916_v37, 16  ;;  %v12917_v17 = vpack.c.bf16 %v7594_v31, %v7594_v31  ;;  %v7559_v0 = vmax.f32 %v7435_v5, 0.0  ;;  %v13872_v5 = vld [vmem:[%s19056_s6 + $0xf8] sm:$0xff]  }
 0x33e   : > { %11484 = vmatpush1.bf16.msra.mxu0 %v13868_v57  ;;  %v7438_v29 = vadd.f32 %v13185_v4, %v13069_v14 }
 0x33f   : > { %11485 = vmatprep.subr.bf16.mxu0 %v19133_v58  ;;  %v7775_v33 = vrot.slane %v7773_v54, 6  ;;  %v7778_v34 = vrot.slane %v7776_v1, 7  ;;  %v7783_v35 = vshrl.u32 %v12917_v17, 16  ;;  %v7786_v12 = vshll.u32 %v12917_v17, 16 }
 0x340   : > { %v7595_v63 = vmul.f32 %v7559_v0, %v19217_v36  ;;  %v7560_v59 = vmax.f32 %v7438_v29, 0.0  ;;  %v17586_v38 = vpop.f32.mrb[52].mxu1 }
 0x341   : > { %11365 = vmatmul.mubr.bf16.gmra.mrb[132].mxu0 %v10706_v27  ;;  %v7785_v21 = vrot.slane %v7783_v35, 6  ;;  %v7788_v61 = vrot.slane %v7786_v12, 7  ;;  %v7267_v60 = vpop.f32.mrb[53].mxu1  ;;  %v7779_v55 = vor.u32 %v7778_v34, %v7775_v33  ;;  %v10728_v33 = vld [vmem:[#allocation2 + $0x200] sm:$0xff]  ;;  %v13186_v27 = vadd.f32 %v17505_v45, %v17586_v38  ;;  %v10735_v38 = vld [vmem:[#allocation2 + $0x238] sm:$0xff] }
 0x342   : > { %11372 = vmatprep.mubr.bf16.mxu0 %v10714_v48  ;;  %11486 = vmatpush1.bf16.msra.mxu0 %v13869_v3  ;;  %v12918_v23 = vpack.c.bf16 %v7595_v63, %v7595_v63  ;;  %v7596_v40 = vmul.f32 %v7560_v59, %v19218_v11  ;;  %v7268_v42 = vpop.f32.mrb[54].mxu1  ;;  %v10720_v3 = vld [vmem:[#allocation2 + $0x1c0] sm:$0xff] }
 0x343   : > { %11487 = vmatprep.subr.bf16.mxu0 %v19133_v58  ;;  %v7270_v43 = vpop.f32.mrb[55].mxu1  ;;  %v7780_v9 = vsel %vm15688_vm10, %v7771_v15, %v7779_v55  ;;  %v7781_v14 = vrot.slane %v7779_v55, 4  ;;  %v7789_v2 = vor.u32 %v7788_v61, %v7785_v21  ;;  %v13187_v61 = vadd.f32 %v17505_v45, %v7268_v42 }
 0x344   : > { %v7793_v44 = vshrl.u32 %v12918_v23, 16  ;;  %v7796_v28 = vshll.u32 %v12918_v23, 16  ;;  %v12919_v41 = vpack.c.bf16 %v7596_v40, %v7596_v40  ;;  %8100 = vrot.lane.b32.xlu1 %v7780_v9, %s14079_s21  ;;  %v10727_v43 = vld [vmem:[#allocation2 + $0x1f8] sm:$0xff]  ;;  %v19219_v9 = vld [vmem:[#allocation22_spill] sm:$0xff] }
 0x345   : > { %v7790_v22 = vsel %vm15688_vm10, %v7781_v14, %v7789_v2  ;;  %v7791_v37 = vrot.slane %v7789_v2, 4 }
 0x346   : > { %11488 = vmatpush1.bf16.msra.mxu0 %v13870_v10  ;;  %v7795_v39 = vrot.slane %v7793_v44, 6  ;;  %v7798_v26 = vrot.slane %v7796_v28, 7  ;;  %v7803_v25 = vshrl.u32 %v12919_v41, 16  ;;  %v7806_v6 = vshll.u32 %v12919_v41, 16  ;;  %8102 = vrot.lane.b32.xlu0 %v7790_v22, %s14079_s21  ;;  %v19220_v44 = vld [vmem:[#allocation20_spill] sm:$0xff] }
 0x347   : > { %11489 = vmatprep.subr.bf16.mxu0 %v19133_v58 }
 0x348   : > { %v7805_v49 = vrot.slane %v7803_v25, 6  ;;  %v7808_v13 = vrot.slane %v7806_v6, 7  ;;  %v7273_v57 = vpop.f32.mrb[56].mxu1  ;;  %v7799_v51 = vor.u32 %v7798_v26, %v7795_v39  ;;  %v19222_v26 = vld [vmem:[#allocation10_spill] sm:$0xff] }
 0x349   : > { %11373 = vmatmul.mubr.bf16.gmra.mrb[136].mxu0 %v10713_v47  ;;  %v7275_v31 = vpop.f32.mrb[57].mxu1  ;;  %v13188_v35 = vadd.f32 %v17505_v45, %v7273_v57 }
 0x34a   : > { %11380 = vmatprep.mubr.bf16.mxu0 %v10721_v52  ;;  %11490 = vmatpush1.bf16.msra.mxu0 %v13871_v50  ;;  %v7800_v4 = vsel %vm15688_vm10, %v7791_v37, %v7799_v51  ;;  %v7276_v32 = vpop.f32.mrb[58].mxu1  ;;  %v7801_v54 = vrot.slane %v7799_v51, 4  ;;  %v17609_v1 = vor.u32 %v7808_v13, %v7805_v49  ;;  %v19221_v50 = vld [vmem:[#allocation11_spill] sm:$0xff] }
 0x34b   : > { %11491 = vmatprep.subr.bf16.mxu0 %v19133_v58  ;;  %8104 = vrot.lane.b32.xlu1 %v7800_v4, %s14079_s21  ;;  %v7278_v17 = vpop.f32.mrb[59].mxu1  ;;  %v13189_v59 = vadd.f32 %v17505_v45, %v7276_v32 }
 0x34c   : > { %v7810_v0 = vsel %vm15688_vm10, %v7801_v54, %v17609_v1 }
 0x34d   : > { %8106 = vrot.lane.b32.xlu0 %v7810_v0, %s14079_s21 }
 0x34e   : > { %11492 = vmatpush1.bf16.msra.mxu0 %v13872_v5 }
 0x34f   : > { %11638 = vmatprep.subr.bf16.mxu0 %v19133_v58 }
 0x350   : > { %v17618_v29 = vpop.f32.mrb[60].mxu1 }
 0x351   : > { %11381 = vmatmul.mubr.bf16.gmra.mrb[140].mxu0 %v10720_v3  ;;  %v7283_v34 = vpop.f32.mrb[61].mxu1 }
 0x352   : > { %11388 = vmatprep.mubr.bf16.mxu0 %v10728_v33  ;;  %v17621_v12 = vpop.f32.mrb[62].mxu1 }
 0x353   : > { %v7286_v36 = vpop.f32.mrb[63].mxu1  ;;  %v13072_v63 = vpop.f32.mrb[80].mxu0 }
 0x354   : > { %v7451_v48 = vadd.f32 %v13188_v35, %v13072_v63  ;;  %v7442_v21 = vpop.f32.mrb[81].mxu0  ;;  %v10734_v35 = vld [vmem:[#allocation2 + $0x230] sm:$0xff] }
 0x355   : > { %v7443_v60 = vadd.f32 %v13186_v27, %v7442_v21  ;;  %v13073_v15 = vpop.f32.mrb[82].mxu0  ;;  %v10742_v63 = vld [vmem:[#allocation2 + $0x270] sm:$0xff] }
 0x356   : > { %v7563_v55 = vmax.f32 %v7451_v48, 0.0  ;;  %v7454_v10 = vadd.f32 %v13189_v59, %v13073_v15  ;;  %v7445_v23 = vpop.f32.mrb[83].mxu0 }
 0x357   : > { %v7561_v11 = vmax.f32 %v7443_v60, 0.0  ;;  %v7446_v40 = vadd.f32 %v13187_v61, %v7445_v23  ;;  %v7811_v61 = vrot.slane %v17609_v1, 4 }
 0x358   : > { %v7599_v14 = vmul.f32 %v7563_v55, %v19219_v9  ;;  %v7564_v2 = vmax.f32 %v7454_v10, 0.0 }
 0x359   : > { %11389 = vmatmul.mubr.bf16.gmra.mrb[144].mxu0 %v10727_v43  ;;  %v7597_v28 = vmul.f32 %v7561_v11, %v19220_v44  ;;  %v7562_v41 = vmax.f32 %v7446_v40, 0.0 }
 0x35a   : > { %11396 = vmatprep.mubr.bf16.mxu0 %v10735_v38  ;;  %v12922_v22 = vpack.c.bf16 %v7599_v14, %v7599_v14  ;;  %v7600_v42 = vmul.f32 %v7564_v2, %v19221_v50  ;;  %v10741_v14 = vld [vmem:[#allocation2 + $0x268] sm:$0xff]  ;;  %v13190_v50 = vadd.f32 %v17505_v45, %v17618_v29  ;;  %v19223_v29 = vld [vmem:[#allocation24_spill] sm:$0xff] }
 0x35b   : > { %v12920_v39 = vpack.c.bf16 %v7597_v28, %v7597_v28  ;;  %v7598_v25 = vmul.f32 %v7562_v41, %v19222_v26  ;;  %v10749_v38 = vld [vmem:[#allocation2 + $0x2a8] sm:$0xff] }
 0x35c   : > { %v7833_v6 = vshrl.u32 %v12922_v22, 16  ;;  %v7836_v47 = vshll.u32 %v12922_v22, 16  ;;  %v12923_v49 = vpack.c.bf16 %v7600_v42, %v7600_v42  ;;  %v7289_v13 = vpop.f32.mrb[64].mxu1 }
 0x35d   : > { %v7813_v57 = vshrl.u32 %v12920_v39, 16  ;;  %v7816_v52 = vshll.u32 %v12920_v39, 16  ;;  %v12921_v37 = vpack.c.bf16 %v7598_v25, %v7598_v25  ;;  %v7291_v51 = vpop.f32.mrb[65].mxu1  ;;  %v13192_v22 = vadd.f32 %v17505_v45, %v7289_v13  ;;  %v10748_v39 = vld [vmem:[#allocation2 + $0x2a0] sm:$0xff] }
 0x35e   : > { %v7835_v31 = vrot.slane %v7833_v6, 6  ;;  %v7838_v5 = vrot.slane %v7836_v47, 7  ;;  %v7843_v4 = vshrl.u32 %v12923_v49, 16  ;;  %v7846_v32 = vshll.u32 %v12923_v49, 16  ;;  %v7292_v54 = vpop.f32.mrb[66].mxu1  ;;  %v10756_v47 = vld [vmem:[#allocation2 + $0x2e0] sm:$0xff] }
 0x35f   : > { %v7815_v17 = vrot.slane %v7813_v57, 6  ;;  %v7818_v0 = vrot.slane %v7816_v52, 7  ;;  %v7823_v3 = vshrl.u32 %v12921_v37, 16  ;;  %v7826_v33 = vshll.u32 %v12921_v37, 16  ;;  %v7294_v34 = vpop.f32.mrb[67].mxu1 }
 0x360   : > { %v7845_v27 = vrot.slane %v7843_v4, 6  ;;  %v7848_v36 = vrot.slane %v7846_v32, 7  ;;  %v7839_v59 = vor.u32 %v7838_v5, %v7835_v31  ;;  %v13193_v26 = vadd.f32 %v17505_v45, %v7292_v54 }
 0x361   : > { %11397 = vmatmul.mubr.bf16.gmra.mrb[148].mxu0 %v10734_v35  ;;  %v7825_v48 = vrot.slane %v7823_v3, 6  ;;  %v7828_v21 = vrot.slane %v7826_v33, 7  ;;  %v7819_v60 = vor.u32 %v7818_v0, %v7815_v17  ;;  %v13191_v49 = vadd.f32 %v17505_v45, %v17621_v12  ;;  %v19224_v17 = vld [vmem:[#allocation23_spill] sm:$0xff]  ;;  %v19225_v33 = vld [vmem:[#allocation14_spill] sm:$0xff] }
 0x362   : > { %11404 = vmatprep.mubr.bf16.mxu0 %v10742_v63  ;;  %v7841_v15 = vrot.slane %v7839_v59, 4  ;;  %v17632_v55 = vor.u32 %v7848_v36, %v7845_v27  ;;  %v19226_v27 = vld [vmem:[#allocation13_spill] sm:$0xff] }
 0x363   : > { %v7820_v10 = vsel %vm15688_vm10, %v7811_v61, %v7819_v60  ;;  %v7821_v23 = vrot.slane %v7819_v60, 4  ;;  %v7829_v11 = vor.u32 %v7828_v21, %v7825_v48  ;;  %v10755_v36 = vld [vmem:[#allocation2 + $0x2d8] sm:$0xff] }
 0x364   : > { %8108 = vrot.lane.b32.xlu1 %v7820_v10, %s14079_s21  ;;  %v7850_v40 = vsel %vm15688_vm10, %v7841_v15, %v17632_v55  ;;  %v10763_v61 = vld [vmem:[#allocation2 + $0x318] sm:$0xff] }
 0x365   : > { %v7830_v43 = vsel %vm15688_vm10, %v7821_v23, %v7829_v11  ;;  %v7831_v9 = vrot.slane %v7829_v11, 4 }
 0x366   : > { %8110 = vrot.lane.b32.xlu0 %v7830_v43, %s14079_s21 }
 0x367   : > { %v7840_v1 = vsel %vm15688_vm10, %v7831_v9, %v7839_v59 }
 0x368   : > { %8112 = vrot.lane.b32.xlu1 %v7840_v1, %s14079_s21  ;;  %v17646_v2 = vpop.f32.mrb[68].mxu1 }
 0x369   : > { %11405 = vmatmul.mubr.bf16.gmra.mrb[152].mxu0 %v10741_v14  ;;  %v7299_v44 = vpop.f32.mrb[69].mxu1 }
 0x36a   : > { %11412 = vmatprep.mubr.bf16.mxu0 %v10749_v38  ;;  %8114 = vrot.lane.b32.xlu0 %v7850_v40, %s14079_s21  ;;  %v17649_v28 = vpop.f32.mrb[70].mxu1 }
 0x36b   : > { %v7302_v41 = vpop.f32.mrb[71].mxu1 }
 0x36f   : > { %v13076_v42 = vpop.f32.mrb[84].mxu0 }
 0x370   : > { %v7467_v25 = vadd.f32 %v13192_v22, %v13076_v42  ;;  %v7458_v6 = vpop.f32.mrb[85].mxu0 }
 0x371   : > { %11413 = vmatmul.mubr.bf16.gmra.mrb[156].mxu0 %v10748_v39  ;;  %v7459_v57 = vadd.f32 %v13190_v50, %v7458_v6  ;;  %v13077_v52 = vpop.f32.mrb[86].mxu0  ;;  %v7851_v6 = vrot.slane %v17632_v55, 4 }
 0x372   : > { %11420 = vmatprep.mubr.bf16.mxu0 %v10756_v47  ;;  %v7567_v37 = vmax.f32 %v7467_v25, 0.0  ;;  %v7470_v51 = vadd.f32 %v13193_v26, %v13077_v52  ;;  %v7461_v13 = vpop.f32.mrb[87].mxu0 }
 0x373   : > { %v7565_v31 = vmax.f32 %v7459_v57, 0.0  ;;  %v7462_v5 = vadd.f32 %v13191_v49, %v7461_v13 }
 0x374   : > { %v7603_v4 = vmul.f32 %v7567_v37, %v19223_v29  ;;  %v7568_v32 = vmax.f32 %v7470_v51, 0.0  ;;  %v10762_v37 = vld [vmem:[#allocation2 + $0x310] sm:$0xff] }
 0x375   : > { %v7601_v54 = vmul.f32 %v7565_v31, %v19224_v17  ;;  %v7566_v0 = vmax.f32 %v7462_v5, 0.0  ;;  %v10770_v31 = vld [vmem:[#allocation2 + $0x350] sm:$0xff] }
 0x376   : > { %v12926_v3 = vpack.c.bf16 %v7603_v4, %v7603_v4  ;;  %v7604_v34 = vmul.f32 %v7568_v32, %v19225_v33  ;;  %v10777_v33 = vld [vmem:[#allocation2 + $0x388] sm:$0xff] }
 0x377   : > { %v12924_v35 = vpack.c.bf16 %v7601_v54, %v7601_v54  ;;  %v7602_v12 = vmul.f32 %v7566_v0, %v19226_v27 }
 0x378   : > { %v7873_v63 = vshrl.u32 %v12926_v3, 16  ;;  %v7876_v59 = vshll.u32 %v12926_v3, 16  ;;  %v12927_v48 = vpack.c.bf16 %v7604_v34, %v7604_v34  ;;  %v10769_v3 = vld [vmem:[#allocation2 + $0x348] sm:$0xff] }
 0x379   : > { %v7305_v21 = vpop.f32.mrb[72].mxu1  ;;  %11421 = vmatmul.mubr.bf16.gmra.mrb[160].mxu0 %v10755_v36  ;;  %v7853_v60 = vshrl.u32 %v12924_v35, 16  ;;  %v7856_v15 = vshll.u32 %v12924_v35, 16  ;;  %v12925_v10 = vpack.c.bf16 %v7602_v12, %v7602_v12  ;;  %v13194_v35 = vadd.f32 %v17505_v45, %v17646_v2  ;;  %v10784_v2 = vld [vmem:[#allocation2 + $0x3c0] sm:$0xff] }
 0x37a   : > { %v7307_v23 = vpop.f32.mrb[73].mxu1  ;;  %11428 = vmatprep.mubr.bf16.mxu0 %v10763_v61  ;;  %v7875_v11 = vrot.slane %v7873_v63, 6  ;;  %v7878_v40 = vrot.slane %v7876_v59, 7  ;;  %v7883_v43 = vshrl.u32 %v12927_v48, 16  ;;  %v7886_v9 = vshll.u32 %v12927_v48, 16 }
 0x37b   : > { %v7308_v1 = vpop.f32.mrb[74].mxu1  ;;  %v7855_v14 = vrot.slane %v7853_v60, 6  ;;  %v7858_v38 = vrot.slane %v7856_v15, 7  ;;  %v7863_v44 = vshrl.u32 %v12925_v10, 16  ;;  %v7866_v41 = vshll.u32 %v12925_v10, 16 }
 0x37c   : > { %v7310_v22 = vpop.f32.mrb[75].mxu1  ;;  %v7885_v50 = vrot.slane %v7883_v43, 6  ;;  %v7888_v42 = vrot.slane %v7886_v9, 7  ;;  %v7879_v39 = vor.u32 %v7878_v40, %v7875_v11  ;;  %v13196_v34 = vadd.f32 %v17505_v45, %v7305_v21  ;;  %v10776_v40 = vld [vmem:[#allocation2 + $0x380] sm:$0xff] }
 0x37d   : > { %v7865_v26 = vrot.slane %v7863_v44, 6  ;;  %v7868_v25 = vrot.slane %v7866_v41, 7  ;;  %v7859_v47 = vor.u32 %v7858_v38, %v7855_v14  ;;  %v13197_v12 = vadd.f32 %v17505_v45, %v7308_v1  ;;  %v19227_v21 = vld [vmem:[#allocation26_spill] sm:$0xff]  ;;  %v19228_v14 = vld [vmem:[#allocation25_spill] sm:$0xff] }
 0x37e   : > { %v7881_v49 = vrot.slane %v7879_v39, 4  ;;  %v17662_v57 = vor.u32 %v7888_v42, %v7885_v50  ;;  %v13195_v59 = vadd.f32 %v17505_v45, %v17649_v28  ;;  %v19229_v41 = vld [vmem:[#allocation17_spill] sm:$0xff]  ;;  %v19230_v50 = vld [vmem:[#allocation15_spill] sm:$0xff] }
 0x37f   : > { %v7860_v52 = vsel %vm15688_vm10, %v7851_v6, %v7859_v47  ;;  %v7861_v51 = vrot.slane %v7859_v47, 4  ;;  %v7869_v13 = vor.u32 %v7868_v25, %v7865_v26 }
 0x380   : > { %8116 = vrot.lane.b32.xlu1 %v7860_v52, %s14079_s21  ;;  %v7890_v5 = vsel %vm15688_vm10, %v7881_v49, %v17662_v57 }
 0x381   : > { %11429 = vmatmul.mubr.bf16.gmra.mrb[164].mxu0 %v10762_v37  ;;  %v7870_v55 = vsel %vm15688_vm10, %v7861_v51, %v7869_v13  ;;  %v7871_v29 = vrot.slane %v7869_v13, 4  ;;  %v8205_v13 = vld [vmem:[#allocation3 + $0x8] sm:$0xe] }
 0x382   : > { %11436 = vmatprep.mubr.bf16.mxu0 %v10770_v31  ;;  %8118 = vrot.lane.b32.xlu0 %v7870_v55, %s14079_s21 }
 0x383   : > { %v7880_v4 = vsel %vm15688_vm10, %v7871_v29, %v7879_v39 }
 0x384   : > { %8120 = vrot.lane.b32.xlu1 %v7880_v4, %s14079_s21 }
 0x385   : > { %v17676_v32 = vpop.f32.mrb[76].mxu1 }
 0x386   : > { %v7315_v17 = vpop.f32.mrb[77].mxu1  ;;  %8122 = vrot.lane.b32.xlu0 %v7890_v5, %s14079_s21 }
 0x387   : > { %v17679_v54 = vpop.f32.mrb[78].mxu1 }
 0x388   : > { %v7318_v0 = vpop.f32.mrb[79].mxu1 }
 0x389   : > { %11437 = vmatmul.mubr.bf16.gmra.mrb[168].mxu0 %v10769_v3 }
 0x38a   : > { %11444 = vmatprep.mubr.bf16.mxu0 %v10777_v33 }
 0x38c   : > { %v13080_v27 = vpop.f32.mrb[88].mxu0 }
 0x38d   : > { %v7483_v36 = vadd.f32 %v13196_v34, %v13080_v27  ;;  %v7474_v63 = vpop.f32.mrb[89].mxu0  ;;  %v10783_v27 = vld [vmem:[#allocation2 + $0x3b8] sm:$0xff] }
 0x38e   : > { %v7475_v48 = vadd.f32 %v13194_v35, %v7474_v63  ;;  %v13081_v61 = vpop.f32.mrb[90].mxu0 }
 0x38f   : > { %v7571_v60 = vmax.f32 %v7483_v36, 0.0  ;;  %v7486_v15 = vadd.f32 %v13197_v12, %v13081_v61  ;;  %v7477_v10 = vpop.f32.mrb[91].mxu0  ;;  %v7891_v61 = vrot.slane %v17662_v57, 4 }
 0x390   : > { %v7569_v23 = vmax.f32 %v7475_v48, 0.0  ;;  %v7478_v11 = vadd.f32 %v13195_v59, %v7477_v10  ;;  %v10667_v48 = vld [vmem:[#allocation2 + $0x18] sm:$0xff] }
 0x391   : > { %v7607_v43 = vmul.f32 %v7571_v60, %v19227_v21  ;;  %v7572_v9 = vmax.f32 %v7486_v15, 0.0  ;;  %11445 = vmatmul.mubr.bf16.gmra.mrb[172].mxu0 %v10776_v40  ;;  %v13892_v60 = vld [vmem:[%s19056_s6 + $0x100] sm:$0xff]  }
 0x392   : > { %v7605_v1 = vmul.f32 %v7569_v23, %v19228_v14  ;;  %v7570_v38 = vmax.f32 %v7478_v11, 0.0  ;;  %11452 = vmatprep.mubr.bf16.mxu0 %v10784_v2  ;;  %13162 = vmatpush1.bf16.msra.mxu1 %v13892_v60 }
 0x393   : > { %v12930_v44 = vpack.c.bf16 %v7607_v43, %v7607_v43  ;;  %v7608_v28 = vmul.f32 %v7572_v9, %v19229_v41  ;;  %13147 = vmatprep.subr.bf16.mxu1 %v19133_v58 }
 0x394   : > { %v12928_v22 = vpack.c.bf16 %v7605_v1, %v7605_v1  ;;  %v7606_v42 = vmul.f32 %v7570_v38, %v19230_v50  ;;  %v10674_v50 = vld [vmem:[#allocation2 + $0x50] sm:$0xff] }
 0x395   : > { %v7913_v39 = vshrl.u32 %v12930_v44, 16  ;;  %v7916_v26 = vshll.u32 %v12930_v44, 16  ;;  %v12931_v25 = vpack.c.bf16 %v7608_v28, %v7608_v28  ;;  %v17691_v6 = vpop.f32.mrb[80].mxu1  ;;  %v8093_v31 = vpop.permute.xlu1 %8092  ;;  %v10666_v28 = vld [vmem:[#allocation2 + $0x10] sm:$0xff] }
 0x396   : > { %v7893_v47 = vshrl.u32 %v12928_v22, 16  ;;  %v7896_v49 = vshll.u32 %v12928_v22, 16  ;;  %v12929_v52 = vpack.c.bf16 %v7606_v42, %v7606_v42  ;;  %v7323_v37 = vpop.f32.mrb[81].mxu1  ;;  %v8206_v63 = vsel %vm17694_vm13, %v8093_v31, %v8205_v13  ;;  %v10681_v31 = vld [vmem:[#allocation2 + $0x88] sm:$0xff] }
 0x397   : > { %v7915_v5 = vrot.slane %v7913_v39, 6  ;;  %v7918_v55 = vrot.slane %v7916_v26, 7  ;;  %v7923_v29 = vshrl.u32 %v12931_v25, 16  ;;  %v7926_v4 = vshll.u32 %v12931_v25, 16  ;;  %v7324_v17 = vpop.f32.mrb[82].mxu1  ;;  %v8095_v59 = vpop.permute.xlu0 %8094 }
 0x398   : > { %v7895_v0 = vrot.slane %v7893_v47, 6  ;;  %v7898_v3 = vrot.slane %v7896_v49, 7  ;;  %v7903_v33 = vshrl.u32 %v12929_v52, 16  ;;  %v7906_v34 = vshll.u32 %v12929_v52, 16  ;;  %v7326_v35 = vpop.f32.mrb[83].mxu1  ;;  %v10673_v52 = vld [vmem:[#allocation2 + $0x48] sm:$0xff] }
 0x399   : > { %v7925_v12 = vrot.slane %v7923_v29, 6  ;;  %v7928_v36 = vrot.slane %v7926_v4, 7  ;;  %11453 = vmatmul.mubr.bf16.gmra.mrb[176].mxu0 %v10783_v27  ;;  %8207 = vst [vmem:[#allocation3 + $0x8] sm:$0xe] %v8206_v63  ;;  %8209 = vst.msk [vmem:[#allocation3 + $0xc] sm:$0xf] %vm8208_vm14, %v8095_v59  ;;  %v7919_v11 = vor.u32 %v7918_v55, %v7915_v5  ;;  %v8097_v40 = vpop.permute.xlu1 %8096  ;;  %v13200_v25 = vadd.f32 %v17505_v45, %v17691_v6 }
 0x39a   : > { %v7905_v15 = vrot.slane %v7903_v33, 6  ;;  %v7908_v10 = vrot.slane %v7906_v34, 7  ;;  %11493 = vmatprep.mubr.bf16.mxu0 %v10667_v48  ;;  %v7899_v23 = vor.u32 %v7898_v3, %v7895_v0  ;;  %8210 = vst.msk [vmem:[#allocation3 + $0x10] sm:$0xf] %vm8208_vm14, %v8097_v40  ;;  %v13198_v47 = vadd.f32 %v17505_v45, %v17676_v32  ;;  %v13897_v5 = vld [vmem:[%s19056_s6 + $0x108] sm:$0xff]   ;;  %v19234_v34 = vld [vmem:[#allocation28_spill] sm:$0xff] }
 0x39b   : > { %v17705_v21 = vor.u32 %v7928_v36, %v7925_v12  ;;  %v7921_v2 = vrot.slane %v7919_v11, 4  ;;  %v8099_v14 = vpop.permute.xlu0 %8098  ;;  %v13201_v37 = vadd.f32 %v17505_v45, %v7324_v17  ;;  %v13199_v55 = vadd.f32 %v17505_v45, %v17679_v54  ;;  %13163 = vmatpush1.bf16.msra.mxu1 %v13897_v5  ;;  %v13903_v17 = vld [vmem:[%s19056_s6 + $0x110] sm:$0xff]   ;;  %v10680_v36 = vld [vmem:[#allocation2 + $0x80] sm:$0xff] }
 0x39c   : > { %v7900_v57 = vsel %vm15688_vm10, %v7891_v61, %v7899_v23  ;;  %v7901_v43 = vrot.slane %v7899_v23, 4  ;;  %v7909_v9 = vor.u32 %v7908_v10, %v7905_v15  ;;  %8211 = vst.msk [vmem:[#allocation3 + $0x14] sm:$0xf] %vm8208_vm14, %v8099_v14  ;;  %13148 = vmatprep.subr.bf16.mxu1 %v19133_v58  ;;  %v19235_v35 = vld [vmem:[#allocation27_spill] sm:$0xff] }
 0x39d   : > { %8124 = vrot.lane.b32.xlu1 %v7900_v57, %s14079_s21  ;;  %v7930_v44 = vsel %vm15688_vm10, %v7921_v2, %v17705_v21  ;;  %v19236_v59 = vld [vmem:[#allocation19_spill] sm:$0xff]  ;;  %v10688_v57 = vld [vmem:[#allocation2 + $0xc0] sm:$0xff] }
 0x39e   : > { %v7910_v1 = vsel %vm15688_vm10, %v7901_v43, %v7909_v9  ;;  %v7911_v38 = vrot.slane %v7909_v9, 4 }
 0x39f   : > { %8126 = vrot.lane.b32.xlu0 %v7910_v1, %s14079_s21  ;;  %13164 = vmatpush1.bf16.msra.mxu1 %v13903_v17  ;;  %v13908_v1 = vld [vmem:[%s19056_s6 + $0x118] sm:$0xff]  }
 0x3a0   : > { %v7920_v41 = vsel %vm15688_vm10, %v7911_v38, %v7919_v11  ;;  %13149 = vmatprep.subr.bf16.mxu1 %v19133_v58 }
 0x3a1   : > { %8128 = vrot.lane.b32.xlu1 %v7920_v41, %s14079_s21  ;;  %v17722_v22 = vpop.f32.mrb[84].mxu1  ;;  %11494 = vmatmul.mubr.bf16.vlgmr.msra.gmra.mrb[108].mxu0 %v10666_v28 }
 0x3a2   : > { %v7331_v42 = vpop.f32.mrb[85].mxu1  ;;  %11501 = vmatprep.mubr.bf16.mxu0 %v10674_v50  ;;  %11639 = vmatpush1.bf16.msra.mxu0 %v13892_v60  ;;  %v19237_v60 = vld [vmem:[#allocation18_spill] sm:$0xff] }
 0x3a3   : > { %8130 = vrot.lane.b32.xlu0 %v7930_v44, %s14079_s21  ;;  %v17725_v39 = vpop.f32.mrb[86].mxu1  ;;  %11640 = vmatprep.subr.bf16.mxu0 %v19133_v58 }
 0x3a4   : > { %v7334_v26 = vpop.f32.mrb[87].mxu1  ;;  %13165 = vmatpush1.bf16.msra.mxu1 %v13908_v1 }
 0x3a5   : > { %13150 = vmatprep.subr.bf16.mxu1 %v19133_v58 }
 0x3a6   : > { %11641 = vmatpush1.bf16.msra.mxu0 %v13897_v5  ;;  %v7931_v5 = vrot.slane %v17705_v21, 4 }
 0x3a7   : > { %11642 = vmatprep.subr.bf16.mxu0 %v19133_v58 }
 0x3a8   : > { %v13084_v49 = vpop.f32.mrb[92].mxu0 }
 0x3a9   : > { %v7499_v51 = vadd.f32 %v13200_v25, %v13084_v49  ;;  %v7490_v13 = vpop.f32.mrb[93].mxu0  ;;  %11502 = vmatmul.mubr.bf16.gmra.mrb[112].mxu0 %v10673_v52 }
 0x3aa   : > { %v7491_v29 = vadd.f32 %v13198_v47, %v7490_v13  ;;  %v13085_v6 = vpop.f32.mrb[94].mxu0  ;;  %11509 = vmatprep.mubr.bf16.mxu0 %v10681_v31  ;;  %11643 = vmatpush1.bf16.msra.mxu0 %v13903_v17 }
 0x3ab   : > { %v7575_v4 = vmax.f32 %v7499_v51, 0.0  ;;  %v7502_v32 = vadd.f32 %v13201_v37, %v13085_v6  ;;  %v7493_v0 = vpop.f32.mrb[95].mxu0  ;;  %11644 = vmatprep.subr.bf16.mxu0 %v19133_v58 }
 0x3ac   : > { %v7573_v3 = vmax.f32 %v7491_v29, 0.0  ;;  %v7494_v33 = vadd.f32 %v13199_v55, %v7493_v0  ;;  %v10687_v0 = vld [vmem:[#allocation2 + $0xb8] sm:$0xff] }
 0x3ad   : > { %v7611_v45 = vmul.f32 %v7575_v4, %v19234_v34  ;;  %v7576_v54 = vmax.f32 %v7502_v32, 0.0  ;;  %v10695_v34 = vld [vmem:[#allocation2 + $0xf8] sm:$0xff] }
 0x3ae   : > { %v7609_v27 = vmul.f32 %v7573_v3, %v19235_v35  ;;  %v7574_v12 = vmax.f32 %v7494_v33, 0.0  ;;  %11645 = vmatpush1.bf16.msra.mxu0 %v13908_v1 }
 0x3af   : > { %v12934_v63 = vpack.c.bf16 %v7611_v45, %v7611_v45  ;;  %v7612_v48 = vmul.f32 %v7576_v54, %v19236_v59  ;;  %11646 = vmatprep.subr.bf16.mxu0 %v19133_v58 }
 0x3b0   : > { %v12932_v61 = vpack.c.bf16 %v7609_v27, %v7609_v27  ;;  %v7610_v15 = vmul.f32 %v7574_v12, %v19237_v60  ;;  %v13914_v27 = vld [vmem:[%s19056_s6 + $0x120] sm:$0xff]  }
 0x3b1   : > { %v7953_v10 = vshrl.u32 %v12934_v63, 16  ;;  %v7956_v23 = vshll.u32 %v12934_v63, 16  ;;  %v12935_v11 = vpack.c.bf16 %v7612_v48, %v7612_v48  ;;  %v7337_v40 = vpop.f32.mrb[88].mxu1  ;;  %11510 = vmatmul.mubr.bf16.gmra.mrb[116].mxu0 %v10680_v36  ;;  %13166 = vmatpush1.bf16.msra.mxu1 %v13914_v27  ;;  %v17784_v48 = vld [vmem:[%s19055_s5] ss:$0 sm:$0xff] }
 0x3b2   : > { %v7933_v43 = vshrl.u32 %v12932_v61, 16  ;;  %v7936_v9 = vshll.u32 %v12932_v61, 16  ;;  %v12933_v2 = vpack.c.bf16 %v7610_v15, %v7610_v15  ;;  %v7339_v14 = vpop.f32.mrb[89].mxu1  ;;  %11517 = vmatprep.mubr.bf16.mxu0 %v10688_v57  ;;  %11647 = vmatpush1.bf16.msra.mxu0 %v13914_v27  ;;  %v13204_v61 = vadd.f32 %v17784_v48, %v7337_v40  ;;  %v10702_v57 = vld [vmem:[#allocation2 + $0x130] sm:$0xff] }
 0x3b3   : > { %v7955_v38 = vrot.slane %v7953_v10, 6  ;;  %v7958_v44 = vrot.slane %v7956_v23, 7  ;;  %v7963_v41 = vshrl.u32 %v12935_v11, 16  ;;  %v7966_v28 = vshll.u32 %v12935_v11, 16  ;;  %v7340_v50 = vpop.f32.mrb[90].mxu1  ;;  %13151 = vmatprep.subr.bf16.mxu1 %v19133_v58  ;;  %v10694_v10 = vld [vmem:[#allocation2 + $0xf0] sm:$0xff]  ;;  %11648 = vmatprep.subr.bf16.mxu0 %v19133_v58 }
 0x3b4   : > { %v7935_v42 = vrot.slane %v7933_v43, 6  ;;  %v7938_v26 = vrot.slane %v7936_v9, 7  ;;  %v7943_v25 = vshrl.u32 %v12933_v2, 16  ;;  %v7946_v47 = vshll.u32 %v12933_v2, 16  ;;  %v7342_v49 = vpop.f32.mrb[91].mxu1 }
 0x3b5   : > { %v7965_v52 = vrot.slane %v7963_v41, 6  ;;  %v7968_v37 = vrot.slane %v7966_v28, 7  ;;  %v7959_v51 = vor.u32 %v7958_v44, %v7955_v38  ;;  %v13202_v23 = vadd.f32 %v17784_v48, %v17722_v22 }
 0x3b6   : > { %v7945_v13 = vrot.slane %v7943_v25, 6  ;;  %v7948_v31 = vrot.slane %v7946_v47, 7  ;;  %v7939_v55 = vor.u32 %v7938_v26, %v7935_v42  ;;  %v8101_v29 = vpop.permute.xlu1 %8100  ;;  %v13205_v43 = vadd.f32 %v17784_v48, %v7340_v50 }
 0x3b7   : > { %v7961_v6 = vrot.slane %v7959_v51, 4  ;;  %v17755_v4 = vor.u32 %v7968_v37, %v7965_v52  ;;  %8212 = vst.msk [vmem:[#allocation3 + $0x18] sm:$0xf] %vm8208_vm14, %v8101_v29  ;;  %v13203_v40 = vadd.f32 %v17784_v48, %v17725_v39  ;;  %v10701_v52 = vld [vmem:[#allocation2 + $0x128] sm:$0xff] }
 0x3b8   : > { %v7940_v32 = vsel %vm15688_vm10, %v7931_v5, %v7939_v55  ;;  %v7941_v17 = vrot.slane %v7939_v55, 4  ;;  %v7949_v3 = vor.u32 %v7948_v31, %v7945_v13  ;;  %v8103_v33 = vpop.permute.xlu0 %8102  ;;  %v10709_v31 = vld [vmem:[#allocation2 + $0x168] sm:$0xff] }
 0x3b9   : > { %8132 = vrot.lane.b32.xlu1 %v7940_v32, %s14079_s21  ;;  %11518 = vmatmul.mubr.bf16.gmra.mrb[120].mxu0 %v10687_v0  ;;  %v7970_v21 = vsel %vm15688_vm10, %v7961_v6, %v17755_v4  ;;  %8213 = vst.msk [vmem:[#allocation3 + $0x1c] sm:$0xf] %vm8208_vm14, %v8103_v33 }
 0x3ba   : > { %11525 = vmatprep.mubr.bf16.mxu0 %v10695_v34  ;;  %v7950_v45 = vsel %vm15688_vm10, %v7941_v17, %v7949_v3  ;;  %v7951_v54 = vrot.slane %v7949_v3, 4 }
 0x3bb   : > { %8134 = vrot.lane.b32.xlu0 %v7950_v45, %s14079_s21 }
 0x3bc   : > { %v7960_v35 = vsel %vm15688_vm10, %v7951_v54, %v7959_v51  ;;  %v19238_v51 = vld [vmem:[#allocation21_spill] sm:$0xff] }
 0x3bd   : > { %8136 = vrot.lane.b32.xlu1 %v7960_v35, %s14079_s21  ;;  %v17774_v12 = vpop.f32.mrb[92].mxu1  ;;  %v8105_v36 = vpop.permute.xlu1 %8104 }
 0x3be   : > { %v7347_v63 = vpop.f32.mrb[93].mxu1  ;;  %8214 = vst.msk [vmem:[#allocation3 + $0x20] sm:$0xf] %vm8208_vm14, %v8105_v36 }
 0x3bf   : > { %8138 = vrot.lane.b32.xlu0 %v7970_v21, %s14079_s21  ;;  %v17778_v59 = vpop.f32.mrb[94].mxu1  ;;  %v8107_v60 = vpop.permute.xlu0 %8106 }
 0x3c0   : > { %v7350_v15 = vpop.f32.mrb[95].mxu1  ;;  %8215 = vst.msk [vmem:[#allocation3 + $0x24] sm:$0xf] %vm8208_vm14, %v8107_v60  ;;  %v13088_v11 = vpop.f32.mrb[96].mxu0  ;;  %v10708_v60 = vld [vmem:[#allocation2 + $0x160] sm:$0xff] }
 0x3c1   : > { %11526 = vmatmul.mubr.bf16.gmra.mrb[124].mxu0 %v10694_v10  ;;  %v7515_v9 = vadd.f32 %v13204_v61, %v13088_v11  ;;  %v7506_v2 = vpop.f32.mrb[97].mxu0  ;;  %v7971_v61 = vrot.slane %v17755_v4, 4  ;;  %v13919_v15 = vld [vmem:[%s19056_s6 + $0x128] sm:$0xff]   ;;  %v13925_v4 = vld [vmem:[%s19056_s6 + $0x130] sm:$0xff]  }
 0x3c2   : > { %11533 = vmatprep.mubr.bf16.mxu0 %v10702_v57  ;;  %v7507_v14 = vadd.f32 %v13202_v23, %v7506_v2  ;;  %v13089_v1 = vpop.f32.mrb[98].mxu0  ;;  %13167 = vmatpush1.bf16.msra.mxu1 %v13919_v15 }
 0x3c3   : > { %v7579_v38 = vmax.f32 %v7515_v9, 0.0  ;;  %v7518_v44 = vadd.f32 %v13205_v43, %v13089_v1  ;;  %v7509_v41 = vpop.f32.mrb[99].mxu0  ;;  %v13206_v43 = vadd.f32 %v17784_v48, %v17774_v12  ;;  %11649 = vmatpush1.bf16.msra.mxu0 %v13919_v15  ;;  %13152 = vmatprep.subr.bf16.mxu1 %v19133_v58 }
 0x3c4   : > { %v7577_v28 = vmax.f32 %v7507_v14, 0.0  ;;  %v7510_v22 = vadd.f32 %v13203_v40, %v7509_v41  ;;  %v10716_v40 = vld [vmem:[#allocation2 + $0x1a0] sm:$0xff]  ;;  %11650 = vmatprep.subr.bf16.mxu0 %v19133_v58 }
 0x3c5   : > { %v7615_v42 = vmul.f32 %v7579_v38, %v16176_v19  ;;  %v7580_v26 = vmax.f32 %v7518_v44, 0.0 }
 0x3c6   : > { %v7613_v25 = vmul.f32 %v7577_v28, %v16155_v20  ;;  %v7578_v47 = vmax.f32 %v7510_v22, 0.0  ;;  %v13207_v22 = vadd.f32 %v17784_v48, %v17778_v59  ;;  %13168 = vmatpush1.bf16.msra.mxu1 %v13925_v4 }
 0x3c7   : > { %v12938_v50 = vpack.c.bf16 %v7615_v42, %v7615_v42  ;;  %v7616_v49 = vmul.f32 %v7580_v26, %v15873_v16  ;;  %13153 = vmatprep.subr.bf16.mxu1 %v19133_v58  ;;  %11651 = vmatpush1.bf16.msra.mxu0 %v13925_v4 }
 0x3c8   : > { %v12936_v37 = vpack.c.bf16 %v7613_v25, %v7613_v25  ;;  %v7614_v39 = vmul.f32 %v7578_v47, %v19238_v51  ;;  %11652 = vmatprep.subr.bf16.mxu0 %v19133_v58 }
 0x3c9   : > { %v7353_v13 = vpop.f32.mrb[96].mxu1  ;;  %11534 = vmatmul.mubr.bf16.gmra.mrb[128].mxu0 %v10701_v52  ;;  %v7993_v5 = vshrl.u32 %v12938_v50, 16  ;;  %v7996_v55 = vshll.u32 %v12938_v50, 16  ;;  %v12939_v29 = vpack.c.bf16 %v7616_v49, %v7616_v49 }
 0x3ca   : > { %v7355_v6 = vpop.f32.mrb[97].mxu1  ;;  %11541 = vmatprep.mubr.bf16.mxu0 %v10709_v31  ;;  %v7973_v19 = vshrl.u32 %v12936_v37, 16  ;;  %v7976_v32 = vshll.u32 %v12936_v37, 16  ;;  %v12937_v0 = vpack.c.bf16 %v7614_v39, %v7614_v39  ;;  %v13208_v11 = vadd.f32 %v17784_v48, %v7353_v13 }
 0x3cb   : > { %v7356_v20 = vpop.f32.mrb[98].mxu1  ;;  %v7995_v17 = vrot.slane %v7993_v5, 6  ;;  %v7998_v3 = vrot.slane %v7996_v55, 7  ;;  %v8003_v33 = vshrl.u32 %v12939_v29, 16  ;;  %v8006_v16 = vshll.u32 %v12939_v29, 16 }
 0x3cc   : > { %v7358_v34 = vpop.f32.mrb[99].mxu1  ;;  %v7975_v21 = vrot.slane %v7973_v19, 6  ;;  %v7978_v45 = vrot.slane %v7976_v32, 7  ;;  %v7983_v54 = vshrl.u32 %v12937_v0, 16  ;;  %v7986_v35 = vshll.u32 %v12937_v0, 16  ;;  %v10715_v0 = vld [vmem:[#allocation2 + $0x198] sm:$0xff] }
 0x3cd   : > { %v7999_v27 = vor.u32 %v7998_v3, %v7995_v17  ;;  %v8005_v36 = vrot.slane %v8003_v33, 6  ;;  %v8008_v63 = vrot.slane %v8006_v16, 7  ;;  %v13209_v9 = vadd.f32 %v17784_v48, %v7356_v20  ;;  %v10723_v16 = vld [vmem:[#allocation2 + $0x1d8] sm:$0xff] }
 0x3ce   : > { %v7985_v10 = vrot.slane %v7983_v54, 6  ;;  %v7988_v23 = vrot.slane %v7986_v35, 7  ;;  %v7979_v57 = vor.u32 %v7978_v45, %v7975_v21 }
 0x3cf   : > { %v8001_v14 = vrot.slane %v7999_v27, 4  ;;  %v17806_v1 = vor.u32 %v8008_v63, %v8005_v36 }
 0x3d0   : > { %v13092_v2 = vpop.f32.mrb[100].mxu0  ;;  %v7980_v44 = vsel %vm15688_vm10, %v7971_v61, %v7979_v57  ;;  %v7981_v12 = vrot.slane %v7979_v57, 4  ;;  %v7989_v28 = vor.u32 %v7988_v23, %v7985_v10 }
 0x3d1   : > { %v7531_v38 = vadd.f32 %v13208_v11, %v13092_v2  ;;  %v7522_v41 = vpop.f32.mrb[101].mxu0  ;;  %11542 = vmatmul.mubr.bf16.gmra.mrb[132].mxu0 %v10708_v60  ;;  %8140 = vrot.lane.b32.xlu0 %v7980_v44, %s14079_s21  ;;  %v8010_v25 = vsel %vm15688_vm10, %v8001_v14, %v17806_v1  ;;  %v8011_v45 = vrot.slane %v17806_v1, 4 }
 0x3d2   : > { %v7523_v42 = vadd.f32 %v13206_v43, %v7522_v41  ;;  %v13093_v26 = vpop.f32.mrb[102].mxu0  ;;  %11549 = vmatprep.mubr.bf16.mxu0 %v10716_v40  ;;  %v7990_v49 = vsel %vm15688_vm10, %v7981_v12, %v7989_v28  ;;  %v7991_v37 = vrot.slane %v7989_v28, 4 }
 0x3d3   : > { %v7583_v47 = vmax.f32 %v7531_v38, 0.0  ;;  %v7534_v50 = vadd.f32 %v13209_v9, %v13093_v26  ;;  %v7525_v52 = vpop.f32.mrb[103].mxu0  ;;  %8142 = vrot.lane.b32.xlu1 %v7990_v49, %s14079_s21  ;;  %v10722_v49 = vld [vmem:[#allocation2 + $0x1d0] sm:$0xff] }
 0x3d4   : > { %v7581_v51 = vmax.f32 %v7523_v42, 0.0  ;;  %v7526_v59 = vadd.f32 %v13207_v22, %v7525_v52  ;;  %v8000_v31 = vsel %vm15688_vm10, %v7991_v37, %v7999_v27 }
 0x3d5   : > { %v7619_v39 = vmul.f32 %v7583_v47, %v16399_v62  ;;  %v7584_v13 = vmax.f32 %v7534_v50, 0.0  ;;  %8146 = vrot.lane.b32.xlu0 %v8010_v25, %s14079_s21 }
 0x3d6   : > { %v7617_v5 = vmul.f32 %v7581_v51, %v16216_v56  ;;  %v7582_v55 = vmax.f32 %v7526_v59, 0.0  ;;  %v8109_v19 = vpop.permute.xlu1 %8108  ;;  %v13930_v56 = vld [vmem:[%s19056_s6 + $0x138] sm:$0xff]   ;;  %v10730_v59 = vld [vmem:[#allocation2 + $0x210] sm:$0xff] }
 0x3d7   : > { %v12942_v29 = vpack.c.bf16 %v7619_v39, %v7619_v39  ;;  %v7620_v6 = vmul.f32 %v7584_v13, %v16296_v46  ;;  %8144 = vrot.lane.b32.xlu1 %v8000_v31, %s14079_s21  ;;  %8216 = vst.msk [vmem:[#allocation3 + $0x28] sm:$0xf] %vm8208_vm14, %v8109_v19  ;;  %13169 = vmatpush1.bf16.msra.mxu1 %v13930_v56 }
 0x3d8   : > { %v12940_v32 = vpack.c.bf16 %v7617_v5, %v7617_v5  ;;  %v7618_v62 = vmul.f32 %v7582_v55, %v16252_v24  ;;  %v8111_v33 = vpop.permute.xlu0 %8110  ;;  %13154 = vmatprep.subr.bf16.mxu1 %v19133_v58  ;;  %11653 = vmatpush1.bf16.msra.mxu0 %v13930_v56 }
 0x3d9   : > { %v8033_v20 = vshrl.u32 %v12942_v29, 16  ;;  %v8036_v17 = vshll.u32 %v12942_v29, 16  ;;  %v12943_v3 = vpack.c.bf16 %v7620_v6, %v7620_v6  ;;  %11550 = vmatmul.mubr.bf16.gmra.mrb[136].mxu0 %v10715_v0  ;;  %8217 = vst.msk [vmem:[#allocation3 + $0x2c] sm:$0xf] %vm8208_vm14, %v8111_v33  ;;  %v7361_v24 = vpop.f32.mrb[100].mxu1  ;;  %11654 = vmatprep.subr.bf16.mxu0 %v19133_v58 }
 0x3da   : > { %v8013_v46 = vshrl.u32 %v12940_v32, 16  ;;  %v8016_v34 = vshll.u32 %v12940_v32, 16  ;;  %v12941_v21 = vpack.c.bf16 %v7618_v62, %v7618_v62  ;;  %11557 = vmatprep.mubr.bf16.mxu0 %v10723_v16  ;;  %v8113_v63 = vpop.permute.xlu1 %8112  ;;  %v7363_v61 = vpop.f32.mrb[101].mxu1  ;;  %v13210_v40 = vadd.f32 %v17784_v48, %v7361_v24 }
 0x3db   : > { %v8035_v54 = vrot.slane %v8033_v20, 6  ;;  %v8038_v35 = vrot.slane %v8036_v17, 7  ;;  %v8043_v27 = vshrl.u32 %v12943_v3, 16  ;;  %v8046_v36 = vshll.u32 %v12943_v3, 16  ;;  %8218 = vst.msk [vmem:[#allocation3 + $0x30] sm:$0xf] %vm8208_vm14, %v8113_v63 }
 0x3dc   : > { %v8015_v60 = vrot.slane %v8013_v46, 6  ;;  %v8018_v15 = vrot.slane %v8016_v34, 7  ;;  %v8023_v10 = vshrl.u32 %v12941_v21, 16  ;;  %v8026_v23 = vshll.u32 %v12941_v21, 16  ;;  %v13096_v11 = vpop.f32.mrb[104].mxu0  ;;  %v7364_v57 = vpop.f32.mrb[102].mxu1 }
 0x3dd   : > { %v8039_v43 = vor.u32 %v8038_v35, %v8035_v54  ;;  %v8045_v9 = vrot.slane %v8043_v27, 6  ;;  %v8048_v2 = vrot.slane %v8046_v36, 7  ;;  %v8115_v14 = vpop.permute.xlu0 %8114  ;;  %v7538_v1 = vpop.f32.mrb[105].mxu0  ;;  %v13211_v44 = vadd.f32 %v17784_v48, %v7364_v57  ;;  %v10729_v3 = vld [vmem:[#allocation2 + $0x208] sm:$0xff]  ;;  %v13936_v61 = vld [vmem:[%s19056_s6 + $0x140] sm:$0xff]  }
 0x3de   : > { %v8025_v4 = vrot.slane %v8023_v10, 6  ;;  %v8028_v38 = vrot.slane %v8026_v23, 7  ;;  %8219 = vst.msk [vmem:[#allocation3 + $0x34] sm:$0xf] %vm8208_vm14, %v8115_v14  ;;  %v7366_v41 = vpop.f32.mrb[103].mxu1  ;;  %v13097_v12 = vpop.f32.mrb[106].mxu0  ;;  %v8019_v28 = vor.u32 %v8018_v15, %v8015_v60  ;;  %v7539_v22 = vadd.f32 %v13210_v40, %v7538_v1  ;;  %13170 = vmatpush1.bf16.msra.mxu1 %v13936_v61  ;;  %11655 = vmatpush1.bf16.msra.mxu0 %v13936_v61 }
 0x3df   : > { %v7541_v42 = vpop.f32.mrb[107].mxu0  ;;  %v8041_v26 = vrot.slane %v8039_v43, 4  ;;  %v8049_v25 = vor.u32 %v8048_v2, %v8045_v9  ;;  %v10737_v46 = vld [vmem:[#allocation2 + $0x248] sm:$0xff]  ;;  %v10744_v9 = vld [vmem:[#allocation2 + $0x280] sm:$0xff]  ;;  %13155 = vmatprep.subr.bf16.mxu1 %v19133_v58  ;;  %v13874_v14 = vld [vmem:[#allocation3 + $0x8] sm:$0xff]   ;;  %11656 = vmatprep.subr.bf16.mxu0 %v19133_v58 }
 0x3e0   : > { %v7542_v47 = vadd.f32 %v13211_v44, %v7541_v42  ;;  %v8020_v50 = vsel %vm15688_vm10, %v8011_v45, %v8019_v28  ;;  %v8021_v52 = vrot.slane %v8019_v28, 4  ;;  %v8029_v37 = vor.u32 %v8028_v38, %v8025_v4  ;;  %v13941_v2 = vld [vmem:[%s19056_s6 + $0x148] sm:$0xff]   ;;  %v13873_v40 = vld [vmem:[#allocation3 + $0x10] sm:$0xff]   ;;  %v13877_v4 = vld [vmem:[#allocation3 + $0x8] sm:$0xff]  }
 0x3e1   : > { %v7585_v51 = vmax.f32 %v7539_v22, 0.0  ;;  %8148 = vrot.lane.b32.xlu0 %v8020_v50, %s14079_s21  ;;  %11558 = vmatmul.mubr.bf16.gmra.mrb[140].mxu0 %v10722_v49  ;;  %v8050_v39 = vsel %vm15688_vm10, %v8041_v26, %v8049_v25  ;;  %v8051_v27 = vrot.slane %v8049_v25, 4  ;;  %v17882_v38 = vld [vmem:[#allocation3 + $0x10] sm:$0xff]   ;;  %v17894_v49 = vld [vmem:[#allocation3 + $0x8] sm:$0xff]  }
 0x3e2   : > { %v7586_v13 = vmax.f32 %v7542_v47, 0.0  ;;  %11565 = vmatprep.mubr.bf16.mxu0 %v10730_v59  ;;  %v8030_v31 = vsel %vm15688_vm10, %v8021_v52, %v8029_v37  ;;  %v8031_v5 = vrot.slane %v8029_v37, 4  ;;  %v17884_v22 = vld [vmem:[#allocation3 + $0x10] sm:$0xff]   ;;  %13171 = vmatpush1.bf16.msra.mxu1 %v13941_v2  ;;  %v8585_v52 = vshll.u32 %v13877_v4, 16 }
 0x3e3   : > { %v7621_v55 = vmul.f32 %v7585_v51, %v16338_v7  ;;  %8150 = vrot.lane.b32.xlu1 %v8030_v31, %s14079_s21  ;;  %11657 = vmatpush1.bf16.msra.mxu0 %v13941_v2  ;;  %v10743_v31 = vld [vmem:[#allocation2 + $0x278] sm:$0xff] }
 0x3e4   : > { %v7622_v29 = vmul.f32 %v7586_v13, %v16374_v53  ;;  %v8040_v6 = vsel %vm15688_vm10, %v8031_v5, %v8039_v43  ;;  %13156 = vmatprep.subr.bf16.mxu1 %v19133_v58  ;;  %11658 = vmatprep.subr.bf16.mxu0 %v19133_v58  ;;  %v8930_v5 = vrot.slane %v17882_v38, 1 }
 0x3e5   : > { %v12944_v19 = vpack.c.bf16 %v7621_v55, %v7621_v55  ;;  %8154 = vrot.lane.b32.xlu0 %v8050_v39, %s14079_s21 }
 0x3e6   : > { %v12945_v32 = vpack.c.bf16 %v7622_v29, %v7622_v29  ;;  %v10751_v29 = vld [vmem:[#allocation2 + $0x2b8] sm:$0xff] }
 0x3e7   : > { %v8053_v62 = vshrl.u32 %v12944_v19, 16  ;;  %v8056_v0 = vshll.u32 %v12944_v19, 16  ;;  %8152 = vrot.lane.b32.xlu1 %v8040_v6, %s14079_s21 }
 0x3e8   : > { %v8063_v56 = vshrl.u32 %v12945_v32, 16  ;;  %v8066_v20 = vshll.u32 %v12945_v32, 16  ;;  %v7369_v17 = vpop.f32.mrb[104].mxu1 }
 0x3e9   : > { %v8055_v7 = vrot.slane %v8053_v62, 6  ;;  %v8058_v33 = vrot.slane %v8056_v0, 7  ;;  %v13212_v16 = vadd.f32 %v17784_v48, %v7369_v17  ;;  %v7371_v53 = vpop.f32.mrb[105].mxu1  ;;  %11566 = vmatmul.mubr.bf16.gmra.mrb[144].mxu0 %v10729_v3  ;;  %v8593_v62 = vshll.u32 %v17884_v22, 16  ;;  %v17911_v3 = vld [vmem:[#allocation3 + $0x10] sm:$0xff]  }
 0x3ea   : > { %v8065_v34 = vrot.slane %v8063_v56, 6  ;;  %v8068_v21 = vrot.slane %v8066_v20, 7  ;;  %v7372_v24 = vpop.f32.mrb[106].mxu1  ;;  %11573 = vmatprep.mubr.bf16.mxu0 %v10737_v46  ;;  %v8928_v0 = vrot.slane %v17894_v49, 1  ;;  %v8589_v56 = vshrl.u32 %v13877_v4, 16  ;;  %v13882_v46 = vld [vmem:[#allocation3 + $0x18] sm:$0xff]  }
 0x3eb   : > { %v7547_v45 = vadd.f32 %v13212_v16, %v13096_v11  ;;  %v13213_v54 = vadd.f32 %v17784_v48, %v7372_v24  ;;  %v7374_v35 = vpop.f32.mrb[107].mxu1  ;;  %v8059_v36 = vor.u32 %v8058_v33, %v8055_v7  ;;  %v10736_v11 = vld [vmem:[#allocation2 + $0x240] sm:$0xff]  ;;  %v17909_v17 = vrot.slane %v8585_v52, 1  ;;  %v13952_v4 = vld [vmem:[%s19056_s6 + $0x158] sm:$0xff]  }
 0x3ec   : > { %v17862_v63 = vor.u32 %v8068_v21, %v8065_v34  ;;  %v8931_v7 = vsel %vm1006_vm1, %v8928_v0, %v8930_v5  ;;  %v17919_v33 = vrot.slane %v8593_v62, 1  ;;  %v13888_v16 = vld [vmem:[#allocation3 + $0x10] sm:$0xff]   ;;  %v17922_v34 = vld [vmem:[#allocation3 + $0x18] sm:$0xff]   ;;  %v10758_v21 = vld [vmem:[#allocation2 + $0x2f0] sm:$0xff] }
 0x3ed   : > { %v7587_v60 = vmax.f32 %v7547_v45, 0.0  ;;  %v7550_v15 = vadd.f32 %v13213_v54, %v13097_v12  ;;  %v8060_v10 = vsel %vm15688_vm10, %v8051_v27, %v8059_v36  ;;  %v8061_v23 = vrot.slane %v8059_v36, 4  ;;  %v13889_v45 = vld [vmem:[#allocation3 + $0x18] sm:$0xff]   ;;  %v17926_v54 = vld [vmem:[#allocation3 + $0x20] sm:$0xff]  }
 0x3ee   : > { %8156 = vrot.lane.b32.xlu0 %v8060_v10, %s14079_s21  ;;  %v8071_v39 = vrot.slane %v17862_v63, 4  ;;  %v8591_v24 = vor.u32 %v8589_v56, %v17909_v17  ;;  %v9742_v27 = vrot.slane %v17911_v3, 2  ;;  %v17931_v36 = vld [vmem:[#allocation3 + $0x20] sm:$0xff]   ;;  %v9378_v61 = vshrl.u32 %v13888_v16, 16 }
 0x3ef   : > { %v7623_v48 = vmul.f32 %v7587_v60, %v16434_v8  ;;  %v7588_v57 = vmax.f32 %v7550_v15, 0.0  ;;  %v8070_v43 = vsel %vm15688_vm10, %v8061_v23, %v17862_v63  ;;  %v13879_v63 = vld [vmem:[#allocation3 + $0x20] sm:$0xff]   ;;  %v9381_v60 = vshll.u32 %v13888_v16, 16  ;;  %v13884_v23 = vld [vmem:[#allocation3 + $0x18] sm:$0xff]  }
 0x3f0   : > { %8158 = vrot.lane.b32.xlu1 %v8070_v43, %s14079_s21  ;;  %v8596_v35 = vsel %vm654_vm2, %v8591_v24, %v17919_v33  ;;  %v13890_v15 = vld [vmem:[#allocation3 + $0x20] sm:$0xff]   ;;  %v9744_v10 = vrot.slane %v13882_v46, 2  ;;  %v9387_v43 = vshrl.u32 %v13889_v45, 16  ;;  %v8609_v2 = vshll.u32 %v17931_v36, 16 }
 0x3f1   : > { %v12946_v8 = vpack.c.bf16 %v7623_v48, %v7623_v48  ;;  %v7624_v1 = vmul.f32 %v7588_v57, %v16412_v30  ;;  %11574 = vmatmul.mubr.bf16.gmra.mrb[148].mxu0 %v10736_v11  ;;  %v13947_v30 = vld [vmem:[%s19056_s6 + $0x150] sm:$0xff]   ;;  %v13880_v11 = vld [vmem:[#allocation3 + $0x18] sm:$0xff]   ;;  %v8601_v57 = vshll.u32 %v17922_v34, 16 }
 0x3f2   : > { %8379 = vrot.lane.b32.xlu0 %v13873_v40, %s14079_s21  ;;  %11581 = vmatprep.mubr.bf16.mxu0 %v10744_v9  ;;  %v8117_v28 = vpop.permute.xlu1 %8116  ;;  %v17935_v48 = vld [vmem:[#allocation3 + $0x20] sm:$0xff]   ;;  %v9746_v9 = vrot.slane %v17926_v54, 2  ;;  %v8597_v40 = vshrl.u32 %v17884_v22, 16  ;;  %v17957_v52 = vrot.slane %v8609_v2, 1 }
 0x3f3   : > { %v8073_v44 = vshrl.u32 %v12946_v8, 16  ;;  %v8076_v41 = vshll.u32 %v12946_v8, 16  ;;  %v12947_v12 = vpack.c.bf16 %v7624_v1, %v7624_v1  ;;  %8220 = vst.msk [vmem:[#allocation3 + $0x38] sm:$0xf] %vm8208_vm14, %v8117_v28  ;;  %13172 = vmatpush1.bf16.msra.mxu1 %v13947_v30  ;;  %11659 = vmatpush1.bf16.msra.mxu0 %v13947_v30  ;;  %v9396_v8 = vshrl.u32 %v13890_v15, 16  ;;  %v13965_v62 = vld [vmem:[%s19056_s6 + $0x170] sm:$0xff]  }
 0x3f4   : > { %8377 = vrot.lane.b32.xlu1 %v13874_v14, %s14079_s21  ;;  %v8119_v50 = vpop.permute.xlu0 %8118  ;;  %13157 = vmatprep.subr.bf16.mxu1 %v19133_v58  ;;  %v9390_v14 = vshll.u32 %v13889_v45, 16  ;;  %v9399_v1 = vshll.u32 %v13890_v15, 16  ;;  %v8932_v28 = vrot.slane %v13884_v23, 1  ;;  %v9380_v30 = vrot.slane %v9378_v61, 1  ;;  %v13899_v61 = vld [vmem:[#allocation3 + $0x28] sm:$0xff]   ;;  %v18005_v23 = vld [vmem:[#allocation3 + $0x30] sm:$0xff]  }
 0x3f5   : > { %v8075_v42 = vrot.slane %v8073_v44, 6  ;;  %v8078_v26 = vrot.slane %v8076_v41, 7  ;;  %v8083_v25 = vshrl.u32 %v12947_v12, 16  ;;  %v8086_v47 = vshll.u32 %v12947_v12, 16  ;;  %8221 = vst.msk [vmem:[#allocation3 + $0x3c] sm:$0xf] %vm8208_vm14, %v8119_v50  ;;  %11660 = vmatprep.subr.bf16.mxu0 %v19133_v58 }
 0x3f6   : > { %v8121_v59 = vpop.permute.xlu1 %8120  ;;  %v9745_v44 = vsel %vm1824_vm0, %v9742_v27, %v9744_v10  ;;  %v10757_v41 = vld [vmem:[#allocation2 + $0x2e8] sm:$0xff]  ;;  %v8934_v22 = vrot.slane %v17935_v48, 1  ;;  %v9747_v50 = vsel %vm1824_vm0, %v9744_v10, %v9746_v9  ;;  %v13893_v15 = vld [vmem:[#allocation3 + $0x28] sm:$0xff]  }
 0x3f7   : > { %v8085_v37 = vrot.slane %v8083_v25, 6  ;;  %v8088_v51 = vrot.slane %v8086_v47, 7  ;;  %v8079_v13 = vor.u32 %v8078_v26, %v8075_v42  ;;  %8222 = vst.msk [vmem:[#allocation3 + $0x40] sm:$0xf] %vm8208_vm14, %v8121_v59  ;;  %v10765_v12 = vld [vmem:[#allocation2 + $0x328] sm:$0xff]  ;;  %v9383_v42 = vrot.slane %v9381_v60, 2  ;;  %13173 = vmatpush1.bf16.msra.mxu1 %v13952_v4  ;;  %11661 = vmatpush1.bf16.msra.mxu0 %v13952_v4 }
 0x3f8   : > { %v8123_v55 = vpop.permute.xlu0 %8122  ;;  %v8603_v26 = vrot.slane %v8601_v57, 1  ;;  %v8605_v25 = vshrl.u32 %v17922_v34, 16  ;;  %v13956_v47 = vld [vmem:[%s19056_s6 + $0x160] sm:$0xff]   ;;  %13158 = vmatprep.subr.bf16.mxu1 %v19133_v58  ;;  %v9398_v59 = vrot.slane %v9396_v8, 1  ;;  %11662 = vmatprep.subr.bf16.mxu0 %v19133_v58  ;;  %v13896_v34 = vld [vmem:[#allocation3 + $0x28] sm:$0xff]   ;;  %v8617_v8 = vshll.u32 %v13899_v61, 16 }
 0x3f9   : > { %11582 = vmatmul.mubr.bf16.gmra.mrb[152].mxu0 %v10743_v31  ;;  %v8080_v6 = vsel %vm15688_vm10, %v8071_v39, %v8079_v13  ;;  %v8081_v19 = vrot.slane %v8079_v13, 4  ;;  %v8089_v32 = vor.u32 %v8088_v51, %v8085_v37  ;;  %8223 = vst.msk [vmem:[#allocation3 + $0x44] sm:$0xf] %vm8208_vm14, %v8123_v55  ;;  %v9389_v37 = vrot.slane %v9387_v43, 1  ;;  %v13959_v13 = vld [vmem:[%s19056_s6 + $0x168] sm:$0xff]   ;;  %v10771_v60 = vld [vmem:[#allocation2 + $0x358] sm:$0xff] }
 0x3fa   : > { %11589 = vmatprep.mubr.bf16.mxu0 %v10751_v29  ;;  %8160 = vrot.lane.b32.xlu1 %v8080_v6, %s14079_s21  ;;  %v9392_v51 = vrot.slane %v9390_v14, 2  ;;  %v9401_v39 = vrot.slane %v9399_v1, 2  ;;  %v8933_v31 = vsel %vm1006_vm1, %v8930_v5, %v8932_v28  ;;  %v8935_v55 = vsel %vm1006_vm1, %v8932_v28, %v8934_v22  ;;  %v13901_v57 = vld [vmem:[#allocation3 + $0x28] sm:$0xff]  }
 0x3fb   : > { %v8090_v20 = vsel %vm15688_vm10, %v8081_v19, %v8089_v32  ;;  %v8091_v53 = vrot.slane %v8089_v32, 4  ;;  %13174 = vmatpush1.bf16.msra.mxu1 %v13956_v47  ;;  %v8599_v29 = vor.u32 %v8597_v40, %v17919_v33  ;;  %v8607_v5 = vor.u32 %v8605_v25, %v8603_v26  ;;  %11663 = vmatpush1.bf16.msra.mxu0 %v13956_v47  ;;  %v10764_v32 = vld [vmem:[#allocation2 + $0x320] sm:$0xff]  ;;  %v10779_v43 = vld [vmem:[#allocation2 + $0x398] sm:$0xff] }
 0x3fc   : > { %8162 = vrot.lane.b32.xlu0 %v8090_v20, %s14079_s21  ;;  %13159 = vmatprep.subr.bf16.mxu1 %v19133_v58  ;;  %v9393_v19 = vor.u32 %v9392_v51, %v9389_v37  ;;  %v10772_v20 = vld [vmem:[#allocation2 + $0x360] sm:$0xff]  ;;  %v17983_v33 = vor.u32 %v9383_v42, %v9380_v30  ;;  %v17985_v16 = vor.u32 %v9401_v39, %v9398_v59  ;;  %v8936_v14 = vrot.slane %v13896_v34, 1 }
 0x3fd   : > { %v8604_v38 = vsel %vm654_vm2, %v8599_v29, %v8603_v26  ;;  %11664 = vmatprep.subr.bf16.mxu0 %v19133_v58  ;;  %v13902_v40 = vld [vmem:[#allocation3 + $0x30] sm:$0xff]   ;;  %v9405_v1 = vshrl.u32 %v13901_v57, 16  ;;  %v9408_v4 = vshll.u32 %v13901_v57, 16  ;;  %v8613_v26 = vshrl.u32 %v17931_v36, 16 }
 0x3fe   : > { %8966 = vrot.lane.b32.xlu1 %v8931_v7, %s14080_s22  ;;  %v8612_v7 = vsel %vm654_vm2, %v8607_v5, %v17957_v52  ;;  %v9394_v46 = vsel %vm1487_vm6, %v17983_v33, %v9393_v19  ;;  %v9403_v45 = vsel %vm1487_vm6, %v9393_v19, %v17985_v16  ;;  %v9414_v30 = vshrl.u32 %v13902_v40, 16  ;;  %v13909_v19 = vld [vmem:[#allocation3 + $0x38] sm:$0xff]  }
 0x3ff   : > { %13175 = vmatpush1.bf16.msra.mxu1 %v13959_v13  ;;  %11665 = vmatpush1.bf16.msra.mxu0 %v13959_v13  ;;  %v9417_v42 = vshll.u32 %v13902_v40, 16  ;;  %v8619_v54 = vrot.slane %v8617_v8, 1  ;;  %v9407_v25 = vrot.slane %v9405_v1, 1  ;;  %v9410_v47 = vrot.slane %v9408_v4, 2 }
 0x400   : > { %8164 = vrot.lane.b32.xlu0 %v8091_v53, %s14079_s21  ;;  %13160 = vmatprep.subr.bf16.mxu1 %v19133_v58  ;;  %v13894_v53 = vld [vmem:[#allocation3 + $0x28] sm:$0xff]   ;;  %v8621_v37 = vshrl.u32 %v13899_v61, 16  ;;  %v8615_v39 = vor.u32 %v8613_v26, %v17957_v52  ;;  %v9416_v36 = vrot.slane %v9414_v30, 1  ;;  %v18051_v57 = vld [vmem:[#allocation3 + $0x40] sm:$0xff]   ;;  %v8637_v26 = vshrl.u32 %v13909_v19, 16 }
 0x401   : > { %11590 = vmatmul.mubr.bf16.gmra.mrb[156].mxu0 %v10750_v18  ;;  %v9748_v10 = vrot.slane %v13894_v53, 2  ;;  %11666 = vmatprep.subr.bf16.mxu0 %v19133_v58  ;;  %v9419_v13 = vrot.slane %v9417_v42, 2  ;;  %v13917_v8 = vld [vmem:[#allocation3 + $0x40] sm:$0xff]   ;;  %v8942_v4 = vrot.slane %v18051_v57, 1  ;;  %vm8244_vm10 = vcmask 517376  }
 0x402   : > { %11597 = vmatprep.mubr.bf16.mxu0 %v10758_v21  ;;  %8727 = vrot.lane.b32.xlu1 %v8596_v35, %s14078_s20  ;;  %v13968_v21 = vld [vmem:[%s19056_s6 + $0x178] sm:$0xff]   ;;  %v13891_v35 = vld [vmem:[#allocation3 + $0x30] sm:$0xff]   ;;  %v8620_v48 = vsel %vm654_vm2, %v8615_v39, %v8619_v54  ;;  %vm8245_vm15 = vmand %vm8244_vm10, %vm348_vm12 }
 0x403   : > { %13176 = vmatpush1.bf16.msra.mxu1 %v13965_v62  ;;  %11667 = vmatpush1.bf16.msra.mxu0 %v13965_v62  ;;  %v13986_v62 = vld [vmem:[%s19056_s6 + $0x180] sm:$0xff]  }
 0x404   : > { %8383 = vrot.lane.b32.xlu0 %v13879_v63, %s14079_s21  ;;  %v18000_v63 = vld [vmem:[#allocation3 + $0x30] sm:$0xff]   ;;  %13161 = vmatprep.subr.bf16.mxu1 %v19133_v58 }
 0x405   : > { %v9750_v2 = vrot.slane %v18000_v63, 2  ;;  %11668 = vmatprep.subr.bf16.mxu0 %v19133_v58  ;;  %v10786_v58 = vld [vmem:[#allocation2 + $0x3d0] sm:$0xff] }
 0x406   : > { %8381 = vrot.lane.b32.xlu1 %v13880_v11, %s14079_s21  ;;  %v18007_v11 = vld [vmem:[#allocation3 + $0x30] sm:$0xff]  }
 0x407   : > { %13177 = vmatpush1.bf16.msra.mxu1 %v13968_v21  ;;  %v9751_v28 = vsel %vm1824_vm0, %v9748_v10, %v9750_v2  ;;  %11669 = vmatpush1.bf16.msra.mxu0 %v13968_v21  ;;  %v13905_v21 = vld [vmem:[#allocation3 + $0x38] sm:$0xff]  }
 0x408   : > { %9780 = vrot.lane.b32.xlu0 %v9745_v44, %s14078_s20  ;;  %v9749_v44 = vsel %vm1824_vm0, %v9746_v9, %v9748_v10  ;;  %v8937_v9 = vsel %vm1006_vm1, %v8934_v22, %v8936_v14  ;;  %v8623_v22 = vor.u32 %v8621_v37, %v8619_v54  ;;  %13098 = vmatprep.subr.bf16.mxu1 %v13986_v62 }
 0x409   : > { %11598 = vmatmul.mubr.bf16.gmra.mrb[160].mxu0 %v10757_v41  ;;  %v8938_v41 = vrot.slane %v18005_v23, 1 }
 0x40a   : > { %11605 = vmatprep.mubr.bf16.mxu0 %v10765_v12  ;;  %9782 = vrot.lane.b32.xlu1 %v9747_v50, %s14078_s20  ;;  %v8625_v12 = vshll.u32 %v18007_v11, 16  ;;  %v10778_v50 = vld [vmem:[#allocation2 + $0x390] sm:$0xff] }
 0x40b   : > { %v8939_v59 = vsel %vm1006_vm1, %v8936_v14, %v8938_v41 }
 0x40c   : > { %8968 = vrot.lane.b32.xlu0 %v8933_v31, %s14080_s22  ;;  %v8627_v51 = vrot.slane %v8625_v12, 1  ;;  %v9411_v31 = vor.u32 %v9410_v47, %v9407_v25  ;;  %v9432_v12 = vshrl.u32 %v13917_v8, 16 }
 0x40e   : > { %8970 = vrot.lane.b32.xlu1 %v8935_v55, %s14080_s22  ;;  %v13904_v55 = vld [vmem:[#allocation3 + $0x38] sm:$0xff]   ;;  %v8628_v29 = vsel %vm654_vm2, %v8623_v22, %v8627_v51  ;;  %v9412_v52 = vsel %vm1487_vm6, %v17985_v16, %v9411_v31  ;;  %v9434_v25 = vrot.slane %v9432_v12, 1 }
 0x40f   : > { %v8125_v6 = vpop.permute.xlu1 %8124  ;;  %v9752_v5 = vrot.slane %v13904_v55, 2 }
 0x410   : > { %8224 = vst.msk [vmem:[#allocation3 + $0x48] sm:$0xf] %vm8208_vm14, %v8125_v6  ;;  %8729 = vrot.lane.b32.xlu0 %v8604_v38, %s14078_s20  ;;  %v9420_v6 = vor.u32 %v9419_v13, %v9416_v36  ;;  %v13906_v38 = vld [vmem:[#allocation3 + $0x38] sm:$0xff]  }
 0x411   : > { %v8127_v56 = vpop.permute.xlu0 %8126  ;;  %11606 = vmatmul.mubr.bf16.gmra.mrb[164].mxu0 %v10764_v32  ;;  %v13911_v32 = vld [vmem:[#allocation3 + $0x38] sm:$0xff]   ;;  %v9753_v16 = vsel %vm1824_vm0, %v9750_v2, %v9752_v5 }
 0x412   : > { %8225 = vst.msk [vmem:[#allocation3 + $0x4c] sm:$0xf] %vm8208_vm14, %v8127_v56  ;;  %11613 = vmatprep.mubr.bf16.mxu0 %v10772_v20  ;;  %8731 = vrot.lane.b32.xlu1 %v8612_v7, %s14078_s20  ;;  %v10785_v56 = vld [vmem:[#allocation2 + $0x3c8] sm:$0xff]  ;;  %v9421_v20 = vsel %vm1487_vm6, %v9411_v31, %v9420_v6  ;;  %v8940_v7 = vrot.slane %v13906_v38, 1  ;;  %v9426_v34 = vshll.u32 %v13911_v32, 16 }
 0x413   : > { %v8129_v18 = vpop.permute.xlu1 %8128 }
 0x414   : > { %8226 = vst.msk [vmem:[#allocation3 + $0x50] sm:$0xf] %vm8208_vm14, %v8129_v18  ;;  %9541 = vrot.lane.b32.xlu0 %v9394_v46, %s14079_s21  ;;  %v8633_v18 = vshll.u32 %v13909_v19, 16  ;;  %v9423_v46 = vshrl.u32 %v13911_v32, 16  ;;  %v8941_v61 = vsel %vm1006_vm1, %v8938_v41, %v8940_v7  ;;  %v9428_v23 = vrot.slane %v9426_v34, 2 }
 0x415   : > { %v8131_v24 = vpop.permute.xlu0 %8130 }
 0x416   : > { %8227 = vst.msk [vmem:[#allocation3 + $0x54] sm:$0xf] %vm8208_vm14, %v8131_v24  ;;  %9543 = vrot.lane.b32.xlu1 %v9403_v45, %s14079_s21  ;;  %v13910_v45 = vld [vmem:[#allocation3 + $0x40] sm:$0xff]   ;;  %v9425_v10 = vrot.slane %v9423_v46, 1 }
 0x417   : > { %v9754_v14 = vrot.slane %v13910_v45, 2 }
 0x418   : > { %8387 = vrot.lane.b32.xlu0 %v13891_v35, %s14079_s21  ;;  %v8629_v35 = vshrl.u32 %v18007_v11, 16  ;;  %v9429_v1 = vor.u32 %v9428_v23, %v9425_v10 }
 0x419   : > { %11614 = vmatmul.mubr.bf16.gmra.mrb[168].mxu0 %v10771_v60  ;;  %v13907_v60 = vld [vmem:[#allocation3 + $0x40] sm:$0xff]   ;;  %v9755_v41 = vsel %vm1824_vm0, %v9752_v5, %v9754_v14  ;;  %v13916_v42 = vld [vmem:[#allocation3 + $0x48] sm:$0xff]  }
 0x41a   : > { %11621 = vmatprep.mubr.bf16.mxu0 %v10779_v43  ;;  %8385 = vrot.lane.b32.xlu1 %v13893_v15, %s14079_s21  ;;  %v8635_v15 = vrot.slane %v8633_v18, 1  ;;  %v18053_v43 = vld [vmem:[#allocation3 + $0x40] sm:$0xff]   ;;  %v8631_v40 = vor.u32 %v8629_v35, %v8627_v51  ;;  %v9430_v30 = vsel %vm1487_vm6, %v9420_v6, %v9429_v1  ;;  %v9756_v51 = vrot.slane %v13916_v42, 2  ;;  %v13924_v38 = vld [vmem:[#allocation3 + $0x48] sm:$0xff]  }
 0x41b   : > { %v8653_v23 = vshrl.u32 %v13924_v38, 16 }
 0x41c   : > { %9784 = vrot.lane.b32.xlu0 %v9749_v44, %s14078_s20  ;;  %v8636_v11 = vsel %vm654_vm2, %v8631_v40, %v8635_v15  ;;  %v8641_v44 = vshll.u32 %v18053_v43, 16  ;;  %v8639_v37 = vor.u32 %v8637_v26, %v8635_v15  ;;  %v9757_v22 = vsel %vm1824_vm0, %v9754_v14, %v9756_v51 }
 0x41d   : > { %v18072_v13 = vld [vmem:[#allocation3 + $0x50] sm:$0xff]  }
 0x41e   : > { %9786 = vrot.lane.b32.xlu1 %v9751_v28, %s14078_s20  ;;  %v9435_v28 = vshll.u32 %v13917_v8, 16  ;;  %v8643_v54 = vrot.slane %v8641_v44, 1  ;;  %v8946_v5 = vrot.slane %v18072_v13, 1 }
 0x420   : > { %8972 = vrot.lane.b32.xlu0 %v8937_v9, %s14080_s22  ;;  %v8943_v9 = vsel %vm1006_vm1, %v8940_v7, %v8942_v4  ;;  %v9437_v47 = vrot.slane %v9435_v28, 2  ;;  %v8644_v39 = vsel %vm654_vm2, %v8639_v37, %v8643_v54  ;;  %v13920_v7 = vld [vmem:[#allocation3 + $0x50] sm:$0xff]  }
 0x421   : > { %11622 = vmatmul.mubr.bf16.gmra.mrb[172].mxu0 %v10778_v50  ;;  %v13913_v50 = vld [vmem:[#allocation3 + $0x48] sm:$0xff]  }
 0x422   : > { %11629 = vmatprep.mubr.bf16.mxu0 %v10786_v58  ;;  %8974 = vrot.lane.b32.xlu1 %v8939_v59, %s14080_s22  ;;  %v13923_v58 = vld [vmem:[#allocation3 + $0x48] sm:$0xff]   ;;  %v18067_v59 = vld [vmem:[#allocation3 + $0x50] sm:$0xff]   ;;  %v9438_v36 = vor.u32 %v9437_v47, %v9434_v25 }
 0x423   : > { %v9758_v31 = vrot.slane %v18067_v59, 2  ;;  %v9444_v55 = vshll.u32 %v13923_v58, 16 }
 0x424   : > { %8733 = vrot.lane.b32.xlu0 %v8620_v48, %s14078_s20  ;;  %v9441_v48 = vshrl.u32 %v13923_v58, 16  ;;  %v9439_v6 = vsel %vm1487_vm6, %v9429_v1, %v9438_v36 }
 0x425   : > { %v9759_v32 = vsel %vm1824_vm0, %v9756_v51, %v9758_v31  ;;  %v9446_v62 = vrot.slane %v9444_v55, 2 }
 0x426   : > { %8735 = vrot.lane.b32.xlu1 %v8628_v29, %s14078_s20  ;;  %v13921_v29 = vld [vmem:[#allocation3 + $0x48] sm:$0xff]   ;;  %v9443_v19 = vrot.slane %v9441_v48, 1 }
 0x428   : > { %9545 = vrot.lane.b32.xlu0 %v9412_v52, %s14079_s21  ;;  %v18078_v52 = vld [vmem:[#allocation3 + $0x50] sm:$0xff]  }
 0x429   : > { %11630 = vmatmul.mubr.bf16.gmra.mrb[176].mxu0 %v10785_v56  ;;  %v13928_v56 = vld [vmem:[#allocation3 + $0x50] sm:$0xff]   ;;  %v8657_v18 = vshll.u32 %v18078_v52, 16  ;;  %v8661_v59 = vshrl.u32 %v18078_v52, 16 }
 0x42a   : > { %9547 = vrot.lane.b32.xlu1 %v9421_v20, %s14079_s21  ;;  %v9453_v45 = vshll.u32 %v13928_v56, 16 }
 0x42b   : > { %v8133_v53 = vpop.permute.xlu1 %8132 }
 0x42c   : > { %8228 = vst.msk [vmem:[#allocation3 + $0x58] sm:$0xf] %vm8208_vm14, %v8133_v53  ;;  %9788 = vrot.lane.b32.xlu0 %v9753_v16, %s14078_s20  ;;  %v8944_v53 = vrot.slane %v13921_v29, 1  ;;  %v8649_v16 = vshll.u32 %v13924_v38, 16  ;;  %v9455_v14 = vrot.slane %v9453_v45, 2 }
 0x42d   : > { %v8135_v24 = vpop.permute.xlu0 %8134 }
 0x42e   : > { %8229 = vst.msk [vmem:[#allocation3 + $0x5c] sm:$0xf] %vm8208_vm14, %v8135_v24  ;;  %8389 = vrot.lane.b32.xlu1 %v13905_v21, %s14079_s21  ;;  %v8947_v34 = vsel %vm1006_vm1, %v8944_v53, %v8946_v5  ;;  %v9447_v21 = vor.u32 %v9446_v62, %v9443_v19  ;;  %v9450_v24 = vshrl.u32 %v13928_v56, 16 }
 0x42f   : > { %v8137_v63 = vpop.permute.xlu1 %8136 }
 0x430   : > { %8230 = vst.msk [vmem:[#allocation3 + $0x60] sm:$0xf] %vm8208_vm14, %v8137_v63  ;;  %8976 = vrot.lane.b32.xlu0 %v8941_v61, %s14080_s22  ;;  %v8645_v63 = vshrl.u32 %v18053_v43, 16  ;;  %v8945_v61 = vsel %vm1006_vm1, %v8942_v4, %v8944_v53  ;;  %v9448_v57 = vsel %vm1487_vm6, %v9438_v36, %v9447_v21  ;;  %v9452_v40 = vrot.slane %v9450_v24, 1 }
 0x431   : > { %v8139_v2 = vpop.permute.xlu0 %8138 }
 0x432   : > { %8231 = vst.msk [vmem:[#allocation3 + $0x64] sm:$0xf] %vm8208_vm14, %v8139_v2  ;;  %8391 = vrot.lane.b32.xlu1 %v13907_v60, %s14079_s21  ;;  %v8651_v60 = vrot.slane %v8649_v16, 1  ;;  %v8647_v10 = vor.u32 %v8645_v63, %v8643_v54  ;;  %v8659_v2 = vrot.slane %v8657_v18, 1  ;;  %v9456_v4 = vor.u32 %v9455_v14, %v9452_v40 }
 0x434   : > { %8737 = vrot.lane.b32.xlu0 %v8636_v11, %s14078_s20  ;;  %v8652_v43 = vsel %vm654_vm2, %v8647_v10, %v8651_v60  ;;  %v8655_v8 = vor.u32 %v8653_v23, %v8651_v60  ;;  %v9457_v26 = vsel %vm1487_vm6, %v9447_v21, %v9456_v4 }
 0x435   : > { %v13929_v11 = vld [vmem:[#allocation3 + $0x58] sm:$0xff]  }
 0x436   : > { %9790 = vrot.lane.b32.xlu1 %v9755_v41, %s14078_s20  ;;  %v8660_v1 = vsel %vm654_vm2, %v8655_v8, %v8659_v2  ;;  %v13932_v44 = vld [vmem:[#allocation3 + $0x58] sm:$0xff]   ;;  %v9760_v28 = vrot.slane %v13929_v11, 2 }
 0x437   : > { %v13934_v41 = vld [vmem:[#allocation3 + $0x58] sm:$0xff]   ;;  %v8948_v25 = vrot.slane %v13932_v44, 1 }
 0x438   : > { %9549 = vrot.lane.b32.xlu0 %v9430_v30, %s14079_s21  ;;  %v13937_v30 = vld [vmem:[#allocation3 + $0x58] sm:$0xff]   ;;  %v8665_v58 = vshll.u32 %v13934_v41, 16  ;;  %v8669_v53 = vshrl.u32 %v13934_v41, 16 }
 0x439   : > { %v13927_v12 = vld [vmem:[#allocation3 + $0x60] sm:$0xff]   ;;  %v9459_v51 = vshrl.u32 %v13937_v30, 16  ;;  %v8949_v29 = vsel %vm1006_vm1, %v8946_v5, %v8948_v25 }
 0x43a   : > { %8978 = vrot.lane.b32.xlu1 %v8943_v9, %s14080_s22  ;;  %v18107_v54 = vld [vmem:[#allocation3 + $0x60] sm:$0xff]   ;;  %v13931_v9 = vld [vmem:[#allocation3 + $0x58] sm:$0xff]  }
 0x43b   : > { %v18114_v37 = vld [vmem:[#allocation3 + $0x60] sm:$0xff]   ;;  %v9461_v38 = vrot.slane %v9459_v51, 1 }
 0x43c   : > { %8393 = vrot.lane.b32.xlu0 %v13913_v50, %s14079_s21  ;;  %v9761_v50 = vsel %vm1824_vm0, %v9758_v31, %v9760_v28  ;;  %v18118_v36 = vld [vmem:[#allocation3 + $0x60] sm:$0xff]  }
 0x43d   : > { %v13940_v55 = vld [vmem:[#allocation3 + $0x60] sm:$0xff]   ;;  %v8673_v62 = vshll.u32 %v18118_v36, 16 }
 0x43e   : > { %8739 = vrot.lane.b32.xlu1 %v8644_v39, %s14078_s20  ;;  %v9462_v39 = vshll.u32 %v13937_v30, 16  ;;  %v9468_v52 = vshrl.u32 %v13940_v55, 16 }
 0x43f   : > { %v8675_v16 = vrot.slane %v8673_v62, 1 }
 0x440   : > { %9792 = vrot.lane.b32.xlu0 %v9757_v22, %s14078_s20  ;;  %v9762_v22 = vrot.slane %v18107_v54, 2  ;;  %v9464_v19 = vrot.slane %v9462_v39, 2 }
 0x442   : > { %9551 = vrot.lane.b32.xlu1 %v9439_v6, %s14079_s21  ;;  %v8667_v6 = vrot.slane %v8665_v58, 1  ;;  %v9763_v56 = vsel %vm1824_vm0, %v9760_v28, %v9762_v22  ;;  %v9465_v5 = vor.u32 %v9464_v19, %v9461_v38  ;;  %v18163_v28 = vld [vmem:[#allocation3 + $0x10] sm:$0xff]  }
 0x443   : > { %v8141_v20 = vpop.permute.xlu0 %8140 }
 0x444   : > { %9794 = vrot.lane.b32.xlu0 %v9759_v32, %s14078_s20  ;;  %8232 = vst.msk [vmem:[#allocation3 + $0x68] sm:$0xf] %vm8208_vm14, %v8141_v20  ;;  %v8950_v32 = vrot.slane %v18114_v37, 1  ;;  %v8663_v20 = vor.u32 %v8661_v59, %v8659_v2  ;;  %v9466_v24 = vsel %vm1487_vm6, %v9456_v4, %v9465_v5  ;;  %v8671_v45 = vor.u32 %v8669_v53, %v8667_v6 }
 0x445   : > { %v8143_v46 = vpop.permute.xlu1 %8142  ;;  %v9167_v59 = vrot.slane %v18163_v28, 1 }
 0x446   : > { %8395 = vrot.lane.b32.xlu1 %v13920_v7, %s14079_s21  ;;  %8233 = vst.msk [vmem:[#allocation3 + $0x6c] sm:$0xf] %vm8208_vm14, %v8143_v46  ;;  %v9471_v7 = vshll.u32 %v13940_v55, 16  ;;  %v8668_v13 = vsel %vm654_vm2, %v8663_v20, %v8667_v6  ;;  %v8951_v18 = vsel %vm1006_vm1, %v8948_v25, %v8950_v32  ;;  %v9470_v46 = vrot.slane %v9468_v52, 1 }
 0x447   : > { %v8147_v35 = vpop.permute.xlu0 %8146 }
 0x448   : > { %8982 = vrot.lane.b32.xlu0 %v8947_v34, %s14080_s22  ;;  %8235 = vst.msk [vmem:[#allocation3 + $0x74] sm:$0xf] %vm8208_vm14, %v8147_v35  ;;  %v9473_v34 = vrot.slane %v9471_v7, 2 }
 0x449   : > { %v8145_v15 = vpop.permute.xlu1 %8144 }
 0x44a   : > { %8980 = vrot.lane.b32.xlu1 %v8945_v61, %s14080_s22  ;;  %8234 = vst.msk [vmem:[#allocation3 + $0x70] sm:$0xf] %vm8208_vm14, %v8145_v15  ;;  %v8676_v15 = vsel %vm654_vm2, %v8671_v45, %v8675_v16  ;;  %v18146_v10 = vor.u32 %v9473_v34, %v9470_v46  ;;  %v13964_v45 = vld [vmem:[#allocation3 + $0x20] sm:$0xff]  }
 0x44c   : > { %9553 = vrot.lane.b32.xlu0 %v9448_v57, %s14079_s21  ;;  %v9475_v8 = vsel %vm1487_vm6, %v9465_v5, %v18146_v10 }
 0x44d   : > { %v13942_v35 = vld [vmem:[#allocation3 + $0x68] sm:$0xff]  }
 0x44e   : > { %8741 = vrot.lane.b32.xlu1 %v8652_v43, %s14078_s20  ;;  %v18140_v61 = vld [vmem:[#allocation3 + $0x68] sm:$0xff]   ;;  %v9764_v40 = vrot.slane %v13942_v35, 2  ;;  %v18151_v43 = vld [vmem:[#allocation3 + $0x18] sm:$0xff]  }
 0x44f   : > { %v18142_v60 = vld [vmem:[#allocation3 + $0x68] sm:$0xff]   ;;  %v8952_v11 = vrot.slane %v18140_v61, 1  ;;  %v9169_v37 = vrot.slane %v18151_v43, 1 }
 0x450   : > { %8743 = vrot.lane.b32.xlu0 %v8660_v1, %s14078_s20  ;;  %v13949_v23 = vld [vmem:[#allocation3 + $0x68] sm:$0xff]   ;;  %v8681_v4 = vshll.u32 %v18142_v60, 16  ;;  %v9765_v30 = vsel %vm1824_vm0, %v9762_v22, %v9764_v40  ;;  %v8685_v20 = vshrl.u32 %v18142_v60, 16 }
 0x451   : > { %v13939_v2 = vld [vmem:[#allocation3 + $0x70] sm:$0xff]   ;;  %v9477_v44 = vshrl.u32 %v13949_v23, 16  ;;  %v9480_v41 = vshll.u32 %v13949_v23, 16  ;;  %v8953_v51 = vsel %vm1006_vm1, %v8950_v32, %v8952_v11  ;;  %v9170_v19 = vsel %vm1006_vm1, %v9167_v59, %v9169_v37  ;;  %v8246_v32 = vld [vmem:[#allocation3 + $0x98] sm:$0x3]  ;;  %v18215_v60 = vld [vmem:[#allocation3 + $0x28] sm:$0xff]  }
 0x452   : > { %8399 = vrot.lane.b32.xlu1 %v13927_v12, %s14079_s21  ;;  %v18157_v1 = vld [vmem:[#allocation3 + $0x70] sm:$0xff]  }
 0x453   : > { %v8149_v42 = vpop.permute.xlu0 %8148  ;;  %v18161_v12 = vld [vmem:[#allocation3 + $0x70] sm:$0xff]   ;;  %v9766_v54 = vrot.slane %v18157_v1, 2  ;;  %v9479_v58 = vrot.slane %v9477_v44, 1  ;;  %v9482_v39 = vrot.slane %v9480_v41, 2 }
 0x454   : > { %8236 = vst.msk [vmem:[#allocation3 + $0x78] sm:$0xf] %vm8208_vm14, %v8149_v42  ;;  %9555 = vrot.lane.b32.xlu0 %v9457_v26, %s14079_s21  ;;  %v13943_v42 = vld [vmem:[#allocation3 + $0x68] sm:$0xff]   ;;  %v18167_v26 = vld [vmem:[#allocation3 + $0x70] sm:$0xff]  }
 0x455   : > { %v8151_v47 = vpop.permute.xlu1 %8150 }
 0x456   : > { %8237 = vst.msk [vmem:[#allocation3 + $0x7c] sm:$0xf] %vm8208_vm14, %v8151_v47  ;;  %9796 = vrot.lane.b32.xlu1 %v9761_v50, %s14078_s20  ;;  %v8677_v47 = vshrl.u32 %v18118_v36, 16  ;;  %v8683_v50 = vrot.slane %v8681_v4, 1  ;;  %v9767_v36 = vsel %vm1824_vm0, %v9764_v40, %v9766_v54 }
 0x457   : > { %v8155_v48 = vpop.permute.xlu0 %8154 }
 0x458   : > { %8239 = vst.msk [vmem:[#allocation3 + $0x84] sm:$0xf] %vm8208_vm14, %v8155_v48  ;;  %8397 = vrot.lane.b32.xlu0 %v13931_v9, %s14079_s21  ;;  %v13953_v9 = vld [vmem:[#allocation3 + $0x70] sm:$0xff]   ;;  %v8689_v48 = vshll.u32 %v18161_v12, 16  ;;  %v8679_v55 = vor.u32 %v8677_v47, %v8675_v16 }
 0x459   : > { %v8153_v31 = vpop.permute.xlu1 %8152  ;;  %v9489_v6 = vshll.u32 %v13953_v9, 16 }
 0x45a   : > { %8238 = vst.msk [vmem:[#allocation3 + $0x80] sm:$0xf] %vm8208_vm14, %v8153_v31  ;;  %8984 = vrot.lane.b32.xlu1 %v8949_v29, %s14080_s22  ;;  %v8954_v31 = vrot.slane %v18167_v26, 1  ;;  %v9486_v29 = vshrl.u32 %v13953_v9, 16  ;;  %v8684_v62 = vsel %vm654_vm2, %v8679_v55, %v8683_v50  ;;  %v18194_v52 = vrot.slane %v8689_v48, 1 }
 0x45b   : > { %v9491_v16 = vrot.slane %v9489_v6, 2  ;;  %v8693_v6 = vshrl.u32 %v18161_v12, 16 }
 0x45c   : > { %9798 = vrot.lane.b32.xlu0 %v9763_v56, %s14078_s20  ;;  %v9483_v56 = vor.u32 %v9482_v39, %v9479_v58  ;;  %v8955_v5 = vsel %vm1006_vm1, %v8952_v11, %v8954_v31  ;;  %v9488_v53 = vrot.slane %v9486_v29, 1  ;;  %v9171_v11 = vrot.slane %v13964_v45, 1 }
 0x45d   : > { %v18202_v46 = vld [vmem:[#allocation3 + $0x78] sm:$0xff]   ;;  %v8695_v12 = vor.u32 %v8693_v6, %v18194_v52 }
 0x45e   : > { %8745 = vrot.lane.b32.xlu1 %v8668_v13, %s14078_s20  ;;  %v9484_v34 = vsel %vm1487_vm6, %v18146_v10, %v9483_v56  ;;  %v18213_v61 = vld [vmem:[#allocation3 + $0x78] sm:$0xff]   ;;  %v9768_v23 = vrot.slane %v18202_v46, 2 }
 0x45f   : > { %v8956_v41 = vrot.slane %v18213_v61, 1  ;;  %v13955_v39 = vld [vmem:[#allocation3 + $0x78] sm:$0xff]  }
 0x460   : > { %v8157_v21 = vpop.permute.xlu0 %8156  ;;  %8986 = vrot.lane.b32.xlu0 %v8951_v18, %s14080_s22  ;;  %v9769_v9 = vsel %vm1824_vm0, %v9766_v54, %v9768_v23  ;;  %v9172_v54 = vsel %vm1006_vm1, %v9169_v37, %v9171_v11  ;;  %v18286_v61 = vld [vmem:[#allocation3 + $0x38] sm:$0xff]  }
 0x461   : > { %8240 = vst.msk [vmem:[#allocation3 + $0x88] sm:$0xf] %vm8208_vm14, %v8157_v21  ;;  %v8687_v21 = vor.u32 %v8685_v20, %v8683_v50  ;;  %v13951_v10 = vld [vmem:[#allocation3 + $0x80] sm:$0xff]   ;;  %v8957_v43 = vsel %vm1006_vm1, %v8954_v31, %v8956_v41 }
 0x462   : > { %v8159_v63 = vpop.permute.xlu1 %8158  ;;  %9557 = vrot.lane.b32.xlu1 %v9466_v24, %s14079_s21  ;;  %v18243_v48 = vld [vmem:[#allocation3 + $0x80] sm:$0xff]  }
 0x463   : > { %8241 = vst.msk [vmem:[#allocation3 + $0x8c] sm:$0xf] %vm8208_vm14, %v8159_v63  ;;  %v8692_v35 = vsel %vm654_vm2, %v8687_v21, %v18194_v52  ;;  %v18211_v63 = vor.u32 %v9491_v16, %v9488_v53  ;;  %v18247_v1 = vld [vmem:[#allocation3 + $0x80] sm:$0xff]  }
 0x464   : > { %v8380_v57 = vpop.permute.xlu0 %8379  ;;  %8747 = vrot.lane.b32.xlu0 %v8676_v15, %s14078_s20  ;;  %v8958_v31 = vrot.slane %v18247_v1, 1 }
 0x465   : > { %8431 = vst.msk [vmem:[#allocation2 + $0x90] sm:$0xff] %vm1098_vm8, %v8380_v57  ;;  %v18220_v57 = vld [vmem:[#allocation3 + $0x78] sm:$0xff]  }
 0x466   : > { %v8378_v14 = vpop.permute.xlu1 %8377  ;;  %8403 = vrot.lane.b32.xlu1 %v13939_v2, %s14079_s21  ;;  %v13966_v2 = vld [vmem:[#allocation3 + $0x78] sm:$0xff]   ;;  %v8701_v21 = vshrl.u32 %v18220_v57, 16 }
 0x467   : > { %8430 = vst.msk [vmem:[#allocation2 + $0x58] sm:$0xff] %vm1098_vm8, %v8378_v14  ;;  %v9493_v14 = vsel %vm1487_vm6, %v9483_v56, %v18211_v63  ;;  %v9495_v47 = vshrl.u32 %v13966_v2, 16  ;;  %v9498_v50 = vshll.u32 %v13966_v2, 16  ;;  %v8705_v56 = vshll.u32 %v18243_v48, 16 }
 0x468   : > { %9559 = vrot.lane.b32.xlu0 %v9475_v8, %s14079_s21  ;;  %v18227_v8 = vld [vmem:[#allocation3 + $0x80] sm:$0xff]  }
 0x469   : > { %v9770_v55 = vrot.slane %v18227_v8, 2  ;;  %v9497_v37 = vrot.slane %v9495_v47, 1 }
 0x46a   : > { %9800 = vrot.lane.b32.xlu1 %v9765_v30, %s14078_s20  ;;  %v9173_v30 = vrot.slane %v18215_v60, 1  ;;  %v18282_v45 = vld [vmem:[#allocation3 + $0x88] sm:$0xff]   ;;  %v14016_v60 = vld [vmem:[%s19056_s6 + $0x190] sm:$0xff]  }
 0x46b   : > { %v9771_v26 = vsel %vm1824_vm0, %v9768_v23, %v9770_v55 }
 0x46c   : > { %8401 = vrot.lane.b32.xlu0 %v13943_v42, %s14079_s21  ;;  %v8161_v25 = vpop.permute.xlu1 %8160 }
 0x46d   : > { %8242 = vst.msk [vmem:[#allocation3 + $0x90] sm:$0xf] %vm8208_vm14, %v8161_v25  ;;  %v8697_v25 = vshll.u32 %v18220_v57, 16 }
 0x46e   : > { %v8163_v22 = vpop.permute.xlu0 %8162  ;;  %8988 = vrot.lane.b32.xlu1 %v8953_v51, %s14080_s22 }
 0x46f   : > { %8243 = vst.msk [vmem:[#allocation3 + $0x94] sm:$0xf] %vm8208_vm14, %v8163_v22 }
 0x470   : > { %9802 = vrot.lane.b32.xlu0 %v9767_v36, %s14078_s20  ;;  %v8967_v38 = vpop.permute.xlu1 %8966  ;;  %v13970_v36 = vld [vmem:[#allocation3 + $0x80] sm:$0xff]  }
 0x471   : > { %9019 = vst.msk [vmem:[#allocation2 + $0x60] sm:$0xff] %vm505_vm4, %v8967_v38  ;;  %v9174_v38 = vsel %vm1006_vm1, %v9171_v11, %v9173_v30  ;;  %v9504_v20 = vshrl.u32 %v13970_v36, 16  ;;  %v13976_v11 = vld [vmem:[#allocation3 + $0x88] sm:$0xff]  }
 0x472   : > { %v8165_v7 = vpop.permute.xlu0 %8164  ;;  %8749 = vrot.lane.b32.xlu1 %v8684_v62, %s14078_s20  ;;  %9222 = vst.msk [vmem:[#allocation2 + $0x60] sm:$0xff] %vm857_vm7, %v9170_v19  ;;  %v8699_v19 = vrot.slane %v8697_v25, 1 }
 0x473   : > { %v8247_v13 = vsel %vm8245_vm15, %v8165_v7, %v8246_v32  ;;  %v9500_v32 = vrot.slane %v9498_v50, 2  ;;  %v9507_v7 = vshll.u32 %v13970_v36, 16  ;;  %v9506_v23 = vrot.slane %v9504_v20, 1 }
 0x474   : > { %8248 = vst [vmem:[#allocation3 + $0x98] sm:$0x3] %v8247_v13  ;;  %8990 = vrot.lane.b32.xlu0 %v8955_v5, %s14080_s22  ;;  %v8728_v18 = vpop.permute.xlu1 %8727  ;;  %v8700_v53 = vsel %vm654_vm2, %v8695_v12, %v8699_v19  ;;  %v13974_v6 = vld [vmem:[#allocation3 + $0x90] ss:$0 sps:$4 sm:$0x11]   ;;  %v14003_v12 = vld [vmem:[%s19056_s6 + $0x188] sm:$0xff]  }
 0x475   : > { %8780 = vst.msk [vmem:[#allocation2 + $0x58] sm:$0xff] %vm1338_vm9, %v8728_v18  ;;  %v9501_v16 = vor.u32 %v9500_v32, %v9497_v37  ;;  %v18276_v18 = vld [vmem:[#allocation3 + $0x88] sm:$0xff]   ;;  %v9509_v2 = vrot.slane %v9507_v7, 2  ;;  %v8709_v37 = vshrl.u32 %v18243_v48, 16 }
 0x476   : > { %v8384_v24 = vpop.permute.xlu0 %8383  ;;  %9561 = vrot.lane.b32.xlu1 %v9484_v34, %s14079_s21  ;;  %v9772_v25 = vrot.slane %v18276_v18, 2  ;;  %v14037_v18 = vld [vmem:[%s19056_s6 + $0x1a0] sm:$0xff]  }
 0x477   : > { %8433 = vst.msk [vmem:[#allocation2 + $0x100] sm:$0xff] %vm1098_vm8, %v8384_v24  ;;  %v8707_v24 = vrot.slane %v8705_v56, 1  ;;  %v18307_v50 = vor.u32 %v9509_v2, %v9506_v23 }
 0x478   : > { %8751 = vrot.lane.b32.xlu0 %v8692_v35, %s14078_s20  ;;  %v8382_v15 = vpop.permute.xlu1 %8381  ;;  %v18284_v35 = vld [vmem:[#allocation3 + $0x30] sm:$0xff]  }
 0x479   : > { %8432 = vst.msk [vmem:[#allocation2 + $0xc8] sm:$0xff] %vm1098_vm8, %v8382_v15 }
 0x47a   : > { %v18222_v40 = vpop.permute.xlu0 %9780  ;;  %8407 = vrot.lane.b32.xlu1 %v13951_v10, %s14079_s21  ;;  %v8959_v10 = vsel %vm1006_vm1, %v8956_v41, %v8958_v31 }
 0x47c   : > { %v18229_v4 = vpop.f32.mrb[112].mxu0  ;;  %9563 = vrot.lane.b32.xlu0 %v9493_v14, %s14079_s21  ;;  %v18232_v44 = vpop.permute.xlu1 %9782  ;;  %v18292_v14 = vld [vmem:[#allocation3 + $0x88] sm:$0xff]  }
 0x47d   : > { %v11505_v42 = vpop.f32.mrb[113].mxu0  ;;  %v10675_v20 = vld [vmem:[#allocation2 + $0x58] sm:$0xff] }
 0x47e   : > { %v18240_v58 = vpop.f32.mrb[114].mxu0  ;;  %v8969_v51 = vpop.permute.xlu0 %8968  ;;  %9804 = vrot.lane.b32.xlu1 %v9769_v9, %s14078_s20  ;;  %v9502_v42 = vsel %vm1487_vm6, %v18211_v63, %v9501_v16  ;;  %v8703_v9 = vor.u32 %v8701_v21, %v8699_v19  ;;  %v8711_v21 = vor.u32 %v8709_v37, %v8707_v24 }
 0x47f   : > { %9020 = vst.msk [vmem:[#allocation2 + $0x98] sm:$0xff] %vm505_vm4, %v8969_v51  ;;  %v11508_v22 = vpop.f32.mrb[115].mxu0 }
 0x480   : > { %8405 = vrot.lane.b32.xlu0 %v13955_v39, %s14079_s21  ;;  %v8971_v29 = vpop.permute.xlu1 %8970  ;;  %9223 = vst.msk [vmem:[#allocation2 + $0x98] sm:$0xff] %vm857_vm7, %v9172_v54  ;;  %v8708_v47 = vsel %vm654_vm2, %v8703_v9, %v8707_v24  ;;  %v8960_v39 = vrot.slane %v18292_v14, 1  ;;  %v9513_v22 = vshrl.u32 %v13976_v11, 16  ;;  %v9177_v54 = vrot.slane %v18286_v61, 1 }
 0x481   : > { %9021 = vst.msk [vmem:[#allocation2 + $0xd0] sm:$0xff] %vm505_vm4, %v8971_v29  ;;  %v9773_v29 = vsel %vm1824_vm0, %v9770_v55, %v9772_v25  ;;  %v9511_v55 = vsel %vm1487_vm6, %v9501_v16, %v18307_v50  ;;  %v13972_v16 = vld [vmem:[#allocation3 + $0x88] sm:$0xff]  }
 0x482   : > { %v8730_v62 = vpop.permute.xlu0 %8729  ;;  %8992 = vrot.lane.b32.xlu1 %v8957_v43, %s14080_s22  ;;  %9224 = vst.msk [vmem:[#allocation2 + $0xd0] sm:$0xff] %vm857_vm7, %v9174_v38  ;;  %v9516_v38 = vshll.u32 %v13976_v11, 16  ;;  %v9515_v7 = vrot.slane %v9513_v22, 1  ;;  %v8961_v48 = vsel %vm1006_vm1, %v8958_v31, %v8960_v39  ;;  %v14068_v31 = vld [vmem:[%s19056_s6 + $0x180] sm:$0xff]  }
 0x483   : > { %8781 = vst.msk [vmem:[#allocation2 + $0x90] sm:$0xff] %vm1338_vm9, %v8730_v62  ;;  %v13980_v62 = vld [vmem:[#allocation3 + $0x90] sm:$0xff]  }
 0x484   : > { %v18271_v13 = vpop.f32.mrb[116].mxu0  ;;  %9806 = vrot.lane.b32.xlu0 %v9771_v26, %s14078_s20  ;;  %v8732_v5 = vpop.permute.xlu1 %8731  ;;  %v9525_v1 = vshll.u32 %v13980_v62, 16 }
 0x485   : > { %8782 = vst.msk [vmem:[#allocation2 + $0xc8] sm:$0xff] %vm1338_vm9, %v8732_v5  ;;  %v11513_v52 = vpop.f32.mrb[117].mxu0 }
 0x486   : > { %v18278_v46 = vpop.f32.mrb[118].mxu0  ;;  %v9542_v34 = vpop.permute.xlu0 %9541  ;;  %8753 = vrot.lane.b32.xlu1 %v8700_v53, %s14078_s20  ;;  %v9518_v52 = vrot.slane %v9516_v38, 2  ;;  %v14030_v38 = vld [vmem:[%s19056_s6 + $0x198] sm:$0xff]  }
 0x487   : > { %9594 = vst.msk [vmem:[#allocation2 + $0x60] sm:$0xff] %vm1098_vm8, %v9542_v34  ;;  %v11516_v15 = vpop.f32.mrb[119].mxu0 }
 0x488   : > { %9833 = vst.msk [vmem:[#allocation2 + $0x60] sm:$0xff] %vm1338_vm9, %v18222_v40  ;;  %8994 = vrot.lane.b32.xlu0 %v8959_v10, %s14080_s22  ;;  %v9544_v57 = vpop.permute.xlu1 %9543  ;;  %v8713_v40 = vshll.u32 %v18282_v45, 16  ;;  %v13977_v15 = vld [vmem:[#allocation3 + $0x90] sm:$0xff]   ;;  %v9522_v10 = vshrl.u32 %v13980_v62, 16  ;;  %v9519_v14 = vor.u32 %v9518_v52, %v9515_v7  ;;  %v18383_v7 = vld [vmem:[#allocation3 + $0x40] sm:$0xff]  }
 0x489   : > { %9595 = vst.msk [vmem:[#allocation2 + $0x98] sm:$0xff] %vm1098_vm8, %v9544_v57  ;;  %v13979_v57 = vld [vmem:[#allocation3 + $0x98] ss:$0 sps:$4 sm:$0x33]  }
 0x48a   : > { %9834 = vst.msk [vmem:[#allocation2 + $0x98] sm:$0xff] %vm1338_vm9, %v18232_v44  ;;  %v8388_v41 = vpop.permute.xlu0 %8387  ;;  %9565 = vrot.lane.b32.xlu1 %v9502_v42, %s14079_s21  ;;  %v9175_v44 = vrot.slane %v18284_v35, 1  ;;  %v18327_v32 = vrot.slane %v8713_v40, 1  ;;  %v8962_v35 = vrot.slane %v13974_v6, 1  ;;  %v9524_v22 = vrot.slane %v9522_v10, 1  ;;  %v18368_v6 = vld [vmem:[#allocation3 + $0x18] sm:$0xff]  }
 0x48b   : > { %8435 = vst.msk [vmem:[#allocation2 + $0x170] sm:$0xff] %vm1098_vm8, %v8388_v41  ;;  %v13983_v41 = vld [vmem:[#allocation3 + $0x90] ss:$0 sps:$4 sm:$0x11]   ;;  %v9776_v37 = vrot.slane %v13979_v57, 2 }
 0x48c   : > { %v18309_v51 = vpop.f32.mrb[120].mxu0  ;;  %8755 = vrot.lane.b32.xlu0 %v8708_v47, %s14078_s20  ;;  %v8386_v63 = vpop.permute.xlu1 %8385  ;;  %v9176_v34 = vsel %vm1006_vm1, %v9173_v30, %v9175_v44  ;;  %v8716_v24 = vsel %vm654_vm2, %v8711_v21, %v18327_v32  ;;  %v9178_v11 = vsel %vm1006_vm1, %v9175_v44, %v9177_v54  ;;  %v8963_v47 = vsel %vm1006_vm1, %v8960_v39, %v8962_v35  ;;  %v13989_v62 = vld [vmem:[#allocation3 + $0x98] ss:$0 sps:$4 sm:$0x33]  }
 0x48d   : > { %8434 = vst.msk [vmem:[#allocation2 + $0x138] sm:$0xff] %vm1098_vm8, %v8386_v63  ;;  %v11521_v36 = vpop.f32.mrb[121].mxu0  ;;  %v9774_v63 = vrot.slane %v13977_v15, 2  ;;  %v9520_v39 = vsel %vm1487_vm6, %v18307_v50, %v9519_v14  ;;  %v13984_v15 = vld [vmem:[#allocation3 + $0x10] sm:$0xf8]  }
 0x48e   : > { %v18321_v43 = vpop.f32.mrb[122].mxu0  ;;  %v18323_v19 = vpop.permute.xlu0 %9784  ;;  %9808 = vrot.lane.b32.xlu1 %v9773_v29, %s14078_s20  ;;  %v9527_v36 = vrot.slane %v9525_v1, 2  ;;  %v10682_v29 = vld [vmem:[#allocation2 + $0x90] sm:$0xff] }
 0x48f   : > { %v11524_v8 = vpop.f32.mrb[123].mxu0  ;;  %v10676_v56 = vld [vmem:[#allocation2 + $0x60] sm:$0xff]  ;;  %v9777_v52 = vsel %vm1824_vm0, %v9774_v63, %v9776_v37 }
 0x490   : > { %9567 = vrot.lane.b32.xlu0 %v9511_v55, %s14079_s21  ;;  %11678 = vmatprep.mubr.bf16.mxu1 %v10676_v56  ;;  %v18335_v26 = vpop.permute.xlu1 %9786  ;;  %v13981_v8 = vld [vmem:[#allocation3 + $0x10] sm:$0xfc]   ;;  %v9775_v55 = vsel %vm1824_vm0, %v9772_v25, %v9774_v63  ;;  %v18381_v56 = vor.u32 %v9527_v36, %v9524_v22  ;;  %v10555_v63 = vrot.slane %v13984_v15, 3 }
 0x491   : > { %11679 = vmatmul.mubr.bf16.vlgmr.msra.gmra.mrb[108].mxu1 %v10675_v20  ;;  %v10683_v5 = vld [vmem:[#allocation2 + $0x98] sm:$0xff]  ;;  %v8721_v20 = vshll.u32 %v13983_v41, 16  ;;  %v9980_v35 = vrot.slane %v13981_v8, 2 }
 0x492   : > { %v8973_v53 = vpop.permute.xlu0 %8972  ;;  %8996 = vrot.lane.b32.xlu1 %v8961_v48, %s14080_s22  ;;  %11686 = vmatprep.mubr.bf16.mxu1 %v10683_v5  ;;  %v9981_v5 = vrot.slane %v18368_v6, 2  ;;  %v9529_v1 = vsel %vm1487_vm6, %v9519_v14, %v18381_v56 }
 0x493   : > { %9022 = vst.msk [vmem:[#allocation2 + $0x108] sm:$0xff] %vm505_vm4, %v8973_v53  ;;  %13099 = vmatpush3.bf16.msra.mxu1 %v14068_v31  ;;  %v18396_v53 = vld [vmem:[#allocation3 + $0x18] sm:$0xff]   ;;  %v8717_v31 = vshrl.u32 %v18282_v45, 16 }
 0x494   : > { %v18348_v23 = vpop.f32.mrb[124].mxu0  ;;  %8409 = vrot.lane.b32.xlu0 %v13972_v16, %s14079_s21  ;;  %v8975_v2 = vpop.permute.xlu1 %8974  ;;  %9225 = vst.msk [vmem:[#allocation2 + $0x108] sm:$0xff] %vm857_vm7, %v9176_v34  ;;  %13100 = vmatprep.subr.bf16.mxu1 %v14003_v12  ;;  %v9534_v16 = vshll.u32 %v13989_v62, 16  ;;  %v10556_v45 = vrot.slane %v18396_v53, 3 }
 0x495   : > { %9023 = vst.msk [vmem:[#allocation2 + $0x140] sm:$0xff] %vm505_vm4, %v8975_v2  ;;  %v11529_v30 = vpop.f32.mrb[125].mxu0  ;;  %v8723_v2 = vrot.slane %v8721_v20, 1  ;;  %v8719_v14 = vor.u32 %v8717_v31, %v18327_v32  ;;  %v18425_v32 = vld [vmem:[#allocation3 + $0x20] sm:$0xff]  }
 0x496   : > { %v18361_v42 = vpop.f32.mrb[126].mxu0  ;;  %v8734_v9 = vpop.permute.xlu0 %8733  ;;  %8757 = vrot.lane.b32.xlu1 %v8716_v24, %s14078_s20  ;;  %9226 = vst.msk [vmem:[#allocation2 + $0x140] sm:$0xff] %vm857_vm7, %v9178_v11  ;;  %v9179_v30 = vrot.slane %v18383_v7, 1  ;;  %v9982_v24 = vsel %vm1824_vm0, %v9980_v35, %v9981_v5  ;;  %v9536_v11 = vrot.slane %v9534_v16, 2  ;;  %v10557_v37 = vsel %vm2676_vm5, %v10555_v63, %v10556_v45  ;;  %v13995_v35 = vld [vmem:[#allocation3 + $0x28] sm:$0xff]   ;;  %v14000_v63 = vld [vmem:[#allocation3 + $0x38] sm:$0xff]  }
 0x497   : > { %8783 = vst.msk [vmem:[#allocation2 + $0x100] sm:$0xff] %vm1338_vm9, %v8734_v9  ;;  %v11532_v40 = vpop.f32.mrb[127].mxu0  ;;  %13101 = vmatpush3.bf16.msra.mxu1 %v14003_v12  ;;  %v14043_v9 = vld [vmem:[%s19056_s6 + $0x1a8] sm:$0xff]  }
 0x498   : > { %8998 = vrot.lane.b32.xlu0 %v8963_v47, %s14080_s22  ;;  %v8736_v44 = vpop.permute.xlu1 %8735  ;;  %13102 = vmatprep.subr.bf16.mxu1 %v14016_v60  ;;  %v8724_v40 = vsel %vm654_vm2, %v8719_v14, %v8723_v2  ;;  %v9180_v36 = vsel %vm1006_vm1, %v9177_v54, %v9179_v30  ;;  %v13993_v54 = vld [vmem:[#allocation3 + $0x28] sm:$0xff]  }
 0x499   : > { %8784 = vst.msk [vmem:[#allocation2 + $0x138] sm:$0xff] %vm1338_vm9, %v8736_v44  ;;  %11687 = vmatmul.mubr.bf16.gmra.mrb[112].mxu1 %v10682_v29  ;;  %v9985_v16 = vrot.slane %v13993_v54, 2 }
 0x49a   : > { %v9546_v12 = vpop.permute.xlu0 %9545  ;;  %9569 = vrot.lane.b32.xlu1 %v9520_v39, %s14079_s21 }
 0x49b   : > { %9596 = vst.msk [vmem:[#allocation2 + $0xd0] sm:$0xff] %vm1098_vm8, %v9546_v12  ;;  %13103 = vmatpush3.bf16.msra.mxu1 %v14016_v60  ;;  %v18408_v60 = vld [vmem:[#allocation3 + $0x20] sm:$0xff]   ;;  %v18438_v12 = vld [vmem:[#allocation3 + $0x48] sm:$0xff]  }
 0x49c   : > { %9835 = vst.msk [vmem:[#allocation2 + $0xd0] sm:$0xff] %vm1338_vm9, %v18323_v19  ;;  %v18387_v50 = vpop.f32.mrb[128].mxu0  ;;  %9810 = vrot.lane.b32.xlu0 %v9775_v55, %s14078_s20  ;;  %v9548_v48 = vpop.permute.xlu1 %9547  ;;  %13104 = vmatprep.subr.bf16.mxu1 %v14030_v38  ;;  %v9531_v19 = vshrl.u32 %v13989_v62, 16  ;;  %v9983_v22 = vrot.slane %v18408_v60, 2 }
 0x49d   : > { %9597 = vst.msk [vmem:[#allocation2 + $0x108] sm:$0xff] %vm1098_vm8, %v9548_v48  ;;  %v11537_v25 = vpop.f32.mrb[129].mxu0 }
 0x49e   : > { %9836 = vst.msk [vmem:[#allocation2 + $0x108] sm:$0xff] %vm1338_vm9, %v18335_v26  ;;  %v18400_v34 = vpop.f32.mrb[130].mxu0  ;;  %v18402_v21 = vpop.permute.xlu0 %9788  ;;  %9812 = vrot.lane.b32.xlu1 %v9777_v52, %s14078_s20  ;;  %v9533_v57 = vrot.slane %v9531_v19, 1  ;;  %v9984_v48 = vsel %vm1824_vm0, %v9981_v5, %v9983_v22  ;;  %v13994_v25 = vld [vmem:[#allocation3 + $0x30] sm:$0xff]   ;;  %v9181_v19 = vrot.slane %v18438_v12, 1 }
 0x49f   : > { %v11540_v10 = vpop.f32.mrb[131].mxu0  ;;  %13105 = vmatpush3.bf16.msra.mxu1 %v14030_v38  ;;  %v10689_v38 = vld [vmem:[#allocation2 + $0xc8] sm:$0xff]  ;;  %v9987_v5 = vrot.slane %v13994_v25, 2  ;;  %v10696_v31 = vld [vmem:[#allocation2 + $0x100] sm:$0xff] }
 0x4a0   : > { %9571 = vrot.lane.b32.xlu0 %v9529_v1, %s14079_s21  ;;  %v8390_v26 = vpop.permute.xlu1 %8389  ;;  %13106 = vmatprep.subr.bf16.mxu1 %v14037_v18  ;;  %v9537_v61 = vor.u32 %v9536_v11, %v9533_v57  ;;  %v13996_v10 = vld [vmem:[#allocation3 + $0x30] sm:$0xff]   ;;  %v9182_v2 = vsel %vm1006_vm1, %v9179_v30, %v9181_v19  ;;  %v13998_v11 = vld [vmem:[#allocation3 + $0x40] sm:$0xff]  }
 0x4a1   : > { %8436 = vst.msk [vmem:[#allocation2 + $0x1a8] sm:$0xff] %vm1098_vm8, %v8390_v26  ;;  %v9986_v26 = vsel %vm1824_vm0, %v9983_v22, %v9985_v16  ;;  %v9988_v30 = vsel %vm1824_vm0, %v9985_v16, %v9987_v5  ;;  %v10562_v57 = vrot.slane %v13996_v10, 3 }
 0x4a2   : > { %v8977_v41 = vpop.permute.xlu0 %8976  ;;  %10017 = vrot.lane.b32.xlu1 %v9982_v24, %s14080_s22  ;;  %v9538_v53 = vsel %vm1487_vm6, %v18381_v56, %v9537_v61  ;;  %v10560_v24 = vrot.slane %v13995_v35, 3 }
 0x4a3   : > { %9024 = vst.msk [vmem:[#allocation2 + $0x178] sm:$0xff] %vm505_vm4, %v8977_v41  ;;  %v10690_v47 = vld [vmem:[#allocation2 + $0xd0] sm:$0xff]  ;;  %13107 = vmatpush3.bf16.msra.mxu1 %v14037_v18  ;;  %v10558_v18 = vrot.slane %v18425_v32, 3  ;;  %v18474_v41 = vld [vmem:[#allocation3 + $0x58] sm:$0xff]  }
 0x4a4   : > { %v18432_v44 = vpop.f32.mrb[132].mxu0  ;;  %8759 = vrot.lane.b32.xlu0 %v8724_v40, %s14078_s20  ;;  %11694 = vmatprep.mubr.bf16.mxu1 %v10690_v47  ;;  %v8392_v29 = vpop.permute.xlu1 %8391  ;;  %9227 = vst.msk [vmem:[#allocation2 + $0x178] sm:$0xff] %vm857_vm7, %v9180_v36  ;;  %v10563_v32 = vsel %vm2676_vm5, %v10560_v24, %v10562_v57  ;;  %v9185_v35 = vrot.slane %v18474_v41, 1 }
 0x4a5   : > { %8437 = vst.msk [vmem:[#allocation2 + $0x1e0] sm:$0xff] %vm1098_vm8, %v8392_v29  ;;  %v11545_v39 = vpop.f32.mrb[133].mxu0  ;;  %11695 = vmatmul.mubr.bf16.gmra.mrb[116].mxu1 %v10689_v38  ;;  %v10697_v62 = vld [vmem:[#allocation2 + $0x108] sm:$0xff]  ;;  %13108 = vmatprep.subr.bf16.mxu1 %v14043_v9  ;;  %v10559_v6 = vsel %vm2676_vm5, %v10556_v45, %v10558_v18  ;;  %v10561_v40 = vsel %vm2676_vm5, %v10558_v18, %v10560_v24  ;;  %v9991_v29 = vrot.slane %v13998_v11, 2  ;;  %v18482_v38 = vld [vmem:[#allocation3 + $0x40] sm:$0xff]  }
 0x4a6   : > { %v18440_v8 = vpop.f32.mrb[134].mxu0  ;;  %v8738_v55 = vpop.permute.xlu0 %8737  ;;  %10592 = vrot.lane.b32.xlu1 %v10557_v37, %s14079_s21  ;;  %11702 = vmatprep.mubr.bf16.mxu1 %v10697_v62  ;;  %v10703_v62 = vld [vmem:[#allocation2 + $0x138] sm:$0xff] }
 0x4a7   : > { %8785 = vst.msk [vmem:[#allocation2 + $0x170] sm:$0xff] %vm1338_vm9, %v8738_v55  ;;  %v11548_v20 = vpop.f32.mrb[135].mxu0  ;;  %13109 = vmatpush3.bf16.msra.mxu1 %v14043_v9  ;;  %v13999_v55 = vld [vmem:[#allocation3 + $0x50] sm:$0xff]  }
 0x4a8   : > { %10019 = vrot.lane.b32.xlu0 %v9984_v48, %s14080_s22  ;;  %v9791_v52 = vpop.permute.xlu1 %9790  ;;  %v10564_v20 = vrot.slane %v14000_v63, 3  ;;  %v14002_v48 = vld [vmem:[#allocation3 + $0x48] sm:$0xff]  }
 0x4aa   : > { %v9550_v15 = vpop.permute.xlu0 %9549  ;;  %9573 = vrot.lane.b32.xlu1 %v9538_v53, %s14079_s21  ;;  %v10565_v10 = vsel %vm2676_vm5, %v10562_v57, %v10564_v20 }
 0x4ab   : > { %9598 = vst.msk [vmem:[#allocation2 + $0x140] sm:$0xff] %vm1098_vm8, %v9550_v15  ;;  %v10566_v15 = vrot.slane %v18482_v38, 3  ;;  %v14008_v38 = vld [vmem:[#allocation3 + $0x60] sm:$0xff]  }
 0x4ac   : > { %9837 = vst.msk [vmem:[#allocation2 + $0x140] sm:$0xff] %vm1338_vm9, %v18402_v21  ;;  %v18457_v1 = vpop.f32.mrb[136].mxu0  ;;  %10594 = vrot.lane.b32.xlu0 %v10559_v6, %s14079_s21  ;;  %v8979_v56 = vpop.permute.xlu1 %8978  ;;  %v13997_v21 = vld [vmem:[#allocation3 + $0x38] sm:$0xff]   ;;  %v14004_v6 = vld [vmem:[#allocation3 + $0x50] sm:$0xff]  }
 0x4ad   : > { %9025 = vst.msk [vmem:[#allocation2 + $0x1b0] sm:$0xff] %vm505_vm4, %v8979_v56  ;;  %v11553_v60 = vpop.f32.mrb[137].mxu0  ;;  %11703 = vmatmul.mubr.bf16.gmra.mrb[120].mxu1 %v10696_v31  ;;  %v9989_v47 = vrot.slane %v13997_v21, 2  ;;  %v9993_v56 = vrot.slane %v14002_v48, 2  ;;  %v14005_v31 = vld [vmem:[#allocation3 + $0x48] sm:$0xff]   ;;  %v9995_v24 = vrot.slane %v14004_v6, 2 }
 0x4ae   : > { %9228 = vst.msk [vmem:[#allocation2 + $0x1b0] sm:$0xff] %vm857_vm7, %v9182_v2  ;;  %v18468_v14 = vpop.f32.mrb[138].mxu0  ;;  %v8394_v45 = vpop.permute.xlu0 %8393  ;;  %10021 = vrot.lane.b32.xlu1 %v9986_v26, %s14080_s22  ;;  %v10567_v26 = vsel %vm2676_vm5, %v10564_v20, %v10566_v15  ;;  %v18507_v21 = vld [vmem:[#allocation3 + $0x50] sm:$0xff]   ;;  %v9999_v48 = vrot.slane %v14008_v38, 2 }
 0x4af   : > { %8438 = vst.msk [vmem:[#allocation2 + $0x218] sm:$0xff] %vm1098_vm8, %v8394_v45  ;;  %v11556_v7 = vpop.f32.mrb[139].mxu0  ;;  %v9990_v54 = vsel %vm1824_vm0, %v9987_v5, %v9989_v47  ;;  %v9992_v16 = vsel %vm1824_vm0, %v9989_v47, %v9991_v29  ;;  %v9994_v11 = vsel %vm1824_vm0, %v9991_v29, %v9993_v56  ;;  %v14007_v47 = vld [vmem:[#allocation3 + $0x58] sm:$0xff]   ;;  %v10570_v29 = vrot.slane %v18507_v21, 3 }
 0x4b0   : > { %10023 = vrot.lane.b32.xlu0 %v9988_v30, %s14080_s22  ;;  %v8740_v9 = vpop.permute.xlu1 %8739 }
 0x4b1   : > { %8786 = vst.msk [vmem:[#allocation2 + $0x1a8] sm:$0xff] %vm1338_vm9, %v8740_v9 }
 0x4b2   : > { %v18478_v22 = vpop.permute.xlu0 %9792  ;;  %10596 = vrot.lane.b32.xlu1 %v10561_v40, %s14079_s21  ;;  %v10568_v40 = vrot.slane %v14005_v31, 3 }
 0x4b3   : > { %v10704_v36 = vld [vmem:[#allocation2 + $0x140] sm:$0xff] }
 0x4b4   : > { %v18484_v39 = vpop.f32.mrb[140].mxu0  ;;  %10598 = vrot.lane.b32.xlu0 %v10563_v32, %s14079_s21  ;;  %11710 = vmatprep.mubr.bf16.mxu1 %v10704_v36  ;;  %v9552_v37 = vpop.permute.xlu1 %9551  ;;  %v10710_v36 = vld [vmem:[#allocation2 + $0x170] sm:$0xff]  ;;  %v10571_v20 = vsel %vm2676_vm5, %v10568_v40, %v10570_v29 }
 0x4b5   : > { %9599 = vst.msk [vmem:[#allocation2 + $0x178] sm:$0xff] %vm1098_vm8, %v9552_v37  ;;  %v11561_v61 = vpop.f32.mrb[141].mxu0  ;;  %11711 = vmatmul.mubr.bf16.gmra.mrb[124].mxu1 %v10703_v62  ;;  %v10569_v62 = vsel %vm2676_vm5, %v10566_v15, %v10568_v40 }
 0x4b6   : > { %9838 = vst.msk [vmem:[#allocation2 + $0x178] sm:$0xff] %vm1338_vm9, %v9791_v52  ;;  %v18490_v18 = vpop.f32.mrb[142].mxu0  ;;  %v18492_v25 = vpop.permute.xlu0 %9794  ;;  %10025 = vrot.lane.b32.xlu1 %v9990_v54, %s14080_s22  ;;  %v9183_v52 = vrot.slane %v13999_v55, 1  ;;  %v9997_v61 = vrot.slane %v14007_v47, 2  ;;  %v14009_v54 = vld [vmem:[#allocation3 + $0x58] sm:$0xff]   ;;  %v14014_v47 = vld [vmem:[#allocation3 + $0x68] sm:$0xff]  }
 0x4b7   : > { %v11564_v53 = vpop.f32.mrb[143].mxu0 }
 0x4b8   : > { %10027 = vrot.lane.b32.xlu0 %v9992_v16, %s14080_s22  ;;  %v8396_v5 = vpop.permute.xlu1 %8395  ;;  %v9186_v60 = vsel %vm1006_vm1, %v9183_v52, %v9185_v35  ;;  %v9184_v30 = vsel %vm1006_vm1, %v9181_v19, %v9183_v52  ;;  %v9996_v19 = vsel %vm1824_vm0, %v9993_v56, %v9995_v24  ;;  %v18533_v53 = vld [vmem:[#allocation3 + $0x60] sm:$0xff]   ;;  %v9998_v6 = vsel %vm1824_vm0, %v9995_v24, %v9997_v61 }
 0x4b9   : > { %8439 = vst.msk [vmem:[#allocation2 + $0x250] sm:$0xff] %vm1098_vm8, %v8396_v5  ;;  %v10572_v5 = vrot.slane %v14009_v54, 3  ;;  %v14011_v52 = vld [vmem:[#allocation3 + $0x60] sm:$0xff]   ;;  %v10574_v21 = vrot.slane %v18533_v53, 3  ;;  %v14017_v54 = vld [vmem:[#allocation3 + $0x78] sm:$0xff]  }
 0x4ba   : > { %v8983_v2 = vpop.permute.xlu0 %8982  ;;  %10600 = vrot.lane.b32.xlu1 %v10565_v10, %s14079_s21  ;;  %v14012_v10 = vld [vmem:[#allocation3 + $0x68] sm:$0xff]  }
 0x4bb   : > { %9027 = vst.msk [vmem:[#allocation2 + $0x220] sm:$0xff] %vm505_vm4, %v8983_v2  ;;  %v10001_v40 = vrot.slane %v14012_v10, 2  ;;  %v10005_v10 = vrot.slane %v14017_v54, 2 }
 0x4bc   : > { %9230 = vst.msk [vmem:[#allocation2 + $0x220] sm:$0xff] %vm857_vm7, %v9186_v60  ;;  %v18510_v45 = vpop.f32.mrb[144].mxu0  ;;  %10602 = vrot.lane.b32.xlu0 %v10567_v26, %s14079_s21  ;;  %v8981_v7 = vpop.permute.xlu1 %8980  ;;  %v10000_v60 = vsel %vm1824_vm0, %v9997_v61, %v9999_v48  ;;  %v10576_v61 = vrot.slane %v14014_v47, 3 }
 0x4bd   : > { %9026 = vst.msk [vmem:[#allocation2 + $0x1e8] sm:$0xff] %vm505_vm4, %v8981_v7  ;;  %v11569_v57 = vpop.f32.mrb[145].mxu0  ;;  %v10711_v9 = vld [vmem:[#allocation2 + $0x178] sm:$0xff]  ;;  %v14013_v7 = vld [vmem:[#allocation3 + $0x70] sm:$0xff]  }
 0x4be   : > { %9229 = vst.msk [vmem:[#allocation2 + $0x1e8] sm:$0xff] %vm857_vm7, %v9184_v30  ;;  %v18519_v63 = vpop.f32.mrb[146].mxu0  ;;  %v9554_v32 = vpop.permute.xlu0 %9553  ;;  %10029 = vrot.lane.b32.xlu1 %v9994_v11, %s14080_s22  ;;  %11718 = vmatprep.mubr.bf16.mxu1 %v10711_v9  ;;  %v10717_v30 = vld [vmem:[#allocation2 + $0x1a8] sm:$0xff]  ;;  %v18549_v57 = vld [vmem:[#allocation3 + $0x68] sm:$0xff]   ;;  %v10573_v11 = vsel %vm2676_vm5, %v10570_v29, %v10572_v5  ;;  %v9187_v9 = vrot.slane %v14011_v52, 1  ;;  %v10577_v52 = vsel %vm2676_vm5, %v10574_v21, %v10576_v61 }
 0x4bf   : > { %9600 = vst.msk [vmem:[#allocation2 + $0x1b0] sm:$0xff] %vm1098_vm8, %v9554_v32  ;;  %v11572_v12 = vpop.f32.mrb[147].mxu0  ;;  %11719 = vmatmul.mubr.bf16.gmra.mrb[128].mxu1 %v10710_v36  ;;  %v10003_v36 = vrot.slane %v14013_v7, 2 }
 0x4c0   : > { %9839 = vst.msk [vmem:[#allocation2 + $0x1b0] sm:$0xff] %vm1338_vm9, %v18478_v22  ;;  %10031 = vrot.lane.b32.xlu0 %v9996_v19, %s14080_s22  ;;  %v8742_v37 = vpop.permute.xlu1 %8741  ;;  %v14015_v12 = vld [vmem:[#allocation3 + $0x70] sm:$0xff]   ;;  %v9188_v29 = vsel %vm1006_vm1, %v9185_v35, %v9187_v9  ;;  %v9189_v35 = vrot.slane %v18549_v57, 1 }
 0x4c1   : > { %8787 = vst.msk [vmem:[#allocation2 + $0x1e0] sm:$0xff] %vm1338_vm9, %v8742_v37  ;;  %v10006_v47 = vsel %vm1824_vm0, %v10003_v36, %v10005_v10 }
 0x4c2   : > { %v8744_v55 = vpop.permute.xlu0 %8743  ;;  %10604 = vrot.lane.b32.xlu1 %v10569_v62, %s14079_s21  ;;  %v10002_v62 = vsel %vm1824_vm0, %v9999_v48, %v10001_v40 }
 0x4c3   : > { %8788 = vst.msk [vmem:[#allocation2 + $0x218] sm:$0xff] %vm1338_vm9, %v8744_v55 }
 0x4c4   : > { %v18535_v22 = vpop.f32.mrb[148].mxu0  ;;  %10606 = vrot.lane.b32.xlu0 %v10571_v20, %s14079_s21  ;;  %v8400_v16 = vpop.permute.xlu1 %8399 }
 0x4c5   : > { %8441 = vst.msk [vmem:[#allocation2 + $0x2c0] sm:$0xff] %vm1098_vm8, %v8400_v16  ;;  %v11577_v15 = vpop.f32.mrb[149].mxu0  ;;  %v10004_v16 = vsel %vm1824_vm0, %v10001_v40, %v10003_v36 }
 0x4c6   : > { %v18540_v56 = vpop.f32.mrb[150].mxu0  ;;  %v9556_v31 = vpop.permute.xlu0 %9555  ;;  %10033 = vrot.lane.b32.xlu1 %v9998_v6, %s14080_s22  ;;  %v10578_v15 = vrot.slane %v14015_v12, 3  ;;  %v14018_v6 = vld [vmem:[#allocation3 + $0x80] sm:$0xff]  }
 0x4c7   : > { %9601 = vst.msk [vmem:[#allocation2 + $0x1e8] sm:$0xff] %vm1098_vm8, %v9556_v31  ;;  %v11580_v2 = vpop.f32.mrb[151].mxu0  ;;  %v10718_v26 = vld [vmem:[#allocation2 + $0x1b0] sm:$0xff]  ;;  %v14019_v31 = vld [vmem:[#allocation3 + $0x78] sm:$0xff]   ;;  %v10007_v7 = vrot.slane %v14018_v6, 2 }
 0x4c8   : > { %9840 = vst.msk [vmem:[#allocation2 + $0x1e8] sm:$0xff] %vm1338_vm9, %v18492_v25  ;;  %10035 = vrot.lane.b32.xlu0 %v10000_v60, %s14080_s22  ;;  %11726 = vmatprep.mubr.bf16.mxu1 %v10718_v26  ;;  %v9797_v24 = vpop.permute.xlu1 %9796  ;;  %v10575_v25 = vsel %vm2676_vm5, %v10572_v5, %v10574_v21  ;;  %v10724_v5 = vld [vmem:[#allocation2 + $0x1e0] sm:$0xff]  ;;  %v9190_v60 = vsel %vm1006_vm1, %v9187_v9, %v9189_v35 }
 0x4c9   : > { %11727 = vmatmul.mubr.bf16.gmra.mrb[132].mxu1 %v10717_v30  ;;  %v10579_v26 = vsel %vm2676_vm5, %v10576_v61, %v10578_v15  ;;  %v18578_v30 = vld [vmem:[#allocation3 + $0x80] sm:$0xff]   ;;  %v14027_v61 = vld [vmem:[#allocation3 + $0x8] sm:$0xfe]  }
 0x4ca   : > { %v8398_v32 = vpop.permute.xlu0 %8397  ;;  %10608 = vrot.lane.b32.xlu1 %v10573_v11, %s14079_s21 }
 0x4cb   : > { %8440 = vst.msk [vmem:[#allocation2 + $0x288] sm:$0xff] %vm1098_vm8, %v8398_v32  ;;  %v10580_v32 = vrot.slane %v14019_v31, 3  ;;  %v14026_v31 = vld [vmem:[#allocation3] sm:$0xfe]  }
 0x4cc   : > { %v18555_v19 = vpop.f32.mrb[152].mxu0  ;;  %10610 = vrot.lane.b32.xlu0 %v10575_v25, %s14079_s21  ;;  %v8985_v38 = vpop.permute.xlu1 %8984  ;;  %v14021_v25 = vld [vmem:[#allocation3 + $0x88] sm:$0xff]  }
 0x4cd   : > { %9028 = vst.msk [vmem:[#allocation2 + $0x258] sm:$0xff] %vm505_vm4, %v8985_v38  ;;  %v11585_v37 = vpop.f32.mrb[153].mxu0  ;;  %v10009_v54 = vrot.slane %v14021_v25, 2  ;;  %v10731_v25 = vld [vmem:[#allocation2 + $0x218] sm:$0xff] }
 0x4ce   : > { %9231 = vst.msk [vmem:[#allocation2 + $0x258] sm:$0xff] %vm857_vm7, %v9188_v29  ;;  %v18564_v55 = vpop.f32.mrb[154].mxu0  ;;  %v9799_v20 = vpop.permute.xlu0 %9798  ;;  %10037 = vrot.lane.b32.xlu1 %v10002_v62, %s14080_s22  ;;  %v10008_v29 = vsel %vm1824_vm0, %v10005_v10, %v10007_v7  ;;  %v10582_v37 = vrot.slane %v18578_v30, 3  ;;  %v18593_v62 = vld [vmem:[#allocation3 + $0x90] sm:$0xff]   ;;  %v18612_v10 = vld [vmem:[#allocation3 + $0x78] sm:$0xff]  }
 0x4cf   : > { %v11588_v53 = vpop.f32.mrb[155].mxu0  ;;  %v10725_v41 = vld [vmem:[#allocation2 + $0x1e8] sm:$0xff] }
 0x4d0   : > { %10039 = vrot.lane.b32.xlu0 %v10004_v16, %s14080_s22  ;;  %11734 = vmatprep.mubr.bf16.mxu1 %v10725_v41  ;;  %v8746_v48 = vpop.permute.xlu1 %8745  ;;  %v18598_v53 = vld [vmem:[#allocation3 + $0x70] sm:$0xff]   ;;  %v14024_v16 = vld [vmem:[#allocation3 + $0x88] sm:$0xff]   ;;  %v10583_v6 = vsel %vm2676_vm5, %v10580_v32, %v10582_v37 }
 0x4d1   : > { %8789 = vst.msk [vmem:[#allocation2 + $0x250] sm:$0xff] %vm1338_vm9, %v8746_v48  ;;  %11735 = vmatmul.mubr.bf16.gmra.mrb[136].mxu1 %v10724_v5  ;;  %v10011_v48 = vrot.slane %v18593_v62, 2  ;;  %v18604_v5 = vld [vmem:[#allocation3 + $0x90] sm:$0xff]  }
 0x4d2   : > { %v8987_v2 = vpop.permute.xlu0 %8986  ;;  %10612 = vrot.lane.b32.xlu1 %v10577_v52, %s14079_s21 }
 0x4d3   : > { %9029 = vst.msk [vmem:[#allocation2 + $0x290] sm:$0xff] %vm505_vm4, %v8987_v2  ;;  %v9370_v2 = vshrl.u32 %v14027_v61, 16 }
 0x4d4   : > { %9232 = vst.msk [vmem:[#allocation2 + $0x290] sm:$0xff] %vm857_vm7, %v9190_v60  ;;  %v18581_v11 = vpop.f32.mrb[156].mxu0  ;;  %10614 = vrot.lane.b32.xlu0 %v10579_v26, %s14079_s21  ;;  %v9558_v21 = vpop.permute.xlu1 %9557  ;;  %v10010_v26 = vsel %vm1824_vm0, %v10007_v7, %v10009_v54  ;;  %v10012_v7 = vsel %vm1824_vm0, %v10009_v54, %v10011_v48 }
 0x4d5   : > { %9602 = vst.msk [vmem:[#allocation2 + $0x220] sm:$0xff] %vm1098_vm8, %v9558_v21  ;;  %v11593_v40 = vpop.f32.mrb[157].mxu0  ;;  %v9191_v21 = vrot.slane %v18598_v53, 1  ;;  %v9372_v53 = vrot.slane %v9370_v2, 1 }
 0x4d6   : > { %9841 = vst.msk [vmem:[#allocation2 + $0x220] sm:$0xff] %vm1338_vm9, %v9797_v24  ;;  %v18587_v9 = vpop.f32.mrb[158].mxu0  ;;  %v8748_v12 = vpop.permute.xlu0 %8747  ;;  %10041 = vrot.lane.b32.xlu1 %v10006_v47, %s14080_s22  ;;  %v10581_v24 = vsel %vm2676_vm5, %v10578_v15, %v10580_v32  ;;  %v10584_v40 = vrot.slane %v14024_v16, 3  ;;  %v9373_v47 = vshll.u32 %v14027_v61, 16 }
 0x4d7   : > { %8790 = vst.msk [vmem:[#allocation2 + $0x288] sm:$0xff] %vm1338_vm9, %v8748_v12  ;;  %v11596_v38 = vpop.f32.mrb[159].mxu0  ;;  %v9192_v61 = vsel %vm1006_vm1, %v9189_v35, %v9191_v21  ;;  %v9193_v35 = vrot.slane %v18612_v10, 1 }
 0x4d8   : > { %10043 = vrot.lane.b32.xlu0 %v10008_v29, %s14080_s22  ;;  %v8404_v36 = vpop.permute.xlu1 %8403  ;;  %v10586_v38 = vrot.slane %v18604_v5, 3  ;;  %v9375_v16 = vrot.slane %v9373_v47, 2 }
 0x4d9   : > { %8443 = vst.msk [vmem:[#allocation2 + $0x330] sm:$0xff] %vm1098_vm8, %v8404_v36  ;;  %v8927_v36 = vrot.slane %v14026_v31, 1 }
 0x4da   : > { %v9560_v41 = vpop.permute.xlu0 %9559  ;;  %10616 = vrot.lane.b32.xlu1 %v10581_v24, %s14079_s21  ;;  %v10585_v24 = vsel %vm2676_vm5, %v10582_v37, %v10584_v40  ;;  %v10587_v31 = vsel %vm2676_vm5, %v10584_v40, %v10586_v38 }
 0x4db   : > { %9603 = vst.msk [vmem:[#allocation2 + $0x258] sm:$0xff] %vm1098_vm8, %v9560_v41  ;;  %v14028_v41 = vld [vmem:[#allocation3 + $0x98] sm:$0xff]  }
 0x4dc   : > { %9842 = vst.msk [vmem:[#allocation2 + $0x258] sm:$0xff] %vm1338_vm9, %v9799_v20  ;;  %v18607_v52 = vpop.f32.mrb[160].mxu0  ;;  %10618 = vrot.lane.b32.xlu0 %v10583_v6, %s14079_s21  ;;  %v18610_v15 = vpop.permute.xlu1 %9800  ;;  %v14033_v6 = vld [vmem:[#allocation3] sm:$0xff]   ;;  %v10013_v47 = vrot.slane %v14028_v41, 2 }
 0x4dd   : > { %v11601_v60 = vpop.f32.mrb[161].mxu0  ;;  %v10732_v30 = vld [vmem:[#allocation2 + $0x220] sm:$0xff] }
 0x4de   : > { %v18616_v32 = vpop.f32.mrb[162].mxu0  ;;  %v8402_v20 = vpop.permute.xlu0 %8401  ;;  %10045 = vrot.lane.b32.xlu1 %v10010_v26, %s14080_s22  ;;  %11742 = vmatprep.mubr.bf16.mxu1 %v10732_v30  ;;  %v8929_v26 = vsel %vm1006_vm1, %v8927_v36, %v8928_v0  ;;  %v9376_v30 = vor.u32 %v9375_v16, %v9372_v53  ;;  %v14031_v0 = vld [vmem:[#allocation3 + $0x8] sm:$0xfc]   ;;  %v14032_v36 = vld [vmem:[#allocation3 + $0xa0] ss:$0 sps:$4 sm:$0x33]   ;;  %v10014_v53 = vsel %vm1824_vm0, %v10011_v48, %v10013_v47 }
 0x4df   : > { %8442 = vst.msk [vmem:[#allocation2 + $0x2f8] sm:$0xff] %vm1098_vm8, %v8402_v20  ;;  %v11604_v12 = vpop.f32.mrb[163].mxu0  ;;  %11743 = vmatmul.mubr.bf16.gmra.mrb[140].mxu1 %v10731_v25  ;;  %v8580_v20 = vshll.u32 %v14033_v6, 16  ;;  %v9741_v41 = vrot.slane %v14031_v0, 2 }
 0x4e0   : > { %10047 = vrot.lane.b32.xlu0 %v10012_v7, %s14080_s22  ;;  %v8989_v29 = vpop.permute.xlu1 %8988  ;;  %v10738_v12 = vld [vmem:[#allocation2 + $0x250] sm:$0xff]  ;;  %v9194_v7 = vsel %vm1006_vm1, %v9191_v21, %v9193_v35  ;;  %v9385_v49 = vsel %vm1487_vm6, %v9376_v30, %v17983_v33  ;;  %v8578_v21 = vshrl.u32 %v14033_v6, 16 }
 0x4e1   : > { %9030 = vst.msk [vmem:[#allocation2 + $0x2c8] sm:$0xff] %vm505_vm4, %v8989_v29  ;;  %v8582_v16 = vrot.slane %v8580_v20, 1 }
 0x4e2   : > { %9233 = vst.msk [vmem:[#allocation2 + $0x2c8] sm:$0xff] %vm857_vm7, %v9192_v61  ;;  %v9803_v54 = vpop.permute.xlu0 %9802  ;;  %10620 = vrot.lane.b32.xlu1 %v10585_v24, %s14079_s21  ;;  %v14029_v24 = vld [vmem:[#allocation3] sm:$0xff]  }
 0x4e3   : > { %v10739_v57 = vld [vmem:[#allocation2 + $0x258] sm:$0xff]  ;;  %v8583_v6 = vor.u32 %v8582_v16, %v8578_v21 }
 0x4e4   : > { %v18636_v60 = vpop.f32.mrb[164].mxu0  ;;  %10622 = vrot.lane.b32.xlu0 %v10587_v31, %s14079_s21  ;;  %11750 = vmatprep.mubr.bf16.mxu1 %v10739_v57  ;;  %v8750_v37 = vpop.permute.xlu1 %8749  ;;  %v10015_v31 = vrot.slane %v14032_v36, 2  ;;  %v14034_v57 = vld [vmem:[#allocation3 + $0x98] sm:$0xff]  }
 0x4e5   : > { %8791 = vst.msk [vmem:[#allocation2 + $0x2c0] sm:$0xff] %vm1338_vm9, %v8750_v37  ;;  %v11609_v2 = vpop.f32.mrb[165].mxu0 }
 0x4e6   : > { %v18643_v40 = vpop.f32.mrb[166].mxu0  ;;  %v8991_v25 = vpop.permute.xlu0 %8990  ;;  %8964 = vrot.lane.b32.xlu1 %v8929_v26, %s14080_s22  ;;  %v14035_v2 = vld [vmem:[#allocation3 + $0x80] sm:$0xff]  }
 0x4e7   : > { %9031 = vst.msk [vmem:[#allocation2 + $0x300] sm:$0xff] %vm505_vm4, %v8991_v25  ;;  %v11612_v29 = vpop.f32.mrb[167].mxu0  ;;  %11751 = vmatmul.mubr.bf16.gmra.mrb[144].mxu1 %v10738_v12  ;;  %v14036_v26 = vld [vmem:[#allocation3 + $0xa0] ss:$0 sps:$4 sm:$0x77]   ;;  %v10016_v12 = vsel %vm1824_vm0, %v10013_v47, %v10015_v31  ;;  %v9195_v0 = vrot.slane %v14035_v2, 1 }
 0x4e8   : > { %9234 = vst.msk [vmem:[#allocation2 + $0x300] sm:$0xff] %vm857_vm7, %v9194_v7  ;;  %9539 = vrot.lane.b32.xlu0 %v9385_v49, %s14079_s21  ;;  %v9562_v61 = vpop.permute.xlu1 %9561  ;;  %v10588_v7 = vrot.slane %v14034_v57, 3  ;;  %v8588_v29 = vsel %vm654_vm2, %v8583_v6, %v17909_v17  ;;  %v10590_v36 = vrot.slane %v14036_v26, 3  ;;  %v14038_v2 = vld [vmem:[#allocation3 + $0x90] sm:$0xff]  }
 0x4e9   : > { %9604 = vst.msk [vmem:[#allocation2 + $0x290] sm:$0xff] %vm1098_vm8, %v9562_v61 }
 0x4ea   : > { %9843 = vst.msk [vmem:[#allocation2 + $0x290] sm:$0xff] %vm1338_vm9, %v18610_v15  ;;  %v8752_v33 = vpop.permute.xlu0 %8751  ;;  %10049 = vrot.lane.b32.xlu1 %v10014_v53, %s14080_s22  ;;  %v9743_v15 = vsel %vm1824_vm0, %v9741_v41, %v9742_v27  ;;  %v9068_v27 = vld [vmem:[#allocation3 + $0x88] sm:$0xff]   ;;  %v9196_v53 = vsel %vm1006_vm1, %v9193_v35, %v9195_v0  ;;  %v10591_v16 = vsel %vm2676_vm5, %v10588_v7, %v10590_v36  ;;  %v14041_v36 = vld [vmem:[#allocation3 + $0x18] sm:$0xff]   ;;  %vm11229_vm0 = vcmask 785408  }
 0x4eb   : > { %8792 = vst.msk [vmem:[#allocation2 + $0x2f8] sm:$0xff] %vm1338_vm9, %v8752_v33  ;;  %v9197_v31 = vrot.slane %v9068_v27, 1 }
 0x4ec   : > { %v18662_v37 = vpop.f32.mrb[168].mxu0  ;;  %8375 = vrot.lane.b32.xlu0 %v14029_v24, %s14079_s21  ;;  %v8408_v62 = vpop.permute.xlu1 %8407  ;;  %v10745_v24 = vld [vmem:[#allocation2 + $0x288] sm:$0xff]  ;;  %v10752_v35 = vld [vmem:[#allocation2 + $0x2c0] sm:$0xff] }
 0x4ed   : > { %8445 = vst.msk [vmem:[#allocation2 + $0x3a0] sm:$0xff] %vm1098_vm8, %v8408_v62  ;;  %v11617_v48 = vpop.f32.mrb[169].mxu0  ;;  %v9198_v62 = vsel %vm1006_vm1, %v9195_v0, %v9197_v31 }
 0x4ee   : > { %v18669_v30 = vpop.f32.mrb[170].mxu0  ;;  %v9564_v20 = vpop.permute.xlu0 %9563  ;;  %9778 = vrot.lane.b32.xlu1 %v9743_v15, %s14078_s20 }
 0x4ef   : > { %9605 = vst.msk [vmem:[#allocation2 + $0x2c8] sm:$0xff] %vm1098_vm8, %v9564_v20  ;;  %v11620_v25 = vpop.f32.mrb[171].mxu0 }
 0x4f0   : > { %9844 = vst.msk [vmem:[#allocation2 + $0x2c8] sm:$0xff] %vm1338_vm9, %v9803_v54  ;;  %10051 = vrot.lane.b32.xlu0 %v10016_v12, %s14080_s22  ;;  %v9805_v3 = vpop.permute.xlu1 %9804  ;;  %v10589_v54 = vsel %vm2676_vm5, %v10586_v38, %v10588_v7  ;;  %v9199_v7 = vrot.slane %v14038_v2, 1  ;;  %s301_s22 = smul.u32 36, %s14132_s28 }
 0x4f1   : > { %v10746_v49 = vld [vmem:[#allocation2 + $0x290] sm:$0xff] }
 0x4f2   : > { %v8406_v61 = vpop.permute.xlu0 %8405  ;;  %8725 = vrot.lane.b32.xlu1 %v8588_v29, %s14078_s20  ;;  %11758 = vmatprep.mubr.bf16.mxu1 %v10746_v49  ;;  %v14039_v29 = vld [vmem:[#allocation3 + $0x98] ss:$0 sps:$4 sm:$0x11]   ;;  %v9200_v0 = vsel %vm1006_vm1, %v9197_v31, %v9199_v7  ;;  %p302_p4 = scmp.lt.s32.totalorder %s301_s22, 71 }
 0x4f3   : > { %8444 = vst.msk [vmem:[#allocation2 + $0x368] sm:$0xff] %vm1098_vm8, %v8406_v61  ;;  %11759 = vmatmul.mubr.bf16.gmra.mrb[148].mxu1 %v10745_v24  ;;  %v10759_v24 = vld [vmem:[#allocation2 + $0x2f8] sm:$0xff] }
 0x4f4   : > { %v18683_v47 = vpop.f32.mrb[172].mxu0  ;;  %10624 = vrot.lane.b32.xlu0 %v10589_v54, %s14079_s21  ;;  %v8993_v17 = vpop.permute.xlu1 %8992  ;;  %v9201_v54 = vrot.slane %v14039_v29, 1  ;;  %s19240_s22 = smov (!%p302_p4, %s301_s22), 71 }
 0x4f5   : > { %9032 = vst.msk [vmem:[#allocation2 + $0x338] sm:$0xff] %vm505_vm4, %v8993_v17  ;;  %v11625_v21 = vpop.f32.mrb[173].mxu0  ;;  %v14040_v17 = vld [vmem:[#allocation3 + $0x10] sm:$0xfc]   ;;  %s12126_s10 = sshll.u32 %s19240_s22, 3 }
 0x4f6   : > { %9235 = vst.msk [vmem:[#allocation2 + $0x338] sm:$0xff] %vm857_vm7, %v9196_v53  ;;  %v18692_v33 = vpop.f32.mrb[174].mxu0  ;;  %v9807_v5 = vpop.permute.xlu0 %9806  ;;  %10626 = vrot.lane.b32.xlu1 %v10591_v16, %s14079_s21  ;;  %v10228_v21 = vshrl.u32 %v14041_v36, 16  ;;  %v10231_v16 = vshll.u32 %v14041_v36, 16  ;;  %v10220_v31 = vshrl.u32 %v14040_v17, 16  ;;  %s18970_s12 = scalar_lea.vmem %s19058_s8, %s12126_s10 }
 0x4f7   : > { %v11628_v38 = vpop.f32.mrb[175].mxu0  ;;  %v10753_v41 = vld [vmem:[#allocation2 + $0x2c8] sm:$0xff] }
 0x4f8   : > { %11766 = vmatprep.mubr.bf16.mxu1 %v10753_v41  ;;  %v8754_v57 = vpop.permute.xlu1 %8753  ;;  %v9202_v38 = vsel %vm1006_vm1, %v9199_v7, %v9201_v54  ;;  %v14045_v54 = vld [vmem:[#allocation3 + $0x30] sm:$0xff]  }
 0x4f9   : > { %8793 = vst.msk [vmem:[#allocation2 + $0x330] sm:$0xff] %vm1338_vm9, %v8754_v57  ;;  %v10223_v57 = vshll.u32 %v14040_v17, 16 }
 0x4fa   : > { %v8995_v10 = vpop.permute.xlu0 %8994 }
 0x4fb   : > { %9033 = vst.msk [vmem:[#allocation2 + $0x370] sm:$0xff] %vm505_vm4, %v8995_v10  ;;  %11767 = vmatmul.mubr.bf16.gmra.mrb[152].mxu1 %v10752_v35  ;;  %v14042_v10 = vld [vmem:[#allocation3 + $0x20] sm:$0xff]  }
 0x4fc   : > { %9236 = vst.msk [vmem:[#allocation2 + $0x370] sm:$0xff] %vm857_vm7, %v9198_v62  ;;  %v18699_v48 = vpop.f32.mrb[176].mxu0  ;;  %v9566_v15 = vpop.permute.xlu1 %9565  ;;  %v10230_v62 = vrot.slane %v10228_v21, 2  ;;  %v10237_v7 = vshrl.u32 %v14042_v10, 16 }
 0x4fd   : > { %9606 = vst.msk [vmem:[#allocation2 + $0x300] sm:$0xff] %vm1098_vm8, %v9566_v15  ;;  %v11633_v6 = vpop.f32.mrb[177].mxu0  ;;  %v10233_v15 = vrot.slane %v10231_v16, 3 }
 0x4fe   : > { %9845 = vst.msk [vmem:[#allocation2 + $0x300] sm:$0xff] %vm1338_vm9, %v9805_v3  ;;  %v18703_v26 = vpop.f32.mrb[178].mxu0  ;;  %v8756_v20 = vpop.permute.xlu0 %8755 }
 0x4ff   : > { %8794 = vst.msk [vmem:[#allocation2 + $0x368] sm:$0xff] %vm1338_vm9, %v8756_v20  ;;  %v11636_v25 = vpop.f32.mrb[179].mxu0  ;;  %v10222_v20 = vrot.slane %v10220_v31, 2  ;;  %v10255_v31 = vshrl.u32 %v14045_v54, 16 }
 0x500   : > { %v9809_v12 = vpop.permute.xlu1 %9808  ;;  %v10766_v2 = vld [vmem:[#allocation2 + $0x330] sm:$0xff]  ;;  %v10225_v25 = vrot.slane %v10223_v57, 3  ;;  %v10258_v57 = vshll.u32 %v14045_v54, 16 }
 0x502   : > { %v9568_v27 = vpop.permute.xlu0 %9567  ;;  %v10226_v36 = vor.u32 %v10225_v25, %v10222_v20  ;;  %v10257_v25 = vrot.slane %v10255_v31, 2 }
 0x503   : > { %9607 = vst.msk [vmem:[#allocation2 + $0x338] sm:$0xff] %vm1098_vm8, %v9568_v27  ;;  %v10240_v27 = vshll.u32 %v14042_v10, 16 }
 0x504   : > { %9846 = vst.msk [vmem:[#allocation2 + $0x338] sm:$0xff] %vm1338_vm9, %v9807_v5  ;;  %v8997_v49 = vpop.permute.xlu1 %8996 }
 0x505   : > { %9034 = vst.msk [vmem:[#allocation2 + $0x3a8] sm:$0xff] %vm505_vm4, %v8997_v49  ;;  %v10760_v3 = vld [vmem:[#allocation2 + $0x300] sm:$0xff]  ;;  %v10234_v49 = vor.u32 %v10233_v15, %v10230_v62  ;;  %v14046_v15 = vld [vmem:[#allocation3 + $0x38] sm:$0xff]  }
 0x506   : > { %9237 = vst.msk [vmem:[#allocation2 + $0x3a8] sm:$0xff] %vm857_vm7, %v9200_v0  ;;  %v8410_v61 = vpop.permute.xlu0 %8409  ;;  %11774 = vmatprep.mubr.bf16.mxu1 %v10760_v3  ;;  %v14044_v0 = vld [vmem:[#allocation3 + $0x28] sm:$0xff]  }
 0x507   : > { %8446 = vst.msk [vmem:[#allocation2 + $0x3d8] sm:$0xff] %vm1098_vm8, %v8410_v61  ;;  %11775 = vmatmul.mubr.bf16.gmra.mrb[156].mxu1 %v10759_v24  ;;  %v10239_v61 = vrot.slane %v10237_v7, 2  ;;  %v10242_v24 = vrot.slane %v10240_v27, 3  ;;  %v10235_v17 = vsel %vm2303_vm3, %v10226_v36, %v10234_v49  ;;  %v10246_v21 = vshrl.u32 %v14044_v0, 16  ;;  %v14047_v27 = vld [vmem:[#allocation3 + $0x40] sm:$0xff]  }
 0x508   : > { %v8758_v53 = vpop.permute.xlu1 %8757  ;;  %v10249_v16 = vshll.u32 %v14044_v0, 16  ;;  %v10260_v7 = vrot.slane %v10258_v57, 3  ;;  %v10264_v36 = vshrl.u32 %v14046_v15, 16 }
 0x509   : > { %8795 = vst.msk [vmem:[#allocation2 + $0x3a0] sm:$0xff] %vm1338_vm9, %v8758_v53 }
 0x50a   : > { %v8999_v5 = vpop.permute.xlu0 %8998  ;;  %v10251_v62 = vrot.slane %v10249_v16, 3  ;;  %v10266_v16 = vrot.slane %v10264_v36, 2 }
 0x50b   : > { %9035 = vst.msk [vmem:[#allocation2 + $0x3e0] sm:$0xff] %vm505_vm4, %v8999_v5  ;;  %v10767_v41 = vld [vmem:[#allocation2 + $0x338] sm:$0xff] }
 0x50c   : > { %9238 = vst.msk [vmem:[#allocation2 + $0x3e0] sm:$0xff] %vm857_vm7, %v9202_v38  ;;  %11782 = vmatprep.mubr.bf16.mxu1 %v10767_v41  ;;  %v9570_v35 = vpop.permute.xlu1 %9569  ;;  %v10773_v38 = vld [vmem:[#allocation2 + $0x368] sm:$0xff]  ;;  %v10243_v41 = vor.u32 %v10242_v24, %v10239_v61  ;;  %v10267_v61 = vshll.u32 %v14046_v15, 16 }
 0x50d   : > { %9608 = vst.msk [vmem:[#allocation2 + $0x370] sm:$0xff] %vm1098_vm8, %v9570_v35  ;;  %v10248_v35 = vrot.slane %v10246_v21, 2 }
 0x50e   : > { %9847 = vst.msk [vmem:[#allocation2 + $0x370] sm:$0xff] %vm1338_vm9, %v9809_v12  ;;  %v9811_v6 = vpop.permute.xlu0 %9810 }
 0x50f   : > { %11783 = vmatmul.mubr.bf16.gmra.mrb[160].mxu1 %v10766_v2  ;;  %v10244_v2 = vsel %vm2303_vm3, %v10234_v49, %v10243_v41  ;;  %v10261_v49 = vor.u32 %v10260_v7, %v10257_v25 }
 0x510   : > { %v9813_v29 = vpop.permute.xlu1 %9812  ;;  %v10780_v54 = vld [vmem:[#allocation2 + $0x3a0] sm:$0xff] }
 0x512   : > { %v9572_v3 = vpop.permute.xlu0 %9571 }
 0x513   : > { %9609 = vst.msk [vmem:[#allocation2 + $0x3a8] sm:$0xff] %vm1098_vm8, %v9572_v3  ;;  %v10252_v3 = vor.u32 %v10251_v62, %v10248_v35  ;;  %v14049_v35 = vld [vmem:[#allocation3 + $0x50] sm:$0xff]  }
 0x514   : > { %9848 = vst.msk [vmem:[#allocation2 + $0x3a8] sm:$0xff] %vm1338_vm9, %v9811_v6  ;;  %v10018_v12 = vpop.permute.xlu1 %10017 }
 0x515   : > { %10071 = vst.msk [vmem:[#allocation2 + $0x30] sm:$0xff] %vm505_vm4, %v10018_v12  ;;  %v10774_v53 = vld [vmem:[#allocation2 + $0x370] sm:$0xff]  ;;  %v10273_v12 = vshrl.u32 %v14047_v27, 16  ;;  %v10253_v21 = vsel %vm2303_vm3, %v10243_v41, %v10252_v3 }
 0x516   : > { %10407 = vst.msk [vmem:[#allocation2 + $0x30] sm:$0xff] %vm857_vm7, %v10235_v17  ;;  %v8760_v5 = vpop.permute.xlu0 %8759  ;;  %11790 = vmatprep.mubr.bf16.mxu1 %v10774_v53  ;;  %v10276_v17 = vshll.u32 %v14047_v27, 16 }
 0x517   : > { %8796 = vst.msk [vmem:[#allocation2 + $0x3d8] sm:$0xff] %vm1338_vm9, %v8760_v5  ;;  %11791 = vmatmul.mubr.bf16.gmra.mrb[164].mxu1 %v10773_v38  ;;  %v10269_v5 = vrot.slane %v10267_v61, 3  ;;  %v14048_v38 = vld [vmem:[#allocation3 + $0x48] sm:$0xff]   ;;  %v10275_v57 = vrot.slane %v10273_v12, 2  ;;  %v14050_v12 = vld [vmem:[#allocation3 + $0x58] sm:$0xff]  }
 0x518   : > { %v10593_v10 = vpop.permute.xlu1 %10592 }
 0x519   : > { %10646 = vst.msk [vmem:[#allocation2 + $0x30] sm:$0xff] %vm1098_vm8, %v10593_v10  ;;  %v10278_v10 = vrot.slane %v10276_v17, 3  ;;  %v10270_v15 = vor.u32 %v10269_v5, %v10266_v16  ;;  %v14051_v5 = vld [vmem:[#allocation3 + $0x60] sm:$0xff]  }
 0x51a   : > { %v10020_v6 = vpop.permute.xlu0 %10019 }
 0x51b   : > { %10072 = vst.msk [vmem:[#allocation2 + $0x68] sm:$0xff] %vm505_vm4, %v10020_v6  ;;  %v10781_v20 = vld [vmem:[#allocation2 + $0x3a8] sm:$0xff]  ;;  %v10282_v6 = vshrl.u32 %v14048_v38, 16  ;;  %v10279_v27 = vor.u32 %v10278_v10, %v10275_v57  ;;  %v10271_v61 = vsel %vm2303_vm3, %v10261_v49, %v10270_v15 }
 0x51c   : > { %10408 = vst.msk [vmem:[#allocation2 + $0x68] sm:$0xff] %vm857_vm7, %v10244_v2  ;;  %11798 = vmatprep.mubr.bf16.mxu1 %v10781_v20  ;;  %v9574_v0 = vpop.permute.xlu1 %9573  ;;  %v10285_v2 = vshll.u32 %v14048_v38, 16 }
 0x51d   : > { %9610 = vst.msk [vmem:[#allocation2 + $0x3e0] sm:$0xff] %vm1098_vm8, %v9574_v0  ;;  %v10291_v0 = vshrl.u32 %v14049_v35, 16 }
 0x51e   : > { %9849 = vst.msk [vmem:[#allocation2 + $0x3e0] sm:$0xff] %vm1338_vm9, %v9813_v29  ;;  %v10595_v24 = vpop.permute.xlu0 %10594  ;;  %v10262_v29 = vsel %vm2303_vm3, %v10252_v3, %v10261_v49  ;;  %v10787_v25 = vld [vmem:[#allocation2 + $0x3d8] sm:$0xff]  ;;  %v10294_v3 = vshll.u32 %v14049_v35, 16 }
 0x51f   : > { %10647 = vst.msk [vmem:[#allocation2 + $0x68] sm:$0xff] %vm1098_vm8, %v10595_v24  ;;  %11799 = vmatmul.mubr.bf16.gmra.mrb[168].mxu1 %v10780_v54  ;;  %v10284_v24 = vrot.slane %v10282_v6, 2  ;;  %v10287_v54 = vrot.slane %v10285_v2, 3 }
 0x520   : > { %v10022_v53 = vpop.permute.xlu1 %10021  ;;  %v10670_v7 = vld [vmem:[#allocation2 + $0x30] sm:$0xff]  ;;  %v10296_v16 = vrot.slane %v10294_v3, 3 }
 0x521   : > { %10073 = vst.msk [vmem:[#allocation2 + $0xa0] sm:$0xff] %vm505_vm4, %v10022_v53  ;;  %v10280_v53 = vsel %vm2303_vm3, %v10270_v15, %v10279_v27  ;;  %v10288_v49 = vor.u32 %v10287_v54, %v10284_v24  ;;  %v10312_v15 = vshll.u32 %v14051_v5, 16  ;;  %v14053_v24 = vld [vmem:[#allocation3 + $0x70] sm:$0xff]  }
 0x522   : > { %10409 = vst.msk [vmem:[#allocation2 + $0xa0] sm:$0xff] %vm857_vm7, %v10253_v21  ;;  %v10024_v31 = vpop.permute.xlu0 %10023  ;;  %v10293_v21 = vrot.slane %v10291_v0, 2 }
 0x523   : > { %10074 = vst.msk [vmem:[#allocation2 + $0xd8] sm:$0xff] %vm505_vm4, %v10024_v31  ;;  %v10300_v31 = vshrl.u32 %v14050_v12, 16  ;;  %v10289_v2 = vsel %vm2303_vm3, %v10279_v27, %v10288_v49 }
 0x524   : > { %10410 = vst.msk [vmem:[#allocation2 + $0xd8] sm:$0xff] %vm857_vm7, %v10262_v29  ;;  %v10597_v62 = vpop.permute.xlu1 %10596  ;;  %v10303_v29 = vshll.u32 %v14050_v12, 16 }
 0x525   : > { %10648 = vst.msk [vmem:[#allocation2 + $0xa0] sm:$0xff] %vm1098_vm8, %v10597_v62  ;;  %v10788_v41 = vld [vmem:[#allocation2 + $0x3e0] sm:$0xff]  ;;  %v10297_v62 = vor.u32 %v10296_v16, %v10293_v21 }
 0x526   : > { %v10599_v20 = vpop.permute.xlu0 %10598  ;;  %11806 = vmatprep.mubr.bf16.mxu1 %v10788_v41  ;;  %v10677_v10 = vld [vmem:[#allocation2 + $0x68] sm:$0xff]  ;;  %v10309_v41 = vshrl.u32 %v14051_v5, 16 }
 0x527   : > { %10649 = vst.msk [vmem:[#allocation2 + $0xd8] sm:$0xff] %vm1098_vm8, %v10599_v20  ;;  %11807 = vmatmul.mubr.bf16.gmra.mrb[172].mxu1 %v10787_v25  ;;  %v10302_v20 = vrot.slane %v10300_v31, 2  ;;  %v10305_v25 = vrot.slane %v10303_v29, 3  ;;  %v10298_v3 = vsel %vm2303_vm3, %v10288_v49, %v10297_v62  ;;  %v10330_v49 = vshll.u32 %v14053_v24, 16 }
 0x528   : > { %13110 = vmatprep.mubr.msk.bf16.mxu1 %vm11229_vm0, %v10670_v7  ;;  %v10026_v36 = vpop.permute.xlu1 %10025  ;;  %v14052_v7 = vld [vmem:[#allocation3 + $0x68] sm:$0xff]  }
 0x529   : > { %10075 = vst.msk [vmem:[#allocation2 + $0x110] sm:$0xff] %vm505_vm4, %v10026_v36  ;;  %v10311_v36 = vrot.slane %v10309_v41, 2  ;;  %v10306_v27 = vor.u32 %v10305_v25, %v10302_v20  ;;  %v10318_v12 = vshrl.u32 %v14052_v7, 16  ;;  %v14055_v20 = vld [vmem:[#allocation3 + $0x80] sm:$0xff]  }
 0x52a   : > { %10411 = vst.msk [vmem:[#allocation2 + $0x110] sm:$0xff] %vm857_vm7, %v10271_v61  ;;  %v10028_v17 = vpop.permute.xlu0 %10027  ;;  %v10314_v61 = vrot.slane %v10312_v15, 3 }
 0x52b   : > { %10076 = vst.msk [vmem:[#allocation2 + $0x148] sm:$0xff] %vm505_vm4, %v10028_v17  ;;  %v10321_v17 = vshll.u32 %v14052_v7, 16  ;;  %v10307_v29 = vsel %vm2303_vm3, %v10297_v62, %v10306_v27 }
 0x52c   : > { %10412 = vst.msk [vmem:[#allocation2 + $0x148] sm:$0xff] %vm857_vm7, %v10280_v53  ;;  %v10601_v38 = vpop.permute.xlu1 %10600  ;;  %v10684_v35 = vld [vmem:[#allocation2 + $0xa0] sm:$0xff]  ;;  %v10315_v5 = vor.u32 %v10314_v61, %v10311_v36 }
 0x52d   : > { %10650 = vst.msk [vmem:[#allocation2 + $0x110] sm:$0xff] %vm1098_vm8, %v10601_v38  ;;  %v10327_v38 = vshrl.u32 %v14053_v24, 16 }
 0x52e   : > { %v10603_v57 = vpop.permute.xlu0 %10602  ;;  %v10691_v21 = vld [vmem:[#allocation2 + $0xd8] sm:$0xff]  ;;  %v10316_v15 = vsel %vm2303_vm3, %v10306_v27, %v10315_v5  ;;  %v10348_v27 = vshll.u32 %v14055_v20, 16 }
 0x52f   : > { %10651 = vst.msk [vmem:[#allocation2 + $0x148] sm:$0xff] %vm1098_vm8, %v10603_v57  ;;  %13111 = vmatmul.mubr.msk.bf16.vlgmr.msra.gmra.mrb[176].mxu1 %vm11229_vm0, %v10677_v10  ;;  %v10320_v57 = vrot.slane %v10318_v12, 2  ;;  %v10323_v10 = vrot.slane %v10321_v17, 3 }
 0x530   : > { %13114 = vmatprep.mubr.msk.bf16.mxu1 %vm11229_vm0, %v10684_v35  ;;  %v10030_v6 = vpop.permute.xlu1 %10029  ;;  %v14054_v35 = vld [vmem:[#allocation3 + $0x78] sm:$0xff]  }
 0x531   : > { %10077 = vst.msk [vmem:[#allocation2 + $0x180] sm:$0xff] %vm505_vm4, %v10030_v6  ;;  %v10329_v6 = vrot.slane %v10327_v38, 2  ;;  %v10324_v62 = vor.u32 %v10323_v10, %v10320_v57  ;;  %v10336_v7 = vshrl.u32 %v14054_v35, 16  ;;  %v14057_v57 = vld [vmem:[#allocation3 + $0x90] sm:$0xff]  }
 0x532   : > { %10413 = vst.msk [vmem:[#allocation2 + $0x180] sm:$0xff] %vm857_vm7, %v10289_v2  ;;  %v10032_v0 = vpop.permute.xlu0 %10031  ;;  %v10332_v2 = vrot.slane %v10330_v49, 3 }
 0x533   : > { %10078 = vst.msk [vmem:[#allocation2 + $0x1b8] sm:$0xff] %vm505_vm4, %v10032_v0  ;;  %v10339_v0 = vshll.u32 %v14054_v35, 16  ;;  %v10325_v17 = vsel %vm2303_vm3, %v10315_v5, %v10324_v62 }
 0x534   : > { %10414 = vst.msk [vmem:[#allocation2 + $0x1b8] sm:$0xff] %vm857_vm7, %v10298_v3  ;;  %v10605_v54 = vpop.permute.xlu1 %10604  ;;  %v10698_v16 = vld [vmem:[#allocation2 + $0x110] sm:$0xff]  ;;  %v10333_v24 = vor.u32 %v10332_v2, %v10329_v6 }
 0x535   : > { %10652 = vst.msk [vmem:[#allocation2 + $0x180] sm:$0xff] %vm1098_vm8, %v10605_v54  ;;  %v10345_v54 = vshrl.u32 %v14055_v20, 16 }
 0x536   : > { %v10607_v53 = vpop.permute.xlu0 %10606  ;;  %v10705_v36 = vld [vmem:[#allocation2 + $0x148] sm:$0xff]  ;;  %v10334_v49 = vsel %vm2303_vm3, %v10324_v62, %v10333_v24  ;;  %v10366_v62 = vshll.u32 %v14057_v57, 16 }
 0x537   : > { %10653 = vst.msk [vmem:[#allocation2 + $0x1b8] sm:$0xff] %vm1098_vm8, %v10607_v53  ;;  %13115 = vmatmul.mubr.msk.bf16.gmra.mrb[180].mxu1 %vm11229_vm0, %v10691_v21  ;;  %v10338_v53 = vrot.slane %v10336_v7, 2  ;;  %v10341_v21 = vrot.slane %v10339_v0, 3 }
 0x538   : > { %13118 = vmatprep.mubr.msk.bf16.mxu1 %vm11229_vm0, %v10698_v16  ;;  %v10034_v31 = vpop.permute.xlu1 %10033  ;;  %v14056_v16 = vld [vmem:[#allocation3 + $0x88] sm:$0xff]  }
 0x539   : > { %10079 = vst.msk [vmem:[#allocation2 + $0x1f0] sm:$0xff] %vm505_vm4, %v10034_v31  ;;  %v10347_v31 = vrot.slane %v10345_v54, 2  ;;  %v10342_v5 = vor.u32 %v10341_v21, %v10338_v53  ;;  %v10354_v35 = vshrl.u32 %v14056_v16, 16 }
 0x53a   : > { %10415 = vst.msk [vmem:[#allocation2 + $0x1f0] sm:$0xff] %vm857_vm7, %v10307_v29  ;;  %v10036_v41 = vpop.permute.xlu0 %10035  ;;  %v10350_v29 = vrot.slane %v10348_v27, 3 }
 0x53b   : > { %10080 = vst.msk [vmem:[#allocation2 + $0x228] sm:$0xff] %vm505_vm4, %v10036_v41  ;;  %v10357_v41 = vshll.u32 %v14056_v16, 16  ;;  %v10343_v0 = vsel %vm2303_vm3, %v10333_v24, %v10342_v5  ;;  %v14059_v24 = vld [vmem:[#allocation3 + $0x98] sm:$0xff]  }
 0x53c   : > { %10416 = vst.msk [vmem:[#allocation2 + $0x228] sm:$0xff] %vm857_vm7, %v10316_v15  ;;  %v10609_v25 = vpop.permute.xlu1 %10608  ;;  %v10712_v61 = vld [vmem:[#allocation2 + $0x180] sm:$0xff]  ;;  %v10351_v20 = vor.u32 %v10350_v29, %v10347_v31 }
 0x53d   : > { %10654 = vst.msk [vmem:[#allocation2 + $0x1f0] sm:$0xff] %vm1098_vm8, %v10609_v25  ;;  %v10363_v25 = vshrl.u32 %v14057_v57, 16  ;;  %v10372_v57 = vshrl.u32 %v14059_v24, 16 }
 0x53e   : > { %v10611_v3 = vpop.permute.xlu0 %10610  ;;  %v10719_v6 = vld [vmem:[#allocation2 + $0x1b8] sm:$0xff]  ;;  %v10352_v54 = vsel %vm2303_vm3, %v10342_v5, %v10351_v20 }
 0x53f   : > { %10655 = vst.msk [vmem:[#allocation2 + $0x228] sm:$0xff] %vm1098_vm8, %v10611_v3  ;;  %13119 = vmatmul.mubr.msk.bf16.gmra.mrb[184].mxu1 %vm11229_vm0, %v10705_v36  ;;  %v10356_v3 = vrot.slane %v10354_v35, 2  ;;  %v10359_v36 = vrot.slane %v10357_v41, 3  ;;  %v10365_v27 = vrot.slane %v10363_v25, 2  ;;  %v14058_v41 = vld [vmem:[#allocation3 + $0x8] sm:$0xfe]  }
 0x540   : > { %13122 = vmatprep.mubr.msk.bf16.mxu1 %vm11229_vm0, %v10712_v61  ;;  %v10038_v12 = vpop.permute.xlu1 %10037 }
 0x541   : > { %10081 = vst.msk [vmem:[#allocation2 + $0x260] sm:$0xff] %vm505_vm4, %v10038_v12  ;;  %v10368_v12 = vrot.slane %v10366_v62, 3  ;;  %v10360_v53 = vor.u32 %v10359_v36, %v10356_v3 }
 0x542   : > { %10417 = vst.msk [vmem:[#allocation2 + $0x260] sm:$0xff] %vm857_vm7, %v10325_v17  ;;  %v10040_v38 = vpop.permute.xlu0 %10039 }
 0x543   : > { %10082 = vst.msk [vmem:[#allocation2 + $0x298] sm:$0xff] %vm505_vm4, %v10040_v38  ;;  %v10361_v29 = vsel %vm2303_vm3, %v10351_v20, %v10360_v53 }
 0x544   : > { %10418 = vst.msk [vmem:[#allocation2 + $0x298] sm:$0xff] %vm857_vm7, %v10334_v49  ;;  %v10613_v10 = vpop.permute.xlu1 %10612  ;;  %v10726_v2 = vld [vmem:[#allocation2 + $0x1f0] sm:$0xff]  ;;  %v10369_v49 = vor.u32 %v10368_v12, %v10365_v27 }
 0x545   : > { %10656 = vst.msk [vmem:[#allocation2 + $0x260] sm:$0xff] %vm1098_vm8, %v10613_v10  ;;  %v10375_v10 = vshll.u32 %v14059_v24, 16 }
 0x546   : > { %v10615_v15 = vpop.permute.xlu0 %10614  ;;  %v10733_v16 = vld [vmem:[#allocation2 + $0x228] sm:$0xff]  ;;  %v10370_v35 = vsel %vm2303_vm3, %v10360_v53, %v10369_v49 }
 0x547   : > { %10657 = vst.msk [vmem:[#allocation2 + $0x298] sm:$0xff] %vm1098_vm8, %v10615_v15  ;;  %13123 = vmatmul.mubr.msk.bf16.gmra.mrb[188].mxu1 %vm11229_vm0, %v10719_v6  ;;  %v14060_v15 = vld [vmem:[#allocation3 + $0xa0] ss:$0 sps:$4 sm:$0x77]   ;;  %v10377_v20 = vrot.slane %v10375_v10, 3 }
 0x548   : > { %13126 = vmatprep.mubr.msk.bf16.mxu1 %vm11229_vm0, %v10726_v2  ;;  %v10042_v7 = vpop.permute.xlu1 %10041  ;;  %v10374_v2 = vrot.slane %v10372_v57, 2  ;;  %v10381_v3 = vshrl.u32 %v14060_v15, 16  ;;  %v10384_v36 = vshll.u32 %v14060_v15, 16 }
 0x549   : > { %10083 = vst.msk [vmem:[#allocation2 + $0x2d0] sm:$0xff] %vm505_vm4, %v10042_v7 }
 0x54a   : > { %10419 = vst.msk [vmem:[#allocation2 + $0x2d0] sm:$0xff] %vm857_vm7, %v10343_v0  ;;  %v10044_v61 = vpop.permute.xlu0 %10043  ;;  %v9166_v0 = vrot.slane %v14058_v41, 1  ;;  %v10378_v27 = vor.u32 %v10377_v20, %v10374_v2  ;;  %v10386_v53 = vrot.slane %v10384_v36, 3 }
 0x54b   : > { %10084 = vst.msk [vmem:[#allocation2 + $0x308] sm:$0xff] %vm505_vm4, %v10044_v61 }
 0x54c   : > { %10420 = vst.msk [vmem:[#allocation2 + $0x308] sm:$0xff] %vm857_vm7, %v10352_v54  ;;  %v10617_v17 = vpop.permute.xlu1 %10616  ;;  %v10740_v38 = vld [vmem:[#allocation2 + $0x260] sm:$0xff]  ;;  %v9168_v54 = vsel %vm1006_vm1, %v9166_v0, %v9167_v59 }
 0x54d   : > { %10658 = vst.msk [vmem:[#allocation2 + $0x2d0] sm:$0xff] %vm1098_vm8, %v10617_v17  ;;  %v10383_v17 = vrot.slane %v10381_v3, 2 }
 0x54e   : > { %v10619_v21 = vpop.permute.xlu0 %10618  ;;  %v10747_v62 = vld [vmem:[#allocation2 + $0x298] sm:$0xff] }
 0x54f   : > { %10659 = vst.msk [vmem:[#allocation2 + $0x308] sm:$0xff] %vm1098_vm8, %v10619_v21  ;;  %13127 = vmatmul.mubr.msk.bf16.gmra.mrb[192].mxu1 %vm11229_vm0, %v10733_v16  ;;  %v10379_v21 = vsel %vm2303_vm3, %v10369_v49, %v10378_v27 }
 0x550   : > { %13130 = vmatprep.mubr.msk.bf16.mxu1 %vm11229_vm0, %v10740_v38  ;;  %v10046_v31 = vpop.permute.xlu1 %10045  ;;  %v10387_v38 = vor.u32 %v10386_v53, %v10383_v17 }
 0x551   : > { %10085 = vst.msk [vmem:[#allocation2 + $0x340] sm:$0xff] %vm505_vm4, %v10046_v31  ;;  %v18814_v31 = vld [vmem:[%s19057_s7] ss:$0 sm:$0xff] }
 0x552   : > { %10421 = vst.msk [vmem:[#allocation2 + $0x340] sm:$0xff] %vm857_vm7, %v10361_v29  ;;  %v10048_v5 = vpop.permute.xlu0 %10047  ;;  %v13216_v57 = vadd.f32 %v18814_v31, %v18229_v4  ;;  %v10388_v10 = vsel %vm2303_vm3, %v10378_v27, %v10387_v38  ;;  %v13218_v41 = vadd.f32 %v18814_v31, %v18240_v58  ;;  %v13220_v58 = vadd.f32 %v18814_v31, %v18271_v13 }
 0x553   : > { %10086 = vst.msk [vmem:[#allocation2 + $0x378] sm:$0xff] %vm505_vm4, %v10048_v5  ;;  %v13224_v13 = vadd.f32 %v18814_v31, %v18309_v51 }
 0x554   : > { %10422 = vst.msk [vmem:[#allocation2 + $0x378] sm:$0xff] %vm857_vm7, %v10370_v35  ;;  %v10621_v6 = vpop.permute.xlu1 %10620  ;;  %v10754_v7 = vld [vmem:[#allocation2 + $0x2d0] sm:$0xff] }
 0x555   : > { %10660 = vst.msk [vmem:[#allocation2 + $0x340] sm:$0xff] %vm1098_vm8, %v10621_v6 }
 0x556   : > { %v10623_v25 = vpop.permute.xlu0 %10622  ;;  %v10761_v16 = vld [vmem:[#allocation2 + $0x308] sm:$0xff] }
 0x557   : > { %10661 = vst.msk [vmem:[#allocation2 + $0x378] sm:$0xff] %vm1098_vm8, %v10623_v25  ;;  %13131 = vmatmul.mubr.msk.bf16.gmra.mrb[196].mxu1 %vm11229_vm0, %v10747_v62 }
 0x558   : > { %13134 = vmatprep.mubr.msk.bf16.mxu1 %vm11229_vm0, %v10754_v7  ;;  %v8965_v61 = vpop.permute.xlu1 %8964 }
 0x559   : > { %9018 = vst.msk [vmem:[#allocation2 + $0x28] sm:$0xff] %vm505_vm4, %v8965_v61  ;;  %v13222_v61 = vadd.f32 %v18814_v31, %v18278_v46  ;;  %v13226_v46 = vadd.f32 %v18814_v31, %v18321_v43 }
 0x55a   : > { %9221 = vst.msk [vmem:[#allocation2 + $0x28] sm:$0xff] %vm857_vm7, %v9168_v54  ;;  %v9540_v12 = vpop.permute.xlu0 %9539 }
 0x55b   : > { %9593 = vst.msk [vmem:[#allocation2 + $0x28] sm:$0xff] %vm1098_vm8, %v9540_v12 }
 0x55c   : > { %v10050_v24 = vpop.permute.xlu1 %10049  ;;  %v10768_v59 = vld [vmem:[#allocation2 + $0x340] sm:$0xff] }
 0x55d   : > { %10087 = vst.msk [vmem:[#allocation2 + $0x3b0] sm:$0xff] %vm505_vm4, %v10050_v24 }
 0x55e   : > { %10423 = vst.msk [vmem:[#allocation2 + $0x3b0] sm:$0xff] %vm857_vm7, %v10379_v21  ;;  %v8376_v28 = vpop.permute.xlu0 %8375  ;;  %v10775_v25 = vld [vmem:[#allocation2 + $0x378] sm:$0xff] }
 0x55f   : > { %8429 = vst.msk [vmem:[#allocation2 + $0x20] sm:$0xff] %vm1098_vm8, %v8376_v28  ;;  %13135 = vmatmul.mubr.msk.bf16.gmra.mrb[200].mxu1 %vm11229_vm0, %v10761_v16 }
 0x560   : > { %13138 = vmatprep.mubr.msk.bf16.mxu1 %vm11229_vm0, %v10768_v59  ;;  %v9779_v49 = vpop.permute.xlu1 %9778 }
 0x561   : > { %9832 = vst.msk [vmem:[#allocation2 + $0x28] sm:$0xff] %vm1338_vm9, %v9779_v49 }
 0x562   : > { %v10052_v29 = vpop.permute.xlu0 %10051 }
 0x563   : > { %10088 = vst.msk [vmem:[#allocation2 + $0x3e8] sm:$0xff] %vm505_vm4, %v10052_v29 }
 0x564   : > { %10424 = vst.msk [vmem:[#allocation2 + $0x3e8] sm:$0xff] %vm857_vm7, %v10388_v10  ;;  %v11680_v5 = vpop.f32.mrb[108].mxu1  ;;  %v8726_v35 = vpop.permute.xlu1 %8725 }
 0x565   : > { %v18825_v15 = vadd.f32 %v13216_v57, %v11680_v5  ;;  %8779 = vst.msk [vmem:[#allocation2 + $0x20] sm:$0xff] %vm1338_vm9, %v8726_v35  ;;  %v11682_v6 = vpop.f32.mrb[109].mxu1  ;;  %v13228_v57 = vadd.f32 %v18814_v31, %v18348_v23  ;;  %v13230_v5 = vadd.f32 %v18814_v31, %v18361_v42 }
 0x566   : > { %v10625_v2 = vpop.permute.xlu0 %10624  ;;  %v11683_v20 = vpop.f32.mrb[110].mxu1 }
 0x567   : > { %10662 = vst.msk [vmem:[#allocation2 + $0x3b0] sm:$0xff] %vm1098_vm8, %v10625_v2  ;;  %v18829_v4 = vadd.f32 %v13218_v41, %v11683_v20  ;;  %v11685_v62 = vpop.f32.mrb[111].mxu1  ;;  %13139 = vmatmul.mubr.msk.bf16.gmra.mrb[204].mxu1 %vm11229_vm0, %v10775_v25  ;;  %v13232_v2 = vadd.f32 %v18814_v31, %v18387_v50  ;;  %v13234_v25 = vadd.f32 %v18814_v31, %v18400_v34 }
 0x568   : > { %v10627_v7 = vpop.permute.xlu1 %10626  ;;  %v10669_v0 = vld [vmem:[#allocation2 + $0x28] sm:$0xff] }
 0x569   : > { %10663 = vst.msk [vmem:[#allocation2 + $0x3e8] sm:$0xff] %vm1098_vm8, %v10627_v7  ;;  %11670 = vmatprep.mubr.bf16.mxu0 %v10669_v0 }
 0x56c   : > { %v11688_v3 = vpop.f32.mrb[112].mxu1  ;;  %v10668_v36 = vld [vmem:[#allocation2 + $0x20] sm:$0xff] }
 0x56d   : > { %v18837_v54 = vadd.f32 %v13220_v58, %v11688_v3  ;;  %11671 = vmatmul.mubr.bf16.vlgmr.msra.gmra.mrb[108].mxu0 %v10668_v36  ;;  %v11690_v27 = vpop.f32.mrb[113].mxu1  ;;  %v13236_v58 = vadd.f32 %v18814_v31, %v18432_v44  ;;  %v13238_v36 = vadd.f32 %v18814_v31, %v18440_v8 }
 0x56e   : > { %v11691_v12 = vpop.f32.mrb[114].mxu1  ;;  %v10782_v17 = vld [vmem:[#allocation2 + $0x3b0] sm:$0xff] }
 0x56f   : > { %v18839_v53 = vadd.f32 %v13222_v61, %v11691_v12  ;;  %v11693_v24 = vpop.f32.mrb[115].mxu1  ;;  %13142 = vmatprep.mubr.msk.bf16.mxu1 %vm11229_vm0, %v10782_v17  ;;  %v13240_v17 = vadd.f32 %v18814_v31, %v18457_v1 }
 0x570   : > { %v10789_v21 = vld [vmem:[#allocation2 + $0x3e8] sm:$0xff] }
 0x571   : > { %13143 = vmatmul.mubr.msk.bf16.gmra.mrb[208].mxu1 %vm11229_vm0, %v10789_v21  ;;  %v13242_v21 = vadd.f32 %v18814_v31, %v18468_v14 }
 0x578   : > { %v11696_v28 = vpop.f32.mrb[116].mxu1 }
 0x579   : > { %v18847_v16 = vadd.f32 %v13224_v13, %v11696_v28  ;;  %v11698_v59 = vpop.f32.mrb[117].mxu1 }
 0x57a   : > { %v11699_v38 = vpop.f32.mrb[118].mxu1  ;;  %v13244_v59 = vadd.f32 %v18814_v31, %v18484_v39 }
 0x57b   : > { %v18849_v49 = vadd.f32 %v13226_v46, %v11699_v38  ;;  %v11701_v29 = vpop.f32.mrb[119].mxu1 }
 0x57c   : > { %v13246_v29 = vadd.f32 %v18814_v31, %v18490_v18 }
 0x580   : > { %v11704_v10 = vpop.f32.mrb[120].mxu1 }
 0x581   : > { %v18855_v35 = vadd.f32 %v13228_v57, %v11704_v10  ;;  %v11706_v51 = vpop.f32.mrb[121].mxu1 }
 0x582   : > { %v11707_v41 = vpop.f32.mrb[122].mxu1  ;;  %v13248_v51 = vadd.f32 %v18814_v31, %v18510_v45 }
 0x583   : > { %v18857_v6 = vadd.f32 %v13230_v5, %v11707_v41  ;;  %v11709_v43 = vpop.f32.mrb[123].mxu1 }
 0x584   : > { %v13250_v43 = vadd.f32 %v18814_v31, %v18519_v63 }
 0x588   : > { %v11712_v20 = vpop.f32.mrb[124].mxu1 }
 0x589   : > { %v18863_v62 = vadd.f32 %v13232_v2, %v11712_v20  ;;  %v11714_v23 = vpop.f32.mrb[125].mxu1 }
 0x58a   : > { %v11715_v7 = vpop.f32.mrb[126].mxu1  ;;  %v13252_v23 = vadd.f32 %v18814_v31, %v18535_v22 }
 0x58b   : > { %v18865_v0 = vadd.f32 %v13234_v25, %v11715_v7  ;;  %v11717_v42 = vpop.f32.mrb[127].mxu1 }
 0x58c   : > { %v13254_v42 = vadd.f32 %v18814_v31, %v18540_v56 }
 0x592   : > { %v11720_v3 = vpop.f32.mrb[128].mxu1 }
 0x593   : > { %v18871_v61 = vadd.f32 %v13236_v58, %v11720_v3  ;;  %v11722_v50 = vpop.f32.mrb[129].mxu1 }
 0x594   : > { %v11723_v27 = vpop.f32.mrb[130].mxu1  ;;  %v13256_v50 = vadd.f32 %v18814_v31, %v18555_v19 }
 0x595   : > { %v18873_v12 = vadd.f32 %v13238_v36, %v11723_v27  ;;  %v11725_v34 = vpop.f32.mrb[131].mxu1 }
 0x596   : > { %v13258_v34 = vadd.f32 %v18814_v31, %v18564_v55 }
 0x59c   : > { %v11728_v24 = vpop.f32.mrb[132].mxu1 }
 0x59d   : > { %v18879_v13 = vadd.f32 %v13240_v17, %v11728_v24  ;;  %v11730_v44 = vpop.f32.mrb[133].mxu1 }
 0x59e   : > { %v11731_v28 = vpop.f32.mrb[134].mxu1  ;;  %v13260_v44 = vadd.f32 %v18814_v31, %v18581_v11 }
 0x59f   : > { %v18881_v46 = vadd.f32 %v13242_v21, %v11731_v28  ;;  %v11733_v8 = vpop.f32.mrb[135].mxu1 }
 0x5a0   : > { %v13262_v8 = vadd.f32 %v18814_v31, %v18587_v9 }
 0x5a4   : > { %v11736_v38 = vpop.f32.mrb[136].mxu1 }
 0x5a5   : > { %v18887_v57 = vadd.f32 %v13244_v59, %v11736_v38  ;;  %v11738_v1 = vpop.f32.mrb[137].mxu1 }
 0x5a6   : > { %v11739_v10 = vpop.f32.mrb[138].mxu1  ;;  %v13264_v1 = vadd.f32 %v18814_v31, %v18607_v52 }
 0x5a7   : > { %v18889_v5 = vadd.f32 %v13246_v29, %v11739_v10  ;;  %v11741_v14 = vpop.f32.mrb[139].mxu1 }
 0x5a8   : > { %v13266_v14 = vadd.f32 %v18814_v31, %v18616_v32 }
 0x5b2   : > { %v11744_v41 = vpop.f32.mrb[140].mxu1 }
 0x5b3   : > { %v18895_v2 = vadd.f32 %v13248_v51, %v11744_v41  ;;  %v11746_v39 = vpop.f32.mrb[141].mxu1 }
 0x5b4   : > { %v11747_v20 = vpop.f32.mrb[142].mxu1  ;;  %v13268_v39 = vadd.f32 %v18814_v31, %v18636_v60 }
 0x5b5   : > { %v18897_v25 = vadd.f32 %v13250_v43, %v11747_v20  ;;  %v11749_v18 = vpop.f32.mrb[143].mxu1 }
 0x5b6   : > { %v13270_v18 = vadd.f32 %v18814_v31, %v18643_v40 }
 0x5ba   : > { %v11752_v7 = vpop.f32.mrb[144].mxu1 }
 0x5bb   : > { %v18903_v58 = vadd.f32 %v13252_v23, %v11752_v7  ;;  %v11754_v45 = vpop.f32.mrb[145].mxu1 }
 0x5bc   : > { %v11755_v3 = vpop.f32.mrb[146].mxu1  ;;  %v13272_v45 = vadd.f32 %v18814_v31, %v18662_v37 }
 0x5bd   : > { %v18905_v36 = vadd.f32 %v13254_v42, %v11755_v3  ;;  %v11757_v63 = vpop.f32.mrb[147].mxu1 }
 0x5be   : > { %v13274_v63 = vadd.f32 %v18814_v31, %v18669_v30 }
 0x5c6   : > { %v11760_v27 = vpop.f32.mrb[148].mxu1 }
 0x5c7   : > { %v18911_v17 = vadd.f32 %v13256_v50, %v11760_v27  ;;  %v11762_v22 = vpop.f32.mrb[149].mxu1 }
 0x5c8   : > { %v11763_v24 = vpop.f32.mrb[150].mxu1  ;;  %v13276_v22 = vadd.f32 %v18814_v31, %v18683_v47  ;;  %v13282_v47 = vadd.f32 %v18814_v31, %v18703_v26 }
 0x5c9   : > { %v18913_v21 = vadd.f32 %v13258_v34, %v11763_v24  ;;  %v11765_v56 = vpop.f32.mrb[151].mxu1 }
 0x5ca   : > { %v13278_v56 = vadd.f32 %v18814_v31, %v18692_v33 }
 0x5ce   : > { %v11768_v28 = vpop.f32.mrb[152].mxu1 }
 0x5cf   : > { %v18919_v59 = vadd.f32 %v13260_v44, %v11768_v28  ;;  %v11770_v19 = vpop.f32.mrb[153].mxu1 }
 0x5d0   : > { %v11771_v38 = vpop.f32.mrb[154].mxu1  ;;  %v13280_v19 = vadd.f32 %v18814_v31, %v18699_v48 }
 0x5d1   : > { %v18921_v29 = vadd.f32 %v13262_v8, %v11771_v38  ;;  %v11773_v55 = vpop.f32.mrb[155].mxu1 }
 0x5da   : > { %v11776_v10 = vpop.f32.mrb[156].mxu1 }
 0x5db   : > { %v18927_v51 = vadd.f32 %v13264_v1, %v11776_v10  ;;  %v11778_v11 = vpop.f32.mrb[157].mxu1 }
 0x5dc   : > { %v11779_v41 = vpop.f32.mrb[158].mxu1 }
 0x5dd   : > { %v18929_v43 = vadd.f32 %v13266_v14, %v11779_v41  ;;  %v11781_v9 = vpop.f32.mrb[159].mxu1 }
 0x5e2   : > { %v11784_v20 = vpop.f32.mrb[160].mxu1 }
 0x5e3   : > { %v18935_v23 = vadd.f32 %v13268_v39, %v11784_v20  ;;  %v11786_v52 = vpop.f32.mrb[161].mxu1 }
 0x5e4   : > { %v11787_v7 = vpop.f32.mrb[162].mxu1 }
 0x5e5   : > { %v18937_v42 = vadd.f32 %v13270_v18, %v11787_v7  ;;  %v11789_v32 = vpop.f32.mrb[163].mxu1 }
 0x5ea   : > { %v11792_v3 = vpop.f32.mrb[164].mxu1 }
 0x5eb   : > { %v18943_v60 = vadd.f32 %v13272_v45, %v11792_v3  ;;  %v11794_v50 = vpop.f32.mrb[165].mxu1 }
 0x5ec   : > { %v11795_v27 = vpop.f32.mrb[166].mxu1 }
 0x5ed   : > { %v18945_v40 = vadd.f32 %v13274_v63, %v11795_v27  ;;  %v11797_v34 = vpop.f32.mrb[167].mxu1 }
 0x5f2   : > { %v11800_v24 = vpop.f32.mrb[168].mxu1 }
 0x5f3   : > { %v18951_v37 = vadd.f32 %v13276_v22, %v11800_v24  ;;  %v11802_v44 = vpop.f32.mrb[169].mxu1 }
 0x5f4   : > { %v11803_v28 = vpop.f32.mrb[170].mxu1 }
 0x5f5   : > { %v18953_v8 = vadd.f32 %v13278_v56, %v11803_v28  ;;  %v11805_v30 = vpop.f32.mrb[171].mxu1 }
 0x5fa   : > { %v11808_v38 = vpop.f32.mrb[172].mxu1 }
 0x5fb   : > { %v18960_v55 = vadd.f32 %v13280_v19, %v11808_v38  ;;  %v11810_v1 = vpop.f32.mrb[173].mxu1 }
 0x5fc   : > { %v11811_v33 = vpop.f32.mrb[174].mxu1 }
 0x5fd   : > { %v18962_v10 = vadd.f32 %v13282_v47, %v11811_v33  ;;  %v11813_v14 = vpop.f32.mrb[175].mxu1 }
 0x602   : > { %v13112_v11 = vpop.f32.mrb[176].mxu1 }
 0x603   : > { %v11858_v41 = vadd.f32 %v18825_v15, %v13112_v11  ;;  %v18965_v9 = vpop.f32.mrb[177].mxu1 }
 0x604   : > { %v13113_v48 = vpop.f32.mrb[178].mxu1 }
 0x605   : > { %v11994_v26 = vmax.f32 %v11858_v41, 0.0  ;;  %v11861_v39 = vadd.f32 %v18829_v4, %v13113_v48  ;;  %v18973_v20 = vpop.f32.mrb[179].mxu1 }
 0x607   : > { %12030 = vst [vmem:[%s18970_s12 + $0x10] sm:$0xff] %v11994_v26  ;;  %v11995_v18 = vmax.f32 %v11861_v39, 0.0 }
 0x609   : > { %12031 = vst [vmem:[%s18970_s12 + $0x18] sm:$0xff] %v11995_v18 }
 0x60a   : > { %v13116_v15 = vpop.f32.mrb[180].mxu1 }
 0x60b   : > { %v11874_v52 = vadd.f32 %v18847_v16, %v13116_v15  ;;  %v11865_v7 = vpop.f32.mrb[181].mxu1 }
 0x60c   : > { %v11866_v32 = vadd.f32 %v18837_v54, %v11865_v7  ;;  %v13117_v45 = vpop.f32.mrb[182].mxu1 }
 0x60d   : > { %v11998_v3 = vmax.f32 %v11874_v52, 0.0  ;;  %v11877_v63 = vadd.f32 %v18849_v49, %v13117_v45  ;;  %v11868_v50 = vpop.f32.mrb[183].mxu1 }
 0x60e   : > { %v11996_v4 = vmax.f32 %v11866_v32, 0.0  ;;  %v11869_v27 = vadd.f32 %v18839_v53, %v11868_v50 }
 0x60f   : > { %12034 = vst [vmem:[%s18970_s12 + $0x30] sm:$0xff] %v11998_v3  ;;  %v11999_v34 = vmax.f32 %v11877_v63, 0.0 }
 0x610   : > { %12032 = vst [vmem:[%s18970_s12 + $0x20] sm:$0xff] %v11996_v4  ;;  %v11997_v22 = vmax.f32 %v11869_v27, 0.0 }
 0x611   : > { %12035 = vst [vmem:[%s18970_s12 + $0x38] sm:$0xff] %v11999_v34 }
 0x612   : > { %12033 = vst [vmem:[%s18970_s12 + $0x28] sm:$0xff] %v11997_v22  ;;  %v13120_v16 = vpop.f32.mrb[184].mxu1 }
 0x613   : > { %v11890_v54 = vadd.f32 %v18863_v62, %v13120_v16  ;;  %v11881_v24 = vpop.f32.mrb[185].mxu1 }
 0x614   : > { %v11882_v49 = vadd.f32 %v18855_v35, %v11881_v24  ;;  %v13121_v56 = vpop.f32.mrb[186].mxu1 }
 0x615   : > { %v12002_v44 = vmax.f32 %v11890_v54, 0.0  ;;  %v11893_v53 = vadd.f32 %v18865_v0, %v13121_v56  ;;  %v11884_v28 = vpop.f32.mrb[187].mxu1 }
 0x616   : > { %v12000_v30 = vmax.f32 %v11882_v49, 0.0  ;;  %v11885_v19 = vadd.f32 %v18857_v6, %v11884_v28 }
 0x617   : > { %12038 = vst [vmem:[%s18970_s12 + $0x50] sm:$0xff] %v12002_v44  ;;  %v12003_v38 = vmax.f32 %v11893_v53, 0.0 }
 0x618   : > { %12036 = vst [vmem:[%s18970_s12 + $0x40] sm:$0xff] %v12000_v30  ;;  %v12001_v47 = vmax.f32 %v11885_v19, 0.0 }
 0x619   : > { %12039 = vst [vmem:[%s18970_s12 + $0x58] sm:$0xff] %v12003_v38 }
 0x61a   : > { %12037 = vst [vmem:[%s18970_s12 + $0x48] sm:$0xff] %v12001_v47  ;;  %v13124_v62 = vpop.f32.mrb[188].mxu1 }
 0x61b   : > { %v11906_v35 = vadd.f32 %v18879_v13, %v13124_v62  ;;  %v11897_v1 = vpop.f32.mrb[189].mxu1 }
 0x61c   : > { %v11898_v0 = vadd.f32 %v18871_v61, %v11897_v1  ;;  %v13125_v33 = vpop.f32.mrb[190].mxu1 }
 0x61d   : > { %v12006_v14 = vmax.f32 %v11906_v35, 0.0  ;;  %v11909_v6 = vadd.f32 %v18881_v46, %v13125_v33  ;;  %v11900_v11 = vpop.f32.mrb[191].mxu1 }
 0x61e   : > { %v12004_v41 = vmax.f32 %v11898_v0, 0.0  ;;  %v11901_v48 = vadd.f32 %v18873_v12, %v11900_v11 }
 0x61f   : > { %12042 = vst [vmem:[%s18970_s12 + $0x70] sm:$0xff] %v12006_v14  ;;  %v12007_v26 = vmax.f32 %v11909_v6, 0.0 }
 0x620   : > { %12040 = vst [vmem:[%s18970_s12 + $0x60] sm:$0xff] %v12004_v41  ;;  %v12005_v39 = vmax.f32 %v11901_v48, 0.0 }
 0x621   : > { %12043 = vst [vmem:[%s18970_s12 + $0x78] sm:$0xff] %v12007_v26 }
 0x622   : > { %12041 = vst [vmem:[%s18970_s12 + $0x68] sm:$0xff] %v12005_v39  ;;  %v13128_v13 = vpop.f32.mrb[192].mxu1 }
 0x623   : > { %v11922_v61 = vadd.f32 %v18895_v2, %v13128_v13  ;;  %v11913_v18 = vpop.f32.mrb[193].mxu1 }
 0x624   : > { %v11914_v46 = vadd.f32 %v18887_v57, %v11913_v18  ;;  %v13129_v15 = vpop.f32.mrb[194].mxu1 }
 0x625   : > { %v12010_v52 = vmax.f32 %v11922_v61, 0.0  ;;  %v11925_v12 = vadd.f32 %v18897_v25, %v13129_v15  ;;  %v11916_v7 = vpop.f32.mrb[195].mxu1 }
 0x626   : > { %v12008_v32 = vmax.f32 %v11914_v46, 0.0  ;;  %v11917_v45 = vadd.f32 %v18889_v5, %v11916_v7 }
 0x627   : > { %12046 = vst [vmem:[%s18970_s12 + $0x90] sm:$0xff] %v12010_v52  ;;  %v12011_v3 = vmax.f32 %v11925_v12, 0.0 }
 0x628   : > { %12044 = vst [vmem:[%s18970_s12 + $0x80] sm:$0xff] %v12008_v32  ;;  %v12009_v63 = vmax.f32 %v11917_v45, 0.0 }
 0x629   : > { %12047 = vst [vmem:[%s18970_s12 + $0x98] sm:$0xff] %v12011_v3 }
 0x62a   : > { %12045 = vst [vmem:[%s18970_s12 + $0x88] sm:$0xff] %v12009_v63  ;;  %v13132_v2 = vpop.f32.mrb[196].mxu1 }
 0x62b   : > { %v11938_v57 = vadd.f32 %v18911_v17, %v13132_v2  ;;  %v11929_v50 = vpop.f32.mrb[197].mxu1 }
 0x62c   : > { %v11930_v25 = vadd.f32 %v18903_v58, %v11929_v50  ;;  %v13133_v4 = vpop.f32.mrb[198].mxu1 }
 0x62d   : > { %v12014_v27 = vmax.f32 %v11938_v57, 0.0  ;;  %v11941_v5 = vadd.f32 %v18913_v21, %v13133_v4  ;;  %v11932_v34 = vpop.f32.mrb[199].mxu1 }
 0x62e   : > { %v12012_v22 = vmax.f32 %v11930_v25, 0.0  ;;  %v11933_v16 = vadd.f32 %v18905_v36, %v11932_v34 }
 0x62f   : > { %12050 = vst [vmem:[%s18970_s12 + $0xb0] sm:$0xff] %v12014_v27  ;;  %v12015_v54 = vmax.f32 %v11941_v5, 0.0 }
 0x630   : > { %12048 = vst [vmem:[%s18970_s12 + $0xa0] sm:$0xff] %v12012_v22  ;;  %v12013_v24 = vmax.f32 %v11933_v16, 0.0 }
 0x631   : > { %12051 = vst [vmem:[%s18970_s12 + $0xb8] sm:$0xff] %v12015_v54 }
 0x632   : > { %12049 = vst [vmem:[%s18970_s12 + $0xa8] sm:$0xff] %v12013_v24  ;;  %v13136_v17 = vpop.f32.mrb[200].mxu1 }
 0x633   : > { %v11954_v58 = vadd.f32 %v18927_v51, %v13136_v17  ;;  %v11945_v49 = vpop.f32.mrb[201].mxu1 }
 0x634   : > { %v11946_v21 = vadd.f32 %v18919_v59, %v11945_v49  ;;  %v13137_v56 = vpop.f32.mrb[202].mxu1 }
 0x635   : > { %v12018_v44 = vmax.f32 %v11954_v58, 0.0  ;;  %v11957_v36 = vadd.f32 %v18929_v43, %v13137_v56  ;;  %v11948_v53 = vpop.f32.mrb[203].mxu1 }
 0x636   : > { %v12016_v28 = vmax.f32 %v11946_v21, 0.0  ;;  %v11949_v30 = vadd.f32 %v18921_v29, %v11948_v53 }
 0x637   : > { %12054 = vst [vmem:[%s18970_s12 + $0xd0] sm:$0xff] %v12018_v44  ;;  %v12019_v19 = vmax.f32 %v11957_v36, 0.0 }
 0x638   : > { %12052 = vst [vmem:[%s18970_s12 + $0xc0] sm:$0xff] %v12016_v28  ;;  %v12017_v38 = vmax.f32 %v11949_v30, 0.0 }
 0x639   : > { %12055 = vst [vmem:[%s18970_s12 + $0xd8] sm:$0xff] %v12019_v19 }
 0x63a   : > { %12053 = vst [vmem:[%s18970_s12 + $0xc8] sm:$0xff] %v12017_v38  ;;  %v13140_v51 = vpop.f32.mrb[204].mxu1 }
 0x63b   : > { %v11970_v59 = vadd.f32 %v18943_v60, %v13140_v51  ;;  %v11961_v47 = vpop.f32.mrb[205].mxu1 }
 0x63c   : > { %v11962_v43 = vadd.f32 %v18935_v23, %v11961_v47  ;;  %v13141_v62 = vpop.f32.mrb[206].mxu1 }
 0x63d   : > { %v12022_v35 = vmax.f32 %v11970_v59, 0.0  ;;  %v11973_v29 = vadd.f32 %v18945_v40, %v13141_v62  ;;  %v11964_v1 = vpop.f32.mrb[207].mxu1 }
 0x63e   : > { %v12020_v0 = vmax.f32 %v11962_v43, 0.0  ;;  %v11965_v33 = vadd.f32 %v18937_v42, %v11964_v1 }
 0x63f   : > { %12058 = vst [vmem:[%s18970_s12 + $0xf0] sm:$0xff] %v12022_v35  ;;  %v12023_v14 = vmax.f32 %v11973_v29, 0.0 }
 0x640   : > { %12056 = vst [vmem:[%s18970_s12 + $0xe0] sm:$0xff] %v12020_v0  ;;  %v12021_v6 = vmax.f32 %v11965_v33, 0.0  ;;  %v11672_v11 = vpop.f32.mrb[108].mxu0 }
 0x641   : > { %12059 = vst [vmem:[%s18970_s12 + $0xf8] sm:$0xff] %v12023_v14  ;;  %v13214_v60 = vadd.f32 %v18814_v31, %v11672_v11  ;;  %v11674_v41 = vpop.f32.mrb[109].mxu0 }
 0x642   : > { %12057 = vst [vmem:[%s18970_s12 + $0xe8] sm:$0xff] %v12021_v6  ;;  %v11675_v23 = vpop.f32.mrb[110].mxu0 }
 0x643   : > { %v11850_v48 = vadd.f32 %v13214_v60, %v18965_v9  ;;  %v13215_v40 = vadd.f32 %v18814_v31, %v11675_v23  ;;  %v11677_v26 = vpop.f32.mrb[111].mxu0 }
 0x644   : > { %v13144_v42 = vpop.f32.mrb[208].mxu1 }
 0x645   : > { %v11992_v39 = vmax.f32 %v11850_v48, 0.0  ;;  %v11853_v13 = vadd.f32 %v13215_v40, %v18973_v20  ;;  %v11986_v61 = vadd.f32 %v18960_v55, %v13144_v42  ;;  %v11977_v18 = vpop.f32.mrb[209].mxu1 }
 0x646   : > { %v11978_v46 = vadd.f32 %v18951_v37, %v11977_v18  ;;  %v13145_v15 = vpop.f32.mrb[210].mxu1 }
 0x647   : > { %12028 = vst [vmem:[%s18970_s12] sm:$0xff] %v11992_v39  ;;  %v11993_v9 = vmax.f32 %v11853_v13, 0.0  ;;  %v12026_v52 = vmax.f32 %v11986_v61, 0.0  ;;  %v11989_v31 = vadd.f32 %v18962_v10, %v13145_v15  ;;  %v11980_v12 = vpop.f32.mrb[211].mxu1 }
 0x648   : > { %v12024_v7 = vmax.f32 %v11978_v46, 0.0  ;;  %v11981_v32 = vadd.f32 %v18953_v8, %v11980_v12 }
 0x649   : > { %12029 = vst [vmem:[%s18970_s12 + $0x8] sm:$0xff] %v11993_v9  ;;  %12062 = vst [vmem:[%s18970_s12 + $0x110] sm:$0xff] %v12026_v52  ;;  %v12027_v20 = vmax.f32 %v11989_v31, 0.0 }
 0x64a   : > { %12060 = vst [vmem:[%s18970_s12 + $0x100] sm:$0xff] %v12024_v7  ;;  %v12025_v55 = vmax.f32 %v11981_v32, 0.0 }
 0x64b   : > { %12063 = vst [vmem:[%s18970_s12 + $0x118] sm:$0xff] %v12027_v20 }
 0x64c   : > { %12061 = vst [vmem:[%s18970_s12 + $0x108] sm:$0xff] %v12025_v55 }
 0x64d PF: > { %s18_s27 = sadd.s32 1, %s14075_s27  }
 0x64e   : > { %p15_p5 = scmp.ge.s32.totalorder %s18_s27, 4  }
 0x650   :  { %17 = sbr.rel (!%p15_p5) target bundleno = 1 (0x1), region = 82 }

</bundles_post_ra>
